<compile_context>
chip_gen: v7x
topology: tpu7x:2x2x1
jax: 0.10.0
libtpu: 0.0.40
codegen_flags: <defaults>
</compile_context>

<pallas_src>
import math
import functools

import numpy as np
import jax
import jax.numpy as jnp
from jax.experimental import pallas as pl
from jax.experimental.pallas import tpu as pltpu

_VMEM = pl.BlockSpec(memory_space=pltpu.MemorySpace.VMEM)
_EPS = 1e-5


# ----------------------- fused 4-direction multi-layer LSTM -------------------
def _lstm_fused_kernel(x_ref, h0_ref, c0_ref, wih_ref, whh_ref, b_ref,
                       amat_ref, abias_ref,
                       out_ref, h1_ref, c1_ref,
                       gx_ref, seq_ref):
    """x_ref:   (S*N, 4H)   direction-stacked, time-major-flat layer-0 input
       h0/c0:   (L, N, H)   shared initial states (tiled across directions)
       wih/whh: (L, 4H, 16H) block-diagonal fused weights, gate columns [i|f|o|g]
       b:       (L, 1, 16H)
       amat:    (L*H, L*Ho) Conv1d(k=4,s=2,p=1) as a dense matrix; abias (1, L*Ho)
       out_ref: (S, N, 4H)  last-layer outputs (4 directions concatenated)
       h1/c1:   (L, N, Ho)  hc path (conv1d -> ReLU -> BN -> transpose)
       gx_ref:  (S*N, 16H)  VMEM scratch, hoisted input projection of current layer
       seq_ref: (S*N, 4H)   VMEM scratch, previous layer's output sequence"""
    S, N, _ = out_ref.shape
    L, _, H = h0_ref.shape
    G = 4 * H                 # per-gate width across the 4 directions
    Ho = h1_ref.shape[2]

    hsums, csums = [], []
    for l in range(L):
        src = x_ref[...] if l == 0 else seq_ref[...]
        # hoisted input projection: one big matmul, staged in scratch (off the
        # serial chain; per-step access is a static leading-offset ref slice)
        gx_ref[...] = jnp.dot(src, wih_ref[l],
                              preferred_element_type=jnp.float32) + b_ref[l]

        h0l = h0_ref[l]
        c0l = c0_ref[l]
        h = jnp.concatenate([h0l, h0l, h0l, h0l], axis=-1)       # (N, 4H)
        c = jnp.concatenate([c0l, c0l, c0l, c0l], axis=-1)
        whh = whh_ref[l]                                         # (4H, 16H)

        # TODO(synk): hold whh resident in the MXU (pltpu.matmul_push_rhs /
        # matmul_acc_lhs) instead of re-streaming it with jnp.dot every step.
        for t in range(S):                                       # unrolled recurrence
            gates = gx_ref[t * N:(t + 1) * N, :] + jnp.dot(
                h, whh, preferred_element_type=jnp.float32)      # (N, 16H)
            sg = jax.nn.sigmoid(gates[:, 0:3 * G])               # [i | f | o]
            gg = jnp.tanh(gates[:, 3 * G:4 * G])                 # [g]
            c = sg[:, G:2 * G] * c + sg[:, 0:G] * gg
            h = sg[:, 2 * G:3 * G] * jnp.tanh(c)
            if l == L - 1:
                out_ref[t] = h
            else:
                seq_ref[t * N:(t + 1) * N, :] = h

        # direction sums of final hidden / cell state for the hc path
        hsums.append(h[:, 0:H] + h[:, H:2 * H] + h[:, 2 * H:3 * H] + h[:, 3 * H:4 * H])
        csums.append(c[:, 0:H] + c[:, H:2 * H] + c[:, 2 * H:3 * H] + c[:, 3 * H:4 * H])

    # fused hc path: Conv1d(k=4,s=2,p=1) as one matmul -> ReLU -> BatchNorm1d
    hcmat = jnp.concatenate([jnp.concatenate(hsums, axis=1),
                             jnp.concatenate(csums, axis=1)], axis=0)  # (2N, L*H)
    conv = jnp.dot(hcmat, amat_ref[...],
                   preferred_element_type=jnp.float32) + abias_ref[...]
    conv = jnp.maximum(conv, 0.0)                                # (2N, L*Ho)
    cnt = 1.0 / float(N * Ho)
    for lo in range(L):
        seg_h = conv[0:N, lo * Ho:(lo + 1) * Ho]
        seg_c = conv[N:2 * N, lo * Ho:(lo + 1) * Ho]
        mu_h = jnp.sum(seg_h, keepdims=True) * cnt
        var_h = jnp.sum((seg_h - mu_h) ** 2, keepdims=True) * cnt
        h1_ref[lo] = (seg_h - mu_h) * jax.lax.rsqrt(var_h + _EPS)
        mu_c = jnp.sum(seg_c, keepdims=True) * cnt
        var_c = jnp.sum((seg_c - mu_c) ** 2, keepdims=True) * cnt
        c1_ref[lo] = (seg_c - mu_c) * jax.lax.rsqrt(var_c + _EPS)


# ------------- fully fused conv path: conv1 -> BN -> ReLU -> conv2 ------------
# -> BN -> ReLU -> [dropout=identity] -> 1x1 pooling -> ReLU, in ONE kernel.
def _conv_fused_kernel(x4_ref, w1k_ref, m1_ref, b1_ref, w2k_ref, m2_ref,
                       dmat_ref, b2_ref, pw_ref, pb_ref, o_ref, *, width):
    """x4:   (4, M1)  channel rows, lanes flattened (n, i, j), M1 = N*S*W
       w1k:  (9, 8, 4)   conv1 per-tap channel-mix weights; m1 (9, M1) tap masks
       w2k:  (16, 16, 8) conv2 per-tap weights;             m2 (16, M1) tap masks
       dmat: (M1, M2) stride-2 downsample matrix; b1 (8,1), b2 (16,1)
       pw:   (1, 16) pooling 1x1 conv; pb (1,1); o_ref (1, M2) lane-dense."""
    x4 = x4_ref[...]                                             # (4, M1)
    M1 = x4.shape[1]
    C1 = w1k_ref.shape[1]
    C2 = w2k_ref.shape[1]

    # conv2d_1 (3x3, s=1, p=1): lane-roll + validity mask + per-tap matmul
    y1 = jnp.zeros((C1, M1), jnp.float32)
    for k in range(9):
        kh, kw = divmod(k, 3)
        off = (kh - 1) * width + (kw - 1)
        shifted = x4 if off == 0 else pltpu.roll(x4, shift=(-off) % M1, axis=1)
        y1 = y1 + jnp.dot(w1k_ref[k], shifted * m1_ref[k:k + 1, :],
                          preferred_element_type=jnp.float32)
    y1 = y1 + b1_ref[...]
    inv1 = 1.0 / float(M1)
    mu1 = jnp.sum(y1, axis=1, keepdims=True) * inv1
    var1 = jnp.sum((y1 - mu1) ** 2, axis=1, keepdims=True) * inv1
    y1 = jnp.maximum((y1 - mu1) * jax.lax.rsqrt(var1 + _EPS), 0.0)   # (8, M1)

    # conv2d_2 (4x4, s=2, p=1): same roll+mask trick; the stride-2 selection is
    # one dense matmul (dmat) applied once after the tap sum.
    acc = jnp.zeros((C2, M1), jnp.float32)
    for k in range(16):
        kh, kw = divmod(k, 4)
        off = (kh - 1) * width + (kw - 1)
        shifted = y1 if off == 0 else pltpu.roll(y1, shift=(-off) % M1, axis=1)
        acc = acc + jnp.dot(w2k_ref[k], shifted * m2_ref[k:k + 1, :],
                            preferred_element_type=jnp.float32)
    y2 = jnp.dot(acc, dmat_ref[...],
                 preferred_element_type=jnp.float32) + b2_ref[...]   # (16, M2)
    M2 = y2.shape[1]
    inv2 = 1.0 / float(M2)
    mu2 = jnp.sum(y2, axis=1, keepdims=True) * inv2
    var2 = jnp.sum((y2 - mu2) ** 2, axis=1, keepdims=True) * inv2
    y2 = jnp.maximum((y2 - mu2) * jax.lax.rsqrt(var2 + _EPS), 0.0)
    # TODO(synk): Dropout2d(p=0.2) is stochastic in train mode; identity here.
    pooled = jnp.dot(pw_ref[...], y2,
                     preferred_element_type=jnp.float32) + pb_ref[...]
    o_ref[...] = jnp.maximum(pooled, 0.0)                            # (1, M2)


# --------------------------------- forward ------------------------------------
def lstm_conv_cell_forward(fused, x_in, h0, c0):
    """x_in: (N, 1, S, S); h0, c0: (num_layers, N, hidden).  mode='encode'."""
    N, _, S, S2 = x_in.shape
    L, _, H = h0.shape
    assert S == S2 == H, "module requires input_size == hidden_size == spatial size"
    D4 = 4 * H
    Ho = H // 2

    # directional inputs (x, rot90, flip180, rot270) stacked along features,
    # time-major, flattened to (S*N, 4H)
    x = x_in[:, 0]                                   # (N, S, S)
    xt = jnp.transpose(x, (1, 0, 2))                 # direction 0
    xT = jnp.transpose(x, (2, 0, 1))                 # direction 3 (x_flip270)
    x_all = jnp.concatenate(
        [xt, jnp.flip(xT, axis=0), jnp.flip(xt, axis=0), xT], axis=2)
    x_flat = x_all.reshape(S * N, D4)

    flops1 = int(L * (2 * (S * N) * D4 * (4 * D4) + S * 2 * N * D4 * (4 * D4))
                 + 2 * (2 * N) * (L * H) * (L * Ho))
    trans1 = int(L * S * N * 4 * D4)
    bytes1 = 4 * int(x_flat.size + h0.size + c0.size + fused["wih"].size
                     + fused["whh"].size + fused["b"].size + fused["amat"].size
                     + fused["abias"].size + S * N * D4 + 2 * L * N * Ho)

    out_seq, h1_conv, c1_conv = pl.pallas_call(
        _lstm_fused_kernel,
        out_shape=(jax.ShapeDtypeStruct((S, N, D4), jnp.float32),
                   jax.ShapeDtypeStruct((L, N, Ho), jnp.float32),
                   jax.ShapeDtypeStruct((L, N, Ho), jnp.float32)),
        in_specs=[_VMEM] * 8,
        out_specs=(_VMEM, _VMEM, _VMEM),
        scratch_shapes=[pltpu.VMEM((S * N, 4 * D4), jnp.float32),   # gx
                        pltpu.VMEM((S * N, D4), jnp.float32)],      # layer seq
        compiler_params=pltpu.CompilerParams(vmem_limit_bytes=32 * 1024 * 1024),
        cost_estimate=pl.CostEstimate(flops=flops1, transcendentals=trans1,
                                      bytes_accessed=bytes1),
    )(x_flat, h0, c0, fused["wih"], fused["whh"], fused["b"],
      fused["amat"], fused["abias"])

    # un-rotate the 4 directional streams into flattened (n,i,j) channel rows
    d0 = out_seq[:, :, 0:H]
    d1 = out_seq[:, :, H:2 * H]
    d2 = out_seq[:, :, 2 * H:3 * H]
    d3 = out_seq[:, :, 3 * H:4 * H]
    ch0 = jnp.transpose(d0, (1, 0, 2)).reshape(-1)
    ch1 = jnp.transpose(jnp.flip(d1, axis=0), (1, 2, 0)).reshape(-1)
    ch2 = jnp.transpose(jnp.flip(d2, axis=0), (1, 0, 2)).reshape(-1)
    ch3 = jnp.transpose(d3, (1, 2, 0)).reshape(-1)
    x4 = jnp.stack([ch0, ch1, ch2, ch3], axis=0)                 # (4, N*S*H)

    C1 = fused["w1k"].shape[1]
    C2 = fused["w2k"].shape[1]
    M1 = N * S * H
    So, Wo = S // 2, H // 2
    M2 = N * So * Wo
    flops2 = int(9 * 2 * C1 * 4 * M1 + 16 * 2 * C2 * C1 * M1
                 + 2 * C2 * M1 * M2 + 2 * C2 * M2)
    bytes2 = 4 * int(x4.size + fused["w1k"].size + fused["m1"].size
                     + fused["b1"].size + fused["w2k"].size + fused["m2"].size
                     + fused["dmat"].size + fused["b2"].size
                     + fused["pw"].size + fused["pb"].size + M2)

    out_flat = pl.pallas_call(
        functools.partial(_conv_fused_kernel, width=H),
        out_shape=jax.ShapeDtypeStruct((1, M2), jnp.float32),
        in_specs=[_VMEM] * 10,
        out_specs=_VMEM,
        compiler_params=pltpu.CompilerParams(vmem_limit_bytes=32 * 1024 * 1024),
        cost_estimate=pl.CostEstimate(flops=flops2, transcendentals=64,
                                      bytes_accessed=bytes2),
    )(x4, fused["w1k"], fused["m1"], fused["b1"], fused["w2k"], fused["m2"],
      fused["dmat"], fused["b2"], fused["pw"], fused["pb"])

    out_conv = out_flat.reshape(N, 1, So, Wo)
    return out_conv, h1_conv, c1_conv


# ------------------------------ parameter setup --------------------------------
def init_params(key, input_size, hidden_size, num_layers):
    """Raw PyTorch-layout parameters (same init distributions as the reference)."""
    keys = iter(jax.random.split(key, 64))

    def u(shape, scale):
        return jax.random.uniform(next(keys), shape, jnp.float32, -scale, scale)

    params = {}
    kl = 1.0 / math.sqrt(hidden_size)
    for name in ("lstm1", "lstm2", "lstm3", "lstm4"):
        layers = []
        for l in range(num_layers):
            in_l = input_size if l == 0 else hidden_size
            layers.append((u((4 * hidden_size, in_l), kl),         # W_ih
                           u((4 * hidden_size, hidden_size), kl),  # W_hh
                           u((4 * hidden_size,), kl),              # b_ih
                           u((4 * hidden_size,), kl)))             # b_hh
        params[name] = layers

    primary, secondary = 8, 16
    s1 = 1.0 / math.sqrt(4 * 3 * 3)
    s2 = 1.0 / math.sqrt(primary * 4 * 4)
    s3 = 1.0 / math.sqrt(num_layers * 4)
    s4 = 1.0 / math.sqrt(secondary)
    params["conv2d_1_w"] = u((primary, 4, 3, 3), s1)
    params["conv2d_1_b"] = u((primary,), s1)
    params["conv2d_2_w"] = u((secondary, primary, 4, 4), s2)
    params["conv2d_2_b"] = u((secondary,), s2)
    params["conv1d_w"] = u((num_layers, num_layers, 4), s3)
    params["conv1d_b"] = u((num_layers,), s3)
    params["pool_w"] = u((1, secondary, 1, 1), s4)
    params["pool_b"] = u((1,), s4)
    return params


def build_fused_params(params, hidden_size, num_layers, batch):
    """Eagerly (outside jit) build the fused block-diagonal LSTM weights (gate
    column order [i|f|o|g]), the Conv1d-as-matrix operator, and the conv-path
    per-tap weights, lane masks and stride-2 downsample matrix."""
    H, L, N = hidden_size, num_layers, batch
    S = W = H
    G = 4 * H            # per-gate width across the 4 directions
    GT = 4 * G           # total fused gate width
    names = ("lstm1", "lstm2", "lstm3", "lstm4")
    blk_of = {0: 0, 1: 1, 2: 3, 3: 2}   # torch gate (i,f,g,o) -> fused block [i,f,o,g]

    wih_s, whh_s, b_s = [], [], []
    for l in range(L):
        Wb = np.zeros((4 * H, GT), np.float32)
        Ub = np.zeros((4 * H, GT), np.float32)
        bb = np.zeros((1, GT), np.float32)
        for d, name in enumerate(names):
            wih, whh, bih, bhh = (np.asarray(a) for a in params[name][l])
            wt, ut, bt = wih.T, whh.T, bih + bhh
            for gt in range(4):
                blk = blk_of[gt]
                cols = slice(blk * G + d * H, blk * G + (d + 1) * H)
                Wb[d * H:(d + 1) * H, cols] = wt[:, gt * H:(gt + 1) * H]
                Ub[d * H:(d + 1) * H, cols] = ut[:, gt * H:(gt + 1) * H]
                bb[0, cols] = bt[gt * H:(gt + 1) * H]
        wih_s.append(Wb)
        whh_s.append(Ub)
        b_s.append(bb)

    # Conv1d(L->L, k=4, s=2, p=1) on length H as a dense (L*H, L*Ho) matrix
    Ho = H // 2
    w1d = np.asarray(params["conv1d_w"])
    b1d = np.asarray(params["conv1d_b"])
    A = np.zeros((L * H, L * Ho), np.float32)
    ab = np.zeros((1, L * Ho), np.float32)
    for lo in range(L):
        ab[0, lo * Ho:(lo + 1) * Ho] = b1d[lo]
        for li in range(L):
            for k in range(4):
                for j in range(Ho):
                    p = 2 * j - 1 + k
                    if 0 <= p < H:
                        A[li * H + p, lo * Ho + j] = w1d[lo, li, k]

    # conv2d path constants: per-tap channel-mix weights, validity masks over the
    # flattened (n, i, j) lane axis, and the stride-2 downsample matrix.
    M1 = N * S * W
    So, Wo = S // 2, W // 2
    M2 = N * So * Wo
    w1 = np.asarray(params["conv2d_1_w"])            # (8, 4, 3, 3)
    w2 = np.asarray(params["conv2d_2_w"])            # (16, 8, 4, 4)
    C1, Cin1 = w1.shape[0], w1.shape[1]
    C2 = w2.shape[0]

    ii = np.arange(S)[:, None]
    jj = np.arange(W)[None, :]

    def tap_mask(kh, kw):
        ok = ((ii + kh - 1 >= 0) & (ii + kh - 1 < S)
              & (jj + kw - 1 >= 0) & (jj + kw - 1 < W)).astype(np.float32)
        return np.tile(ok.reshape(-1), N)            # (M1,)

    w1k = np.zeros((9, C1, Cin1), np.float32)
    m1 = np.zeros((9, M1), np.float32)
    for k in range(9):
        kh, kw = divmod(k, 3)
        w1k[k] = w1[:, :, kh, kw]
        m1[k] = tap_mask(kh, kw)

    w2k = np.zeros((16, C2, C1), np.float32)
    m2 = np.zeros((16, M1), np.float32)
    for k in range(16):
        kh, kw = divmod(k, 4)
        w2k[k] = w2[:, :, kh, kw]
        m2[k] = tap_mask(kh, kw)

    D = np.zeros((M1, M2), np.float32)
    for n in range(N):
        for oi in range(So):
            for oj in range(Wo):
                D[n * S * W + (2 * oi) * W + (2 * oj),
                  n * So * Wo + oi * Wo + oj] = 1.0

    pw = np.asarray(params["pool_w"])
    return {
        "wih": jnp.asarray(np.stack(wih_s)),          # (L, 4H, 16H)
        "whh": jnp.asarray(np.stack(whh_s)),          # (L, 4H, 16H)
        "b": jnp.asarray(np.stack(b_s)),              # (L, 1, 16H)
        "amat": jnp.asarray(A),                       # (L*H, L*Ho)
        "abias": jnp.asarray(ab),                     # (1, L*Ho)
        "w1k": jnp.asarray(w1k),                      # (9, 8, 4)
        "m1": jnp.asarray(m1),                        # (9, M1)
        "b1": jnp.asarray(np.asarray(params["conv2d_1_b"]).reshape(-1, 1)),
        "w2k": jnp.asarray(w2k),                      # (16, 16, 8)
        "m2": jnp.asarray(m2),                        # (16, M1)
        "dmat": jnp.asarray(D),                       # (M1, M2)
        "b2": jnp.asarray(np.asarray(params["conv2d_2_b"]).reshape(-1, 1)),
        "pw": jnp.asarray(pw.reshape(1, -1)),         # (1, 16)
        "pb": jnp.asarray(np.asarray(params["pool_b"]).reshape(1, 1)),
    }


# ----------------------------------- main --------------------------------------
if __name__ == "__main__":
    # module requires input_size == hidden_size == spatial size S
    N, S, num_layers = 2, 16, 2
    input_size = hidden_size = S

    key = jax.random.PRNGKey(0)
    kx, kh, kc, kp = jax.random.split(key, 4)
    x = jax.random.normal(kx, (N, 1, S, S), jnp.float32)
    h0 = jax.random.normal(kh, (num_layers, N, hidden_size), jnp.float32)
    c0 = jax.random.normal(kc, (num_layers, N, hidden_size), jnp.float32)

    params = init_params(kp, input_size, hidden_size, num_layers)
    fused = build_fused_params(params, hidden_size, num_layers, N)

    fwd = jax.jit(functools.partial(lstm_conv_cell_forward, fused))
    out_conv, h1_conv, c1_conv = fwd(x, h0, c0)
    jax.block_until_ready((out_conv, h1_conv, c1_conv))

    assert out_conv.shape == (N, 1, S // 2, S // 2)
    assert h1_conv.shape == (num_layers, N, hidden_size // 2)
    assert c1_conv.shape == (num_layers, N, hidden_size // 2)
    assert bool(jnp.isfinite(out_conv).all())
    assert bool(jnp.isfinite(h1_conv).all()) and bool(jnp.isfinite(c1_conv).all())
    print("KERNEL_OK")
</pallas_src>

<mosaic_0001>
module attributes {stable_mosaic.version = 11 : i64} {
  func.func @_conv_fused_kernel(%arg0: memref<4x512xf32, #tpu.memory_space<vmem>>, %arg1: memref<9x8x4xf32, #tpu.memory_space<vmem>>, %arg2: memref<9x512xf32, #tpu.memory_space<vmem>>, %arg3: memref<8x1xf32, #tpu.memory_space<vmem>>, %arg4: memref<16x16x8xf32, #tpu.memory_space<vmem>>, %arg5: memref<16x512xf32, #tpu.memory_space<vmem>>, %arg6: memref<512x128xf32, #tpu.memory_space<vmem>>, %arg7: memref<16x1xf32, #tpu.memory_space<vmem>>, %arg8: memref<1x16xf32, #tpu.memory_space<vmem>>, %arg9: memref<1x1xf32, #tpu.memory_space<vmem>>, %arg10: memref<1x128xf32, #tpu.memory_space<vmem>>) attributes {dimension_semantics = [], scalar_prefetch = 0 : i64, scratch_operands = 0 : i64, tpu.core_type = #tpu.core_type<tc>} {
    %c0 = arith.constant 0 : index
    %c0_0 = arith.constant 0 : index
    %0 = vector.load %arg0[%c0, %c0_0] : memref<4x512xf32, #tpu.memory_space<vmem>>, vector<4x512xf32>
    %cst = arith.constant 0.000000e+00 : f32
    %1 = vector.broadcast %cst : f32 to vector<8x512xf32>
    %c17_i32 = arith.constant 17 : i32
    %2 = tpu.dynamic_rotate %0 by %c17_i32 dim 1 : vector<4x512xf32>, i32 -> vector<4x512xf32>
    %c0_1 = arith.constant 0 : index
    %c0_2 = arith.constant 0 : index
    %c0_3 = arith.constant 0 : index
    %3 = vector.load %arg1[%c0_1, %c0_2, %c0_3] : memref<9x8x4xf32, #tpu.memory_space<vmem>>, vector<1x8x4xf32>
    %4 = vector.shape_cast %3 : vector<1x8x4xf32> to vector<8x4xf32>
    %c0_4 = arith.constant 0 : index
    %c0_5 = arith.constant 0 : index
    %5 = vector.load %arg2[%c0_4, %c0_5] : memref<9x512xf32, #tpu.memory_space<vmem>>, vector<1x512xf32>
    %6 = vector.broadcast %5 : vector<1x512xf32> to vector<4x512xf32>
    %7 = arith.mulf %2, %6 : vector<4x512xf32>
    %cst_6 = arith.constant dense<0.000000e+00> : vector<8x512xf32>
    %8 = tpu.matmul %4, %7, %cst_6 {dimension_numbers = #tpu.dot_dimension_numbers<[1], [0], [0], [1], [0, 0, 1, 1], [], []>} : vector<8x4xf32>, vector<4x512xf32>, vector<8x512xf32> -> vector<8x512xf32>
    %9 = arith.addf %1, %8 : vector<8x512xf32>
    %c16_i32 = arith.constant 16 : i32
    %10 = tpu.dynamic_rotate %0 by %c16_i32 dim 1 : vector<4x512xf32>, i32 -> vector<4x512xf32>
    %c1 = arith.constant 1 : index
    %c0_7 = arith.constant 0 : index
    %c0_8 = arith.constant 0 : index
    %11 = vector.load %arg1[%c1, %c0_7, %c0_8] : memref<9x8x4xf32, #tpu.memory_space<vmem>>, vector<1x8x4xf32>
    %12 = vector.shape_cast %11 : vector<1x8x4xf32> to vector<8x4xf32>
    %c1_9 = arith.constant 1 : index
    %c0_10 = arith.constant 0 : index
    %13 = vector.load %arg2[%c1_9, %c0_10] : memref<9x512xf32, #tpu.memory_space<vmem>>, vector<1x512xf32>
    %14 = vector.broadcast %13 : vector<1x512xf32> to vector<4x512xf32>
    %15 = arith.mulf %10, %14 : vector<4x512xf32>
    %cst_11 = arith.constant dense<0.000000e+00> : vector<8x512xf32>
    %16 = tpu.matmul %12, %15, %cst_11 {dimension_numbers = #tpu.dot_dimension_numbers<[1], [0], [0], [1], [0, 0, 1, 1], [], []>} : vector<8x4xf32>, vector<4x512xf32>, vector<8x512xf32> -> vector<8x512xf32>
    %17 = arith.addf %9, %16 : vector<8x512xf32>
    %c15_i32 = arith.constant 15 : i32
    %18 = tpu.dynamic_rotate %0 by %c15_i32 dim 1 : vector<4x512xf32>, i32 -> vector<4x512xf32>
    %c2 = arith.constant 2 : index
    %c0_12 = arith.constant 0 : index
    %c0_13 = arith.constant 0 : index
    %19 = vector.load %arg1[%c2, %c0_12, %c0_13] : memref<9x8x4xf32, #tpu.memory_space<vmem>>, vector<1x8x4xf32>
    %20 = vector.shape_cast %19 : vector<1x8x4xf32> to vector<8x4xf32>
    %c2_14 = arith.constant 2 : index
    %c0_15 = arith.constant 0 : index
    %21 = vector.load %arg2[%c2_14, %c0_15] : memref<9x512xf32, #tpu.memory_space<vmem>>, vector<1x512xf32>
    %22 = vector.broadcast %21 : vector<1x512xf32> to vector<4x512xf32>
    %23 = arith.mulf %18, %22 : vector<4x512xf32>
    %cst_16 = arith.constant dense<0.000000e+00> : vector<8x512xf32>
    %24 = tpu.matmul %20, %23, %cst_16 {dimension_numbers = #tpu.dot_dimension_numbers<[1], [0], [0], [1], [0, 0, 1, 1], [], []>} : vector<8x4xf32>, vector<4x512xf32>, vector<8x512xf32> -> vector<8x512xf32>
    %25 = arith.addf %17, %24 : vector<8x512xf32>
    %c1_i32 = arith.constant 1 : i32
    %26 = tpu.dynamic_rotate %0 by %c1_i32 dim 1 : vector<4x512xf32>, i32 -> vector<4x512xf32>
    %c3 = arith.constant 3 : index
    %c0_17 = arith.constant 0 : index
    %c0_18 = arith.constant 0 : index
    %27 = vector.load %arg1[%c3, %c0_17, %c0_18] : memref<9x8x4xf32, #tpu.memory_space<vmem>>, vector<1x8x4xf32>
    %28 = vector.shape_cast %27 : vector<1x8x4xf32> to vector<8x4xf32>
    %c3_19 = arith.constant 3 : index
    %c0_20 = arith.constant 0 : index
    %29 = vector.load %arg2[%c3_19, %c0_20] : memref<9x512xf32, #tpu.memory_space<vmem>>, vector<1x512xf32>
    %30 = vector.broadcast %29 : vector<1x512xf32> to vector<4x512xf32>
    %31 = arith.mulf %26, %30 : vector<4x512xf32>
    %cst_21 = arith.constant dense<0.000000e+00> : vector<8x512xf32>
    %32 = tpu.matmul %28, %31, %cst_21 {dimension_numbers = #tpu.dot_dimension_numbers<[1], [0], [0], [1], [0, 0, 1, 1], [], []>} : vector<8x4xf32>, vector<4x512xf32>, vector<8x512xf32> -> vector<8x512xf32>
    %33 = arith.addf %25, %32 : vector<8x512xf32>
    %c4 = arith.constant 4 : index
    %c0_22 = arith.constant 0 : index
    %c0_23 = arith.constant 0 : index
    %34 = vector.load %arg1[%c4, %c0_22, %c0_23] : memref<9x8x4xf32, #tpu.memory_space<vmem>>, vector<1x8x4xf32>
    %35 = vector.shape_cast %34 : vector<1x8x4xf32> to vector<8x4xf32>
    %c4_24 = arith.constant 4 : index
    %c0_25 = arith.constant 0 : index
    %36 = vector.load %arg2[%c4_24, %c0_25] : memref<9x512xf32, #tpu.memory_space<vmem>>, vector<1x512xf32>
    %37 = vector.broadcast %36 : vector<1x512xf32> to vector<4x512xf32>
    %38 = arith.mulf %0, %37 : vector<4x512xf32>
    %cst_26 = arith.constant dense<0.000000e+00> : vector<8x512xf32>
    %39 = tpu.matmul %35, %38, %cst_26 {dimension_numbers = #tpu.dot_dimension_numbers<[1], [0], [0], [1], [0, 0, 1, 1], [], []>} : vector<8x4xf32>, vector<4x512xf32>, vector<8x512xf32> -> vector<8x512xf32>
    %40 = arith.addf %33, %39 : vector<8x512xf32>
    %c511_i32 = arith.constant 511 : i32
    %41 = tpu.dynamic_rotate %0 by %c511_i32 dim 1 : vector<4x512xf32>, i32 -> vector<4x512xf32>
    %c5 = arith.constant 5 : index
    %c0_27 = arith.constant 0 : index
    %c0_28 = arith.constant 0 : index
    %42 = vector.load %arg1[%c5, %c0_27, %c0_28] : memref<9x8x4xf32, #tpu.memory_space<vmem>>, vector<1x8x4xf32>
    %43 = vector.shape_cast %42 : vector<1x8x4xf32> to vector<8x4xf32>
    %c5_29 = arith.constant 5 : index
    %c0_30 = arith.constant 0 : index
    %44 = vector.load %arg2[%c5_29, %c0_30] : memref<9x512xf32, #tpu.memory_space<vmem>>, vector<1x512xf32>
    %45 = vector.broadcast %44 : vector<1x512xf32> to vector<4x512xf32>
    %46 = arith.mulf %41, %45 : vector<4x512xf32>
    %cst_31 = arith.constant dense<0.000000e+00> : vector<8x512xf32>
    %47 = tpu.matmul %43, %46, %cst_31 {dimension_numbers = #tpu.dot_dimension_numbers<[1], [0], [0], [1], [0, 0, 1, 1], [], []>} : vector<8x4xf32>, vector<4x512xf32>, vector<8x512xf32> -> vector<8x512xf32>
    %48 = arith.addf %40, %47 : vector<8x512xf32>
    %c497_i32 = arith.constant 497 : i32
    %49 = tpu.dynamic_rotate %0 by %c497_i32 dim 1 : vector<4x512xf32>, i32 -> vector<4x512xf32>
    %c6 = arith.constant 6 : index
    %c0_32 = arith.constant 0 : index
    %c0_33 = arith.constant 0 : index
    %50 = vector.load %arg1[%c6, %c0_32, %c0_33] : memref<9x8x4xf32, #tpu.memory_space<vmem>>, vector<1x8x4xf32>
    %51 = vector.shape_cast %50 : vector<1x8x4xf32> to vector<8x4xf32>
    %c6_34 = arith.constant 6 : index
    %c0_35 = arith.constant 0 : index
    %52 = vector.load %arg2[%c6_34, %c0_35] : memref<9x512xf32, #tpu.memory_space<vmem>>, vector<1x512xf32>
    %53 = vector.broadcast %52 : vector<1x512xf32> to vector<4x512xf32>
    %54 = arith.mulf %49, %53 : vector<4x512xf32>
    %cst_36 = arith.constant dense<0.000000e+00> : vector<8x512xf32>
    %55 = tpu.matmul %51, %54, %cst_36 {dimension_numbers = #tpu.dot_dimension_numbers<[1], [0], [0], [1], [0, 0, 1, 1], [], []>} : vector<8x4xf32>, vector<4x512xf32>, vector<8x512xf32> -> vector<8x512xf32>
    %56 = arith.addf %48, %55 : vector<8x512xf32>
    %c496_i32 = arith.constant 496 : i32
    %57 = tpu.dynamic_rotate %0 by %c496_i32 dim 1 : vector<4x512xf32>, i32 -> vector<4x512xf32>
    %c7 = arith.constant 7 : index
    %c0_37 = arith.constant 0 : index
    %c0_38 = arith.constant 0 : index
    %58 = vector.load %arg1[%c7, %c0_37, %c0_38] : memref<9x8x4xf32, #tpu.memory_space<vmem>>, vector<1x8x4xf32>
    %59 = vector.shape_cast %58 : vector<1x8x4xf32> to vector<8x4xf32>
    %c7_39 = arith.constant 7 : index
    %c0_40 = arith.constant 0 : index
    %60 = vector.load %arg2[%c7_39, %c0_40] : memref<9x512xf32, #tpu.memory_space<vmem>>, vector<1x512xf32>
    %61 = vector.broadcast %60 : vector<1x512xf32> to vector<4x512xf32>
    %62 = arith.mulf %57, %61 : vector<4x512xf32>
    %cst_41 = arith.constant dense<0.000000e+00> : vector<8x512xf32>
    %63 = tpu.matmul %59, %62, %cst_41 {dimension_numbers = #tpu.dot_dimension_numbers<[1], [0], [0], [1], [0, 0, 1, 1], [], []>} : vector<8x4xf32>, vector<4x512xf32>, vector<8x512xf32> -> vector<8x512xf32>
    %64 = arith.addf %56, %63 : vector<8x512xf32>
    %c495_i32 = arith.constant 495 : i32
    %65 = tpu.dynamic_rotate %0 by %c495_i32 dim 1 : vector<4x512xf32>, i32 -> vector<4x512xf32>
    %c8 = arith.constant 8 : index
    %c0_42 = arith.constant 0 : index
    %c0_43 = arith.constant 0 : index
    %66 = vector.load %arg1[%c8, %c0_42, %c0_43] : memref<9x8x4xf32, #tpu.memory_space<vmem>>, vector<1x8x4xf32>
    %67 = vector.shape_cast %66 : vector<1x8x4xf32> to vector<8x4xf32>
    %c8_44 = arith.constant 8 : index
    %c0_45 = arith.constant 0 : index
    %68 = vector.load %arg2[%c8_44, %c0_45] : memref<9x512xf32, #tpu.memory_space<vmem>>, vector<1x512xf32>
    %69 = vector.broadcast %68 : vector<1x512xf32> to vector<4x512xf32>
    %70 = arith.mulf %65, %69 : vector<4x512xf32>
    %cst_46 = arith.constant dense<0.000000e+00> : vector<8x512xf32>
    %71 = tpu.matmul %67, %70, %cst_46 {dimension_numbers = #tpu.dot_dimension_numbers<[1], [0], [0], [1], [0, 0, 1, 1], [], []>} : vector<8x4xf32>, vector<4x512xf32>, vector<8x512xf32> -> vector<8x512xf32>
    %72 = arith.addf %64, %71 : vector<8x512xf32>
    %c0_47 = arith.constant 0 : index
    %c0_48 = arith.constant 0 : index
    %73 = vector.load %arg3[%c0_47, %c0_48] : memref<8x1xf32, #tpu.memory_space<vmem>>, vector<8x1xf32>
    %74 = vector.broadcast %73 : vector<8x1xf32> to vector<8x512xf32>
    %75 = arith.addf %72, %74 : vector<8x512xf32>
    %cst_49 = arith.constant dense<0.000000e+00> : vector<8xf32>
    %76 = vector.multi_reduction <add>, %75, %cst_49 [1] : vector<8x512xf32> to vector<8xf32>
    %77 = vector.shape_cast %76 : vector<8xf32> to vector<8x1xf32>
    %cst_50 = arith.constant 0.001953125 : f32
    %78 = vector.broadcast %cst_50 : f32 to vector<8x1xf32>
    %79 = arith.mulf %77, %78 : vector<8x1xf32>
    %80 = vector.broadcast %79 : vector<8x1xf32> to vector<8x512xf32>
    %81 = arith.subf %75, %80 : vector<8x512xf32>
    %82 = arith.mulf %81, %81 : vector<8x512xf32>
    %cst_51 = arith.constant dense<0.000000e+00> : vector<8xf32>
    %83 = vector.multi_reduction <add>, %82, %cst_51 [1] : vector<8x512xf32> to vector<8xf32>
    %84 = vector.shape_cast %83 : vector<8xf32> to vector<8x1xf32>
    %cst_52 = arith.constant 0.001953125 : f32
    %85 = vector.broadcast %cst_52 : f32 to vector<8x1xf32>
    %86 = arith.mulf %84, %85 : vector<8x1xf32>
    %87 = vector.broadcast %79 : vector<8x1xf32> to vector<8x512xf32>
    %88 = arith.subf %75, %87 : vector<8x512xf32>
    %cst_53 = arith.constant 9.99999974E-6 : f32
    %89 = vector.broadcast %cst_53 : f32 to vector<8x1xf32>
    %90 = arith.addf %86, %89 : vector<8x1xf32>
    %91 = math.rsqrt %90 : vector<8x1xf32>
    %92 = vector.broadcast %91 : vector<8x1xf32> to vector<8x512xf32>
    %93 = arith.mulf %88, %92 : vector<8x512xf32>
    %cst_54 = arith.constant 0.000000e+00 : f32
    %94 = vector.broadcast %cst_54 : f32 to vector<8x512xf32>
    %95 = arith.maximumf %93, %94 : vector<8x512xf32>
    %cst_55 = arith.constant 0.000000e+00 : f32
    %96 = vector.broadcast %cst_55 : f32 to vector<16x512xf32>
    %c17_i32_56 = arith.constant 17 : i32
    %97 = tpu.dynamic_rotate %95 by %c17_i32_56 dim 1 : vector<8x512xf32>, i32 -> vector<8x512xf32>
    %c0_57 = arith.constant 0 : index
    %c0_58 = arith.constant 0 : index
    %c0_59 = arith.constant 0 : index
    %98 = vector.load %arg4[%c0_57, %c0_58, %c0_59] : memref<16x16x8xf32, #tpu.memory_space<vmem>>, vector<1x16x8xf32>
    %99 = vector.shape_cast %98 : vector<1x16x8xf32> to vector<16x8xf32>
    %c0_60 = arith.constant 0 : index
    %c0_61 = arith.constant 0 : index
    %100 = vector.load %arg5[%c0_60, %c0_61] : memref<16x512xf32, #tpu.memory_space<vmem>>, vector<1x512xf32>
    %101 = vector.broadcast %100 : vector<1x512xf32> to vector<8x512xf32>
    %102 = arith.mulf %97, %101 : vector<8x512xf32>
    %cst_62 = arith.constant dense<0.000000e+00> : vector<16x512xf32>
    %103 = tpu.matmul %99, %102, %cst_62 {dimension_numbers = #tpu.dot_dimension_numbers<[1], [0], [0], [1], [0, 0, 1, 1], [], []>} : vector<16x8xf32>, vector<8x512xf32>, vector<16x512xf32> -> vector<16x512xf32>
    %104 = arith.addf %96, %103 : vector<16x512xf32>
    %c16_i32_63 = arith.constant 16 : i32
    %105 = tpu.dynamic_rotate %95 by %c16_i32_63 dim 1 : vector<8x512xf32>, i32 -> vector<8x512xf32>
    %c1_64 = arith.constant 1 : index
    %c0_65 = arith.constant 0 : index
    %c0_66 = arith.constant 0 : index
    %106 = vector.load %arg4[%c1_64, %c0_65, %c0_66] : memref<16x16x8xf32, #tpu.memory_space<vmem>>, vector<1x16x8xf32>
    %107 = vector.shape_cast %106 : vector<1x16x8xf32> to vector<16x8xf32>
    %c1_67 = arith.constant 1 : index
    %c0_68 = arith.constant 0 : index
    %108 = vector.load %arg5[%c1_67, %c0_68] : memref<16x512xf32, #tpu.memory_space<vmem>>, vector<1x512xf32>
    %109 = vector.broadcast %108 : vector<1x512xf32> to vector<8x512xf32>
    %110 = arith.mulf %105, %109 : vector<8x512xf32>
    %cst_69 = arith.constant dense<0.000000e+00> : vector<16x512xf32>
    %111 = tpu.matmul %107, %110, %cst_69 {dimension_numbers = #tpu.dot_dimension_numbers<[1], [0], [0], [1], [0, 0, 1, 1], [], []>} : vector<16x8xf32>, vector<8x512xf32>, vector<16x512xf32> -> vector<16x512xf32>
    %112 = arith.addf %104, %111 : vector<16x512xf32>
    %c15_i32_70 = arith.constant 15 : i32
    %113 = tpu.dynamic_rotate %95 by %c15_i32_70 dim 1 : vector<8x512xf32>, i32 -> vector<8x512xf32>
    %c2_71 = arith.constant 2 : index
    %c0_72 = arith.constant 0 : index
    %c0_73 = arith.constant 0 : index
    %114 = vector.load %arg4[%c2_71, %c0_72, %c0_73] : memref<16x16x8xf32, #tpu.memory_space<vmem>>, vector<1x16x8xf32>
    %115 = vector.shape_cast %114 : vector<1x16x8xf32> to vector<16x8xf32>
    %c2_74 = arith.constant 2 : index
    %c0_75 = arith.constant 0 : index
    %116 = vector.load %arg5[%c2_74, %c0_75] : memref<16x512xf32, #tpu.memory_space<vmem>>, vector<1x512xf32>
    %117 = vector.broadcast %116 : vector<1x512xf32> to vector<8x512xf32>
    %118 = arith.mulf %113, %117 : vector<8x512xf32>
    %cst_76 = arith.constant dense<0.000000e+00> : vector<16x512xf32>
    %119 = tpu.matmul %115, %118, %cst_76 {dimension_numbers = #tpu.dot_dimension_numbers<[1], [0], [0], [1], [0, 0, 1, 1], [], []>} : vector<16x8xf32>, vector<8x512xf32>, vector<16x512xf32> -> vector<16x512xf32>
    %120 = arith.addf %112, %119 : vector<16x512xf32>
    %c14_i32 = arith.constant 14 : i32
    %121 = tpu.dynamic_rotate %95 by %c14_i32 dim 1 : vector<8x512xf32>, i32 -> vector<8x512xf32>
    %c3_77 = arith.constant 3 : index
    %c0_78 = arith.constant 0 : index
    %c0_79 = arith.constant 0 : index
    %122 = vector.load %arg4[%c3_77, %c0_78, %c0_79] : memref<16x16x8xf32, #tpu.memory_space<vmem>>, vector<1x16x8xf32>
    %123 = vector.shape_cast %122 : vector<1x16x8xf32> to vector<16x8xf32>
    %c3_80 = arith.constant 3 : index
    %c0_81 = arith.constant 0 : index
    %124 = vector.load %arg5[%c3_80, %c0_81] : memref<16x512xf32, #tpu.memory_space<vmem>>, vector<1x512xf32>
    %125 = vector.broadcast %124 : vector<1x512xf32> to vector<8x512xf32>
    %126 = arith.mulf %121, %125 : vector<8x512xf32>
    %cst_82 = arith.constant dense<0.000000e+00> : vector<16x512xf32>
    %127 = tpu.matmul %123, %126, %cst_82 {dimension_numbers = #tpu.dot_dimension_numbers<[1], [0], [0], [1], [0, 0, 1, 1], [], []>} : vector<16x8xf32>, vector<8x512xf32>, vector<16x512xf32> -> vector<16x512xf32>
    %128 = arith.addf %120, %127 : vector<16x512xf32>
    %c1_i32_83 = arith.constant 1 : i32
    %129 = tpu.dynamic_rotate %95 by %c1_i32_83 dim 1 : vector<8x512xf32>, i32 -> vector<8x512xf32>
    %c4_84 = arith.constant 4 : index
    %c0_85 = arith.constant 0 : index
    %c0_86 = arith.constant 0 : index
    %130 = vector.load %arg4[%c4_84, %c0_85, %c0_86] : memref<16x16x8xf32, #tpu.memory_space<vmem>>, vector<1x16x8xf32>
    %131 = vector.shape_cast %130 : vector<1x16x8xf32> to vector<16x8xf32>
    %c4_87 = arith.constant 4 : index
    %c0_88 = arith.constant 0 : index
    %132 = vector.load %arg5[%c4_87, %c0_88] : memref<16x512xf32, #tpu.memory_space<vmem>>, vector<1x512xf32>
    %133 = vector.broadcast %132 : vector<1x512xf32> to vector<8x512xf32>
    %134 = arith.mulf %129, %133 : vector<8x512xf32>
    %cst_89 = arith.constant dense<0.000000e+00> : vector<16x512xf32>
    %135 = tpu.matmul %131, %134, %cst_89 {dimension_numbers = #tpu.dot_dimension_numbers<[1], [0], [0], [1], [0, 0, 1, 1], [], []>} : vector<16x8xf32>, vector<8x512xf32>, vector<16x512xf32> -> vector<16x512xf32>
    %136 = arith.addf %128, %135 : vector<16x512xf32>
    %c5_90 = arith.constant 5 : index
    %c0_91 = arith.constant 0 : index
    %c0_92 = arith.constant 0 : index
    %137 = vector.load %arg4[%c5_90, %c0_91, %c0_92] : memref<16x16x8xf32, #tpu.memory_space<vmem>>, vector<1x16x8xf32>
    %138 = vector.shape_cast %137 : vector<1x16x8xf32> to vector<16x8xf32>
    %c5_93 = arith.constant 5 : index
    %c0_94 = arith.constant 0 : index
    %139 = vector.load %arg5[%c5_93, %c0_94] : memref<16x512xf32, #tpu.memory_space<vmem>>, vector<1x512xf32>
    %140 = vector.broadcast %139 : vector<1x512xf32> to vector<8x512xf32>
    %141 = arith.mulf %95, %140 : vector<8x512xf32>
    %cst_95 = arith.constant dense<0.000000e+00> : vector<16x512xf32>
    %142 = tpu.matmul %138, %141, %cst_95 {dimension_numbers = #tpu.dot_dimension_numbers<[1], [0], [0], [1], [0, 0, 1, 1], [], []>} : vector<16x8xf32>, vector<8x512xf32>, vector<16x512xf32> -> vector<16x512xf32>
    %143 = arith.addf %136, %142 : vector<16x512xf32>
    %c511_i32_96 = arith.constant 511 : i32
    %144 = tpu.dynamic_rotate %95 by %c511_i32_96 dim 1 : vector<8x512xf32>, i32 -> vector<8x512xf32>
    %c6_97 = arith.constant 6 : index
    %c0_98 = arith.constant 0 : index
    %c0_99 = arith.constant 0 : index
    %145 = vector.load %arg4[%c6_97, %c0_98, %c0_99] : memref<16x16x8xf32, #tpu.memory_space<vmem>>, vector<1x16x8xf32>
    %146 = vector.shape_cast %145 : vector<1x16x8xf32> to vector<16x8xf32>
    %c6_100 = arith.constant 6 : index
    %c0_101 = arith.constant 0 : index
    %147 = vector.load %arg5[%c6_100, %c0_101] : memref<16x512xf32, #tpu.memory_space<vmem>>, vector<1x512xf32>
    %148 = vector.broadcast %147 : vector<1x512xf32> to vector<8x512xf32>
    %149 = arith.mulf %144, %148 : vector<8x512xf32>
    %cst_102 = arith.constant dense<0.000000e+00> : vector<16x512xf32>
    %150 = tpu.matmul %146, %149, %cst_102 {dimension_numbers = #tpu.dot_dimension_numbers<[1], [0], [0], [1], [0, 0, 1, 1], [], []>} : vector<16x8xf32>, vector<8x512xf32>, vector<16x512xf32> -> vector<16x512xf32>
    %151 = arith.addf %143, %150 : vector<16x512xf32>
    %c510_i32 = arith.constant 510 : i32
    %152 = tpu.dynamic_rotate %95 by %c510_i32 dim 1 : vector<8x512xf32>, i32 -> vector<8x512xf32>
    %c7_103 = arith.constant 7 : index
    %c0_104 = arith.constant 0 : index
    %c0_105 = arith.constant 0 : index
    %153 = vector.load %arg4[%c7_103, %c0_104, %c0_105] : memref<16x16x8xf32, #tpu.memory_space<vmem>>, vector<1x16x8xf32>
    %154 = vector.shape_cast %153 : vector<1x16x8xf32> to vector<16x8xf32>
    %c7_106 = arith.constant 7 : index
    %c0_107 = arith.constant 0 : index
    %155 = vector.load %arg5[%c7_106, %c0_107] : memref<16x512xf32, #tpu.memory_space<vmem>>, vector<1x512xf32>
    %156 = vector.broadcast %155 : vector<1x512xf32> to vector<8x512xf32>
    %157 = arith.mulf %152, %156 : vector<8x512xf32>
    %cst_108 = arith.constant dense<0.000000e+00> : vector<16x512xf32>
    %158 = tpu.matmul %154, %157, %cst_108 {dimension_numbers = #tpu.dot_dimension_numbers<[1], [0], [0], [1], [0, 0, 1, 1], [], []>} : vector<16x8xf32>, vector<8x512xf32>, vector<16x512xf32> -> vector<16x512xf32>
    %159 = arith.addf %151, %158 : vector<16x512xf32>
    %c497_i32_109 = arith.constant 497 : i32
    %160 = tpu.dynamic_rotate %95 by %c497_i32_109 dim 1 : vector<8x512xf32>, i32 -> vector<8x512xf32>
    %c8_110 = arith.constant 8 : index
    %c0_111 = arith.constant 0 : index
    %c0_112 = arith.constant 0 : index
    %161 = vector.load %arg4[%c8_110, %c0_111, %c0_112] : memref<16x16x8xf32, #tpu.memory_space<vmem>>, vector<1x16x8xf32>
    %162 = vector.shape_cast %161 : vector<1x16x8xf32> to vector<16x8xf32>
    %c8_113 = arith.constant 8 : index
    %c0_114 = arith.constant 0 : index
    %163 = vector.load %arg5[%c8_113, %c0_114] : memref<16x512xf32, #tpu.memory_space<vmem>>, vector<1x512xf32>
    %164 = vector.broadcast %163 : vector<1x512xf32> to vector<8x512xf32>
    %165 = arith.mulf %160, %164 : vector<8x512xf32>
    %cst_115 = arith.constant dense<0.000000e+00> : vector<16x512xf32>
    %166 = tpu.matmul %162, %165, %cst_115 {dimension_numbers = #tpu.dot_dimension_numbers<[1], [0], [0], [1], [0, 0, 1, 1], [], []>} : vector<16x8xf32>, vector<8x512xf32>, vector<16x512xf32> -> vector<16x512xf32>
    %167 = arith.addf %159, %166 : vector<16x512xf32>
    %c496_i32_116 = arith.constant 496 : i32
    %168 = tpu.dynamic_rotate %95 by %c496_i32_116 dim 1 : vector<8x512xf32>, i32 -> vector<8x512xf32>
    %c9 = arith.constant 9 : index
    %c0_117 = arith.constant 0 : index
    %c0_118 = arith.constant 0 : index
    %169 = vector.load %arg4[%c9, %c0_117, %c0_118] : memref<16x16x8xf32, #tpu.memory_space<vmem>>, vector<1x16x8xf32>
    %170 = vector.shape_cast %169 : vector<1x16x8xf32> to vector<16x8xf32>
    %c9_119 = arith.constant 9 : index
    %c0_120 = arith.constant 0 : index
    %171 = vector.load %arg5[%c9_119, %c0_120] : memref<16x512xf32, #tpu.memory_space<vmem>>, vector<1x512xf32>
    %172 = vector.broadcast %171 : vector<1x512xf32> to vector<8x512xf32>
    %173 = arith.mulf %168, %172 : vector<8x512xf32>
    %cst_121 = arith.constant dense<0.000000e+00> : vector<16x512xf32>
    %174 = tpu.matmul %170, %173, %cst_121 {dimension_numbers = #tpu.dot_dimension_numbers<[1], [0], [0], [1], [0, 0, 1, 1], [], []>} : vector<16x8xf32>, vector<8x512xf32>, vector<16x512xf32> -> vector<16x512xf32>
    %175 = arith.addf %167, %174 : vector<16x512xf32>
    %c495_i32_122 = arith.constant 495 : i32
    %176 = tpu.dynamic_rotate %95 by %c495_i32_122 dim 1 : vector<8x512xf32>, i32 -> vector<8x512xf32>
    %c10 = arith.constant 10 : index
    %c0_123 = arith.constant 0 : index
    %c0_124 = arith.constant 0 : index
    %177 = vector.load %arg4[%c10, %c0_123, %c0_124] : memref<16x16x8xf32, #tpu.memory_space<vmem>>, vector<1x16x8xf32>
    %178 = vector.shape_cast %177 : vector<1x16x8xf32> to vector<16x8xf32>
    %c10_125 = arith.constant 10 : index
    %c0_126 = arith.constant 0 : index
    %179 = vector.load %arg5[%c10_125, %c0_126] : memref<16x512xf32, #tpu.memory_space<vmem>>, vector<1x512xf32>
    %180 = vector.broadcast %179 : vector<1x512xf32> to vector<8x512xf32>
    %181 = arith.mulf %176, %180 : vector<8x512xf32>
    %cst_127 = arith.constant dense<0.000000e+00> : vector<16x512xf32>
    %182 = tpu.matmul %178, %181, %cst_127 {dimension_numbers = #tpu.dot_dimension_numbers<[1], [0], [0], [1], [0, 0, 1, 1], [], []>} : vector<16x8xf32>, vector<8x512xf32>, vector<16x512xf32> -> vector<16x512xf32>
    %183 = arith.addf %175, %182 : vector<16x512xf32>
    %c494_i32 = arith.constant 494 : i32
    %184 = tpu.dynamic_rotate %95 by %c494_i32 dim 1 : vector<8x512xf32>, i32 -> vector<8x512xf32>
    %c11 = arith.constant 11 : index
    %c0_128 = arith.constant 0 : index
    %c0_129 = arith.constant 0 : index
    %185 = vector.load %arg4[%c11, %c0_128, %c0_129] : memref<16x16x8xf32, #tpu.memory_space<vmem>>, vector<1x16x8xf32>
    %186 = vector.shape_cast %185 : vector<1x16x8xf32> to vector<16x8xf32>
    %c11_130 = arith.constant 11 : index
    %c0_131 = arith.constant 0 : index
    %187 = vector.load %arg5[%c11_130, %c0_131] : memref<16x512xf32, #tpu.memory_space<vmem>>, vector<1x512xf32>
    %188 = vector.broadcast %187 : vector<1x512xf32> to vector<8x512xf32>
    %189 = arith.mulf %184, %188 : vector<8x512xf32>
    %cst_132 = arith.constant dense<0.000000e+00> : vector<16x512xf32>
    %190 = tpu.matmul %186, %189, %cst_132 {dimension_numbers = #tpu.dot_dimension_numbers<[1], [0], [0], [1], [0, 0, 1, 1], [], []>} : vector<16x8xf32>, vector<8x512xf32>, vector<16x512xf32> -> vector<16x512xf32>
    %191 = arith.addf %183, %190 : vector<16x512xf32>
    %c481_i32 = arith.constant 481 : i32
    %192 = tpu.dynamic_rotate %95 by %c481_i32 dim 1 : vector<8x512xf32>, i32 -> vector<8x512xf32>
    %c12 = arith.constant 12 : index
    %c0_133 = arith.constant 0 : index
    %c0_134 = arith.constant 0 : index
    %193 = vector.load %arg4[%c12, %c0_133, %c0_134] : memref<16x16x8xf32, #tpu.memory_space<vmem>>, vector<1x16x8xf32>
    %194 = vector.shape_cast %193 : vector<1x16x8xf32> to vector<16x8xf32>
    %c12_135 = arith.constant 12 : index
    %c0_136 = arith.constant 0 : index
    %195 = vector.load %arg5[%c12_135, %c0_136] : memref<16x512xf32, #tpu.memory_space<vmem>>, vector<1x512xf32>
    %196 = vector.broadcast %195 : vector<1x512xf32> to vector<8x512xf32>
    %197 = arith.mulf %192, %196 : vector<8x512xf32>
    %cst_137 = arith.constant dense<0.000000e+00> : vector<16x512xf32>
    %198 = tpu.matmul %194, %197, %cst_137 {dimension_numbers = #tpu.dot_dimension_numbers<[1], [0], [0], [1], [0, 0, 1, 1], [], []>} : vector<16x8xf32>, vector<8x512xf32>, vector<16x512xf32> -> vector<16x512xf32>
    %199 = arith.addf %191, %198 : vector<16x512xf32>
    %c480_i32 = arith.constant 480 : i32
    %200 = tpu.dynamic_rotate %95 by %c480_i32 dim 1 : vector<8x512xf32>, i32 -> vector<8x512xf32>
    %c13 = arith.constant 13 : index
    %c0_138 = arith.constant 0 : index
    %c0_139 = arith.constant 0 : index
    %201 = vector.load %arg4[%c13, %c0_138, %c0_139] : memref<16x16x8xf32, #tpu.memory_space<vmem>>, vector<1x16x8xf32>
    %202 = vector.shape_cast %201 : vector<1x16x8xf32> to vector<16x8xf32>
    %c13_140 = arith.constant 13 : index
    %c0_141 = arith.constant 0 : index
    %203 = vector.load %arg5[%c13_140, %c0_141] : memref<16x512xf32, #tpu.memory_space<vmem>>, vector<1x512xf32>
    %204 = vector.broadcast %203 : vector<1x512xf32> to vector<8x512xf32>
    %205 = arith.mulf %200, %204 : vector<8x512xf32>
    %cst_142 = arith.constant dense<0.000000e+00> : vector<16x512xf32>
    %206 = tpu.matmul %202, %205, %cst_142 {dimension_numbers = #tpu.dot_dimension_numbers<[1], [0], [0], [1], [0, 0, 1, 1], [], []>} : vector<16x8xf32>, vector<8x512xf32>, vector<16x512xf32> -> vector<16x512xf32>
    %207 = arith.addf %199, %206 : vector<16x512xf32>
    %c479_i32 = arith.constant 479 : i32
    %208 = tpu.dynamic_rotate %95 by %c479_i32 dim 1 : vector<8x512xf32>, i32 -> vector<8x512xf32>
    %c14 = arith.constant 14 : index
    %c0_143 = arith.constant 0 : index
    %c0_144 = arith.constant 0 : index
    %209 = vector.load %arg4[%c14, %c0_143, %c0_144] : memref<16x16x8xf32, #tpu.memory_space<vmem>>, vector<1x16x8xf32>
    %210 = vector.shape_cast %209 : vector<1x16x8xf32> to vector<16x8xf32>
    %c14_145 = arith.constant 14 : index
    %c0_146 = arith.constant 0 : index
    %211 = vector.load %arg5[%c14_145, %c0_146] : memref<16x512xf32, #tpu.memory_space<vmem>>, vector<1x512xf32>
    %212 = vector.broadcast %211 : vector<1x512xf32> to vector<8x512xf32>
    %213 = arith.mulf %208, %212 : vector<8x512xf32>
    %cst_147 = arith.constant dense<0.000000e+00> : vector<16x512xf32>
    %214 = tpu.matmul %210, %213, %cst_147 {dimension_numbers = #tpu.dot_dimension_numbers<[1], [0], [0], [1], [0, 0, 1, 1], [], []>} : vector<16x8xf32>, vector<8x512xf32>, vector<16x512xf32> -> vector<16x512xf32>
    %215 = arith.addf %207, %214 : vector<16x512xf32>
    %c478_i32 = arith.constant 478 : i32
    %216 = tpu.dynamic_rotate %95 by %c478_i32 dim 1 : vector<8x512xf32>, i32 -> vector<8x512xf32>
    %c15 = arith.constant 15 : index
    %c0_148 = arith.constant 0 : index
    %c0_149 = arith.constant 0 : index
    %217 = vector.load %arg4[%c15, %c0_148, %c0_149] : memref<16x16x8xf32, #tpu.memory_space<vmem>>, vector<1x16x8xf32>
    %218 = vector.shape_cast %217 : vector<1x16x8xf32> to vector<16x8xf32>
    %c15_150 = arith.constant 15 : index
    %c0_151 = arith.constant 0 : index
    %219 = vector.load %arg5[%c15_150, %c0_151] : memref<16x512xf32, #tpu.memory_space<vmem>>, vector<1x512xf32>
    %220 = vector.broadcast %219 : vector<1x512xf32> to vector<8x512xf32>
    %221 = arith.mulf %216, %220 : vector<8x512xf32>
    %cst_152 = arith.constant dense<0.000000e+00> : vector<16x512xf32>
    %222 = tpu.matmul %218, %221, %cst_152 {dimension_numbers = #tpu.dot_dimension_numbers<[1], [0], [0], [1], [0, 0, 1, 1], [], []>} : vector<16x8xf32>, vector<8x512xf32>, vector<16x512xf32> -> vector<16x512xf32>
    %223 = arith.addf %215, %222 : vector<16x512xf32>
    %c0_153 = arith.constant 0 : index
    %c0_154 = arith.constant 0 : index
    %224 = vector.load %arg6[%c0_153, %c0_154] : memref<512x128xf32, #tpu.memory_space<vmem>>, vector<512x128xf32>
    %cst_155 = arith.constant dense<0.000000e+00> : vector<16x128xf32>
    %225 = tpu.matmul %223, %224, %cst_155 {dimension_numbers = #tpu.dot_dimension_numbers<[1], [0], [0], [1], [0, 0, 1, 1], [], []>} : vector<16x512xf32>, vector<512x128xf32>, vector<16x128xf32> -> vector<16x128xf32>
    %c0_156 = arith.constant 0 : index
    %c0_157 = arith.constant 0 : index
    %226 = vector.load %arg7[%c0_156, %c0_157] : memref<16x1xf32, #tpu.memory_space<vmem>>, vector<16x1xf32>
    %227 = vector.broadcast %226 : vector<16x1xf32> to vector<16x128xf32>
    %228 = arith.addf %225, %227 : vector<16x128xf32>
    %cst_158 = arith.constant dense<0.000000e+00> : vector<16xf32>
    %229 = vector.multi_reduction <add>, %228, %cst_158 [1] : vector<16x128xf32> to vector<16xf32>
    %230 = vector.shape_cast %229 : vector<16xf32> to vector<16x1xf32>
    %cst_159 = arith.constant 7.812500e-03 : f32
    %231 = vector.broadcast %cst_159 : f32 to vector<16x1xf32>
    %232 = arith.mulf %230, %231 : vector<16x1xf32>
    %233 = vector.broadcast %232 : vector<16x1xf32> to vector<16x128xf32>
    %234 = arith.subf %228, %233 : vector<16x128xf32>
    %235 = arith.mulf %234, %234 : vector<16x128xf32>
    %cst_160 = arith.constant dense<0.000000e+00> : vector<16xf32>
    %236 = vector.multi_reduction <add>, %235, %cst_160 [1] : vector<16x128xf32> to vector<16xf32>
    %237 = vector.shape_cast %236 : vector<16xf32> to vector<16x1xf32>
    %cst_161 = arith.constant 7.812500e-03 : f32
    %238 = vector.broadcast %cst_161 : f32 to vector<16x1xf32>
    %239 = arith.mulf %237, %238 : vector<16x1xf32>
    %240 = vector.broadcast %232 : vector<16x1xf32> to vector<16x128xf32>
    %241 = arith.subf %228, %240 : vector<16x128xf32>
    %cst_162 = arith.constant 9.99999974E-6 : f32
    %242 = vector.broadcast %cst_162 : f32 to vector<16x1xf32>
    %243 = arith.addf %239, %242 : vector<16x1xf32>
    %244 = math.rsqrt %243 : vector<16x1xf32>
    %245 = vector.broadcast %244 : vector<16x1xf32> to vector<16x128xf32>
    %246 = arith.mulf %241, %245 : vector<16x128xf32>
    %cst_163 = arith.constant 0.000000e+00 : f32
    %247 = vector.broadcast %cst_163 : f32 to vector<16x128xf32>
    %248 = arith.maximumf %246, %247 : vector<16x128xf32>
    %c0_164 = arith.constant 0 : index
    %c0_165 = arith.constant 0 : index
    %249 = vector.load %arg8[%c0_164, %c0_165] : memref<1x16xf32, #tpu.memory_space<vmem>>, vector<1x16xf32>
    %cst_166 = arith.constant dense<0.000000e+00> : vector<1x128xf32>
    %250 = tpu.matmul %249, %248, %cst_166 {dimension_numbers = #tpu.dot_dimension_numbers<[1], [0], [0], [1], [0, 0, 1, 1], [], []>} : vector<1x16xf32>, vector<16x128xf32>, vector<1x128xf32> -> vector<1x128xf32>
    %c0_167 = arith.constant 0 : index
    %c0_168 = arith.constant 0 : index
    %251 = vector.load %arg9[%c0_167, %c0_168] : memref<1x1xf32, #tpu.memory_space<vmem>>, vector<1x1xf32>
    %252 = vector.broadcast %251 : vector<1x1xf32> to vector<1x128xf32>
    %253 = arith.addf %250, %252 : vector<1x128xf32>
    %cst_169 = arith.constant 0.000000e+00 : f32
    %254 = vector.broadcast %cst_169 : f32 to vector<1x128xf32>
    %255 = arith.maximumf %253, %254 : vector<1x128xf32>
    %c0_170 = arith.constant 0 : index
    %c0_171 = arith.constant 0 : index
    %256 = vector.load %arg10[%c0_170, %c0_171] : memref<1x128xf32, #tpu.memory_space<vmem>>, vector<1x128xf32>
    tpu.vector_store %arg10[%c0_170, %c0_171], %255 {strides = array<i32>} : memref<1x128xf32, #tpu.memory_space<vmem>>, vector<1x128xf32>,
    return
  }
}

module attributes {stable_mosaic.version = 11 : i64} {
  func.func @_lstm_fused_kernel(%arg0: memref<32x64xf32, #tpu.memory_space<vmem>>, %arg1: memref<2x2x16xf32, #tpu.memory_space<vmem>>, %arg2: memref<2x2x16xf32, #tpu.memory_space<vmem>>, %arg3: memref<2x64x256xf32, #tpu.memory_space<vmem>>, %arg4: memref<2x64x256xf32, #tpu.memory_space<vmem>>, %arg5: memref<2x1x256xf32, #tpu.memory_space<vmem>>, %arg6: memref<32x16xf32, #tpu.memory_space<vmem>>, %arg7: memref<1x16xf32, #tpu.memory_space<vmem>>, %arg8: memref<16x2x64xf32, #tpu.memory_space<vmem>>, %arg9: memref<2x2x8xf32, #tpu.memory_space<vmem>>, %arg10: memref<2x2x8xf32, #tpu.memory_space<vmem>>, %arg11: memref<32x256xf32, #tpu.memory_space<vmem>>, %arg12: memref<32x64xf32, #tpu.memory_space<vmem>>) attributes {dimension_semantics = [], scalar_prefetch = 0 : i64, scratch_operands = 2 : i64, tpu.core_type = #tpu.core_type<tc>} {
    %c0 = arith.constant 0 : index
    %c0_0 = arith.constant 0 : index
    %0 = vector.load %arg0[%c0, %c0_0] : memref<32x64xf32, #tpu.memory_space<vmem>>, vector<32x64xf32>
    %c0_1 = arith.constant 0 : index
    %c0_2 = arith.constant 0 : index
    %c0_3 = arith.constant 0 : index
    %1 = vector.load %arg3[%c0_1, %c0_2, %c0_3] : memref<2x64x256xf32, #tpu.memory_space<vmem>>, vector<1x64x256xf32>
    %2 = vector.shape_cast %1 : vector<1x64x256xf32> to vector<64x256xf32>
    %cst = arith.constant dense<0.000000e+00> : vector<32x256xf32>
    %3 = tpu.matmul %0, %2, %cst {dimension_numbers = #tpu.dot_dimension_numbers<[1], [0], [0], [1], [0, 0, 1, 1], [], []>} : vector<32x64xf32>, vector<64x256xf32>, vector<32x256xf32> -> vector<32x256xf32>
    %c0_4 = arith.constant 0 : index
    %c0_5 = arith.constant 0 : index
    %c0_6 = arith.constant 0 : index
    %4 = vector.load %arg5[%c0_4, %c0_5, %c0_6] : memref<2x1x256xf32, #tpu.memory_space<vmem>>, vector<1x1x256xf32>
    %5 = vector.shape_cast %4 : vector<1x1x256xf32> to vector<1x256xf32>
    %6 = vector.broadcast %5 : vector<1x256xf32> to vector<32x256xf32>
    %7 = arith.addf %3, %6 : vector<32x256xf32>
    %c0_7 = arith.constant 0 : index
    %c0_8 = arith.constant 0 : index
    %8 = vector.load %arg11[%c0_7, %c0_8] : memref<32x256xf32, #tpu.memory_space<vmem>>, vector<32x256xf32>
    tpu.vector_store %arg11[%c0_7, %c0_8], %7 {strides = array<i32>} : memref<32x256xf32, #tpu.memory_space<vmem>>, vector<32x256xf32>,
    %c0_9 = arith.constant 0 : index
    %c0_10 = arith.constant 0 : index
    %c0_11 = arith.constant 0 : index
    %9 = vector.load %arg1[%c0_9, %c0_10, %c0_11] : memref<2x2x16xf32, #tpu.memory_space<vmem>>, vector<1x2x16xf32>
    %10 = vector.shape_cast %9 : vector<1x2x16xf32> to vector<2x16xf32>
    %c0_12 = arith.constant 0 : index
    %c0_13 = arith.constant 0 : index
    %c0_14 = arith.constant 0 : index
    %11 = vector.load %arg2[%c0_12, %c0_13, %c0_14] : memref<2x2x16xf32, #tpu.memory_space<vmem>>, vector<1x2x16xf32>
    %12 = vector.shape_cast %11 : vector<1x2x16xf32> to vector<2x16xf32>
    %13 = tpu.concatenate %10, %10, %10, %10 in 1 : vector<2x16xf32>, vector<2x16xf32>, vector<2x16xf32>, vector<2x16xf32> -> vector<2x64xf32>
    %14 = tpu.concatenate %12, %12, %12, %12 in 1 : vector<2x16xf32>, vector<2x16xf32>, vector<2x16xf32>, vector<2x16xf32> -> vector<2x64xf32>
    %c0_15 = arith.constant 0 : index
    %c0_16 = arith.constant 0 : index
    %c0_17 = arith.constant 0 : index
    %15 = vector.load %arg4[%c0_15, %c0_16, %c0_17] : memref<2x64x256xf32, #tpu.memory_space<vmem>>, vector<1x64x256xf32>
    %16 = vector.shape_cast %15 : vector<1x64x256xf32> to vector<64x256xf32>
    %c0_18 = arith.constant 0 : index
    %c0_19 = arith.constant 0 : index
    %17 = vector.load %arg11[%c0_18, %c0_19] : memref<32x256xf32, #tpu.memory_space<vmem>>, vector<2x256xf32>
    %cst_20 = arith.constant dense<0.000000e+00> : vector<2x256xf32>
    %18 = tpu.matmul %13, %16, %cst_20 {dimension_numbers = #tpu.dot_dimension_numbers<[1], [0], [0], [1], [0, 0, 1, 1], [], []>} : vector<2x64xf32>, vector<64x256xf32>, vector<2x256xf32> -> vector<2x256xf32>
    %19 = arith.addf %17, %18 : vector<2x256xf32>
    %20 = vector.extract_strided_slice %19 {offsets = [0, 0], sizes = [2, 192], strides = [1, 1]} : vector<2x256xf32> to vector<2x192xf32>
    %21 = arith.negf %20 : vector<2x192xf32>
    %22 = math.exp %21 : vector<2x192xf32>
    %cst_21 = arith.constant 1.000000e+00 : f32
    %23 = vector.broadcast %cst_21 : f32 to vector<2x192xf32>
    %24 = arith.addf %23, %22 : vector<2x192xf32>
    %25 = arith.divf %23, %24 : vector<2x192xf32>
    %26 = vector.extract_strided_slice %19 {offsets = [0, 192], sizes = [2, 64], strides = [1, 1]} : vector<2x256xf32> to vector<2x64xf32>
    %27 = math.tanh %26 : vector<2x64xf32>
    %28 = vector.extract_strided_slice %25 {offsets = [0, 64], sizes = [2, 64], strides = [1, 1]} : vector<2x192xf32> to vector<2x64xf32>
    %29 = arith.mulf %28, %14 : vector<2x64xf32>
    %30 = vector.extract_strided_slice %25 {offsets = [0, 0], sizes = [2, 64], strides = [1, 1]} : vector<2x192xf32> to vector<2x64xf32>
    %31 = arith.mulf %30, %27 : vector<2x64xf32>
    %32 = arith.addf %29, %31 : vector<2x64xf32>
    %33 = vector.extract_strided_slice %25 {offsets = [0, 128], sizes = [2, 64], strides = [1, 1]} : vector<2x192xf32> to vector<2x64xf32>
    %34 = math.tanh %32 : vector<2x64xf32>
    %35 = arith.mulf %33, %34 : vector<2x64xf32>
    %c0_22 = arith.constant 0 : index
    %c0_23 = arith.constant 0 : index
    %36 = vector.load %arg12[%c0_22, %c0_23] : memref<32x64xf32, #tpu.memory_space<vmem>>, vector<2x64xf32>
    tpu.vector_store %arg12[%c0_22, %c0_23], %35 {strides = array<i32>} : memref<32x64xf32, #tpu.memory_space<vmem>>, vector<2x64xf32>,
    %c2 = arith.constant 2 : index
    %c0_24 = arith.constant 0 : index
    %37 = vector.load %arg11[%c2, %c0_24] : memref<32x256xf32, #tpu.memory_space<vmem>>, vector<2x256xf32>
    %cst_25 = arith.constant dense<0.000000e+00> : vector<2x256xf32>
    %38 = tpu.matmul %35, %16, %cst_25 {dimension_numbers = #tpu.dot_dimension_numbers<[1], [0], [0], [1], [0, 0, 1, 1], [], []>} : vector<2x64xf32>, vector<64x256xf32>, vector<2x256xf32> -> vector<2x256xf32>
    %39 = arith.addf %37, %38 : vector<2x256xf32>
    %40 = vector.extract_strided_slice %39 {offsets = [0, 0], sizes = [2, 192], strides = [1, 1]} : vector<2x256xf32> to vector<2x192xf32>
    %41 = arith.negf %40 : vector<2x192xf32>
    %42 = math.exp %41 : vector<2x192xf32>
    %cst_26 = arith.constant 1.000000e+00 : f32
    %43 = vector.broadcast %cst_26 : f32 to vector<2x192xf32>
    %44 = arith.addf %43, %42 : vector<2x192xf32>
    %45 = arith.divf %43, %44 : vector<2x192xf32>
    %46 = vector.extract_strided_slice %39 {offsets = [0, 192], sizes = [2, 64], strides = [1, 1]} : vector<2x256xf32> to vector<2x64xf32>
    %47 = math.tanh %46 : vector<2x64xf32>
    %48 = vector.extract_strided_slice %45 {offsets = [0, 64], sizes = [2, 64], strides = [1, 1]} : vector<2x192xf32> to vector<2x64xf32>
    %49 = arith.mulf %48, %32 : vector<2x64xf32>
    %50 = vector.extract_strided_slice %45 {offsets = [0, 0], sizes = [2, 64], strides = [1, 1]} : vector<2x192xf32> to vector<2x64xf32>
    %51 = arith.mulf %50, %47 : vector<2x64xf32>
    %52 = arith.addf %49, %51 : vector<2x64xf32>
    %53 = vector.extract_strided_slice %45 {offsets = [0, 128], sizes = [2, 64], strides = [1, 1]} : vector<2x192xf32> to vector<2x64xf32>
    %54 = math.tanh %52 : vector<2x64xf32>
    %55 = arith.mulf %53, %54 : vector<2x64xf32>
    %c2_27 = arith.constant 2 : index
    %c0_28 = arith.constant 0 : index
    %56 = vector.load %arg12[%c2_27, %c0_28] : memref<32x64xf32, #tpu.memory_space<vmem>>, vector<2x64xf32>
    tpu.vector_store %arg12[%c2_27, %c0_28], %55 {strides = array<i32>} : memref<32x64xf32, #tpu.memory_space<vmem>>, vector<2x64xf32>,
    %c4 = arith.constant 4 : index
    %c0_29 = arith.constant 0 : index
    %57 = vector.load %arg11[%c4, %c0_29] : memref<32x256xf32, #tpu.memory_space<vmem>>, vector<2x256xf32>
    %cst_30 = arith.constant dense<0.000000e+00> : vector<2x256xf32>
    %58 = tpu.matmul %55, %16, %cst_30 {dimension_numbers = #tpu.dot_dimension_numbers<[1], [0], [0], [1], [0, 0, 1, 1], [], []>} : vector<2x64xf32>, vector<64x256xf32>, vector<2x256xf32> -> vector<2x256xf32>
    %59 = arith.addf %57, %58 : vector<2x256xf32>
    %60 = vector.extract_strided_slice %59 {offsets = [0, 0], sizes = [2, 192], strides = [1, 1]} : vector<2x256xf32> to vector<2x192xf32>
    %61 = arith.negf %60 : vector<2x192xf32>
    %62 = math.exp %61 : vector<2x192xf32>
    %cst_31 = arith.constant 1.000000e+00 : f32
    %63 = vector.broadcast %cst_31 : f32 to vector<2x192xf32>
    %64 = arith.addf %63, %62 : vector<2x192xf32>
    %65 = arith.divf %63, %64 : vector<2x192xf32>
    %66 = vector.extract_strided_slice %59 {offsets = [0, 192], sizes = [2, 64], strides = [1, 1]} : vector<2x256xf32> to vector<2x64xf32>
    %67 = math.tanh %66 : vector<2x64xf32>
    %68 = vector.extract_strided_slice %65 {offsets = [0, 64], sizes = [2, 64], strides = [1, 1]} : vector<2x192xf32> to vector<2x64xf32>
    %69 = arith.mulf %68, %52 : vector<2x64xf32>
    %70 = vector.extract_strided_slice %65 {offsets = [0, 0], sizes = [2, 64], strides = [1, 1]} : vector<2x192xf32> to vector<2x64xf32>
    %71 = arith.mulf %70, %67 : vector<2x64xf32>
    %72 = arith.addf %69, %71 : vector<2x64xf32>
    %73 = vector.extract_strided_slice %65 {offsets = [0, 128], sizes = [2, 64], strides = [1, 1]} : vector<2x192xf32> to vector<2x64xf32>
    %74 = math.tanh %72 : vector<2x64xf32>
    %75 = arith.mulf %73, %74 : vector<2x64xf32>
    %c4_32 = arith.constant 4 : index
    %c0_33 = arith.constant 0 : index
    %76 = vector.load %arg12[%c4_32, %c0_33] : memref<32x64xf32, #tpu.memory_space<vmem>>, vector<2x64xf32>
    tpu.vector_store %arg12[%c4_32, %c0_33], %75 {strides = array<i32>} : memref<32x64xf32, #tpu.memory_space<vmem>>, vector<2x64xf32>,
    %c6 = arith.constant 6 : index
    %c0_34 = arith.constant 0 : index
    %77 = vector.load %arg11[%c6, %c0_34] : memref<32x256xf32, #tpu.memory_space<vmem>>, vector<2x256xf32>
    %cst_35 = arith.constant dense<0.000000e+00> : vector<2x256xf32>
    %78 = tpu.matmul %75, %16, %cst_35 {dimension_numbers = #tpu.dot_dimension_numbers<[1], [0], [0], [1], [0, 0, 1, 1], [], []>} : vector<2x64xf32>, vector<64x256xf32>, vector<2x256xf32> -> vector<2x256xf32>
    %79 = arith.addf %77, %78 : vector<2x256xf32>
    %80 = vector.extract_strided_slice %79 {offsets = [0, 0], sizes = [2, 192], strides = [1, 1]} : vector<2x256xf32> to vector<2x192xf32>
    %81 = arith.negf %80 : vector<2x192xf32>
    %82 = math.exp %81 : vector<2x192xf32>
    %cst_36 = arith.constant 1.000000e+00 : f32
    %83 = vector.broadcast %cst_36 : f32 to vector<2x192xf32>
    %84 = arith.addf %83, %82 : vector<2x192xf32>
    %85 = arith.divf %83, %84 : vector<2x192xf32>
    %86 = vector.extract_strided_slice %79 {offsets = [0, 192], sizes = [2, 64], strides = [1, 1]} : vector<2x256xf32> to vector<2x64xf32>
    %87 = math.tanh %86 : vector<2x64xf32>
    %88 = vector.extract_strided_slice %85 {offsets = [0, 64], sizes = [2, 64], strides = [1, 1]} : vector<2x192xf32> to vector<2x64xf32>
    %89 = arith.mulf %88, %72 : vector<2x64xf32>
    %90 = vector.extract_strided_slice %85 {offsets = [0, 0], sizes = [2, 64], strides = [1, 1]} : vector<2x192xf32> to vector<2x64xf32>
    %91 = arith.mulf %90, %87 : vector<2x64xf32>
    %92 = arith.addf %89, %91 : vector<2x64xf32>
    %93 = vector.extract_strided_slice %85 {offsets = [0, 128], sizes = [2, 64], strides = [1, 1]} : vector<2x192xf32> to vector<2x64xf32>
    %94 = math.tanh %92 : vector<2x64xf32>
    %95 = arith.mulf %93, %94 : vector<2x64xf32>
    %c6_37 = arith.constant 6 : index
    %c0_38 = arith.constant 0 : index
    %96 = vector.load %arg12[%c6_37, %c0_38] : memref<32x64xf32, #tpu.memory_space<vmem>>, vector<2x64xf32>
    tpu.vector_store %arg12[%c6_37, %c0_38], %95 {strides = array<i32>} : memref<32x64xf32, #tpu.memory_space<vmem>>, vector<2x64xf32>,
    %c8 = arith.constant 8 : index
    %c0_39 = arith.constant 0 : index
    %97 = vector.load %arg11[%c8, %c0_39] : memref<32x256xf32, #tpu.memory_space<vmem>>, vector<2x256xf32>
    %cst_40 = arith.constant dense<0.000000e+00> : vector<2x256xf32>
    %98 = tpu.matmul %95, %16, %cst_40 {dimension_numbers = #tpu.dot_dimension_numbers<[1], [0], [0], [1], [0, 0, 1, 1], [], []>} : vector<2x64xf32>, vector<64x256xf32>, vector<2x256xf32> -> vector<2x256xf32>
    %99 = arith.addf %97, %98 : vector<2x256xf32>
    %100 = vector.extract_strided_slice %99 {offsets = [0, 0], sizes = [2, 192], strides = [1, 1]} : vector<2x256xf32> to vector<2x192xf32>
    %101 = arith.negf %100 : vector<2x192xf32>
    %102 = math.exp %101 : vector<2x192xf32>
    %cst_41 = arith.constant 1.000000e+00 : f32
    %103 = vector.broadcast %cst_41 : f32 to vector<2x192xf32>
    %104 = arith.addf %103, %102 : vector<2x192xf32>
    %105 = arith.divf %103, %104 : vector<2x192xf32>
    %106 = vector.extract_strided_slice %99 {offsets = [0, 192], sizes = [2, 64], strides = [1, 1]} : vector<2x256xf32> to vector<2x64xf32>
    %107 = math.tanh %106 : vector<2x64xf32>
    %108 = vector.extract_strided_slice %105 {offsets = [0, 64], sizes = [2, 64], strides = [1, 1]} : vector<2x192xf32> to vector<2x64xf32>
    %109 = arith.mulf %108, %92 : vector<2x64xf32>
    %110 = vector.extract_strided_slice %105 {offsets = [0, 0], sizes = [2, 64], strides = [1, 1]} : vector<2x192xf32> to vector<2x64xf32>
    %111 = arith.mulf %110, %107 : vector<2x64xf32>
    %112 = arith.addf %109, %111 : vector<2x64xf32>
    %113 = vector.extract_strided_slice %105 {offsets = [0, 128], sizes = [2, 64], strides = [1, 1]} : vector<2x192xf32> to vector<2x64xf32>
    %114 = math.tanh %112 : vector<2x64xf32>
    %115 = arith.mulf %113, %114 : vector<2x64xf32>
    %c8_42 = arith.constant 8 : index
    %c0_43 = arith.constant 0 : index
    %116 = vector.load %arg12[%c8_42, %c0_43] : memref<32x64xf32, #tpu.memory_space<vmem>>, vector<2x64xf32>
    tpu.vector_store %arg12[%c8_42, %c0_43], %115 {strides = array<i32>} : memref<32x64xf32, #tpu.memory_space<vmem>>, vector<2x64xf32>,
    %c10 = arith.constant 10 : index
    %c0_44 = arith.constant 0 : index
    %117 = vector.load %arg11[%c10, %c0_44] : memref<32x256xf32, #tpu.memory_space<vmem>>, vector<2x256xf32>
    %cst_45 = arith.constant dense<0.000000e+00> : vector<2x256xf32>
    %118 = tpu.matmul %115, %16, %cst_45 {dimension_numbers = #tpu.dot_dimension_numbers<[1], [0], [0], [1], [0, 0, 1, 1], [], []>} : vector<2x64xf32>, vector<64x256xf32>, vector<2x256xf32> -> vector<2x256xf32>
    %119 = arith.addf %117, %118 : vector<2x256xf32>
    %120 = vector.extract_strided_slice %119 {offsets = [0, 0], sizes = [2, 192], strides = [1, 1]} : vector<2x256xf32> to vector<2x192xf32>
    %121 = arith.negf %120 : vector<2x192xf32>
    %122 = math.exp %121 : vector<2x192xf32>
    %cst_46 = arith.constant 1.000000e+00 : f32
    %123 = vector.broadcast %cst_46 : f32 to vector<2x192xf32>
    %124 = arith.addf %123, %122 : vector<2x192xf32>
    %125 = arith.divf %123, %124 : vector<2x192xf32>
    %126 = vector.extract_strided_slice %119 {offsets = [0, 192], sizes = [2, 64], strides = [1, 1]} : vector<2x256xf32> to vector<2x64xf32>
    %127 = math.tanh %126 : vector<2x64xf32>
    %128 = vector.extract_strided_slice %125 {offsets = [0, 64], sizes = [2, 64], strides = [1, 1]} : vector<2x192xf32> to vector<2x64xf32>
    %129 = arith.mulf %128, %112 : vector<2x64xf32>
    %130 = vector.extract_strided_slice %125 {offsets = [0, 0], sizes = [2, 64], strides = [1, 1]} : vector<2x192xf32> to vector<2x64xf32>
    %131 = arith.mulf %130, %127 : vector<2x64xf32>
    %132 = arith.addf %129, %131 : vector<2x64xf32>
    %133 = vector.extract_strided_slice %125 {offsets = [0, 128], sizes = [2, 64], strides = [1, 1]} : vector<2x192xf32> to vector<2x64xf32>
    %134 = math.tanh %132 : vector<2x64xf32>
    %135 = arith.mulf %133, %134 : vector<2x64xf32>
    %c10_47 = arith.constant 10 : index
    %c0_48 = arith.constant 0 : index
    %136 = vector.load %arg12[%c10_47, %c0_48] : memref<32x64xf32, #tpu.memory_space<vmem>>, vector<2x64xf32>
    tpu.vector_store %arg12[%c10_47, %c0_48], %135 {strides = array<i32>} : memref<32x64xf32, #tpu.memory_space<vmem>>, vector<2x64xf32>,
    %c12 = arith.constant 12 : index
    %c0_49 = arith.constant 0 : index
    %137 = vector.load %arg11[%c12, %c0_49] : memref<32x256xf32, #tpu.memory_space<vmem>>, vector<2x256xf32>
    %cst_50 = arith.constant dense<0.000000e+00> : vector<2x256xf32>
    %138 = tpu.matmul %135, %16, %cst_50 {dimension_numbers = #tpu.dot_dimension_numbers<[1], [0], [0], [1], [0, 0, 1, 1], [], []>} : vector<2x64xf32>, vector<64x256xf32>, vector<2x256xf32> -> vector<2x256xf32>
    %139 = arith.addf %137, %138 : vector<2x256xf32>
    %140 = vector.extract_strided_slice %139 {offsets = [0, 0], sizes = [2, 192], strides = [1, 1]} : vector<2x256xf32> to vector<2x192xf32>
    %141 = arith.negf %140 : vector<2x192xf32>
    %142 = math.exp %141 : vector<2x192xf32>
    %cst_51 = arith.constant 1.000000e+00 : f32
    %143 = vector.broadcast %cst_51 : f32 to vector<2x192xf32>
    %144 = arith.addf %143, %142 : vector<2x192xf32>
    %145 = arith.divf %143, %144 : vector<2x192xf32>
    %146 = vector.extract_strided_slice %139 {offsets = [0, 192], sizes = [2, 64], strides = [1, 1]} : vector<2x256xf32> to vector<2x64xf32>
    %147 = math.tanh %146 : vector<2x64xf32>
    %148 = vector.extract_strided_slice %145 {offsets = [0, 64], sizes = [2, 64], strides = [1, 1]} : vector<2x192xf32> to vector<2x64xf32>
    %149 = arith.mulf %148, %132 : vector<2x64xf32>
    %150 = vector.extract_strided_slice %145 {offsets = [0, 0], sizes = [2, 64], strides = [1, 1]} : vector<2x192xf32> to vector<2x64xf32>
    %151 = arith.mulf %150, %147 : vector<2x64xf32>
    %152 = arith.addf %149, %151 : vector<2x64xf32>
    %153 = vector.extract_strided_slice %145 {offsets = [0, 128], sizes = [2, 64], strides = [1, 1]} : vector<2x192xf32> to vector<2x64xf32>
    %154 = math.tanh %152 : vector<2x64xf32>
    %155 = arith.mulf %153, %154 : vector<2x64xf32>
    %c12_52 = arith.constant 12 : index
    %c0_53 = arith.constant 0 : index
    %156 = vector.load %arg12[%c12_52, %c0_53] : memref<32x64xf32, #tpu.memory_space<vmem>>, vector<2x64xf32>
    tpu.vector_store %arg12[%c12_52, %c0_53], %155 {strides = array<i32>} : memref<32x64xf32, #tpu.memory_space<vmem>>, vector<2x64xf32>,
    %c14 = arith.constant 14 : index
    %c0_54 = arith.constant 0 : index
    %157 = vector.load %arg11[%c14, %c0_54] : memref<32x256xf32, #tpu.memory_space<vmem>>, vector<2x256xf32>
    %cst_55 = arith.constant dense<0.000000e+00> : vector<2x256xf32>
    %158 = tpu.matmul %155, %16, %cst_55 {dimension_numbers = #tpu.dot_dimension_numbers<[1], [0], [0], [1], [0, 0, 1, 1], [], []>} : vector<2x64xf32>, vector<64x256xf32>, vector<2x256xf32> -> vector<2x256xf32>
    %159 = arith.addf %157, %158 : vector<2x256xf32>
    %160 = vector.extract_strided_slice %159 {offsets = [0, 0], sizes = [2, 192], strides = [1, 1]} : vector<2x256xf32> to vector<2x192xf32>
    %161 = arith.negf %160 : vector<2x192xf32>
    %162 = math.exp %161 : vector<2x192xf32>
    %cst_56 = arith.constant 1.000000e+00 : f32
    %163 = vector.broadcast %cst_56 : f32 to vector<2x192xf32>
    %164 = arith.addf %163, %162 : vector<2x192xf32>
    %165 = arith.divf %163, %164 : vector<2x192xf32>
    %166 = vector.extract_strided_slice %159 {offsets = [0, 192], sizes = [2, 64], strides = [1, 1]} : vector<2x256xf32> to vector<2x64xf32>
    %167 = math.tanh %166 : vector<2x64xf32>
    %168 = vector.extract_strided_slice %165 {offsets = [0, 64], sizes = [2, 64], strides = [1, 1]} : vector<2x192xf32> to vector<2x64xf32>
    %169 = arith.mulf %168, %152 : vector<2x64xf32>
    %170 = vector.extract_strided_slice %165 {offsets = [0, 0], sizes = [2, 64], strides = [1, 1]} : vector<2x192xf32> to vector<2x64xf32>
    %171 = arith.mulf %170, %167 : vector<2x64xf32>
    %172 = arith.addf %169, %171 : vector<2x64xf32>
    %173 = vector.extract_strided_slice %165 {offsets = [0, 128], sizes = [2, 64], strides = [1, 1]} : vector<2x192xf32> to vector<2x64xf32>
    %174 = math.tanh %172 : vector<2x64xf32>
    %175 = arith.mulf %173, %174 : vector<2x64xf32>
    %c14_57 = arith.constant 14 : index
    %c0_58 = arith.constant 0 : index
    %176 = vector.load %arg12[%c14_57, %c0_58] : memref<32x64xf32, #tpu.memory_space<vmem>>, vector<2x64xf32>
    tpu.vector_store %arg12[%c14_57, %c0_58], %175 {strides = array<i32>} : memref<32x64xf32, #tpu.memory_space<vmem>>, vector<2x64xf32>,
    %c16 = arith.constant 16 : index
    %c0_59 = arith.constant 0 : index
    %177 = vector.load %arg11[%c16, %c0_59] : memref<32x256xf32, #tpu.memory_space<vmem>>, vector<2x256xf32>
    %cst_60 = arith.constant dense<0.000000e+00> : vector<2x256xf32>
    %178 = tpu.matmul %175, %16, %cst_60 {dimension_numbers = #tpu.dot_dimension_numbers<[1], [0], [0], [1], [0, 0, 1, 1], [], []>} : vector<2x64xf32>, vector<64x256xf32>, vector<2x256xf32> -> vector<2x256xf32>
    %179 = arith.addf %177, %178 : vector<2x256xf32>
    %180 = vector.extract_strided_slice %179 {offsets = [0, 0], sizes = [2, 192], strides = [1, 1]} : vector<2x256xf32> to vector<2x192xf32>
    %181 = arith.negf %180 : vector<2x192xf32>
    %182 = math.exp %181 : vector<2x192xf32>
    %cst_61 = arith.constant 1.000000e+00 : f32
    %183 = vector.broadcast %cst_61 : f32 to vector<2x192xf32>
    %184 = arith.addf %183, %182 : vector<2x192xf32>
    %185 = arith.divf %183, %184 : vector<2x192xf32>
    %186 = vector.extract_strided_slice %179 {offsets = [0, 192], sizes = [2, 64], strides = [1, 1]} : vector<2x256xf32> to vector<2x64xf32>
    %187 = math.tanh %186 : vector<2x64xf32>
    %188 = vector.extract_strided_slice %185 {offsets = [0, 64], sizes = [2, 64], strides = [1, 1]} : vector<2x192xf32> to vector<2x64xf32>
    %189 = arith.mulf %188, %172 : vector<2x64xf32>
    %190 = vector.extract_strided_slice %185 {offsets = [0, 0], sizes = [2, 64], strides = [1, 1]} : vector<2x192xf32> to vector<2x64xf32>
    %191 = arith.mulf %190, %187 : vector<2x64xf32>
    %192 = arith.addf %189, %191 : vector<2x64xf32>
    %193 = vector.extract_strided_slice %185 {offsets = [0, 128], sizes = [2, 64], strides = [1, 1]} : vector<2x192xf32> to vector<2x64xf32>
    %194 = math.tanh %192 : vector<2x64xf32>
    %195 = arith.mulf %193, %194 : vector<2x64xf32>
    %c16_62 = arith.constant 16 : index
    %c0_63 = arith.constant 0 : index
    %196 = vector.load %arg12[%c16_62, %c0_63] : memref<32x64xf32, #tpu.memory_space<vmem>>, vector<2x64xf32>
    tpu.vector_store %arg12[%c16_62, %c0_63], %195 {strides = array<i32>} : memref<32x64xf32, #tpu.memory_space<vmem>>, vector<2x64xf32>,
    %c18 = arith.constant 18 : index
    %c0_64 = arith.constant 0 : index
    %197 = vector.load %arg11[%c18, %c0_64] : memref<32x256xf32, #tpu.memory_space<vmem>>, vector<2x256xf32>
    %cst_65 = arith.constant dense<0.000000e+00> : vector<2x256xf32>
    %198 = tpu.matmul %195, %16, %cst_65 {dimension_numbers = #tpu.dot_dimension_numbers<[1], [0], [0], [1], [0, 0, 1, 1], [], []>} : vector<2x64xf32>, vector<64x256xf32>, vector<2x256xf32> -> vector<2x256xf32>
    %199 = arith.addf %197, %198 : vector<2x256xf32>
    %200 = vector.extract_strided_slice %199 {offsets = [0, 0], sizes = [2, 192], strides = [1, 1]} : vector<2x256xf32> to vector<2x192xf32>
    %201 = arith.negf %200 : vector<2x192xf32>
    %202 = math.exp %201 : vector<2x192xf32>
    %cst_66 = arith.constant 1.000000e+00 : f32
    %203 = vector.broadcast %cst_66 : f32 to vector<2x192xf32>
    %204 = arith.addf %203, %202 : vector<2x192xf32>
    %205 = arith.divf %203, %204 : vector<2x192xf32>
    %206 = vector.extract_strided_slice %199 {offsets = [0, 192], sizes = [2, 64], strides = [1, 1]} : vector<2x256xf32> to vector<2x64xf32>
    %207 = math.tanh %206 : vector<2x64xf32>
    %208 = vector.extract_strided_slice %205 {offsets = [0, 64], sizes = [2, 64], strides = [1, 1]} : vector<2x192xf32> to vector<2x64xf32>
    %209 = arith.mulf %208, %192 : vector<2x64xf32>
    %210 = vector.extract_strided_slice %205 {offsets = [0, 0], sizes = [2, 64], strides = [1, 1]} : vector<2x192xf32> to vector<2x64xf32>
    %211 = arith.mulf %210, %207 : vector<2x64xf32>
    %212 = arith.addf %209, %211 : vector<2x64xf32>
    %213 = vector.extract_strided_slice %205 {offsets = [0, 128], sizes = [2, 64], strides = [1, 1]} : vector<2x192xf32> to vector<2x64xf32>
    %214 = math.tanh %212 : vector<2x64xf32>
    %215 = arith.mulf %213, %214 : vector<2x64xf32>
    %c18_67 = arith.constant 18 : index
    %c0_68 = arith.constant 0 : index
    %216 = vector.load %arg12[%c18_67, %c0_68] : memref<32x64xf32, #tpu.memory_space<vmem>>, vector<2x64xf32>
    tpu.vector_store %arg12[%c18_67, %c0_68], %215 {strides = array<i32>} : memref<32x64xf32, #tpu.memory_space<vmem>>, vector<2x64xf32>,
    %c20 = arith.constant 20 : index
    %c0_69 = arith.constant 0 : index
    %217 = vector.load %arg11[%c20, %c0_69] : memref<32x256xf32, #tpu.memory_space<vmem>>, vector<2x256xf32>
    %cst_70 = arith.constant dense<0.000000e+00> : vector<2x256xf32>
    %218 = tpu.matmul %215, %16, %cst_70 {dimension_numbers = #tpu.dot_dimension_numbers<[1], [0], [0], [1], [0, 0, 1, 1], [], []>} : vector<2x64xf32>, vector<64x256xf32>, vector<2x256xf32> -> vector<2x256xf32>
    %219 = arith.addf %217, %218 : vector<2x256xf32>
    %220 = vector.extract_strided_slice %219 {offsets = [0, 0], sizes = [2, 192], strides = [1, 1]} : vector<2x256xf32> to vector<2x192xf32>
    %221 = arith.negf %220 : vector<2x192xf32>
    %222 = math.exp %221 : vector<2x192xf32>
    %cst_71 = arith.constant 1.000000e+00 : f32
    %223 = vector.broadcast %cst_71 : f32 to vector<2x192xf32>
    %224 = arith.addf %223, %222 : vector<2x192xf32>
    %225 = arith.divf %223, %224 : vector<2x192xf32>
    %226 = vector.extract_strided_slice %219 {offsets = [0, 192], sizes = [2, 64], strides = [1, 1]} : vector<2x256xf32> to vector<2x64xf32>
    %227 = math.tanh %226 : vector<2x64xf32>
    %228 = vector.extract_strided_slice %225 {offsets = [0, 64], sizes = [2, 64], strides = [1, 1]} : vector<2x192xf32> to vector<2x64xf32>
    %229 = arith.mulf %228, %212 : vector<2x64xf32>
    %230 = vector.extract_strided_slice %225 {offsets = [0, 0], sizes = [2, 64], strides = [1, 1]} : vector<2x192xf32> to vector<2x64xf32>
    %231 = arith.mulf %230, %227 : vector<2x64xf32>
    %232 = arith.addf %229, %231 : vector<2x64xf32>
    %233 = vector.extract_strided_slice %225 {offsets = [0, 128], sizes = [2, 64], strides = [1, 1]} : vector<2x192xf32> to vector<2x64xf32>
    %234 = math.tanh %232 : vector<2x64xf32>
    %235 = arith.mulf %233, %234 : vector<2x64xf32>
    %c20_72 = arith.constant 20 : index
    %c0_73 = arith.constant 0 : index
    %236 = vector.load %arg12[%c20_72, %c0_73] : memref<32x64xf32, #tpu.memory_space<vmem>>, vector<2x64xf32>
    tpu.vector_store %arg12[%c20_72, %c0_73], %235 {strides = array<i32>} : memref<32x64xf32, #tpu.memory_space<vmem>>, vector<2x64xf32>,
    %c22 = arith.constant 22 : index
    %c0_74 = arith.constant 0 : index
    %237 = vector.load %arg11[%c22, %c0_74] : memref<32x256xf32, #tpu.memory_space<vmem>>, vector<2x256xf32>
    %cst_75 = arith.constant dense<0.000000e+00> : vector<2x256xf32>
    %238 = tpu.matmul %235, %16, %cst_75 {dimension_numbers = #tpu.dot_dimension_numbers<[1], [0], [0], [1], [0, 0, 1, 1], [], []>} : vector<2x64xf32>, vector<64x256xf32>, vector<2x256xf32> -> vector<2x256xf32>
    %239 = arith.addf %237, %238 : vector<2x256xf32>
    %240 = vector.extract_strided_slice %239 {offsets = [0, 0], sizes = [2, 192], strides = [1, 1]} : vector<2x256xf32> to vector<2x192xf32>
    %241 = arith.negf %240 : vector<2x192xf32>
    %242 = math.exp %241 : vector<2x192xf32>
    %cst_76 = arith.constant 1.000000e+00 : f32
    %243 = vector.broadcast %cst_76 : f32 to vector<2x192xf32>
    %244 = arith.addf %243, %242 : vector<2x192xf32>
    %245 = arith.divf %243, %244 : vector<2x192xf32>
    %246 = vector.extract_strided_slice %239 {offsets = [0, 192], sizes = [2, 64], strides = [1, 1]} : vector<2x256xf32> to vector<2x64xf32>
    %247 = math.tanh %246 : vector<2x64xf32>
    %248 = vector.extract_strided_slice %245 {offsets = [0, 64], sizes = [2, 64], strides = [1, 1]} : vector<2x192xf32> to vector<2x64xf32>
    %249 = arith.mulf %248, %232 : vector<2x64xf32>
    %250 = vector.extract_strided_slice %245 {offsets = [0, 0], sizes = [2, 64], strides = [1, 1]} : vector<2x192xf32> to vector<2x64xf32>
    %251 = arith.mulf %250, %247 : vector<2x64xf32>
    %252 = arith.addf %249, %251 : vector<2x64xf32>
    %253 = vector.extract_strided_slice %245 {offsets = [0, 128], sizes = [2, 64], strides = [1, 1]} : vector<2x192xf32> to vector<2x64xf32>
    %254 = math.tanh %252 : vector<2x64xf32>
    %255 = arith.mulf %253, %254 : vector<2x64xf32>
    %c22_77 = arith.constant 22 : index
    %c0_78 = arith.constant 0 : index
    %256 = vector.load %arg12[%c22_77, %c0_78] : memref<32x64xf32, #tpu.memory_space<vmem>>, vector<2x64xf32>
    tpu.vector_store %arg12[%c22_77, %c0_78], %255 {strides = array<i32>} : memref<32x64xf32, #tpu.memory_space<vmem>>, vector<2x64xf32>,
    %c24 = arith.constant 24 : index
    %c0_79 = arith.constant 0 : index
    %257 = vector.load %arg11[%c24, %c0_79] : memref<32x256xf32, #tpu.memory_space<vmem>>, vector<2x256xf32>
    %cst_80 = arith.constant dense<0.000000e+00> : vector<2x256xf32>
    %258 = tpu.matmul %255, %16, %cst_80 {dimension_numbers = #tpu.dot_dimension_numbers<[1], [0], [0], [1], [0, 0, 1, 1], [], []>} : vector<2x64xf32>, vector<64x256xf32>, vector<2x256xf32> -> vector<2x256xf32>
    %259 = arith.addf %257, %258 : vector<2x256xf32>
    %260 = vector.extract_strided_slice %259 {offsets = [0, 0], sizes = [2, 192], strides = [1, 1]} : vector<2x256xf32> to vector<2x192xf32>
    %261 = arith.negf %260 : vector<2x192xf32>
    %262 = math.exp %261 : vector<2x192xf32>
    %cst_81 = arith.constant 1.000000e+00 : f32
    %263 = vector.broadcast %cst_81 : f32 to vector<2x192xf32>
    %264 = arith.addf %263, %262 : vector<2x192xf32>
    %265 = arith.divf %263, %264 : vector<2x192xf32>
    %266 = vector.extract_strided_slice %259 {offsets = [0, 192], sizes = [2, 64], strides = [1, 1]} : vector<2x256xf32> to vector<2x64xf32>
    %267 = math.tanh %266 : vector<2x64xf32>
    %268 = vector.extract_strided_slice %265 {offsets = [0, 64], sizes = [2, 64], strides = [1, 1]} : vector<2x192xf32> to vector<2x64xf32>
    %269 = arith.mulf %268, %252 : vector<2x64xf32>
    %270 = vector.extract_strided_slice %265 {offsets = [0, 0], sizes = [2, 64], strides = [1, 1]} : vector<2x192xf32> to vector<2x64xf32>
    %271 = arith.mulf %270, %267 : vector<2x64xf32>
    %272 = arith.addf %269, %271 : vector<2x64xf32>
    %273 = vector.extract_strided_slice %265 {offsets = [0, 128], sizes = [2, 64], strides = [1, 1]} : vector<2x192xf32> to vector<2x64xf32>
    %274 = math.tanh %272 : vector<2x64xf32>
    %275 = arith.mulf %273, %274 : vector<2x64xf32>
    %c24_82 = arith.constant 24 : index
    %c0_83 = arith.constant 0 : index
    %276 = vector.load %arg12[%c24_82, %c0_83] : memref<32x64xf32, #tpu.memory_space<vmem>>, vector<2x64xf32>
    tpu.vector_store %arg12[%c24_82, %c0_83], %275 {strides = array<i32>} : memref<32x64xf32, #tpu.memory_space<vmem>>, vector<2x64xf32>,
    %c26 = arith.constant 26 : index
    %c0_84 = arith.constant 0 : index
    %277 = vector.load %arg11[%c26, %c0_84] : memref<32x256xf32, #tpu.memory_space<vmem>>, vector<2x256xf32>
    %cst_85 = arith.constant dense<0.000000e+00> : vector<2x256xf32>
    %278 = tpu.matmul %275, %16, %cst_85 {dimension_numbers = #tpu.dot_dimension_numbers<[1], [0], [0], [1], [0, 0, 1, 1], [], []>} : vector<2x64xf32>, vector<64x256xf32>, vector<2x256xf32> -> vector<2x256xf32>
    %279 = arith.addf %277, %278 : vector<2x256xf32>
    %280 = vector.extract_strided_slice %279 {offsets = [0, 0], sizes = [2, 192], strides = [1, 1]} : vector<2x256xf32> to vector<2x192xf32>
    %281 = arith.negf %280 : vector<2x192xf32>
    %282 = math.exp %281 : vector<2x192xf32>
    %cst_86 = arith.constant 1.000000e+00 : f32
    %283 = vector.broadcast %cst_86 : f32 to vector<2x192xf32>
    %284 = arith.addf %283, %282 : vector<2x192xf32>
    %285 = arith.divf %283, %284 : vector<2x192xf32>
    %286 = vector.extract_strided_slice %279 {offsets = [0, 192], sizes = [2, 64], strides = [1, 1]} : vector<2x256xf32> to vector<2x64xf32>
    %287 = math.tanh %286 : vector<2x64xf32>
    %288 = vector.extract_strided_slice %285 {offsets = [0, 64], sizes = [2, 64], strides = [1, 1]} : vector<2x192xf32> to vector<2x64xf32>
    %289 = arith.mulf %288, %272 : vector<2x64xf32>
    %290 = vector.extract_strided_slice %285 {offsets = [0, 0], sizes = [2, 64], strides = [1, 1]} : vector<2x192xf32> to vector<2x64xf32>
    %291 = arith.mulf %290, %287 : vector<2x64xf32>
    %292 = arith.addf %289, %291 : vector<2x64xf32>
    %293 = vector.extract_strided_slice %285 {offsets = [0, 128], sizes = [2, 64], strides = [1, 1]} : vector<2x192xf32> to vector<2x64xf32>
    %294 = math.tanh %292 : vector<2x64xf32>
    %295 = arith.mulf %293, %294 : vector<2x64xf32>
    %c26_87 = arith.constant 26 : index
    %c0_88 = arith.constant 0 : index
    %296 = vector.load %arg12[%c26_87, %c0_88] : memref<32x64xf32, #tpu.memory_space<vmem>>, vector<2x64xf32>
    tpu.vector_store %arg12[%c26_87, %c0_88], %295 {strides = array<i32>} : memref<32x64xf32, #tpu.memory_space<vmem>>, vector<2x64xf32>,
    %c28 = arith.constant 28 : index
    %c0_89 = arith.constant 0 : index
    %297 = vector.load %arg11[%c28, %c0_89] : memref<32x256xf32, #tpu.memory_space<vmem>>, vector<2x256xf32>
    %cst_90 = arith.constant dense<0.000000e+00> : vector<2x256xf32>
    %298 = tpu.matmul %295, %16, %cst_90 {dimension_numbers = #tpu.dot_dimension_numbers<[1], [0], [0], [1], [0, 0, 1, 1], [], []>} : vector<2x64xf32>, vector<64x256xf32>, vector<2x256xf32> -> vector<2x256xf32>
    %299 = arith.addf %297, %298 : vector<2x256xf32>
    %300 = vector.extract_strided_slice %299 {offsets = [0, 0], sizes = [2, 192], strides = [1, 1]} : vector<2x256xf32> to vector<2x192xf32>
    %301 = arith.negf %300 : vector<2x192xf32>
    %302 = math.exp %301 : vector<2x192xf32>
    %cst_91 = arith.constant 1.000000e+00 : f32
    %303 = vector.broadcast %cst_91 : f32 to vector<2x192xf32>
    %304 = arith.addf %303, %302 : vector<2x192xf32>
    %305 = arith.divf %303, %304 : vector<2x192xf32>
    %306 = vector.extract_strided_slice %299 {offsets = [0, 192], sizes = [2, 64], strides = [1, 1]} : vector<2x256xf32> to vector<2x64xf32>
    %307 = math.tanh %306 : vector<2x64xf32>
    %308 = vector.extract_strided_slice %305 {offsets = [0, 64], sizes = [2, 64], strides = [1, 1]} : vector<2x192xf32> to vector<2x64xf32>
    %309 = arith.mulf %308, %292 : vector<2x64xf32>
    %310 = vector.extract_strided_slice %305 {offsets = [0, 0], sizes = [2, 64], strides = [1, 1]} : vector<2x192xf32> to vector<2x64xf32>
    %311 = arith.mulf %310, %307 : vector<2x64xf32>
    %312 = arith.addf %309, %311 : vector<2x64xf32>
    %313 = vector.extract_strided_slice %305 {offsets = [0, 128], sizes = [2, 64], strides = [1, 1]} : vector<2x192xf32> to vector<2x64xf32>
    %314 = math.tanh %312 : vector<2x64xf32>
    %315 = arith.mulf %313, %314 : vector<2x64xf32>
    %c28_92 = arith.constant 28 : index
    %c0_93 = arith.constant 0 : index
    %316 = vector.load %arg12[%c28_92, %c0_93] : memref<32x64xf32, #tpu.memory_space<vmem>>, vector<2x64xf32>
    tpu.vector_store %arg12[%c28_92, %c0_93], %315 {strides = array<i32>} : memref<32x64xf32, #tpu.memory_space<vmem>>, vector<2x64xf32>,
    %c30 = arith.constant 30 : index
    %c0_94 = arith.constant 0 : index
    %317 = vector.load %arg11[%c30, %c0_94] : memref<32x256xf32, #tpu.memory_space<vmem>>, vector<2x256xf32>
    %cst_95 = arith.constant dense<0.000000e+00> : vector<2x256xf32>
    %318 = tpu.matmul %315, %16, %cst_95 {dimension_numbers = #tpu.dot_dimension_numbers<[1], [0], [0], [1], [0, 0, 1, 1], [], []>} : vector<2x64xf32>, vector<64x256xf32>, vector<2x256xf32> -> vector<2x256xf32>
    %319 = arith.addf %317, %318 : vector<2x256xf32>
    %320 = vector.extract_strided_slice %319 {offsets = [0, 0], sizes = [2, 192], strides = [1, 1]} : vector<2x256xf32> to vector<2x192xf32>
    %321 = arith.negf %320 : vector<2x192xf32>
    %322 = math.exp %321 : vector<2x192xf32>
    %cst_96 = arith.constant 1.000000e+00 : f32
    %323 = vector.broadcast %cst_96 : f32 to vector<2x192xf32>
    %324 = arith.addf %323, %322 : vector<2x192xf32>
    %325 = arith.divf %323, %324 : vector<2x192xf32>
    %326 = vector.extract_strided_slice %319 {offsets = [0, 192], sizes = [2, 64], strides = [1, 1]} : vector<2x256xf32> to vector<2x64xf32>
    %327 = math.tanh %326 : vector<2x64xf32>
    %328 = vector.extract_strided_slice %325 {offsets = [0, 64], sizes = [2, 64], strides = [1, 1]} : vector<2x192xf32> to vector<2x64xf32>
    %329 = arith.mulf %328, %312 : vector<2x64xf32>
    %330 = vector.extract_strided_slice %325 {offsets = [0, 0], sizes = [2, 64], strides = [1, 1]} : vector<2x192xf32> to vector<2x64xf32>
    %331 = arith.mulf %330, %327 : vector<2x64xf32>
    %332 = arith.addf %329, %331 : vector<2x64xf32>
    %333 = vector.extract_strided_slice %325 {offsets = [0, 128], sizes = [2, 64], strides = [1, 1]} : vector<2x192xf32> to vector<2x64xf32>
    %334 = math.tanh %332 : vector<2x64xf32>
    %335 = arith.mulf %333, %334 : vector<2x64xf32>
    %c30_97 = arith.constant 30 : index
    %c0_98 = arith.constant 0 : index
    %336 = vector.load %arg12[%c30_97, %c0_98] : memref<32x64xf32, #tpu.memory_space<vmem>>, vector<2x64xf32>
    tpu.vector_store %arg12[%c30_97, %c0_98], %335 {strides = array<i32>} : memref<32x64xf32, #tpu.memory_space<vmem>>, vector<2x64xf32>,
    %337 = vector.extract_strided_slice %335 {offsets = [0, 0], sizes = [2, 16], strides = [1, 1]} : vector<2x64xf32> to vector<2x16xf32>
    %338 = vector.extract_strided_slice %335 {offsets = [0, 16], sizes = [2, 16], strides = [1, 1]} : vector<2x64xf32> to vector<2x16xf32>
    %339 = arith.addf %337, %338 : vector<2x16xf32>
    %340 = vector.extract_strided_slice %335 {offsets = [0, 32], sizes = [2, 16], strides = [1, 1]} : vector<2x64xf32> to vector<2x16xf32>
    %341 = arith.addf %339, %340 : vector<2x16xf32>
    %342 = vector.extract_strided_slice %335 {offsets = [0, 48], sizes = [2, 16], strides = [1, 1]} : vector<2x64xf32> to vector<2x16xf32>
    %343 = arith.addf %341, %342 : vector<2x16xf32>
    %344 = vector.extract_strided_slice %332 {offsets = [0, 0], sizes = [2, 16], strides = [1, 1]} : vector<2x64xf32> to vector<2x16xf32>
    %345 = vector.extract_strided_slice %332 {offsets = [0, 16], sizes = [2, 16], strides = [1, 1]} : vector<2x64xf32> to vector<2x16xf32>
    %346 = arith.addf %344, %345 : vector<2x16xf32>
    %347 = vector.extract_strided_slice %332 {offsets = [0, 32], sizes = [2, 16], strides = [1, 1]} : vector<2x64xf32> to vector<2x16xf32>
    %348 = arith.addf %346, %347 : vector<2x16xf32>
    %349 = vector.extract_strided_slice %332 {offsets = [0, 48], sizes = [2, 16], strides = [1, 1]} : vector<2x64xf32> to vector<2x16xf32>
    %350 = arith.addf %348, %349 : vector<2x16xf32>
    %c0_99 = arith.constant 0 : index
    %c0_100 = arith.constant 0 : index
    %351 = vector.load %arg12[%c0_99, %c0_100] : memref<32x64xf32, #tpu.memory_space<vmem>>, vector<32x64xf32>
    %c1 = arith.constant 1 : index
    %c0_101 = arith.constant 0 : index
    %c0_102 = arith.constant 0 : index
    %352 = vector.load %arg3[%c1, %c0_101, %c0_102] : memref<2x64x256xf32, #tpu.memory_space<vmem>>, vector<1x64x256xf32>
    %353 = vector.shape_cast %352 : vector<1x64x256xf32> to vector<64x256xf32>
    %cst_103 = arith.constant dense<0.000000e+00> : vector<32x256xf32>
    %354 = tpu.matmul %351, %353, %cst_103 {dimension_numbers = #tpu.dot_dimension_numbers<[1], [0], [0], [1], [0, 0, 1, 1], [], []>} : vector<32x64xf32>, vector<64x256xf32>, vector<32x256xf32> -> vector<32x256xf32>
    %c1_104 = arith.constant 1 : index
    %c0_105 = arith.constant 0 : index
    %c0_106 = arith.constant 0 : index
    %355 = vector.load %arg5[%c1_104, %c0_105, %c0_106] : memref<2x1x256xf32, #tpu.memory_space<vmem>>, vector<1x1x256xf32>
    %356 = vector.shape_cast %355 : vector<1x1x256xf32> to vector<1x256xf32>
    %357 = vector.broadcast %356 : vector<1x256xf32> to vector<32x256xf32>
    %358 = arith.addf %354, %357 : vector<32x256xf32>
    %c0_107 = arith.constant 0 : index
    %c0_108 = arith.constant 0 : index
    %359 = vector.load %arg11[%c0_107, %c0_108] : memref<32x256xf32, #tpu.memory_space<vmem>>, vector<32x256xf32>
    tpu.vector_store %arg11[%c0_107, %c0_108], %358 {strides = array<i32>} : memref<32x256xf32, #tpu.memory_space<vmem>>, vector<32x256xf32>,
    %c1_109 = arith.constant 1 : index
    %c0_110 = arith.constant 0 : index
    %c0_111 = arith.constant 0 : index
    %360 = vector.load %arg1[%c1_109, %c0_110, %c0_111] : memref<2x2x16xf32, #tpu.memory_space<vmem>>, vector<1x2x16xf32>
    %361 = vector.shape_cast %360 : vector<1x2x16xf32> to vector<2x16xf32>
    %c1_112 = arith.constant 1 : index
    %c0_113 = arith.constant 0 : index
    %c0_114 = arith.constant 0 : index
    %362 = vector.load %arg2[%c1_112, %c0_113, %c0_114] : memref<2x2x16xf32, #tpu.memory_space<vmem>>, vector<1x2x16xf32>
    %363 = vector.shape_cast %362 : vector<1x2x16xf32> to vector<2x16xf32>
    %364 = tpu.concatenate %361, %361, %361, %361 in 1 : vector<2x16xf32>, vector<2x16xf32>, vector<2x16xf32>, vector<2x16xf32> -> vector<2x64xf32>
    %365 = tpu.concatenate %363, %363, %363, %363 in 1 : vector<2x16xf32>, vector<2x16xf32>, vector<2x16xf32>, vector<2x16xf32> -> vector<2x64xf32>
    %c1_115 = arith.constant 1 : index
    %c0_116 = arith.constant 0 : index
    %c0_117 = arith.constant 0 : index
    %366 = vector.load %arg4[%c1_115, %c0_116, %c0_117] : memref<2x64x256xf32, #tpu.memory_space<vmem>>, vector<1x64x256xf32>
    %367 = vector.shape_cast %366 : vector<1x64x256xf32> to vector<64x256xf32>
    %c0_118 = arith.constant 0 : index
    %c0_119 = arith.constant 0 : index
    %368 = vector.load %arg11[%c0_118, %c0_119] : memref<32x256xf32, #tpu.memory_space<vmem>>, vector<2x256xf32>
    %cst_120 = arith.constant dense<0.000000e+00> : vector<2x256xf32>
    %369 = tpu.matmul %364, %367, %cst_120 {dimension_numbers = #tpu.dot_dimension_numbers<[1], [0], [0], [1], [0, 0, 1, 1], [], []>} : vector<2x64xf32>, vector<64x256xf32>, vector<2x256xf32> -> vector<2x256xf32>
    %370 = arith.addf %368, %369 : vector<2x256xf32>
    %371 = vector.extract_strided_slice %370 {offsets = [0, 0], sizes = [2, 192], strides = [1, 1]} : vector<2x256xf32> to vector<2x192xf32>
    %372 = arith.negf %371 : vector<2x192xf32>
    %373 = math.exp %372 : vector<2x192xf32>
    %cst_121 = arith.constant 1.000000e+00 : f32
    %374 = vector.broadcast %cst_121 : f32 to vector<2x192xf32>
    %375 = arith.addf %374, %373 : vector<2x192xf32>
    %376 = arith.divf %374, %375 : vector<2x192xf32>
    %377 = vector.extract_strided_slice %370 {offsets = [0, 192], sizes = [2, 64], strides = [1, 1]} : vector<2x256xf32> to vector<2x64xf32>
    %378 = math.tanh %377 : vector<2x64xf32>
    %379 = vector.extract_strided_slice %376 {offsets = [0, 64], sizes = [2, 64], strides = [1, 1]} : vector<2x192xf32> to vector<2x64xf32>
    %380 = arith.mulf %379, %365 : vector<2x64xf32>
    %381 = vector.extract_strided_slice %376 {offsets = [0, 0], sizes = [2, 64], strides = [1, 1]} : vector<2x192xf32> to vector<2x64xf32>
    %382 = arith.mulf %381, %378 : vector<2x64xf32>
    %383 = arith.addf %380, %382 : vector<2x64xf32>
    %384 = vector.extract_strided_slice %376 {offsets = [0, 128], sizes = [2, 64], strides = [1, 1]} : vector<2x192xf32> to vector<2x64xf32>
    %385 = math.tanh %383 : vector<2x64xf32>
    %386 = arith.mulf %384, %385 : vector<2x64xf32>
    %c0_122 = arith.constant 0 : index
    %c0_123 = arith.constant 0 : index
    %c0_124 = arith.constant 0 : index
    %387 = vector.load %arg8[%c0_122, %c0_123, %c0_124] : memref<16x2x64xf32, #tpu.memory_space<vmem>>, vector<1x2x64xf32>
    %388 = vector.shape_cast %387 : vector<1x2x64xf32> to vector<2x64xf32>
    %389 = vector.shape_cast %386 : vector<2x64xf32> to vector<1x2x64xf32>
    tpu.vector_store %arg8[%c0_122, %c0_123, %c0_124], %389 {strides = array<i32>} : memref<16x2x64xf32, #tpu.memory_space<vmem>>, vector<1x2x64xf32>,
    %c2_125 = arith.constant 2 : index
    %c0_126 = arith.constant 0 : index
    %390 = vector.load %arg11[%c2_125, %c0_126] : memref<32x256xf32, #tpu.memory_space<vmem>>, vector<2x256xf32>
    %cst_127 = arith.constant dense<0.000000e+00> : vector<2x256xf32>
    %391 = tpu.matmul %386, %367, %cst_127 {dimension_numbers = #tpu.dot_dimension_numbers<[1], [0], [0], [1], [0, 0, 1, 1], [], []>} : vector<2x64xf32>, vector<64x256xf32>, vector<2x256xf32> -> vector<2x256xf32>
    %392 = arith.addf %390, %391 : vector<2x256xf32>
    %393 = vector.extract_strided_slice %392 {offsets = [0, 0], sizes = [2, 192], strides = [1, 1]} : vector<2x256xf32> to vector<2x192xf32>
    %394 = arith.negf %393 : vector<2x192xf32>
    %395 = math.exp %394 : vector<2x192xf32>
    %cst_128 = arith.constant 1.000000e+00 : f32
    %396 = vector.broadcast %cst_128 : f32 to vector<2x192xf32>
    %397 = arith.addf %396, %395 : vector<2x192xf32>
    %398 = arith.divf %396, %397 : vector<2x192xf32>
    %399 = vector.extract_strided_slice %392 {offsets = [0, 192], sizes = [2, 64], strides = [1, 1]} : vector<2x256xf32> to vector<2x64xf32>
    %400 = math.tanh %399 : vector<2x64xf32>
    %401 = vector.extract_strided_slice %398 {offsets = [0, 64], sizes = [2, 64], strides = [1, 1]} : vector<2x192xf32> to vector<2x64xf32>
    %402 = arith.mulf %401, %383 : vector<2x64xf32>
    %403 = vector.extract_strided_slice %398 {offsets = [0, 0], sizes = [2, 64], strides = [1, 1]} : vector<2x192xf32> to vector<2x64xf32>
    %404 = arith.mulf %403, %400 : vector<2x64xf32>
    %405 = arith.addf %402, %404 : vector<2x64xf32>
    %406 = vector.extract_strided_slice %398 {offsets = [0, 128], sizes = [2, 64], strides = [1, 1]} : vector<2x192xf32> to vector<2x64xf32>
    %407 = math.tanh %405 : vector<2x64xf32>
    %408 = arith.mulf %406, %407 : vector<2x64xf32>
    %c1_129 = arith.constant 1 : index
    %c0_130 = arith.constant 0 : index
    %c0_131 = arith.constant 0 : index
    %409 = vector.load %arg8[%c1_129, %c0_130, %c0_131] : memref<16x2x64xf32, #tpu.memory_space<vmem>>, vector<1x2x64xf32>
    %410 = vector.shape_cast %409 : vector<1x2x64xf32> to vector<2x64xf32>
    %411 = vector.shape_cast %408 : vector<2x64xf32> to vector<1x2x64xf32>
    tpu.vector_store %arg8[%c1_129, %c0_130, %c0_131], %411 {strides = array<i32>} : memref<16x2x64xf32, #tpu.memory_space<vmem>>, vector<1x2x64xf32>,
    %c4_132 = arith.constant 4 : index
    %c0_133 = arith.constant 0 : index
    %412 = vector.load %arg11[%c4_132, %c0_133] : memref<32x256xf32, #tpu.memory_space<vmem>>, vector<2x256xf32>
    %cst_134 = arith.constant dense<0.000000e+00> : vector<2x256xf32>
    %413 = tpu.matmul %408, %367, %cst_134 {dimension_numbers = #tpu.dot_dimension_numbers<[1], [0], [0], [1], [0, 0, 1, 1], [], []>} : vector<2x64xf32>, vector<64x256xf32>, vector<2x256xf32> -> vector<2x256xf32>
    %414 = arith.addf %412, %413 : vector<2x256xf32>
    %415 = vector.extract_strided_slice %414 {offsets = [0, 0], sizes = [2, 192], strides = [1, 1]} : vector<2x256xf32> to vector<2x192xf32>
    %416 = arith.negf %415 : vector<2x192xf32>
    %417 = math.exp %416 : vector<2x192xf32>
    %cst_135 = arith.constant 1.000000e+00 : f32
    %418 = vector.broadcast %cst_135 : f32 to vector<2x192xf32>
    %419 = arith.addf %418, %417 : vector<2x192xf32>
    %420 = arith.divf %418, %419 : vector<2x192xf32>
    %421 = vector.extract_strided_slice %414 {offsets = [0, 192], sizes = [2, 64], strides = [1, 1]} : vector<2x256xf32> to vector<2x64xf32>
    %422 = math.tanh %421 : vector<2x64xf32>
    %423 = vector.extract_strided_slice %420 {offsets = [0, 64], sizes = [2, 64], strides = [1, 1]} : vector<2x192xf32> to vector<2x64xf32>
    %424 = arith.mulf %423, %405 : vector<2x64xf32>
    %425 = vector.extract_strided_slice %420 {offsets = [0, 0], sizes = [2, 64], strides = [1, 1]} : vector<2x192xf32> to vector<2x64xf32>
    %426 = arith.mulf %425, %422 : vector<2x64xf32>
    %427 = arith.addf %424, %426 : vector<2x64xf32>
    %428 = vector.extract_strided_slice %420 {offsets = [0, 128], sizes = [2, 64], strides = [1, 1]} : vector<2x192xf32> to vector<2x64xf32>
    %429 = math.tanh %427 : vector<2x64xf32>
    %430 = arith.mulf %428, %429 : vector<2x64xf32>
    %c2_136 = arith.constant 2 : index
    %c0_137 = arith.constant 0 : index
    %c0_138 = arith.constant 0 : index
    %431 = vector.load %arg8[%c2_136, %c0_137, %c0_138] : memref<16x2x64xf32, #tpu.memory_space<vmem>>, vector<1x2x64xf32>
    %432 = vector.shape_cast %431 : vector<1x2x64xf32> to vector<2x64xf32>
    %433 = vector.shape_cast %430 : vector<2x64xf32> to vector<1x2x64xf32>
    tpu.vector_store %arg8[%c2_136, %c0_137, %c0_138], %433 {strides = array<i32>} : memref<16x2x64xf32, #tpu.memory_space<vmem>>, vector<1x2x64xf32>,
    %c6_139 = arith.constant 6 : index
    %c0_140 = arith.constant 0 : index
    %434 = vector.load %arg11[%c6_139, %c0_140] : memref<32x256xf32, #tpu.memory_space<vmem>>, vector<2x256xf32>
    %cst_141 = arith.constant dense<0.000000e+00> : vector<2x256xf32>
    %435 = tpu.matmul %430, %367, %cst_141 {dimension_numbers = #tpu.dot_dimension_numbers<[1], [0], [0], [1], [0, 0, 1, 1], [], []>} : vector<2x64xf32>, vector<64x256xf32>, vector<2x256xf32> -> vector<2x256xf32>
    %436 = arith.addf %434, %435 : vector<2x256xf32>
    %437 = vector.extract_strided_slice %436 {offsets = [0, 0], sizes = [2, 192], strides = [1, 1]} : vector<2x256xf32> to vector<2x192xf32>
    %438 = arith.negf %437 : vector<2x192xf32>
    %439 = math.exp %438 : vector<2x192xf32>
    %cst_142 = arith.constant 1.000000e+00 : f32
    %440 = vector.broadcast %cst_142 : f32 to vector<2x192xf32>
    %441 = arith.addf %440, %439 : vector<2x192xf32>
    %442 = arith.divf %440, %441 : vector<2x192xf32>
    %443 = vector.extract_strided_slice %436 {offsets = [0, 192], sizes = [2, 64], strides = [1, 1]} : vector<2x256xf32> to vector<2x64xf32>
    %444 = math.tanh %443 : vector<2x64xf32>
    %445 = vector.extract_strided_slice %442 {offsets = [0, 64], sizes = [2, 64], strides = [1, 1]} : vector<2x192xf32> to vector<2x64xf32>
    %446 = arith.mulf %445, %427 : vector<2x64xf32>
    %447 = vector.extract_strided_slice %442 {offsets = [0, 0], sizes = [2, 64], strides = [1, 1]} : vector<2x192xf32> to vector<2x64xf32>
    %448 = arith.mulf %447, %444 : vector<2x64xf32>
    %449 = arith.addf %446, %448 : vector<2x64xf32>
    %450 = vector.extract_strided_slice %442 {offsets = [0, 128], sizes = [2, 64], strides = [1, 1]} : vector<2x192xf32> to vector<2x64xf32>
    %451 = math.tanh %449 : vector<2x64xf32>
    %452 = arith.mulf %450, %451 : vector<2x64xf32>
    %c3 = arith.constant 3 : index
    %c0_143 = arith.constant 0 : index
    %c0_144 = arith.constant 0 : index
    %453 = vector.load %arg8[%c3, %c0_143, %c0_144] : memref<16x2x64xf32, #tpu.memory_space<vmem>>, vector<1x2x64xf32>
    %454 = vector.shape_cast %453 : vector<1x2x64xf32> to vector<2x64xf32>
    %455 = vector.shape_cast %452 : vector<2x64xf32> to vector<1x2x64xf32>
    tpu.vector_store %arg8[%c3, %c0_143, %c0_144], %455 {strides = array<i32>} : memref<16x2x64xf32, #tpu.memory_space<vmem>>, vector<1x2x64xf32>,
    %c8_145 = arith.constant 8 : index
    %c0_146 = arith.constant 0 : index
    %456 = vector.load %arg11[%c8_145, %c0_146] : memref<32x256xf32, #tpu.memory_space<vmem>>, vector<2x256xf32>
    %cst_147 = arith.constant dense<0.000000e+00> : vector<2x256xf32>
    %457 = tpu.matmul %452, %367, %cst_147 {dimension_numbers = #tpu.dot_dimension_numbers<[1], [0], [0], [1], [0, 0, 1, 1], [], []>} : vector<2x64xf32>, vector<64x256xf32>, vector<2x256xf32> -> vector<2x256xf32>
    %458 = arith.addf %456, %457 : vector<2x256xf32>
    %459 = vector.extract_strided_slice %458 {offsets = [0, 0], sizes = [2, 192], strides = [1, 1]} : vector<2x256xf32> to vector<2x192xf32>
    %460 = arith.negf %459 : vector<2x192xf32>
    %461 = math.exp %460 : vector<2x192xf32>
    %cst_148 = arith.constant 1.000000e+00 : f32
    %462 = vector.broadcast %cst_148 : f32 to vector<2x192xf32>
    %463 = arith.addf %462, %461 : vector<2x192xf32>
    %464 = arith.divf %462, %463 : vector<2x192xf32>
    %465 = vector.extract_strided_slice %458 {offsets = [0, 192], sizes = [2, 64], strides = [1, 1]} : vector<2x256xf32> to vector<2x64xf32>
    %466 = math.tanh %465 : vector<2x64xf32>
    %467 = vector.extract_strided_slice %464 {offsets = [0, 64], sizes = [2, 64], strides = [1, 1]} : vector<2x192xf32> to vector<2x64xf32>
    %468 = arith.mulf %467, %449 : vector<2x64xf32>
    %469 = vector.extract_strided_slice %464 {offsets = [0, 0], sizes = [2, 64], strides = [1, 1]} : vector<2x192xf32> to vector<2x64xf32>
    %470 = arith.mulf %469, %466 : vector<2x64xf32>
    %471 = arith.addf %468, %470 : vector<2x64xf32>
    %472 = vector.extract_strided_slice %464 {offsets = [0, 128], sizes = [2, 64], strides = [1, 1]} : vector<2x192xf32> to vector<2x64xf32>
    %473 = math.tanh %471 : vector<2x64xf32>
    %474 = arith.mulf %472, %473 : vector<2x64xf32>
    %c4_149 = arith.constant 4 : index
    %c0_150 = arith.constant 0 : index
    %c0_151 = arith.constant 0 : index
    %475 = vector.load %arg8[%c4_149, %c0_150, %c0_151] : memref<16x2x64xf32, #tpu.memory_space<vmem>>, vector<1x2x64xf32>
    %476 = vector.shape_cast %475 : vector<1x2x64xf32> to vector<2x64xf32>
    %477 = vector.shape_cast %474 : vector<2x64xf32> to vector<1x2x64xf32>
    tpu.vector_store %arg8[%c4_149, %c0_150, %c0_151], %477 {strides = array<i32>} : memref<16x2x64xf32, #tpu.memory_space<vmem>>, vector<1x2x64xf32>,
    %c10_152 = arith.constant 10 : index
    %c0_153 = arith.constant 0 : index
    %478 = vector.load %arg11[%c10_152, %c0_153] : memref<32x256xf32, #tpu.memory_space<vmem>>, vector<2x256xf32>
    %cst_154 = arith.constant dense<0.000000e+00> : vector<2x256xf32>
    %479 = tpu.matmul %474, %367, %cst_154 {dimension_numbers = #tpu.dot_dimension_numbers<[1], [0], [0], [1], [0, 0, 1, 1], [], []>} : vector<2x64xf32>, vector<64x256xf32>, vector<2x256xf32> -> vector<2x256xf32>
    %480 = arith.addf %478, %479 : vector<2x256xf32>
    %481 = vector.extract_strided_slice %480 {offsets = [0, 0], sizes = [2, 192], strides = [1, 1]} : vector<2x256xf32> to vector<2x192xf32>
    %482 = arith.negf %481 : vector<2x192xf32>
    %483 = math.exp %482 : vector<2x192xf32>
    %cst_155 = arith.constant 1.000000e+00 : f32
    %484 = vector.broadcast %cst_155 : f32 to vector<2x192xf32>
    %485 = arith.addf %484, %483 : vector<2x192xf32>
    %486 = arith.divf %484, %485 : vector<2x192xf32>
    %487 = vector.extract_strided_slice %480 {offsets = [0, 192], sizes = [2, 64], strides = [1, 1]} : vector<2x256xf32> to vector<2x64xf32>
    %488 = math.tanh %487 : vector<2x64xf32>
    %489 = vector.extract_strided_slice %486 {offsets = [0, 64], sizes = [2, 64], strides = [1, 1]} : vector<2x192xf32> to vector<2x64xf32>
    %490 = arith.mulf %489, %471 : vector<2x64xf32>
    %491 = vector.extract_strided_slice %486 {offsets = [0, 0], sizes = [2, 64], strides = [1, 1]} : vector<2x192xf32> to vector<2x64xf32>
    %492 = arith.mulf %491, %488 : vector<2x64xf32>
    %493 = arith.addf %490, %492 : vector<2x64xf32>
    %494 = vector.extract_strided_slice %486 {offsets = [0, 128], sizes = [2, 64], strides = [1, 1]} : vector<2x192xf32> to vector<2x64xf32>
    %495 = math.tanh %493 : vector<2x64xf32>
    %496 = arith.mulf %494, %495 : vector<2x64xf32>
    %c5 = arith.constant 5 : index
    %c0_156 = arith.constant 0 : index
    %c0_157 = arith.constant 0 : index
    %497 = vector.load %arg8[%c5, %c0_156, %c0_157] : memref<16x2x64xf32, #tpu.memory_space<vmem>>, vector<1x2x64xf32>
    %498 = vector.shape_cast %497 : vector<1x2x64xf32> to vector<2x64xf32>
    %499 = vector.shape_cast %496 : vector<2x64xf32> to vector<1x2x64xf32>
    tpu.vector_store %arg8[%c5, %c0_156, %c0_157], %499 {strides = array<i32>} : memref<16x2x64xf32, #tpu.memory_space<vmem>>, vector<1x2x64xf32>,
    %c12_158 = arith.constant 12 : index
    %c0_159 = arith.constant 0 : index
    %500 = vector.load %arg11[%c12_158, %c0_159] : memref<32x256xf32, #tpu.memory_space<vmem>>, vector<2x256xf32>
    %cst_160 = arith.constant dense<0.000000e+00> : vector<2x256xf32>
    %501 = tpu.matmul %496, %367, %cst_160 {dimension_numbers = #tpu.dot_dimension_numbers<[1], [0], [0], [1], [0, 0, 1, 1], [], []>} : vector<2x64xf32>, vector<64x256xf32>, vector<2x256xf32> -> vector<2x256xf32>
    %502 = arith.addf %500, %501 : vector<2x256xf32>
    %503 = vector.extract_strided_slice %502 {offsets = [0, 0], sizes = [2, 192], strides = [1, 1]} : vector<2x256xf32> to vector<2x192xf32>
    %504 = arith.negf %503 : vector<2x192xf32>
    %505 = math.exp %504 : vector<2x192xf32>
    %cst_161 = arith.constant 1.000000e+00 : f32
    %506 = vector.broadcast %cst_161 : f32 to vector<2x192xf32>
    %507 = arith.addf %506, %505 : vector<2x192xf32>
    %508 = arith.divf %506, %507 : vector<2x192xf32>
    %509 = vector.extract_strided_slice %502 {offsets = [0, 192], sizes = [2, 64], strides = [1, 1]} : vector<2x256xf32> to vector<2x64xf32>
    %510 = math.tanh %509 : vector<2x64xf32>
    %511 = vector.extract_strided_slice %508 {offsets = [0, 64], sizes = [2, 64], strides = [1, 1]} : vector<2x192xf32> to vector<2x64xf32>
    %512 = arith.mulf %511, %493 : vector<2x64xf32>
    %513 = vector.extract_strided_slice %508 {offsets = [0, 0], sizes = [2, 64], strides = [1, 1]} : vector<2x192xf32> to vector<2x64xf32>
    %514 = arith.mulf %513, %510 : vector<2x64xf32>
    %515 = arith.addf %512, %514 : vector<2x64xf32>
    %516 = vector.extract_strided_slice %508 {offsets = [0, 128], sizes = [2, 64], strides = [1, 1]} : vector<2x192xf32> to vector<2x64xf32>
    %517 = math.tanh %515 : vector<2x64xf32>
    %518 = arith.mulf %516, %517 : vector<2x64xf32>
    %c6_162 = arith.constant 6 : index
    %c0_163 = arith.constant 0 : index
    %c0_164 = arith.constant 0 : index
    %519 = vector.load %arg8[%c6_162, %c0_163, %c0_164] : memref<16x2x64xf32, #tpu.memory_space<vmem>>, vector<1x2x64xf32>
    %520 = vector.shape_cast %519 : vector<1x2x64xf32> to vector<2x64xf32>
    %521 = vector.shape_cast %518 : vector<2x64xf32> to vector<1x2x64xf32>
    tpu.vector_store %arg8[%c6_162, %c0_163, %c0_164], %521 {strides = array<i32>} : memref<16x2x64xf32, #tpu.memory_space<vmem>>, vector<1x2x64xf32>,
    %c14_165 = arith.constant 14 : index
    %c0_166 = arith.constant 0 : index
    %522 = vector.load %arg11[%c14_165, %c0_166] : memref<32x256xf32, #tpu.memory_space<vmem>>, vector<2x256xf32>
    %cst_167 = arith.constant dense<0.000000e+00> : vector<2x256xf32>
    %523 = tpu.matmul %518, %367, %cst_167 {dimension_numbers = #tpu.dot_dimension_numbers<[1], [0], [0], [1], [0, 0, 1, 1], [], []>} : vector<2x64xf32>, vector<64x256xf32>, vector<2x256xf32> -> vector<2x256xf32>
    %524 = arith.addf %522, %523 : vector<2x256xf32>
    %525 = vector.extract_strided_slice %524 {offsets = [0, 0], sizes = [2, 192], strides = [1, 1]} : vector<2x256xf32> to vector<2x192xf32>
    %526 = arith.negf %525 : vector<2x192xf32>
    %527 = math.exp %526 : vector<2x192xf32>
    %cst_168 = arith.constant 1.000000e+00 : f32
    %528 = vector.broadcast %cst_168 : f32 to vector<2x192xf32>
    %529 = arith.addf %528, %527 : vector<2x192xf32>
    %530 = arith.divf %528, %529 : vector<2x192xf32>
    %531 = vector.extract_strided_slice %524 {offsets = [0, 192], sizes = [2, 64], strides = [1, 1]} : vector<2x256xf32> to vector<2x64xf32>
    %532 = math.tanh %531 : vector<2x64xf32>
    %533 = vector.extract_strided_slice %530 {offsets = [0, 64], sizes = [2, 64], strides = [1, 1]} : vector<2x192xf32> to vector<2x64xf32>
    %534 = arith.mulf %533, %515 : vector<2x64xf32>
    %535 = vector.extract_strided_slice %530 {offsets = [0, 0], sizes = [2, 64], strides = [1, 1]} : vector<2x192xf32> to vector<2x64xf32>
    %536 = arith.mulf %535, %532 : vector<2x64xf32>
    %537 = arith.addf %534, %536 : vector<2x64xf32>
    %538 = vector.extract_strided_slice %530 {offsets = [0, 128], sizes = [2, 64], strides = [1, 1]} : vector<2x192xf32> to vector<2x64xf32>
    %539 = math.tanh %537 : vector<2x64xf32>
    %540 = arith.mulf %538, %539 : vector<2x64xf32>
    %c7 = arith.constant 7 : index
    %c0_169 = arith.constant 0 : index
    %c0_170 = arith.constant 0 : index
    %541 = vector.load %arg8[%c7, %c0_169, %c0_170] : memref<16x2x64xf32, #tpu.memory_space<vmem>>, vector<1x2x64xf32>
    %542 = vector.shape_cast %541 : vector<1x2x64xf32> to vector<2x64xf32>
    %543 = vector.shape_cast %540 : vector<2x64xf32> to vector<1x2x64xf32>
    tpu.vector_store %arg8[%c7, %c0_169, %c0_170], %543 {strides = array<i32>} : memref<16x2x64xf32, #tpu.memory_space<vmem>>, vector<1x2x64xf32>,
    %c16_171 = arith.constant 16 : index
    %c0_172 = arith.constant 0 : index
    %544 = vector.load %arg11[%c16_171, %c0_172] : memref<32x256xf32, #tpu.memory_space<vmem>>, vector<2x256xf32>
    %cst_173 = arith.constant dense<0.000000e+00> : vector<2x256xf32>
    %545 = tpu.matmul %540, %367, %cst_173 {dimension_numbers = #tpu.dot_dimension_numbers<[1], [0], [0], [1], [0, 0, 1, 1], [], []>} : vector<2x64xf32>, vector<64x256xf32>, vector<2x256xf32> -> vector<2x256xf32>
    %546 = arith.addf %544, %545 : vector<2x256xf32>
    %547 = vector.extract_strided_slice %546 {offsets = [0, 0], sizes = [2, 192], strides = [1, 1]} : vector<2x256xf32> to vector<2x192xf32>
    %548 = arith.negf %547 : vector<2x192xf32>
    %549 = math.exp %548 : vector<2x192xf32>
    %cst_174 = arith.constant 1.000000e+00 : f32
    %550 = vector.broadcast %cst_174 : f32 to vector<2x192xf32>
    %551 = arith.addf %550, %549 : vector<2x192xf32>
    %552 = arith.divf %550, %551 : vector<2x192xf32>
    %553 = vector.extract_strided_slice %546 {offsets = [0, 192], sizes = [2, 64], strides = [1, 1]} : vector<2x256xf32> to vector<2x64xf32>
    %554 = math.tanh %553 : vector<2x64xf32>
    %555 = vector.extract_strided_slice %552 {offsets = [0, 64], sizes = [2, 64], strides = [1, 1]} : vector<2x192xf32> to vector<2x64xf32>
    %556 = arith.mulf %555, %537 : vector<2x64xf32>
    %557 = vector.extract_strided_slice %552 {offsets = [0, 0], sizes = [2, 64], strides = [1, 1]} : vector<2x192xf32> to vector<2x64xf32>
    %558 = arith.mulf %557, %554 : vector<2x64xf32>
    %559 = arith.addf %556, %558 : vector<2x64xf32>
    %560 = vector.extract_strided_slice %552 {offsets = [0, 128], sizes = [2, 64], strides = [1, 1]} : vector<2x192xf32> to vector<2x64xf32>
    %561 = math.tanh %559 : vector<2x64xf32>
    %562 = arith.mulf %560, %561 : vector<2x64xf32>
    %c8_175 = arith.constant 8 : index
    %c0_176 = arith.constant 0 : index
    %c0_177 = arith.constant 0 : index
    %563 = vector.load %arg8[%c8_175, %c0_176, %c0_177] : memref<16x2x64xf32, #tpu.memory_space<vmem>>, vector<1x2x64xf32>
    %564 = vector.shape_cast %563 : vector<1x2x64xf32> to vector<2x64xf32>
    %565 = vector.shape_cast %562 : vector<2x64xf32> to vector<1x2x64xf32>
    tpu.vector_store %arg8[%c8_175, %c0_176, %c0_177], %565 {strides = array<i32>} : memref<16x2x64xf32, #tpu.memory_space<vmem>>, vector<1x2x64xf32>,
    %c18_178 = arith.constant 18 : index
    %c0_179 = arith.constant 0 : index
    %566 = vector.load %arg11[%c18_178, %c0_179] : memref<32x256xf32, #tpu.memory_space<vmem>>, vector<2x256xf32>
    %cst_180 = arith.constant dense<0.000000e+00> : vector<2x256xf32>
    %567 = tpu.matmul %562, %367, %cst_180 {dimension_numbers = #tpu.dot_dimension_numbers<[1], [0], [0], [1], [0, 0, 1, 1], [], []>} : vector<2x64xf32>, vector<64x256xf32>, vector<2x256xf32> -> vector<2x256xf32>
    %568 = arith.addf %566, %567 : vector<2x256xf32>
    %569 = vector.extract_strided_slice %568 {offsets = [0, 0], sizes = [2, 192], strides = [1, 1]} : vector<2x256xf32> to vector<2x192xf32>
    %570 = arith.negf %569 : vector<2x192xf32>
    %571 = math.exp %570 : vector<2x192xf32>
    %cst_181 = arith.constant 1.000000e+00 : f32
    %572 = vector.broadcast %cst_181 : f32 to vector<2x192xf32>
    %573 = arith.addf %572, %571 : vector<2x192xf32>
    %574 = arith.divf %572, %573 : vector<2x192xf32>
    %575 = vector.extract_strided_slice %568 {offsets = [0, 192], sizes = [2, 64], strides = [1, 1]} : vector<2x256xf32> to vector<2x64xf32>
    %576 = math.tanh %575 : vector<2x64xf32>
    %577 = vector.extract_strided_slice %574 {offsets = [0, 64], sizes = [2, 64], strides = [1, 1]} : vector<2x192xf32> to vector<2x64xf32>
    %578 = arith.mulf %577, %559 : vector<2x64xf32>
    %579 = vector.extract_strided_slice %574 {offsets = [0, 0], sizes = [2, 64], strides = [1, 1]} : vector<2x192xf32> to vector<2x64xf32>
    %580 = arith.mulf %579, %576 : vector<2x64xf32>
    %581 = arith.addf %578, %580 : vector<2x64xf32>
    %582 = vector.extract_strided_slice %574 {offsets = [0, 128], sizes = [2, 64], strides = [1, 1]} : vector<2x192xf32> to vector<2x64xf32>
    %583 = math.tanh %581 : vector<2x64xf32>
    %584 = arith.mulf %582, %583 : vector<2x64xf32>
    %c9 = arith.constant 9 : index
    %c0_182 = arith.constant 0 : index
    %c0_183 = arith.constant 0 : index
    %585 = vector.load %arg8[%c9, %c0_182, %c0_183] : memref<16x2x64xf32, #tpu.memory_space<vmem>>, vector<1x2x64xf32>
    %586 = vector.shape_cast %585 : vector<1x2x64xf32> to vector<2x64xf32>
    %587 = vector.shape_cast %584 : vector<2x64xf32> to vector<1x2x64xf32>
    tpu.vector_store %arg8[%c9, %c0_182, %c0_183], %587 {strides = array<i32>} : memref<16x2x64xf32, #tpu.memory_space<vmem>>, vector<1x2x64xf32>,
    %c20_184 = arith.constant 20 : index
    %c0_185 = arith.constant 0 : index
    %588 = vector.load %arg11[%c20_184, %c0_185] : memref<32x256xf32, #tpu.memory_space<vmem>>, vector<2x256xf32>
    %cst_186 = arith.constant dense<0.000000e+00> : vector<2x256xf32>
    %589 = tpu.matmul %584, %367, %cst_186 {dimension_numbers = #tpu.dot_dimension_numbers<[1], [0], [0], [1], [0, 0, 1, 1], [], []>} : vector<2x64xf32>, vector<64x256xf32>, vector<2x256xf32> -> vector<2x256xf32>
    %590 = arith.addf %588, %589 : vector<2x256xf32>
    %591 = vector.extract_strided_slice %590 {offsets = [0, 0], sizes = [2, 192], strides = [1, 1]} : vector<2x256xf32> to vector<2x192xf32>
    %592 = arith.negf %591 : vector<2x192xf32>
    %593 = math.exp %592 : vector<2x192xf32>
    %cst_187 = arith.constant 1.000000e+00 : f32
    %594 = vector.broadcast %cst_187 : f32 to vector<2x192xf32>
    %595 = arith.addf %594, %593 : vector<2x192xf32>
    %596 = arith.divf %594, %595 : vector<2x192xf32>
    %597 = vector.extract_strided_slice %590 {offsets = [0, 192], sizes = [2, 64], strides = [1, 1]} : vector<2x256xf32> to vector<2x64xf32>
    %598 = math.tanh %597 : vector<2x64xf32>
    %599 = vector.extract_strided_slice %596 {offsets = [0, 64], sizes = [2, 64], strides = [1, 1]} : vector<2x192xf32> to vector<2x64xf32>
    %600 = arith.mulf %599, %581 : vector<2x64xf32>
    %601 = vector.extract_strided_slice %596 {offsets = [0, 0], sizes = [2, 64], strides = [1, 1]} : vector<2x192xf32> to vector<2x64xf32>
    %602 = arith.mulf %601, %598 : vector<2x64xf32>
    %603 = arith.addf %600, %602 : vector<2x64xf32>
    %604 = vector.extract_strided_slice %596 {offsets = [0, 128], sizes = [2, 64], strides = [1, 1]} : vector<2x192xf32> to vector<2x64xf32>
    %605 = math.tanh %603 : vector<2x64xf32>
    %606 = arith.mulf %604, %605 : vector<2x64xf32>
    %c10_188 = arith.constant 10 : index
    %c0_189 = arith.constant 0 : index
    %c0_190 = arith.constant 0 : index
    %607 = vector.load %arg8[%c10_188, %c0_189, %c0_190] : memref<16x2x64xf32, #tpu.memory_space<vmem>>, vector<1x2x64xf32>
    %608 = vector.shape_cast %607 : vector<1x2x64xf32> to vector<2x64xf32>
    %609 = vector.shape_cast %606 : vector<2x64xf32> to vector<1x2x64xf32>
    tpu.vector_store %arg8[%c10_188, %c0_189, %c0_190], %609 {strides = array<i32>} : memref<16x2x64xf32, #tpu.memory_space<vmem>>, vector<1x2x64xf32>,
    %c22_191 = arith.constant 22 : index
    %c0_192 = arith.constant 0 : index
    %610 = vector.load %arg11[%c22_191, %c0_192] : memref<32x256xf32, #tpu.memory_space<vmem>>, vector<2x256xf32>
    %cst_193 = arith.constant dense<0.000000e+00> : vector<2x256xf32>
    %611 = tpu.matmul %606, %367, %cst_193 {dimension_numbers = #tpu.dot_dimension_numbers<[1], [0], [0], [1], [0, 0, 1, 1], [], []>} : vector<2x64xf32>, vector<64x256xf32>, vector<2x256xf32> -> vector<2x256xf32>
    %612 = arith.addf %610, %611 : vector<2x256xf32>
    %613 = vector.extract_strided_slice %612 {offsets = [0, 0], sizes = [2, 192], strides = [1, 1]} : vector<2x256xf32> to vector<2x192xf32>
    %614 = arith.negf %613 : vector<2x192xf32>
    %615 = math.exp %614 : vector<2x192xf32>
    %cst_194 = arith.constant 1.000000e+00 : f32
    %616 = vector.broadcast %cst_194 : f32 to vector<2x192xf32>
    %617 = arith.addf %616, %615 : vector<2x192xf32>
    %618 = arith.divf %616, %617 : vector<2x192xf32>
    %619 = vector.extract_strided_slice %612 {offsets = [0, 192], sizes = [2, 64], strides = [1, 1]} : vector<2x256xf32> to vector<2x64xf32>
    %620 = math.tanh %619 : vector<2x64xf32>
    %621 = vector.extract_strided_slice %618 {offsets = [0, 64], sizes = [2, 64], strides = [1, 1]} : vector<2x192xf32> to vector<2x64xf32>
    %622 = arith.mulf %621, %603 : vector<2x64xf32>
    %623 = vector.extract_strided_slice %618 {offsets = [0, 0], sizes = [2, 64], strides = [1, 1]} : vector<2x192xf32> to vector<2x64xf32>
    %624 = arith.mulf %623, %620 : vector<2x64xf32>
    %625 = arith.addf %622, %624 : vector<2x64xf32>
    %626 = vector.extract_strided_slice %618 {offsets = [0, 128], sizes = [2, 64], strides = [1, 1]} : vector<2x192xf32> to vector<2x64xf32>
    %627 = math.tanh %625 : vector<2x64xf32>
    %628 = arith.mulf %626, %627 : vector<2x64xf32>
    %c11 = arith.constant 11 : index
    %c0_195 = arith.constant 0 : index
    %c0_196 = arith.constant 0 : index
    %629 = vector.load %arg8[%c11, %c0_195, %c0_196] : memref<16x2x64xf32, #tpu.memory_space<vmem>>, vector<1x2x64xf32>
    %630 = vector.shape_cast %629 : vector<1x2x64xf32> to vector<2x64xf32>
    %631 = vector.shape_cast %628 : vector<2x64xf32> to vector<1x2x64xf32>
    tpu.vector_store %arg8[%c11, %c0_195, %c0_196], %631 {strides = array<i32>} : memref<16x2x64xf32, #tpu.memory_space<vmem>>, vector<1x2x64xf32>,
    %c24_197 = arith.constant 24 : index
    %c0_198 = arith.constant 0 : index
    %632 = vector.load %arg11[%c24_197, %c0_198] : memref<32x256xf32, #tpu.memory_space<vmem>>, vector<2x256xf32>
    %cst_199 = arith.constant dense<0.000000e+00> : vector<2x256xf32>
    %633 = tpu.matmul %628, %367, %cst_199 {dimension_numbers = #tpu.dot_dimension_numbers<[1], [0], [0], [1], [0, 0, 1, 1], [], []>} : vector<2x64xf32>, vector<64x256xf32>, vector<2x256xf32> -> vector<2x256xf32>
    %634 = arith.addf %632, %633 : vector<2x256xf32>
    %635 = vector.extract_strided_slice %634 {offsets = [0, 0], sizes = [2, 192], strides = [1, 1]} : vector<2x256xf32> to vector<2x192xf32>
    %636 = arith.negf %635 : vector<2x192xf32>
    %637 = math.exp %636 : vector<2x192xf32>
    %cst_200 = arith.constant 1.000000e+00 : f32
    %638 = vector.broadcast %cst_200 : f32 to vector<2x192xf32>
    %639 = arith.addf %638, %637 : vector<2x192xf32>
    %640 = arith.divf %638, %639 : vector<2x192xf32>
    %641 = vector.extract_strided_slice %634 {offsets = [0, 192], sizes = [2, 64], strides = [1, 1]} : vector<2x256xf32> to vector<2x64xf32>
    %642 = math.tanh %641 : vector<2x64xf32>
    %643 = vector.extract_strided_slice %640 {offsets = [0, 64], sizes = [2, 64], strides = [1, 1]} : vector<2x192xf32> to vector<2x64xf32>
    %644 = arith.mulf %643, %625 : vector<2x64xf32>
    %645 = vector.extract_strided_slice %640 {offsets = [0, 0], sizes = [2, 64], strides = [1, 1]} : vector<2x192xf32> to vector<2x64xf32>
    %646 = arith.mulf %645, %642 : vector<2x64xf32>
    %647 = arith.addf %644, %646 : vector<2x64xf32>
    %648 = vector.extract_strided_slice %640 {offsets = [0, 128], sizes = [2, 64], strides = [1, 1]} : vector<2x192xf32> to vector<2x64xf32>
    %649 = math.tanh %647 : vector<2x64xf32>
    %650 = arith.mulf %648, %649 : vector<2x64xf32>
    %c12_201 = arith.constant 12 : index
    %c0_202 = arith.constant 0 : index
    %c0_203 = arith.constant 0 : index
    %651 = vector.load %arg8[%c12_201, %c0_202, %c0_203] : memref<16x2x64xf32, #tpu.memory_space<vmem>>, vector<1x2x64xf32>
    %652 = vector.shape_cast %651 : vector<1x2x64xf32> to vector<2x64xf32>
    %653 = vector.shape_cast %650 : vector<2x64xf32> to vector<1x2x64xf32>
    tpu.vector_store %arg8[%c12_201, %c0_202, %c0_203], %653 {strides = array<i32>} : memref<16x2x64xf32, #tpu.memory_space<vmem>>, vector<1x2x64xf32>,
    %c26_204 = arith.constant 26 : index
    %c0_205 = arith.constant 0 : index
    %654 = vector.load %arg11[%c26_204, %c0_205] : memref<32x256xf32, #tpu.memory_space<vmem>>, vector<2x256xf32>
    %cst_206 = arith.constant dense<0.000000e+00> : vector<2x256xf32>
    %655 = tpu.matmul %650, %367, %cst_206 {dimension_numbers = #tpu.dot_dimension_numbers<[1], [0], [0], [1], [0, 0, 1, 1], [], []>} : vector<2x64xf32>, vector<64x256xf32>, vector<2x256xf32> -> vector<2x256xf32>
    %656 = arith.addf %654, %655 : vector<2x256xf32>
    %657 = vector.extract_strided_slice %656 {offsets = [0, 0], sizes = [2, 192], strides = [1, 1]} : vector<2x256xf32> to vector<2x192xf32>
    %658 = arith.negf %657 : vector<2x192xf32>
    %659 = math.exp %658 : vector<2x192xf32>
    %cst_207 = arith.constant 1.000000e+00 : f32
    %660 = vector.broadcast %cst_207 : f32 to vector<2x192xf32>
    %661 = arith.addf %660, %659 : vector<2x192xf32>
    %662 = arith.divf %660, %661 : vector<2x192xf32>
    %663 = vector.extract_strided_slice %656 {offsets = [0, 192], sizes = [2, 64], strides = [1, 1]} : vector<2x256xf32> to vector<2x64xf32>
    %664 = math.tanh %663 : vector<2x64xf32>
    %665 = vector.extract_strided_slice %662 {offsets = [0, 64], sizes = [2, 64], strides = [1, 1]} : vector<2x192xf32> to vector<2x64xf32>
    %666 = arith.mulf %665, %647 : vector<2x64xf32>
    %667 = vector.extract_strided_slice %662 {offsets = [0, 0], sizes = [2, 64], strides = [1, 1]} : vector<2x192xf32> to vector<2x64xf32>
    %668 = arith.mulf %667, %664 : vector<2x64xf32>
    %669 = arith.addf %666, %668 : vector<2x64xf32>
    %670 = vector.extract_strided_slice %662 {offsets = [0, 128], sizes = [2, 64], strides = [1, 1]} : vector<2x192xf32> to vector<2x64xf32>
    %671 = math.tanh %669 : vector<2x64xf32>
    %672 = arith.mulf %670, %671 : vector<2x64xf32>
    %c13 = arith.constant 13 : index
    %c0_208 = arith.constant 0 : index
    %c0_209 = arith.constant 0 : index
    %673 = vector.load %arg8[%c13, %c0_208, %c0_209] : memref<16x2x64xf32, #tpu.memory_space<vmem>>, vector<1x2x64xf32>
    %674 = vector.shape_cast %673 : vector<1x2x64xf32> to vector<2x64xf32>
    %675 = vector.shape_cast %672 : vector<2x64xf32> to vector<1x2x64xf32>
    tpu.vector_store %arg8[%c13, %c0_208, %c0_209], %675 {strides = array<i32>} : memref<16x2x64xf32, #tpu.memory_space<vmem>>, vector<1x2x64xf32>,
    %c28_210 = arith.constant 28 : index
    %c0_211 = arith.constant 0 : index
    %676 = vector.load %arg11[%c28_210, %c0_211] : memref<32x256xf32, #tpu.memory_space<vmem>>, vector<2x256xf32>
    %cst_212 = arith.constant dense<0.000000e+00> : vector<2x256xf32>
    %677 = tpu.matmul %672, %367, %cst_212 {dimension_numbers = #tpu.dot_dimension_numbers<[1], [0], [0], [1], [0, 0, 1, 1], [], []>} : vector<2x64xf32>, vector<64x256xf32>, vector<2x256xf32> -> vector<2x256xf32>
    %678 = arith.addf %676, %677 : vector<2x256xf32>
    %679 = vector.extract_strided_slice %678 {offsets = [0, 0], sizes = [2, 192], strides = [1, 1]} : vector<2x256xf32> to vector<2x192xf32>
    %680 = arith.negf %679 : vector<2x192xf32>
    %681 = math.exp %680 : vector<2x192xf32>
    %cst_213 = arith.constant 1.000000e+00 : f32
    %682 = vector.broadcast %cst_213 : f32 to vector<2x192xf32>
    %683 = arith.addf %682, %681 : vector<2x192xf32>
    %684 = arith.divf %682, %683 : vector<2x192xf32>
    %685 = vector.extract_strided_slice %678 {offsets = [0, 192], sizes = [2, 64], strides = [1, 1]} : vector<2x256xf32> to vector<2x64xf32>
    %686 = math.tanh %685 : vector<2x64xf32>
    %687 = vector.extract_strided_slice %684 {offsets = [0, 64], sizes = [2, 64], strides = [1, 1]} : vector<2x192xf32> to vector<2x64xf32>
    %688 = arith.mulf %687, %669 : vector<2x64xf32>
    %689 = vector.extract_strided_slice %684 {offsets = [0, 0], sizes = [2, 64], strides = [1, 1]} : vector<2x192xf32> to vector<2x64xf32>
    %690 = arith.mulf %689, %686 : vector<2x64xf32>
    %691 = arith.addf %688, %690 : vector<2x64xf32>
    %692 = vector.extract_strided_slice %684 {offsets = [0, 128], sizes = [2, 64], strides = [1, 1]} : vector<2x192xf32> to vector<2x64xf32>
    %693 = math.tanh %691 : vector<2x64xf32>
    %694 = arith.mulf %692, %693 : vector<2x64xf32>
    %c14_214 = arith.constant 14 : index
    %c0_215 = arith.constant 0 : index
    %c0_216 = arith.constant 0 : index
    %695 = vector.load %arg8[%c14_214, %c0_215, %c0_216] : memref<16x2x64xf32, #tpu.memory_space<vmem>>, vector<1x2x64xf32>
    %696 = vector.shape_cast %695 : vector<1x2x64xf32> to vector<2x64xf32>
    %697 = vector.shape_cast %694 : vector<2x64xf32> to vector<1x2x64xf32>
    tpu.vector_store %arg8[%c14_214, %c0_215, %c0_216], %697 {strides = array<i32>} : memref<16x2x64xf32, #tpu.memory_space<vmem>>, vector<1x2x64xf32>,
    %c30_217 = arith.constant 30 : index
    %c0_218 = arith.constant 0 : index
    %698 = vector.load %arg11[%c30_217, %c0_218] : memref<32x256xf32, #tpu.memory_space<vmem>>, vector<2x256xf32>
    %cst_219 = arith.constant dense<0.000000e+00> : vector<2x256xf32>
    %699 = tpu.matmul %694, %367, %cst_219 {dimension_numbers = #tpu.dot_dimension_numbers<[1], [0], [0], [1], [0, 0, 1, 1], [], []>} : vector<2x64xf32>, vector<64x256xf32>, vector<2x256xf32> -> vector<2x256xf32>
    %700 = arith.addf %698, %699 : vector<2x256xf32>
    %701 = vector.extract_strided_slice %700 {offsets = [0, 0], sizes = [2, 192], strides = [1, 1]} : vector<2x256xf32> to vector<2x192xf32>
    %702 = arith.negf %701 : vector<2x192xf32>
    %703 = math.exp %702 : vector<2x192xf32>
    %cst_220 = arith.constant 1.000000e+00 : f32
    %704 = vector.broadcast %cst_220 : f32 to vector<2x192xf32>
    %705 = arith.addf %704, %703 : vector<2x192xf32>
    %706 = arith.divf %704, %705 : vector<2x192xf32>
    %707 = vector.extract_strided_slice %700 {offsets = [0, 192], sizes = [2, 64], strides = [1, 1]} : vector<2x256xf32> to vector<2x64xf32>
    %708 = math.tanh %707 : vector<2x64xf32>
    %709 = vector.extract_strided_slice %706 {offsets = [0, 64], sizes = [2, 64], strides = [1, 1]} : vector<2x192xf32> to vector<2x64xf32>
    %710 = arith.mulf %709, %691 : vector<2x64xf32>
    %711 = vector.extract_strided_slice %706 {offsets = [0, 0], sizes = [2, 64], strides = [1, 1]} : vector<2x192xf32> to vector<2x64xf32>
    %712 = arith.mulf %711, %708 : vector<2x64xf32>
    %713 = arith.addf %710, %712 : vector<2x64xf32>
    %714 = vector.extract_strided_slice %706 {offsets = [0, 128], sizes = [2, 64], strides = [1, 1]} : vector<2x192xf32> to vector<2x64xf32>
    %715 = math.tanh %713 : vector<2x64xf32>
    %716 = arith.mulf %714, %715 : vector<2x64xf32>
    %c15 = arith.constant 15 : index
    %c0_221 = arith.constant 0 : index
    %c0_222 = arith.constant 0 : index
    %717 = vector.load %arg8[%c15, %c0_221, %c0_222] : memref<16x2x64xf32, #tpu.memory_space<vmem>>, vector<1x2x64xf32>
    %718 = vector.shape_cast %717 : vector<1x2x64xf32> to vector<2x64xf32>
    %719 = vector.shape_cast %716 : vector<2x64xf32> to vector<1x2x64xf32>
    tpu.vector_store %arg8[%c15, %c0_221, %c0_222], %719 {strides = array<i32>} : memref<16x2x64xf32, #tpu.memory_space<vmem>>, vector<1x2x64xf32>,
    %720 = vector.extract_strided_slice %716 {offsets = [0, 0], sizes = [2, 16], strides = [1, 1]} : vector<2x64xf32> to vector<2x16xf32>
    %721 = vector.extract_strided_slice %716 {offsets = [0, 16], sizes = [2, 16], strides = [1, 1]} : vector<2x64xf32> to vector<2x16xf32>
    %722 = arith.addf %720, %721 : vector<2x16xf32>
    %723 = vector.extract_strided_slice %716 {offsets = [0, 32], sizes = [2, 16], strides = [1, 1]} : vector<2x64xf32> to vector<2x16xf32>
    %724 = arith.addf %722, %723 : vector<2x16xf32>
    %725 = vector.extract_strided_slice %716 {offsets = [0, 48], sizes = [2, 16], strides = [1, 1]} : vector<2x64xf32> to vector<2x16xf32>
    %726 = arith.addf %724, %725 : vector<2x16xf32>
    %727 = vector.extract_strided_slice %713 {offsets = [0, 0], sizes = [2, 16], strides = [1, 1]} : vector<2x64xf32> to vector<2x16xf32>
    %728 = vector.extract_strided_slice %713 {offsets = [0, 16], sizes = [2, 16], strides = [1, 1]} : vector<2x64xf32> to vector<2x16xf32>
    %729 = arith.addf %727, %728 : vector<2x16xf32>
    %730 = vector.extract_strided_slice %713 {offsets = [0, 32], sizes = [2, 16], strides = [1, 1]} : vector<2x64xf32> to vector<2x16xf32>
    %731 = arith.addf %729, %730 : vector<2x16xf32>
    %732 = vector.extract_strided_slice %713 {offsets = [0, 48], sizes = [2, 16], strides = [1, 1]} : vector<2x64xf32> to vector<2x16xf32>
    %733 = arith.addf %731, %732 : vector<2x16xf32>
    %734 = tpu.concatenate %343, %726 in 1 : vector<2x16xf32>, vector<2x16xf32> -> vector<2x32xf32>
    %735 = tpu.concatenate %350, %733 in 1 : vector<2x16xf32>, vector<2x16xf32> -> vector<2x32xf32>
    %736 = tpu.concatenate %734, %735 in 0 : vector<2x32xf32>, vector<2x32xf32> -> vector<4x32xf32>
    %c0_223 = arith.constant 0 : index
    %c0_224 = arith.constant 0 : index
    %737 = vector.load %arg6[%c0_223, %c0_224] : memref<32x16xf32, #tpu.memory_space<vmem>>, vector<32x16xf32>
    %cst_225 = arith.constant dense<0.000000e+00> : vector<4x16xf32>
    %738 = tpu.matmul %736, %737, %cst_225 {dimension_numbers = #tpu.dot_dimension_numbers<[1], [0], [0], [1], [0, 0, 1, 1], [], []>} : vector<4x32xf32>, vector<32x16xf32>, vector<4x16xf32> -> vector<4x16xf32>
    %c0_226 = arith.constant 0 : index
    %c0_227 = arith.constant 0 : index
    %739 = vector.load %arg7[%c0_226, %c0_227] : memref<1x16xf32, #tpu.memory_space<vmem>>, vector<1x16xf32>
    %740 = vector.broadcast %739 : vector<1x16xf32> to vector<4x16xf32>
    %741 = arith.addf %738, %740 : vector<4x16xf32>
    %cst_228 = arith.constant 0.000000e+00 : f32
    %742 = vector.broadcast %cst_228 : f32 to vector<4x16xf32>
    %743 = arith.maximumf %741, %742 : vector<4x16xf32>
    %744 = vector.extract_strided_slice %743 {offsets = [0, 0], sizes = [2, 8], strides = [1, 1]} : vector<4x16xf32> to vector<2x8xf32>
    %745 = vector.extract_strided_slice %743 {offsets = [2, 0], sizes = [2, 8], strides = [1, 1]} : vector<4x16xf32> to vector<2x8xf32>
    %746 = vector.shape_cast %744 : vector<2x8xf32> to vector<1x2x8xf32>
    %cst_229 = arith.constant dense<0.000000e+00> : vector<1xf32>
    %747 = vector.multi_reduction <add>, %746, %cst_229 [1, 2] : vector<1x2x8xf32> to vector<1xf32>
    %748 = vector.shape_cast %747 : vector<1xf32> to vector<1x1x1xf32>
    %749 = vector.extract %748[0, 0, 0] : f32 from vector<1x1x1xf32>
    %750 = vector.broadcast %749 : f32 to vector<1x1xf32>
    %cst_230 = arith.constant 6.250000e-02 : f32
    %751 = vector.broadcast %cst_230 : f32 to vector<1x1xf32>
    %752 = arith.mulf %750, %751 : vector<1x1xf32>
    %753 = vector.broadcast %752 : vector<1x1xf32> to vector<2x8xf32>
    %754 = arith.subf %744, %753 : vector<2x8xf32>
    %755 = arith.mulf %754, %754 : vector<2x8xf32>
    %756 = vector.shape_cast %755 : vector<2x8xf32> to vector<1x2x8xf32>
    %cst_231 = arith.constant dense<0.000000e+00> : vector<1xf32>
    %757 = vector.multi_reduction <add>, %756, %cst_231 [1, 2] : vector<1x2x8xf32> to vector<1xf32>
    %758 = vector.shape_cast %757 : vector<1xf32> to vector<1x1x1xf32>
    %759 = vector.extract %758[0, 0, 0] : f32 from vector<1x1x1xf32>
    %760 = vector.broadcast %759 : f32 to vector<1x1xf32>
    %cst_232 = arith.constant 6.250000e-02 : f32
    %761 = vector.broadcast %cst_232 : f32 to vector<1x1xf32>
    %762 = arith.mulf %760, %761 : vector<1x1xf32>
    %763 = vector.broadcast %752 : vector<1x1xf32> to vector<2x8xf32>
    %764 = arith.subf %744, %763 : vector<2x8xf32>
    %cst_233 = arith.constant 9.99999974E-6 : f32
    %765 = vector.broadcast %cst_233 : f32 to vector<1x1xf32>
    %766 = arith.addf %762, %765 : vector<1x1xf32>
    %767 = math.rsqrt %766 : vector<1x1xf32>
    %768 = vector.broadcast %767 : vector<1x1xf32> to vector<2x8xf32>
    %769 = arith.mulf %764, %768 : vector<2x8xf32>
    %c0_234 = arith.constant 0 : index
    %c0_235 = arith.constant 0 : index
    %c0_236 = arith.constant 0 : index
    %770 = vector.load %arg9[%c0_234, %c0_235, %c0_236] : memref<2x2x8xf32, #tpu.memory_space<vmem>>, vector<1x2x8xf32>
    %771 = vector.shape_cast %770 : vector<1x2x8xf32> to vector<2x8xf32>
    %772 = vector.shape_cast %769 : vector<2x8xf32> to vector<1x2x8xf32>
    tpu.vector_store %arg9[%c0_234, %c0_235, %c0_236], %772 {strides = array<i32>} : memref<2x2x8xf32, #tpu.memory_space<vmem>>, vector<1x2x8xf32>,
    %773 = vector.shape_cast %745 : vector<2x8xf32> to vector<1x2x8xf32>
    %cst_237 = arith.constant dense<0.000000e+00> : vector<1xf32>
    %774 = vector.multi_reduction <add>, %773, %cst_237 [1, 2] : vector<1x2x8xf32> to vector<1xf32>
    %775 = vector.shape_cast %774 : vector<1xf32> to vector<1x1x1xf32>
    %776 = vector.extract %775[0, 0, 0] : f32 from vector<1x1x1xf32>
    %777 = vector.broadcast %776 : f32 to vector<1x1xf32>
    %cst_238 = arith.constant 6.250000e-02 : f32
    %778 = vector.broadcast %cst_238 : f32 to vector<1x1xf32>
    %779 = arith.mulf %777, %778 : vector<1x1xf32>
    %780 = vector.broadcast %779 : vector<1x1xf32> to vector<2x8xf32>
    %781 = arith.subf %745, %780 : vector<2x8xf32>
    %782 = arith.mulf %781, %781 : vector<2x8xf32>
    %783 = vector.shape_cast %782 : vector<2x8xf32> to vector<1x2x8xf32>
    %cst_239 = arith.constant dense<0.000000e+00> : vector<1xf32>
    %784 = vector.multi_reduction <add>, %783, %cst_239 [1, 2] : vector<1x2x8xf32> to vector<1xf32>
    %785 = vector.shape_cast %784 : vector<1xf32> to vector<1x1x1xf32>
    %786 = vector.extract %785[0, 0, 0] : f32 from vector<1x1x1xf32>
    %787 = vector.broadcast %786 : f32 to vector<1x1xf32>
    %cst_240 = arith.constant 6.250000e-02 : f32
    %788 = vector.broadcast %cst_240 : f32 to vector<1x1xf32>
    %789 = arith.mulf %787, %788 : vector<1x1xf32>
    %790 = vector.broadcast %779 : vector<1x1xf32> to vector<2x8xf32>
    %791 = arith.subf %745, %790 : vector<2x8xf32>
    %cst_241 = arith.constant 9.99999974E-6 : f32
    %792 = vector.broadcast %cst_241 : f32 to vector<1x1xf32>
    %793 = arith.addf %789, %792 : vector<1x1xf32>
    %794 = math.rsqrt %793 : vector<1x1xf32>
    %795 = vector.broadcast %794 : vector<1x1xf32> to vector<2x8xf32>
    %796 = arith.mulf %791, %795 : vector<2x8xf32>
    %c0_242 = arith.constant 0 : index
    %c0_243 = arith.constant 0 : index
    %c0_244 = arith.constant 0 : index
    %797 = vector.load %arg10[%c0_242, %c0_243, %c0_244] : memref<2x2x8xf32, #tpu.memory_space<vmem>>, vector<1x2x8xf32>
    %798 = vector.shape_cast %797 : vector<1x2x8xf32> to vector<2x8xf32>
    %799 = vector.shape_cast %796 : vector<2x8xf32> to vector<1x2x8xf32>
    tpu.vector_store %arg10[%c0_242, %c0_243, %c0_244], %799 {strides = array<i32>} : memref<2x2x8xf32, #tpu.memory_space<vmem>>, vector<1x2x8xf32>,
    %800 = vector.extract_strided_slice %743 {offsets = [0, 8], sizes = [2, 8], strides = [1, 1]} : vector<4x16xf32> to vector<2x8xf32>
    %801 = vector.extract_strided_slice %743 {offsets = [2, 8], sizes = [2, 8], strides = [1, 1]} : vector<4x16xf32> to vector<2x8xf32>
    %802 = vector.shape_cast %800 : vector<2x8xf32> to vector<1x2x8xf32>
    %cst_245 = arith.constant dense<0.000000e+00> : vector<1xf32>
    %803 = vector.multi_reduction <add>, %802, %cst_245 [1, 2] : vector<1x2x8xf32> to vector<1xf32>
    %804 = vector.shape_cast %803 : vector<1xf32> to vector<1x1x1xf32>
    %805 = vector.extract %804[0, 0, 0] : f32 from vector<1x1x1xf32>
    %806 = vector.broadcast %805 : f32 to vector<1x1xf32>
    %cst_246 = arith.constant 6.250000e-02 : f32
    %807 = vector.broadcast %cst_246 : f32 to vector<1x1xf32>
    %808 = arith.mulf %806, %807 : vector<1x1xf32>
    %809 = vector.broadcast %808 : vector<1x1xf32> to vector<2x8xf32>
    %810 = arith.subf %800, %809 : vector<2x8xf32>
    %811 = arith.mulf %810, %810 : vector<2x8xf32>
    %812 = vector.shape_cast %811 : vector<2x8xf32> to vector<1x2x8xf32>
    %cst_247 = arith.constant dense<0.000000e+00> : vector<1xf32>
    %813 = vector.multi_reduction <add>, %812, %cst_247 [1, 2] : vector<1x2x8xf32> to vector<1xf32>
    %814 = vector.shape_cast %813 : vector<1xf32> to vector<1x1x1xf32>
    %815 = vector.extract %814[0, 0, 0] : f32 from vector<1x1x1xf32>
    %816 = vector.broadcast %815 : f32 to vector<1x1xf32>
    %cst_248 = arith.constant 6.250000e-02 : f32
    %817 = vector.broadcast %cst_248 : f32 to vector<1x1xf32>
    %818 = arith.mulf %816, %817 : vector<1x1xf32>
    %819 = vector.broadcast %808 : vector<1x1xf32> to vector<2x8xf32>
    %820 = arith.subf %800, %819 : vector<2x8xf32>
    %cst_249 = arith.constant 9.99999974E-6 : f32
    %821 = vector.broadcast %cst_249 : f32 to vector<1x1xf32>
    %822 = arith.addf %818, %821 : vector<1x1xf32>
    %823 = math.rsqrt %822 : vector<1x1xf32>
    %824 = vector.broadcast %823 : vector<1x1xf32> to vector<2x8xf32>
    %825 = arith.mulf %820, %824 : vector<2x8xf32>
    %c1_250 = arith.constant 1 : index
    %c0_251 = arith.constant 0 : index
    %c0_252 = arith.constant 0 : index
    %826 = vector.load %arg9[%c1_250, %c0_251, %c0_252] : memref<2x2x8xf32, #tpu.memory_space<vmem>>, vector<1x2x8xf32>
    %827 = vector.shape_cast %826 : vector<1x2x8xf32> to vector<2x8xf32>
    %828 = vector.shape_cast %825 : vector<2x8xf32> to vector<1x2x8xf32>
    tpu.vector_store %arg9[%c1_250, %c0_251, %c0_252], %828 {strides = array<i32>} : memref<2x2x8xf32, #tpu.memory_space<vmem>>, vector<1x2x8xf32>,
    %829 = vector.shape_cast %801 : vector<2x8xf32> to vector<1x2x8xf32>
    %cst_253 = arith.constant dense<0.000000e+00> : vector<1xf32>
    %830 = vector.multi_reduction <add>, %829, %cst_253 [1, 2] : vector<1x2x8xf32> to vector<1xf32>
    %831 = vector.shape_cast %830 : vector<1xf32> to vector<1x1x1xf32>
    %832 = vector.extract %831[0, 0, 0] : f32 from vector<1x1x1xf32>
    %833 = vector.broadcast %832 : f32 to vector<1x1xf32>
    %cst_254 = arith.constant 6.250000e-02 : f32
    %834 = vector.broadcast %cst_254 : f32 to vector<1x1xf32>
    %835 = arith.mulf %833, %834 : vector<1x1xf32>
    %836 = vector.broadcast %835 : vector<1x1xf32> to vector<2x8xf32>
    %837 = arith.subf %801, %836 : vector<2x8xf32>
    %838 = arith.mulf %837, %837 : vector<2x8xf32>
    %839 = vector.shape_cast %838 : vector<2x8xf32> to vector<1x2x8xf32>
    %cst_255 = arith.constant dense<0.000000e+00> : vector<1xf32>
    %840 = vector.multi_reduction <add>, %839, %cst_255 [1, 2] : vector<1x2x8xf32> to vector<1xf32>
    %841 = vector.shape_cast %840 : vector<1xf32> to vector<1x1x1xf32>
    %842 = vector.extract %841[0, 0, 0] : f32 from vector<1x1x1xf32>
    %843 = vector.broadcast %842 : f32 to vector<1x1xf32>
    %cst_256 = arith.constant 6.250000e-02 : f32
    %844 = vector.broadcast %cst_256 : f32 to vector<1x1xf32>
    %845 = arith.mulf %843, %844 : vector<1x1xf32>
    %846 = vector.broadcast %835 : vector<1x1xf32> to vector<2x8xf32>
    %847 = arith.subf %801, %846 : vector<2x8xf32>
    %cst_257 = arith.constant 9.99999974E-6 : f32
    %848 = vector.broadcast %cst_257 : f32 to vector<1x1xf32>
    %849 = arith.addf %845, %848 : vector<1x1xf32>
    %850 = math.rsqrt %849 : vector<1x1xf32>
    %851 = vector.broadcast %850 : vector<1x1xf32> to vector<2x8xf32>
    %852 = arith.mulf %847, %851 : vector<2x8xf32>
    %c1_258 = arith.constant 1 : index
    %c0_259 = arith.constant 0 : index
    %c0_260 = arith.constant 0 : index
    %853 = vector.load %arg10[%c1_258, %c0_259, %c0_260] : memref<2x2x8xf32, #tpu.memory_space<vmem>>, vector<1x2x8xf32>
    %854 = vector.shape_cast %853 : vector<1x2x8xf32> to vector<2x8xf32>
    %855 = vector.shape_cast %852 : vector<2x8xf32> to vector<1x2x8xf32>
    tpu.vector_store %arg10[%c1_258, %c0_259, %c0_260], %855 {strides = array<i32>} : memref<2x2x8xf32, #tpu.memory_space<vmem>>, vector<1x2x8xf32>,
    return
  }
}

</mosaic_0001>

<bundles_post_ra>
// kernel: lstm_conv_cell_forward.3
= control target key start
LH: loop header
LB: loop body
LE: loop exit
PB: predicated region body
PF: predicated region fallthrough
CT: control target
= control target key end

     0   :  { %v6084_v2 = vmov 0.0   ;;  %s6085_s17 = smov 16   ;;  %s6087_s18 = smov 15   ;;  %v6093_v5 = vmov 0   ;;  %v53_v7 = vlaneseq  ;;  %vm133_vm1 = vcmask 1043456   ;;  %s7245_s0 = inlined_call_operand.vmem [shape: f32[4,512], index: 0, kind: input, shape index: {}]   ;;  %s7246_s3 = inlined_call_operand.vmem [shape: f32[8,1], index: 3, kind: input, shape index: {}]   ;;  %s7247_s2 = inlined_call_operand.vmem [shape: f32[9,512], index: 2, kind: input, shape index: {}]   ;;  %s7248_s1 = inlined_call_operand.vmem [shape: f32[9,8,4], index: 1, kind: input, shape index: {}]   ;;  %s7249_s5 = inlined_call_operand.vmem [shape: f32[16,512], index: 5, kind: input, shape index: {}]   ;;  %s7250_s7 = inlined_call_operand.vmem [shape: f32[16,1], index: 7, kind: input, shape index: {}]   ;;  %s7251_s4 = inlined_call_operand.vmem [shape: f32[16,16,8], index: 4, kind: input, shape index: {}]   ;;  %s7252_s6 = inlined_call_operand.vmem [shape: f32[512,128], index: 6, kind: input, shape index: {}]   ;;  %s7253_s9 = inlined_call_operand.<no memory space> [shape: f32[1,1], index: 9, kind: input, shape index: {}]   ;;  %s7254_s8 = inlined_call_operand.vmem [shape: f32[1,16], index: 8, kind: input, shape index: {}]   ;;  %s7255_s10 = inlined_call_operand.vmem [shape: f32[1,128], index: 10, kind: output, shape index: {}]  }
   0x1   :  { %v6161_v0 = vld [vmem:[%s7245_s0] sm:$0xff]  ;;  %v6166_v1 = vld [vmem:[%s7245_s0 + $0x8] sm:$0xff]  ;;  %210 = vmatprep.mubr.f32.mxu0 %v6084_v2  ;;  %281 = vmatprep.mubr.f32.mxu1 %v6084_v2  ;;  %s6086_s0 = smov 17   ;;  %s6088_s19 = smov 1   ;;  %vm129_vm2 = vcmask 31744   ;;  %vm1973_vm10 = vcmask 64512  }
   0x2   :  { %87 = vrot.lane.b32.xlu0 %v6161_v0, %s6085_s17  ;;  %v42_v3 = vcombine.high %v6166_v1, %v6166_v1  ;;  %v41_v4 = vcombine.high %v6161_v0, %v6161_v0  ;;  %s6089_s20 = smov 127   ;;  %s6090_s21 = smov 113   ;;  %v1851_v6 = vld [vmem:[%s7246_s3] sm:$0xff]  ;;  %6075 = vset.pattern.permute.xlu1 %v6093_v5  ;;  %v64_v8 = vshrl.u32 %v53_v7, 7  ;;  %v6225_v9 = vand.u32 127, %v53_v7  ;;  %v5570_v30 = vld [vmem:[%s7248_s1 + $0x8] sm:$0xff] }
   0x3   :  { %s6091_s22 = smov 112   ;;  %s6092_s23 = smov 111   ;;  %6074 = vset.pattern.permute.xlu0 %v6093_v5  ;;  %v5571_v15 = vld [vmem:[%s7247_s2 + $0x1] ss:$8 sm:$0xf] }
   0x4   :  { %93 = vrot.lane.b32.xlu1 %v42_v3, %s6085_s17  ;;  %v6227_v10 = vsub.s32 1, %v64_v8  ;;  %v6229_v11 = vsub.s32 0, %v64_v8  ;;  %v6231_v13 = vsub.s32 2, %v64_v8  ;;  %v6233_v14 = vsub.s32 3, %v64_v8  ;;  %v60_v49 = vld [vmem:[%s7248_s1] sm:$0xff] }
   0x5   :  { %vm95_vm0 = vcmp.lt.s32.totalorder %v6225_v9, 16  ;;  %v61_v24 = vld [vmem:[%s7247_s2] ss:$8 sm:$0xf]  ;;  %vm55_vm3 = vcmp.lt.s32.totalorder %v6225_v9, 17  ;;  %vm453_vm4 = vcmp.lt.s32.totalorder %v6225_v9, 15 }
   0x6   :  { %89 = vrot.lane.b32.xlu0 %v41_v4, %s6085_s17  ;;  %v112_v17 = vrot.slane %v5571_v15, %v6227_v10  ;;  %v108_v18 = vrot.slane %v5571_v15, %v6229_v11  ;;  %v120_v21 = vrot.slane %v5571_v15, %v6233_v14  ;;  %v116_v22 = vrot.slane %v5571_v15, %v6231_v13  ;;  %v5585_v43 = vld [vmem:[%s7247_s2 + $0x2] ss:$8 sm:$0xf]  ;;  %v5601_v46 = vld [vmem:[%s7247_s2 + $0x4] ss:$8 sm:$0xf] }
   0x7   :  { %v70_v33 = vrot.slane %v61_v24, %v6227_v10  ;;  %v66_v36 = vrot.slane %v61_v24, %v6229_v11  ;;  %v74_v40 = vrot.slane %v61_v24, %v6231_v13  ;;  %v78_v41 = vrot.slane %v61_v24, %v6233_v14 }
   0x8   :  { %91 = vrot.lane.b32.xlu1 %v6166_v1, %s6085_s17  ;;  %v470_v53 = vrot.slane %v5585_v43, %v6227_v10  ;;  %v859_v54 = vrot.slane %v5601_v46, %v6229_v11  ;;  %v863_v55 = vrot.slane %v5601_v46, %v6227_v10  ;;  %v466_v57 = vrot.slane %v5585_v43, %v6229_v11 }
   0x9   :  { %v474_v61 = vrot.slane %v5585_v43, %v6231_v13  ;;  %v478_v62 = vrot.slane %v5585_v43, %v6233_v14  ;;  %v867_v5 = vrot.slane %v5601_v46, %v6231_v13  ;;  %vm656_vm5 = vcmp.lt.s32.totalorder %v6225_v9, 1 }
   0xa   :  { %45 = vrot.lane.b32.xlu0 %v6161_v0, %s6086_s0  ;;  %vm1047_vm6 = vcmp.lt.s32.totalorder %v6225_v9, 127  ;;  %vm1250_vm7 = vcmp.lt.s32.totalorder %v6225_v9, 113  ;;  %vm1453_vm8 = vcmp.lt.s32.totalorder %v6225_v9, 112  ;;  %vm1656_vm9 = vcmp.lt.s32.totalorder %v6225_v9, 111 }
   0xb   :  { %vm2512_vm11 = vcmp.lt.s32.totalorder %v6225_v9, 14  ;;  %vm3341_vm12 = vcmp.lt.s32.totalorder %v6225_v9, 126  ;;  %vm4182_vm13 = vcmp.lt.s32.totalorder %v6225_v9, 110  ;;  %vm4393_vm14 = vcmp.lt.s32.totalorder %v6225_v9, 97 }
   0xc   :  { %47 = vrot.lane.b32.xlu1 %v41_v4, %s6086_s0  ;;  %vm4604_vm15 = vcmp.lt.s32.totalorder %v6225_v9, 96 }
   0xe   :  { %51 = vrot.lane.b32.xlu0 %v42_v3, %s6086_s0 }
  0x10   :  { %49 = vrot.lane.b32.xlu1 %v6166_v1, %s6086_s0 }
  0x12   :  { %445 = vrot.lane.b32.xlu0 %v6161_v0, %s6087_s18 }
  0x14   :  { %447 = vrot.lane.b32.xlu1 %v41_v4, %s6087_s18 }
  0x16   :  { %451 = vrot.lane.b32.xlu0 %v42_v3, %s6087_s18 }
  0x18   :  { %449 = vrot.lane.b32.xlu1 %v6166_v1, %s6087_s18 }
  0x1a   :  { %648 = vrot.lane.b32.xlu0 %v6161_v0, %s6088_s19 }
  0x1c   :  { %650 = vrot.lane.b32.xlu1 %v41_v4, %s6088_s19 }
  0x1e   :  { %654 = vrot.lane.b32.xlu0 %v42_v3, %s6088_s19 }
  0x20   :  { %652 = vrot.lane.b32.xlu1 %v6166_v1, %s6088_s19 }
  0x22   :  { %1041 = vrot.lane.b32.xlu0 %v41_v4, %s6089_s20 }
  0x24   :  { %1043 = vrot.lane.b32.xlu1 %v6166_v1, %s6089_s20 }
  0x26   :  { %1039 = vrot.lane.b32.xlu0 %v6161_v0, %s6089_s20 }
  0x28   :  { %1045 = vrot.lane.b32.xlu1 %v42_v3, %s6089_s20 }
  0x2a   :  { %1244 = vrot.lane.b32.xlu0 %v41_v4, %s6090_s21 }
  0x2c   :  { %1246 = vrot.lane.b32.xlu1 %v6166_v1, %s6090_s21 }
  0x2e   :  { %1242 = vrot.lane.b32.xlu0 %v6161_v0, %s6090_s21 }
  0x30   :  { %1248 = vrot.lane.b32.xlu1 %v42_v3, %s6090_s21 }
  0x32   :  { %1447 = vrot.lane.b32.xlu0 %v41_v4, %s6091_s22 }
  0x34   :  { %1449 = vrot.lane.b32.xlu1 %v6166_v1, %s6091_s22 }
  0x36   :  { %1445 = vrot.lane.b32.xlu0 %v6161_v0, %s6091_s22 }
  0x38   :  { %1451 = vrot.lane.b32.xlu1 %v42_v3, %s6091_s22 }
  0x3a   :  { %1650 = vrot.lane.b32.xlu0 %v41_v4, %s6092_s23  ;;  %v872_v4 = vcombine.low %v859_v54, %v863_v55  ;;  %v5600_v55 = vld [vmem:[%s7248_s1 + $0x20] sm:$0xff] }
  0x3c   :  { %1652 = vrot.lane.b32.xlu1 %v6166_v1, %s6092_s23 }
  0x3e   :  { %1648 = vrot.lane.b32.xlu0 %v6161_v0, %s6092_s23 }
  0x40   :  { %1654 = vrot.lane.b32.xlu1 %v42_v3, %s6092_s23  ;;  %v5593_v3 = vld [vmem:[%s7247_s2 + $0x3] ss:$8 sm:$0xf] }
  0x41   :  { %v669_v24 = vrot.slane %v5593_v3, %v6229_v11 }
  0x42   :  { %1854 = vperm.xlu0 %6074, %v1851_v6   ;;  %v871_v6 = vrot.slane %v5601_v46, %v6233_v14 }
  0x74   :  { %v88_v12 = vpop.permute.xlu0 %87 }
  0x76   :  { %v94_v16 = vpop.permute.xlu1 %93 }
  0x77   :  { %v99_v19 = vsel %vm95_vm0, %v94_v16, %v88_v12 }
  0x78   :  { %v90_v20 = vpop.permute.xlu0 %89  ;;  %v125_v28 = vmul.f32 %v108_v18, %v99_v19 }
  0x79   :  { %v98_v23 = vsel %vm95_vm0, %v88_v12, %v90_v20 }
  0x7a   :  { %v92_v25 = vpop.permute.xlu1 %91  ;;  %v126_v26 = vmul.f32 %v112_v17, %v98_v23 }
  0x7b   :  { %v97_v27 = vsel %vm95_vm0, %v90_v20, %v92_v25  ;;  %v96_v29 = vsel %vm95_vm0, %v92_v25, %v94_v16  ;;  %v5584_v16 = vld [vmem:[%s7248_s1 + $0x10] sm:$0xff]  ;;  %v673_v20 = vrot.slane %v5593_v3, %v6227_v10 }
  0x7c   :  { %5572 = vmatprep.subr.msk.mxu0 %vm133_vm1, %v126_v26  ;;  %v46_v31 = vpop.permute.xlu0 %45  ;;  %v128_v32 = vmul.f32 %v120_v21, %v96_v29  ;;  %v127_v34 = vmul.f32 %v116_v22, %v97_v27  ;;  %v876_v21 = vmul.f32 %v872_v4, %v6161_v0  ;;  %v873_v22 = vcombine.low %v867_v5, %v871_v6 }
  0x7d   :  { %5573 = vmatpush1.msk.msra.mxu0 %vm133_vm1, %v125_v28  ;;  %v677_v0 = vrot.slane %v5593_v3, %v6231_v13  ;;  %v681_v28 = vrot.slane %v5593_v3, %v6233_v14 }
  0x7e   :  { %5575 = vmatprep.subr.msk.mxu1 %vm133_vm1, %v128_v32  ;;  %v48_v35 = vpop.permute.xlu1 %47  ;;  %5574 = vmatmul.mubr.msk.f32.vlgmr.msra.gmra.mrb[0].mxu0 %vm129_vm2, %v5570_v30  ;;  %v877_v32 = vmul.f32 %v873_v22, %v6166_v1 }
  0x7f   :  { %v58_v37 = vsel %vm55_vm3, %v46_v31, %v48_v35  ;;  %5576 = vmatpush1.msk.msra.mxu1 %vm133_vm1, %v127_v34  ;;  %367 = vmatprep.mubr.f32.mxu0 %v6084_v2 }
  0x80   :  { %v84_v38 = vmul.f32 %v70_v33, %v58_v37  ;;  %5577 = vmatmul.mubr.msk.f32.vlgmr.msra.gmra.mrb[0].mxu1 %vm129_vm2, %v5570_v30  ;;  %v52_v39 = vpop.permute.xlu0 %51  ;;  %v5609_v30 = vld [vmem:[%s7247_s2 + $0x5] ss:$8 sm:$0xf] }
  0x81   :  { %v59_v42 = vsel %vm55_vm3, %v52_v39, %v46_v31  ;;  %438 = vmatprep.mubr.f32.mxu1 %v6084_v2  ;;  %v880_v31 = vcombine.high %v876_v21, %v876_v21  ;;  %v5592_v37 = vld [vmem:[%s7248_s1 + $0x18] sm:$0xff]  ;;  %v1064_v1 = vrot.slane %v5609_v30, %v6227_v10 }
  0x82   :  { %v83_v44 = vmul.f32 %v66_v36, %v59_v42  ;;  %v50_v45 = vpop.permute.xlu1 %49  ;;  %5578 = vmatprep.subr.msk.mxu0 %vm133_vm1, %v84_v38 }
  0x83   :  { %v56_v47 = vsel %vm55_vm3, %v50_v45, %v52_v39  ;;  %v57_v48 = vsel %vm55_vm3, %v48_v35, %v50_v45 }
  0x84   :  { %v85_v50 = vmul.f32 %v74_v40, %v57_v48  ;;  %v86_v51 = vmul.f32 %v78_v41, %v56_v47  ;;  %5579 = vmatpush1.msk.msra.mxu0 %vm133_vm1, %v83_v44  ;;  %v446_v52 = vpop.permute.xlu0 %445  ;;  %v881_v41 = vcombine.high %v877_v32, %v877_v32  ;;  %v1060_v44 = vrot.slane %v5609_v30, %v6229_v11 }
  0x85   :  { %v1072_v47 = vrot.slane %v5609_v30, %v6233_v14 }
  0x86   :  { %v448_v56 = vpop.permute.xlu1 %447  ;;  %5580 = vmatmul.mubr.msk.f32.vlgmr.msra.gmra.mrb[0].mxu0 %vm129_vm2, %v60_v49  ;;  %5581 = vmatprep.subr.msk.mxu1 %vm133_vm1, %v86_v51 }
  0x87   :  { %v456_v58 = vsel %vm453_vm4, %v446_v52, %v448_v56  ;;  %5582 = vmatpush1.msk.msra.mxu1 %vm133_vm1, %v85_v50  ;;  %566 = vmatprep.mubr.f32.mxu0 %v6084_v2  ;;  %v5617_v50 = vld [vmem:[%s7247_s2 + $0x6] ss:$8 sm:$0xf] }
  0x88   :  { %v484_v59 = vmul.f32 %v470_v53, %v456_v58  ;;  %5583 = vmatmul.mubr.msk.f32.vlgmr.msra.gmra.mrb[0].mxu1 %vm129_vm2, %v60_v49  ;;  %v452_v60 = vpop.permute.xlu0 %451  ;;  %v1068_v49 = vrot.slane %v5609_v30, %v6231_v13  ;;  %v1267_v58 = vrot.slane %v5617_v50, %v6227_v10  ;;  %v1275_v4 = vrot.slane %v5617_v50, %v6233_v14 }
  0x89   :  { %v457_v63 = vsel %vm453_vm4, %v452_v60, %v446_v52  ;;  %637 = vmatprep.mubr.f32.mxu1 %v6084_v2  ;;  %v1271_v6 = vrot.slane %v5617_v50, %v6231_v13 }
  0x8a   :  { %v483_v7 = vmul.f32 %v466_v57, %v457_v63  ;;  %v450_v8 = vpop.permute.xlu1 %449  ;;  %5586 = vmatprep.subr.msk.mxu0 %vm133_vm1, %v484_v59 }
  0x8b   :  { %v454_v12 = vsel %vm453_vm4, %v450_v8, %v452_v60  ;;  %v455_v15 = vsel %vm453_vm4, %v448_v56, %v450_v8 }
  0x8c   :  { %v485_v17 = vmul.f32 %v474_v61, %v455_v15  ;;  %v486_v18 = vmul.f32 %v478_v62, %v454_v12  ;;  %5587 = vmatpush1.msk.msra.mxu0 %vm133_vm1, %v483_v7  ;;  %v649_v19 = vpop.permute.xlu0 %648  ;;  %v1263_v62 = vrot.slane %v5617_v50, %v6229_v11  ;;  %v5625_v7 = vld [vmem:[%s7247_s2 + $0x7] ss:$8 sm:$0xf] }
  0x8d   :  { %v5624_v50 = vld [vmem:[%s7248_s1 + $0x38] sm:$0xff] }
  0x8e   :  { %v651_v23 = vpop.permute.xlu1 %650  ;;  %5588 = vmatmul.mubr.msk.f32.vlgmr.msra.gmra.mrb[0].mxu0 %vm129_vm2, %v5584_v16  ;;  %5589 = vmatprep.subr.msk.mxu1 %vm133_vm1, %v486_v18 }
  0x8f   :  { %v659_v25 = vsel %vm656_vm5, %v649_v19, %v651_v23  ;;  %5590 = vmatpush1.msk.msra.mxu1 %vm133_vm1, %v485_v17  ;;  %769 = vmatprep.mubr.f32.mxu0 %v6084_v2  ;;  %v5608_v17 = vld [vmem:[%s7248_s1 + $0x28] sm:$0xff] }
  0x90   :  { %v687_v26 = vmul.f32 %v673_v20, %v659_v25  ;;  %5591 = vmatmul.mubr.msk.f32.vlgmr.msra.gmra.mrb[0].mxu1 %vm129_vm2, %v5584_v16  ;;  %v655_v27 = vpop.permute.xlu0 %654  ;;  %v1470_v20 = vrot.slane %v5625_v7, %v6227_v10 }
  0x91   :  { %v660_v29 = vsel %vm656_vm5, %v655_v27, %v649_v19  ;;  %840 = vmatprep.mubr.f32.mxu1 %v6084_v2 }
  0x92   :  { %v686_v33 = vmul.f32 %v669_v24, %v660_v29  ;;  %v653_v34 = vpop.permute.xlu1 %652  ;;  %5594 = vmatprep.subr.msk.mxu0 %vm133_vm1, %v687_v26  ;;  %v1466_v24 = vrot.slane %v5625_v7, %v6229_v11  ;;  %v5633_v29 = vld [vmem:[%s7247_s2 + $0x20] ss:$8 sm:$0xf] }
  0x93   :  { %v657_v35 = vsel %vm656_vm5, %v653_v34, %v655_v27  ;;  %v658_v36 = vsel %vm656_vm5, %v651_v23, %v653_v34  ;;  %v1478_v27 = vrot.slane %v5625_v7, %v6233_v14  ;;  %v5616_v34 = vld [vmem:[%s7248_s1 + $0x30] sm:$0xff] }
  0x94   :  { %v688_v38 = vmul.f32 %v677_v0, %v658_v36  ;;  %v689_v39 = vmul.f32 %v681_v28, %v657_v35  ;;  %5595 = vmatpush1.msk.msra.mxu0 %vm133_vm1, %v686_v33  ;;  %v1042_v40 = vpop.permute.xlu0 %1041  ;;  %v1474_v28 = vrot.slane %v5625_v7, %v6231_v13 }
  0x95   :  { %5602 = vmatprep.subr.msk.mxu0 %vm133_vm1, %v880_v31 }
  0x96   :  { %5596 = vmatmul.mubr.msk.f32.vlgmr.msra.gmra.mrb[0].mxu0 %vm129_vm2, %v5592_v37  ;;  %5597 = vmatprep.subr.msk.mxu1 %vm133_vm1, %v689_v39  ;;  %v1044_v42 = vpop.permute.xlu1 %1043 }
  0x97   :  { %5598 = vmatpush1.msk.msra.mxu1 %vm133_vm1, %v688_v38  ;;  %v1049_v43 = vsel %vm1047_vm6, %v1042_v40, %v1044_v42  ;;  %5603 = vmatpush1.msk.msra.mxu0 %vm133_vm1, %v876_v21 }
  0x98   :  { %5599 = vmatmul.mubr.msk.f32.vlgmr.msra.gmra.mrb[0].mxu1 %vm129_vm2, %v5592_v37  ;;  %v1078_v45 = vmul.f32 %v1064_v1, %v1049_v43  ;;  %957 = vmatprep.mubr.f32.mxu0 %v6084_v2  ;;  %v1040_v46 = vpop.permute.xlu0 %1039  ;;  %v1673_v37 = vrot.slane %v5633_v29, %v6227_v10  ;;  %v1669_v1 = vrot.slane %v5633_v29, %v6229_v11 }
  0x99   :  { %v1050_v48 = vsel %vm1047_vm6, %v1040_v46, %v1042_v40  ;;  %5605 = vmatprep.subr.msk.mxu1 %vm133_vm1, %v881_v41  ;;  %1028 = vmatprep.mubr.f32.mxu1 %v6084_v2  ;;  %v1681_v43 = vrot.slane %v5633_v29, %v6233_v14 }
  0x9a   :  { %v1046_v51 = vpop.permute.xlu1 %1045  ;;  %5606 = vmatpush1.msk.msra.mxu1 %vm133_vm1, %v877_v32  ;;  %5610 = vmatprep.subr.msk.mxu0 %vm133_vm1, %v1078_v45  ;;  %v1077_v52 = vmul.f32 %v1060_v44, %v1050_v48  ;;  %v1677_v45 = vrot.slane %v5633_v29, %v6231_v13 }
  0x9b   :  { %v1048_v53 = vsel %vm1047_vm6, %v1044_v42, %v1046_v51  ;;  %v1051_v54 = vsel %vm1047_vm6, %v1046_v51, %v1040_v46 }
  0x9c   :  { %v1080_v56 = vmul.f32 %v1072_v47, %v1051_v54  ;;  %v1245_v57 = vpop.permute.xlu0 %1244  ;;  %v1079_v59 = vmul.f32 %v1068_v49, %v1048_v53  ;;  %v5632_v53 = vld [vmem:[%s7248_s1 + $0x40] sm:$0xff]  ;;  %s6094_s1 = smov 14  }
  0x9e   :  { %5604 = vmatmul.mubr.msk.f32.vlgmr.msra.gmra.mrb[0].mxu0 %vm129_vm2, %v5600_v55  ;;  %v1247_v60 = vpop.permute.xlu1 %1246  ;;  %5613 = vmatprep.subr.msk.mxu1 %vm133_vm1, %v1080_v56 }
  0x9f   :  { %5611 = vmatpush1.msk.msra.mxu0 %vm133_vm1, %v1077_v52  ;;  %v1252_v61 = vsel %vm1250_vm7, %v1245_v57, %v1247_v60  ;;  %1160 = vmatprep.mubr.f32.mxu0 %v6084_v2 }
  0xa0   :  { %5607 = vmatmul.mubr.msk.f32.vlgmr.msra.gmra.mrb[0].mxu1 %vm129_vm2, %v5600_v55  ;;  %v1281_v63 = vmul.f32 %v1267_v58, %v1252_v61  ;;  %v1243_v3 = vpop.permute.xlu0 %1242 }
  0xa1   :  { %5614 = vmatpush1.msk.msra.mxu1 %vm133_vm1, %v1079_v59  ;;  %v1253_v5 = vsel %vm1250_vm7, %v1243_v3, %v1245_v57  ;;  %1231 = vmatprep.mubr.f32.mxu1 %v6084_v2 }
  0xa2   :  { %v1249_v8 = vpop.permute.xlu1 %1248  ;;  %5618 = vmatprep.subr.msk.mxu0 %vm133_vm1, %v1281_v63  ;;  %v1280_v12 = vmul.f32 %v1263_v62, %v1253_v5 }
  0xa3   :  { %v1251_v15 = vsel %vm1250_vm7, %v1247_v60, %v1249_v8  ;;  %v1254_v16 = vsel %vm1250_vm7, %v1249_v8, %v1243_v3 }
  0xa4   :  { %v1283_v18 = vmul.f32 %v1275_v4, %v1254_v16  ;;  %v1448_v19 = vpop.permute.xlu0 %1447  ;;  %v1282_v21 = vmul.f32 %v1271_v6, %v1251_v15 }
  0xa6   :  { %5612 = vmatmul.mubr.msk.f32.vlgmr.msra.gmra.mrb[0].mxu0 %vm129_vm2, %v5608_v17  ;;  %v1450_v22 = vpop.permute.xlu1 %1449  ;;  %5621 = vmatprep.subr.msk.mxu1 %vm133_vm1, %v1283_v18 }
  0xa7   :  { %5619 = vmatpush1.msk.msra.mxu0 %vm133_vm1, %v1280_v12  ;;  %v1455_v23 = vsel %vm1453_vm8, %v1448_v19, %v1450_v22  ;;  %1363 = vmatprep.mubr.f32.mxu0 %v6084_v2 }
  0xa8   :  { %5615 = vmatmul.mubr.msk.f32.vlgmr.msra.gmra.mrb[0].mxu1 %vm129_vm2, %v5608_v17  ;;  %v1484_v25 = vmul.f32 %v1470_v20, %v1455_v23  ;;  %v1446_v26 = vpop.permute.xlu0 %1445 }
  0xa9   :  { %5622 = vmatpush1.msk.msra.mxu1 %vm133_vm1, %v1282_v21  ;;  %v1456_v0 = vsel %vm1453_vm8, %v1446_v26, %v1448_v19  ;;  %1434 = vmatprep.mubr.f32.mxu1 %v6084_v2 }
  0xaa   :  { %v1452_v30 = vpop.permute.xlu1 %1451  ;;  %5626 = vmatprep.subr.msk.mxu0 %vm133_vm1, %v1484_v25  ;;  %v1483_v31 = vmul.f32 %v1466_v24, %v1456_v0 }
  0xab   :  { %v1454_v32 = vsel %vm1453_vm8, %v1450_v22, %v1452_v30  ;;  %v1457_v33 = vsel %vm1453_vm8, %v1452_v30, %v1446_v26 }
  0xac   :  { %v1486_v35 = vmul.f32 %v1478_v27, %v1457_v33  ;;  %v1651_v36 = vpop.permute.xlu0 %1650  ;;  %v1485_v38 = vmul.f32 %v1474_v28, %v1454_v32 }
  0xae   :  { %5620 = vmatmul.mubr.msk.f32.vlgmr.msra.gmra.mrb[0].mxu0 %vm129_vm2, %v5616_v34  ;;  %v1653_v39 = vpop.permute.xlu1 %1652  ;;  %5629 = vmatprep.subr.msk.mxu1 %vm133_vm1, %v1486_v35 }
  0xaf   :  { %5627 = vmatpush1.msk.msra.mxu0 %vm133_vm1, %v1483_v31  ;;  %v1658_v40 = vsel %vm1656_vm9, %v1651_v36, %v1653_v39  ;;  %1566 = vmatprep.mubr.f32.mxu0 %v6084_v2 }
  0xb0   :  { %5623 = vmatmul.mubr.msk.f32.vlgmr.msra.gmra.mrb[0].mxu1 %vm129_vm2, %v5616_v34  ;;  %v1687_v41 = vmul.f32 %v1673_v37, %v1658_v40  ;;  %v1649_v42 = vpop.permute.xlu0 %1648  ;;  %v5642_v34 = vld [vmem:[%s7249_s5 + $0x1] ss:$8 sm:$0xf] }
  0xb1   :  { %5630 = vmatpush1.msk.msra.mxu1 %vm133_vm1, %v1485_v38  ;;  %v1659_v44 = vsel %vm1656_vm9, %v1649_v42, %v1651_v36  ;;  %1637 = vmatprep.mubr.f32.mxu1 %v6084_v2  ;;  %v1956_v35 = vrot.slane %v5642_v34, %v6227_v10  ;;  %v5293_v36 = vld [vmem:[%s7250_s7] sm:$0xff] }
  0xb2   :  { %v1655_v46 = vpop.permute.xlu1 %1654  ;;  %5634 = vmatprep.subr.msk.mxu0 %vm133_vm1, %v1687_v41  ;;  %v1686_v47 = vmul.f32 %v1669_v1, %v1659_v44  ;;  %v1952_v1 = vrot.slane %v5642_v34, %v6229_v11 }
  0xb3   :  { %v1657_v48 = vsel %vm1656_vm9, %v1653_v39, %v1655_v46  ;;  %v1660_v49 = vsel %vm1656_vm9, %v1655_v46, %v1649_v42  ;;  %v1964_v46 = vrot.slane %v5642_v34, %v6233_v14 }
  0xb4   :  { %v1689_v51 = vmul.f32 %v1681_v43, %v1660_v49  ;;  %v1688_v52 = vmul.f32 %v1677_v45, %v1657_v48  ;;  %v1960_v45 = vrot.slane %v5642_v34, %v6231_v13  ;;  %v1905_v48 = vld [vmem:[%s7249_s5] ss:$8 sm:$0xf] }
  0xb6   :  { %5628 = vmatmul.mubr.msk.f32.vlgmr.msra.gmra.mrb[0].mxu0 %vm129_vm2, %v5624_v50  ;;  %5637 = vmatprep.subr.msk.mxu1 %vm133_vm1, %v1689_v51 }
  0xb7   :  { %5635 = vmatpush1.msk.msra.mxu0 %vm133_vm1, %v1686_v47  ;;  %1769 = vmatprep.mubr.f32.mxu0 %v6084_v2  ;;  %v5640_v47 = vld [vmem:[%s7251_s4 + $0x10] sm:$0xff] }
  0xb8   :  { %5631 = vmatmul.mubr.msk.f32.vlgmr.msra.gmra.mrb[0].mxu1 %vm129_vm2, %v5624_v50 }
  0xb9   :  { %5638 = vmatpush1.msk.msra.mxu1 %vm133_vm1, %v1688_v52  ;;  %1840 = vmatprep.mubr.f32.mxu1 %v6084_v2  ;;  %vm5026_vm1 = vcmp.lt.s32.totalorder %v6225_v9, 94 }
  0xbe   :  { %5636 = vmatmul.mubr.msk.f32.vlgmr.msra.gmra.mrb[0].mxu0 %vm129_vm2, %v5632_v53 }
  0xbf   :  { %2044 = vmatprep.mubr.f32.mxu0 %v6084_v2 }
  0xc0   :  { %5639 = vmatmul.mubr.msk.f32.vlgmr.msra.gmra.mrb[0].mxu1 %vm129_vm2, %v5632_v53  ;;  %vm6102_vm2 = vmmov 0  }
  0xc1   :  { %2121 = vmatprep.mubr.f32.mxu1 %v6084_v2  ;;  %v1855_v54 = vpop.permute.xlu0 %1854 }
 0x191   :  { %v1771_v55 = vpop.f32.mrb[0].mxu0 }
 0x192   :  { %v1773_v56 = vpop.f32.mrb[1].mxu0  ;;  %v1857_v57 = vadd.f32 %v1855_v54, %v1771_v55  ;;  %v1914_v55 = vrot.slane %v1905_v48, %v6227_v10 }
 0x193   :  { %v1858_v58 = vadd.f32 %v1855_v54, %v1773_v56  ;;  %v1842_v59 = vpop.f32.mrb[0].mxu1  ;;  %v5641_v56 = vld [vmem:[%s7251_s4 + $0x18] sm:$0xff] }
 0x194   :  { %v1859_v60 = vadd.f32 %v1855_v54, %v1842_v59  ;;  %v1844_v61 = vpop.f32.mrb[1].mxu1 }
 0x195   :  { %v1861_v62 = vadd.f32 %v1858_v58, %v1857_v57  ;;  %v1860_v3 = vadd.f32 %v1855_v54, %v1844_v61 }
 0x197   :  { %v1862_v63 = vadd.f32 %v1861_v62, %v1859_v60 }
 0x199   :  { %v1863_v4 = vadd.f32 %v1862_v63, %v1860_v3  ;;  %v1918_v63 = vrot.slane %v1905_v48, %v6231_v13 }
 0x19b   :  { %1864 = vadd.xlane.f32.xlu1 %v1863_v4 }
 0x228   :  { %v1865_v5 = vpop.xlane.xlu1 %1864 }
 0x229   :  { %v1866_v6 = vmul.f32 0.001953125, %v1865_v5  ;;  %v1903_v5 = vld [vmem:[%s7251_s4] sm:$0xff] }
 0x22b   :  { %v1867_v7 = vsub.f32 %v1857_v57, %v1866_v6  ;;  %v1868_v8 = vsub.f32 %v1858_v58, %v1866_v6  ;;  %v1869_v12 = vsub.f32 %v1859_v60, %v1866_v6  ;;  %v1870_v15 = vsub.f32 %v1860_v3, %v1866_v6  ;;  %v5653_v6 = vld [vmem:[%s7249_s5 + $0x2] ss:$8 sm:$0xf] }
 0x22c   :  { %v1910_v57 = vrot.slane %v1905_v48, %v6229_v11  ;;  %v1922_v3 = vrot.slane %v1905_v48, %v6233_v14 }
 0x22d   :  { %v1871_v16 = vmul.f32 %v1867_v7, %v1867_v7  ;;  %v1872_v17 = vmul.f32 %v1868_v8, %v1868_v8  ;;  %v1873_v18 = vmul.f32 %v1869_v12, %v1869_v12  ;;  %v1874_v20 = vmul.f32 %v1870_v15, %v1870_v15 }
 0x22f   :  { %v1875_v19 = vadd.f32 %v1872_v17, %v1871_v16 }
 0x231   :  { %v1876_v21 = vadd.f32 %v1875_v19, %v1873_v18  ;;  %v2319_v18 = vrot.slane %v5653_v6, %v6227_v10  ;;  %v2315_v19 = vrot.slane %v5653_v6, %v6229_v11 }
 0x233   :  { %v1877_v22 = vadd.f32 %v1876_v21, %v1874_v20  ;;  %v1904_v20 = vld [vmem:[%s7251_s4 + $0x8] sm:$0xff] }
 0x235   :  { %1878 = vadd.xlane.f32.xlu0 %v1877_v22 }
 0x2c2   :  { %v1879_v23 = vpop.xlane.xlu0 %1878 }
 0x2c3   :  { %v1880_v24 = vmul.f32 0.001953125, %v1879_v23 }
 0x2c5   :  { %v1881_v25 = vadd.f32 1e-05, %v1880_v24 }
 0x2c7   :  { %6078 = vrsqrt.f32 %v1881_v25 }
 0x2d1   :  { %v6079_v26 = vpop.eup %6078 }
 0x2d2   :  { %v1883_v27 = vmul.f32 %v6079_v26, %v1867_v7  ;;  %v1884_v0 = vmul.f32 %v6079_v26, %v1868_v8  ;;  %v1886_v28 = vmul.f32 %v6079_v26, %v1870_v15  ;;  %v1885_v31 = vmul.f32 %v6079_v26, %v1869_v12 }
 0x2d3   :  { %v2323_v26 = vrot.slane %v5653_v6, %v6231_v13 }
 0x2d4   :  { %v6471_v29 = vmax.f32 %v1883_v27, 0.0  ;;  %v6473_v30 = vmax.f32 %v1884_v0, 0.0  ;;  %v6479_v32 = vmax.f32 %v1886_v28, 0.0  ;;  %v6485_v33 = vmax.f32 %v1885_v31, 0.0  ;;  %v5651_v28 = vld [vmem:[%s7251_s4 + $0x20] sm:$0xff] }
 0x2d5   :  { %v2327_v27 = vrot.slane %v5653_v6, %v6233_v14  ;;  %v5660_v31 = vld [vmem:[%s7249_s5 + $0x3] ss:$8 sm:$0xf] }
 0x2d6   :  { %1933 = vrot.lane.b32.xlu0 %v6473_v30, %s6085_s17  ;;  %1931 = vrot.lane.b32.xlu1 %v6471_v29, %s6085_s17  ;;  %v2538_v48 = vrot.slane %v5660_v31, %v6233_v14 }
 0x2da   :  { %1891 = vrot.lane.b32.xlu0 %v6471_v29, %s6086_s0  ;;  %1937 = vrot.lane.b32.xlu1 %v6479_v32, %s6085_s17 }
 0x2de   :  { %1897 = vrot.lane.b32.xlu0 %v6479_v32, %s6086_s0  ;;  %1935 = vrot.lane.b32.xlu1 %v6485_v33, %s6085_s17  ;;  %s6095_s17 = smov 126  }
 0x2e2   :  { %2294 = vrot.lane.b32.xlu0 %v6471_v29, %s6087_s18  ;;  %1893 = vrot.lane.b32.xlu1 %v6473_v30, %s6086_s0 }
 0x2e6   :  { %2300 = vrot.lane.b32.xlu0 %v6479_v32, %s6087_s18  ;;  %1895 = vrot.lane.b32.xlu1 %v6485_v33, %s6086_s0  ;;  %s6096_s0 = smov 110  }
 0x2ea   :  { %2504 = vrot.lane.b32.xlu0 %v6471_v29, %s6094_s1  ;;  %2296 = vrot.lane.b32.xlu1 %v6473_v30, %s6087_s18 }
 0x2ee   :  { %2510 = vrot.lane.b32.xlu0 %v6479_v32, %s6094_s1  ;;  %2298 = vrot.lane.b32.xlu1 %v6485_v33, %s6087_s18  ;;  %s6097_s18 = smov 97  }
 0x2f2   :  { %2715 = vrot.lane.b32.xlu0 %v6471_v29, %s6088_s19  ;;  %2506 = vrot.lane.b32.xlu1 %v6473_v30, %s6094_s1 }
 0x2f6   :  { %2721 = vrot.lane.b32.xlu0 %v6479_v32, %s6088_s19  ;;  %2508 = vrot.lane.b32.xlu1 %v6485_v33, %s6094_s1 }
 0x2fa   :  { %3125 = vrot.lane.b32.xlu0 %v6473_v30, %s6089_s20  ;;  %2717 = vrot.lane.b32.xlu1 %v6473_v30, %s6088_s19 }
 0x2fe   :  { %3123 = vrot.lane.b32.xlu0 %v6471_v29, %s6089_s20  ;;  %2719 = vrot.lane.b32.xlu1 %v6485_v33, %s6088_s19  ;;  %s6098_s19 = smov 96  }
 0x302   :  { %3335 = vrot.lane.b32.xlu0 %v6473_v30, %s6095_s17  ;;  %3127 = vrot.lane.b32.xlu1 %v6485_v33, %s6089_s20 }
 0x306   :  { %3333 = vrot.lane.b32.xlu0 %v6471_v29, %s6095_s17  ;;  %3129 = vrot.lane.b32.xlu1 %v6479_v32, %s6089_s20  ;;  %s6099_s20 = smov 95  }
 0x30a   :  { %3546 = vrot.lane.b32.xlu0 %v6473_v30, %s6090_s21  ;;  %3337 = vrot.lane.b32.xlu1 %v6485_v33, %s6095_s17 }
 0x30e   :  { %3544 = vrot.lane.b32.xlu0 %v6471_v29, %s6090_s21  ;;  %3339 = vrot.lane.b32.xlu1 %v6479_v32, %s6095_s17 }
 0x312   :  { %3756 = vrot.lane.b32.xlu0 %v6473_v30, %s6091_s22  ;;  %3548 = vrot.lane.b32.xlu1 %v6485_v33, %s6090_s21 }
 0x316   :  { %3754 = vrot.lane.b32.xlu0 %v6471_v29, %s6091_s22  ;;  %3550 = vrot.lane.b32.xlu1 %v6479_v32, %s6090_s21  ;;  %s6100_s21 = smov 94  }
 0x31a   :  { %3966 = vrot.lane.b32.xlu0 %v6473_v30, %s6092_s23  ;;  %3758 = vrot.lane.b32.xlu1 %v6485_v33, %s6091_s22 }
 0x31e   :  { %3964 = vrot.lane.b32.xlu0 %v6471_v29, %s6092_s23  ;;  %3760 = vrot.lane.b32.xlu1 %v6479_v32, %s6091_s22 }
 0x322   :  { %4176 = vrot.lane.b32.xlu0 %v6473_v30, %s6096_s0  ;;  %3968 = vrot.lane.b32.xlu1 %v6485_v33, %s6092_s23 }
 0x326   :  { %4174 = vrot.lane.b32.xlu0 %v6471_v29, %s6096_s0  ;;  %3970 = vrot.lane.b32.xlu1 %v6479_v32, %s6092_s23 }
 0x32a   :  { %4387 = vrot.lane.b32.xlu0 %v6473_v30, %s6097_s18  ;;  %4178 = vrot.lane.b32.xlu1 %v6485_v33, %s6096_s0 }
 0x32e   :  { %4385 = vrot.lane.b32.xlu0 %v6471_v29, %s6097_s18  ;;  %4180 = vrot.lane.b32.xlu1 %v6479_v32, %s6096_s0 }
 0x332   :  { %4598 = vrot.lane.b32.xlu0 %v6473_v30, %s6098_s19  ;;  %4389 = vrot.lane.b32.xlu1 %v6485_v33, %s6097_s18 }
 0x336   :  { %4596 = vrot.lane.b32.xlu0 %v6471_v29, %s6098_s19  ;;  %4391 = vrot.lane.b32.xlu1 %v6479_v32, %s6097_s18 }
 0x33a   :  { %4809 = vrot.lane.b32.xlu0 %v6473_v30, %s6099_s20  ;;  %4600 = vrot.lane.b32.xlu1 %v6485_v33, %s6098_s19 }
 0x33e   :  { %4807 = vrot.lane.b32.xlu0 %v6471_v29, %s6099_s20  ;;  %4602 = vrot.lane.b32.xlu1 %v6479_v32, %s6098_s19 }
 0x342   :  { %5020 = vrot.lane.b32.xlu0 %v6473_v30, %s6100_s21  ;;  %4811 = vrot.lane.b32.xlu1 %v6485_v33, %s6099_s20 }
 0x346   :  { %5018 = vrot.lane.b32.xlu0 %v6471_v29, %s6100_s21  ;;  %4813 = vrot.lane.b32.xlu1 %v6479_v32, %s6099_s20 }
 0x348   :  { %v1934_v37 = vpop.permute.xlu0 %1933  ;;  %v1932_v38 = vpop.permute.xlu1 %1931 }
 0x349   :  { %v1941_v39 = vsel %vm95_vm0, %v1932_v38, %v1934_v37 }
 0x34a   :  { %v1970_v40 = vmul.f32 %v1956_v35, %v1941_v39  ;;  %5297 = vperm.xlu0 %6074, %v5293_v36   ;;  %5022 = vrot.lane.b32.xlu1 %v6485_v33, %s6100_s21 }
 0x34c   :  { %v1892_v41 = vpop.permute.xlu0 %1891  ;;  %1980 = vmatprep.subr.mxu0 %v1970_v40  ;;  %v1938_v42 = vpop.permute.xlu1 %1937  ;;  %v2530_v40 = vrot.slane %v5660_v31, %v6227_v10 }
 0x34d   :  { %v1942_v43 = vsel %vm95_vm0, %v1938_v42, %v1932_v38 }
 0x34e   :  { %v1969_v44 = vmul.f32 %v1952_v1, %v1942_v43  ;;  %5024 = vrot.lane.b32.xlu1 %v6479_v32, %s6100_s21  ;;  %v2526_v1 = vrot.slane %v5660_v31, %v6229_v11 }
 0x350   :  { %v1898_v49 = vpop.permute.xlu0 %1897  ;;  %1981 = vmatpush1.msra.mxu0 %v1969_v44  ;;  %v1936_v50 = vpop.permute.xlu1 %1935 }
 0x351   :  { %v1939_v51 = vsel %vm95_vm0, %v1936_v50, %v1938_v42  ;;  %v1940_v52 = vsel %vm95_vm0, %v1934_v37, %v1936_v50  ;;  %5643 = vmatmul.mubr.msk.f32.vlgmr.msra.gmra.mrb[2].mxu0 %vm1973_vm10, %v5640_v47  ;;  %v1902_v58 = vsel %vm55_vm3, %v1898_v49, %v1892_v41  ;;  %v5658_v50 = vld [vmem:[%s7251_s4 + $0x30] sm:$0xff]  ;;  %vm4815_vm0 = vcmp.lt.s32.totalorder %v6225_v9, 95  ;;  %v5229_v9 = vld [vmem:[%s7252_s6] sm:$0xff] }
 0x352   :  { %v1971_v53 = vmul.f32 %v1960_v45, %v1940_v52  ;;  %v1972_v54 = vmul.f32 %v1964_v46, %v1939_v51  ;;  %2050 = vmatprep.mubr.f32.mxu0 %v6084_v2  ;;  %v1927_v4 = vmul.f32 %v1910_v57, %v1902_v58  ;;  %v5667_v51 = vld [vmem:[%s7249_s5 + $0x4] ss:$8 sm:$0xf] }
 0x353   :  { %v2740_v58 = vrot.slane %v5667_v51, %v6227_v10 }
 0x354   :  { %v2295_v59 = vpop.permute.xlu0 %2294  ;;  %2057 = vmatprep.subr.mxu1 %v1972_v54  ;;  %v1894_v60 = vpop.permute.xlu1 %1893 }
 0x355   :  { %v1901_v61 = vsel %vm55_vm3, %v1892_v41, %v1894_v60  ;;  %2058 = vmatpush1.msra.mxu1 %v1971_v53  ;;  %5644 = vmatmul.mubr.msk.f32.gmra.mrb[4].mxu0 %vm1973_vm10, %v5641_v56  ;;  %v5652_v41 = vld [vmem:[%s7251_s4 + $0x28] sm:$0xff] }
 0x356   :  { %v1928_v62 = vmul.f32 %v1914_v55, %v1901_v61  ;;  %5645 = vmatmul.mubr.msk.f32.vlgmr.msra.gmra.mrb[2].mxu1 %vm1973_vm10, %v5640_v47  ;;  %2204 = vmatprep.mubr.f32.mxu0 %v6084_v2  ;;  %v2534_v47 = vrot.slane %v5660_v31, %v6231_v13  ;;  %v5659_v61 = vld [vmem:[%s7251_s4 + $0x38] sm:$0xff] }
 0x357   :  { %2127 = vmatprep.mubr.f32.mxu1 %v6084_v2 }
 0x358   :  { %v2301_v7 = vpop.permute.xlu0 %2300  ;;  %2140 = vmatprep.subr.mxu0 %v1928_v62  ;;  %v1896_v8 = vpop.permute.xlu1 %1895 }
 0x359   :  { %v1899_v12 = vsel %vm55_vm3, %v1896_v8, %v1898_v49  ;;  %v1900_v15 = vsel %vm55_vm3, %v1894_v60, %v1896_v8  ;;  %2141 = vmatpush1.msra.mxu0 %v1927_v4  ;;  %v2305_v21 = vsel %vm453_vm4, %v2301_v7, %v2295_v59  ;;  %v2736_v60 = vrot.slane %v5667_v51, %v6229_v11 }
 0x35a   :  { %v1929_v16 = vmul.f32 %v1918_v63, %v1900_v15  ;;  %v1930_v17 = vmul.f32 %v1922_v3, %v1899_v12  ;;  %5646 = vmatmul.mubr.msk.f32.gmra.mrb[4].mxu1 %vm1973_vm10, %v5641_v56  ;;  %5647 = vmatmul.mubr.msk.f32.vlgmr.msra.gmra.mrb[2].mxu0 %vm1973_vm10, %v1903_v5  ;;  %v2332_v0 = vmul.f32 %v2315_v19, %v2305_v21  ;;  %v5681_v21 = vld [vmem:[%s7249_s5 + $0x6] ss:$8 sm:$0xf]  ;;  %vm5490_vm3 = vcmask 130048  }
 0x35b   :  { %2210 = vmatprep.mubr.f32.mxu0 %v6084_v2  ;;  %2281 = vmatprep.mubr.f32.mxu1 %v6084_v2  ;;  %v2744_v8 = vrot.slane %v5667_v51, %v6231_v13  ;;  %v2748_v12 = vrot.slane %v5667_v51, %v6233_v14 }
 0x35c   :  { %v2505_v22 = vpop.permute.xlu0 %2504  ;;  %2217 = vmatprep.subr.mxu1 %v1930_v17  ;;  %v2297_v23 = vpop.permute.xlu1 %2296 }
 0x35d   :  { %v2304_v24 = vsel %vm453_vm4, %v2295_v59, %v2297_v23  ;;  %2218 = vmatpush1.msra.mxu1 %v1929_v16  ;;  %v5674_v59 = vld [vmem:[%s7249_s5 + $0x5] ss:$8 sm:$0xf] }
 0x35e   :  { %v2333_v25 = vmul.f32 %v2319_v18, %v2304_v24  ;;  %5648 = vmatmul.mubr.msk.f32.gmra.mrb[4].mxu0 %vm1973_vm10, %v1904_v20  ;;  %5649 = vmatmul.mubr.msk.f32.vlgmr.msra.gmra.mrb[2].mxu1 %vm1973_vm10, %v1903_v5  ;;  %v2938_v5 = vrot.slane %v5674_v59, %v6227_v10  ;;  %v2934_v6 = vrot.slane %v5674_v59, %v6229_v11  ;;  %v5665_v16 = vld [vmem:[%s7251_s4 + $0x40] sm:$0xff] }
 0x35f   :  { %2287 = vmatprep.mubr.f32.mxu1 %v6084_v2  ;;  %2406 = vmatprep.mubr.f32.mxu0 %v6084_v2  ;;  %v2946_v19 = vrot.slane %v5674_v59, %v6233_v14 }
 0x360   :  { %v2511_v34 = vpop.permute.xlu0 %2510  ;;  %2342 = vmatprep.subr.mxu0 %v2333_v25  ;;  %v2299_v35 = vpop.permute.xlu1 %2298  ;;  %v2952_v24 = vmul.f32 %v2938_v5, %v6473_v30  ;;  %v2951_v25 = vmul.f32 %v2934_v6, %v6471_v29  ;;  %v5680_v5 = vld [vmem:[%s7251_s4 + $0x68] sm:$0xff] }
 0x361   :  { %v2302_v36 = vsel %vm453_vm4, %v2299_v35, %v2301_v7  ;;  %v2303_v37 = vsel %vm453_vm4, %v2297_v23, %v2299_v35  ;;  %2343 = vmatpush1.msra.mxu0 %v2332_v0  ;;  %v2516_v42 = vsel %vm2512_vm11, %v2511_v34, %v2505_v22  ;;  %v3148_v0 = vrot.slane %v5681_v21, %v6227_v10 }
 0x362   :  { %v2334_v38 = vmul.f32 %v2323_v26, %v2303_v37  ;;  %v2335_v39 = vmul.f32 %v2327_v27, %v2302_v36  ;;  %5650 = vmatmul.mubr.msk.f32.gmra.mrb[4].mxu1 %vm1973_vm10, %v1904_v20  ;;  %5654 = vmatmul.mubr.msk.f32.vlgmr.msra.gmra.mrb[2].mxu0 %vm1973_vm10, %v5651_v28  ;;  %v2543_v49 = vmul.f32 %v2526_v1, %v2516_v42 }
 0x363   :  { %2412 = vmatprep.mubr.f32.mxu0 %v6084_v2  ;;  %2483 = vmatprep.mubr.f32.mxu1 %v6084_v2  ;;  %v2942_v20 = vrot.slane %v5674_v59, %v6231_v13  ;;  %v2954_v29 = vmul.f32 %v2946_v19, %v6479_v32  ;;  %v3156_v32 = vrot.slane %v5681_v21, %v6233_v14  ;;  %v5686_v19 = vld [vmem:[%s7251_s4 + $0x70] sm:$0xff] }
 0x364   :  { %v2716_v43 = vpop.permute.xlu0 %2715  ;;  %2419 = vmatprep.subr.mxu1 %v2335_v39  ;;  %v2507_v44 = vpop.permute.xlu1 %2506  ;;  %v5672_v39 = vld [vmem:[%s7251_s4 + $0x50] sm:$0xff]  ;;  %v3152_v42 = vrot.slane %v5681_v21, %v6231_v13 }
 0x365   :  { %v2515_v45 = vsel %vm2512_vm11, %v2505_v22, %v2507_v44  ;;  %2420 = vmatpush1.msra.mxu1 %v2334_v38  ;;  %v2953_v36 = vmul.f32 %v2942_v20, %v6485_v33 }
 0x366   :  { %v2544_v46 = vmul.f32 %v2530_v40, %v2515_v45  ;;  %5655 = vmatmul.mubr.msk.f32.gmra.mrb[4].mxu0 %vm1973_vm10, %v5652_v41  ;;  %5656 = vmatmul.mubr.msk.f32.vlgmr.msra.gmra.mrb[2].mxu1 %vm1973_vm10, %v5651_v28  ;;  %v5666_v28 = vld [vmem:[%s7251_s4 + $0x48] sm:$0xff] }
 0x367   :  { %2489 = vmatprep.mubr.f32.mxu1 %v6084_v2  ;;  %2617 = vmatprep.mubr.f32.mxu0 %v6084_v2 }
 0x368   :  { %v2722_v52 = vpop.permute.xlu0 %2721  ;;  %2553 = vmatprep.subr.mxu0 %v2544_v46  ;;  %v2509_v53 = vpop.permute.xlu1 %2508 }
 0x369   :  { %v2513_v54 = vsel %vm2512_vm11, %v2509_v53, %v2511_v34  ;;  %v2514_v55 = vsel %vm2512_vm11, %v2507_v44, %v2509_v53  ;;  %2554 = vmatpush1.msra.mxu0 %v2543_v49  ;;  %v2726_v62 = vsel %vm656_vm5, %v2722_v52, %v2716_v43  ;;  %v3144_v34 = vrot.slane %v5681_v21, %v6229_v11 }
 0x36a   :  { %v2545_v56 = vmul.f32 %v2534_v47, %v2514_v55  ;;  %v2546_v57 = vmul.f32 %v2538_v48, %v2513_v54  ;;  %5657 = vmatmul.mubr.msk.f32.gmra.mrb[4].mxu1 %vm1973_vm10, %v5652_v41  ;;  %5661 = vmatmul.mubr.msk.f32.vlgmr.msra.gmra.mrb[2].mxu0 %vm1973_vm10, %v5658_v50  ;;  %v2753_v15 = vmul.f32 %v2736_v60, %v2726_v62  ;;  %v5688_v41 = vld [vmem:[%s7249_s5 + $0x7] ss:$8 sm:$0xf]  ;;  %v5695_v60 = vld [vmem:[%s7249_s5 + $0x20] ss:$8 sm:$0xf] }
 0x36b   :  { %2623 = vmatprep.mubr.f32.mxu0 %v6084_v2  ;;  %2694 = vmatprep.mubr.f32.mxu1 %v6084_v2  ;;  %v3359_v46 = vrot.slane %v5688_v41, %v6227_v10  ;;  %v5673_v47 = vld [vmem:[%s7251_s4 + $0x58] sm:$0xff]  ;;  %v3367_v55 = vrot.slane %v5688_v41, %v6233_v14 }
 0x36c   :  { %v3126_v63 = vpop.permute.xlu0 %3125  ;;  %2630 = vmatprep.subr.mxu1 %v2546_v57  ;;  %v2718_v3 = vpop.permute.xlu1 %2717 }
 0x36d   :  { %v2725_v4 = vsel %vm656_vm5, %v2716_v43, %v2718_v3  ;;  %2631 = vmatpush1.msra.mxu1 %v2545_v56  ;;  %v5679_v56 = vld [vmem:[%s7251_s4 + $0x60] sm:$0xff] }
 0x36e   :  { %v2754_v7 = vmul.f32 %v2740_v58, %v2725_v4  ;;  %5662 = vmatmul.mubr.msk.f32.gmra.mrb[4].mxu0 %vm1973_vm10, %v5659_v61  ;;  %5663 = vmatmul.mubr.msk.f32.vlgmr.msra.gmra.mrb[2].mxu1 %vm1973_vm10, %v5658_v50  ;;  %v3355_v50 = vrot.slane %v5688_v41, %v6229_v11  ;;  %v3569_v4 = vrot.slane %v5695_v60, %v6227_v10 }
 0x36f   :  { %2700 = vmatprep.mubr.f32.mxu1 %v6084_v2  ;;  %2827 = vmatprep.mubr.f32.mxu0 %v6084_v2 }
 0x370   :  { %v3124_v17 = vpop.permute.xlu0 %3123  ;;  %2763 = vmatprep.subr.mxu0 %v2754_v7  ;;  %v2720_v18 = vpop.permute.xlu1 %2719 }
 0x371   :  { %v2723_v22 = vsel %vm656_vm5, %v2720_v18, %v2722_v52  ;;  %v2724_v23 = vsel %vm656_vm5, %v2718_v3, %v2720_v18  ;;  %2764 = vmatpush1.msra.mxu0 %v2753_v15  ;;  %v3133_v37 = vsel %vm1047_vm6, %v3124_v17, %v3126_v63  ;;  %v3577_v18 = vrot.slane %v5695_v60, %v6233_v14 }
 0x372   :  { %v2755_v26 = vmul.f32 %v2744_v8, %v2724_v23  ;;  %v2756_v27 = vmul.f32 %v2748_v12, %v2723_v22  ;;  %5664 = vmatmul.mubr.msk.f32.gmra.mrb[4].mxu1 %vm1973_vm10, %v5659_v61  ;;  %5668 = vmatmul.mubr.msk.f32.vlgmr.msra.gmra.mrb[2].mxu0 %vm1973_vm10, %v5665_v16  ;;  %v3161_v1 = vmul.f32 %v3144_v34, %v3133_v37  ;;  %v5702_v23 = vld [vmem:[%s7249_s5 + $0x21] ss:$8 sm:$0xf] }
 0x373   :  { %2961 = vmatprep.subr.mxu0 %v2952_v24  ;;  %2833 = vmatprep.mubr.f32.mxu0 %v6084_v2  ;;  %v3363_v61 = vrot.slane %v5688_v41, %v6231_v13  ;;  %v3565_v8 = vrot.slane %v5695_v60, %v6229_v11  ;;  %v3573_v24 = vrot.slane %v5695_v60, %v6231_v13 }
 0x374   :  { %2962 = vmatpush1.msra.mxu0 %v2951_v25  ;;  %v3336_v31 = vpop.permute.xlu0 %3335  ;;  %2840 = vmatprep.subr.mxu1 %v2756_v27  ;;  %v3128_v30 = vpop.permute.xlu1 %3127  ;;  %v3783_v41 = vrot.slane %v5702_v23, %v6231_v13 }
 0x375   :  { %v3132_v35 = vsel %vm1047_vm6, %v3126_v63, %v3128_v30  ;;  %2841 = vmatpush1.msra.mxu1 %v2755_v26  ;;  %2904 = vmatprep.mubr.f32.mxu1 %v6084_v2 }
 0x376   :  { %v3162_v38 = vmul.f32 %v3148_v0, %v3132_v35  ;;  %5669 = vmatmul.mubr.msk.f32.gmra.mrb[4].mxu0 %vm1973_vm10, %v5666_v28  ;;  %5670 = vmatmul.mubr.msk.f32.vlgmr.msra.gmra.mrb[2].mxu1 %vm1973_vm10, %v5665_v16  ;;  %v3779_v0 = vrot.slane %v5702_v23, %v6227_v10 }
 0x377   :  { %3038 = vmatprep.subr.mxu1 %v2954_v29  ;;  %2910 = vmatprep.mubr.f32.mxu1 %v6084_v2  ;;  %v3775_v29 = vrot.slane %v5702_v23, %v6229_v11 }
 0x378   :  { %3039 = vmatpush1.msra.mxu1 %v2953_v36  ;;  %v3334_v40 = vpop.permute.xlu0 %3333  ;;  %v3130_v33 = vpop.permute.xlu1 %3129  ;;  %3171 = vmatprep.subr.mxu0 %v3162_v38  ;;  %v3787_v38 = vrot.slane %v5702_v23, %v6233_v14 }
 0x379   :  { %v3134_v43 = vsel %vm1047_vm6, %v3130_v33, %v3124_v17  ;;  %3025 = vmatprep.mubr.f32.mxu0 %v6084_v2  ;;  %v3131_v44 = vsel %vm1047_vm6, %v3128_v30, %v3130_v33  ;;  %v3344_v53 = vsel %vm3341_vm12, %v3334_v40, %v3336_v31 }
 0x37a   :  { %v3164_v45 = vmul.f32 %v3156_v32, %v3134_v43  ;;  %5671 = vmatmul.mubr.msk.f32.gmra.mrb[4].mxu1 %vm1973_vm10, %v5666_v28  ;;  %5675 = vmatmul.mubr.msk.f32.vlgmr.msra.gmra.mrb[2].mxu0 %vm1973_vm10, %v5672_v39  ;;  %v3163_v51 = vmul.f32 %v3152_v42, %v3131_v44  ;;  %v3372_v59 = vmul.f32 %v3355_v50, %v3344_v53  ;;  %v5687_v28 = vld [vmem:[%s7251_s4 + $0x78] sm:$0xff]  ;;  %v5693_v32 = vld [vmem:[%s7251_s4 + $0x80] sm:$0xff] }
 0x37b   :  { %3172 = vmatpush1.msra.mxu0 %v3161_v1  ;;  %3031 = vmatprep.mubr.f32.mxu0 %v6084_v2  ;;  %v5709_v1 = vld [vmem:[%s7249_s5 + $0x22] ss:$8 sm:$0xf] }
 0x37c   :  { %v3547_v48 = vpop.permute.xlu0 %3546  ;;  %3248 = vmatprep.subr.mxu1 %v3164_v45  ;;  %v3338_v49 = vpop.permute.xlu1 %3337  ;;  %3102 = vmatprep.mubr.f32.mxu1 %v6084_v2  ;;  %v3989_v45 = vrot.slane %v5709_v1, %v6227_v10  ;;  %v3993_v60 = vrot.slane %v5709_v1, %v6231_v13 }
 0x37d   :  { %v3343_v52 = vsel %vm3341_vm12, %v3336_v31, %v3338_v49 }
 0x37e   :  { %v3373_v54 = vmul.f32 %v3359_v46, %v3343_v52  ;;  %5676 = vmatmul.mubr.msk.f32.gmra.mrb[4].mxu0 %vm1973_vm10, %v5673_v47  ;;  %5677 = vmatmul.mubr.msk.f32.vlgmr.msra.gmra.mrb[2].mxu1 %vm1973_vm10, %v5672_v39  ;;  %v5694_v46 = vld [vmem:[%s7251_s4 + $0x88] sm:$0xff] }
 0x37f   :  { %3249 = vmatpush1.msra.mxu1 %v3163_v51  ;;  %3108 = vmatprep.mubr.f32.mxu1 %v6084_v2 }
 0x380   :  { %v3545_v57 = vpop.permute.xlu0 %3544  ;;  %v3340_v58 = vpop.permute.xlu1 %3339  ;;  %3382 = vmatprep.subr.mxu0 %v3373_v54  ;;  %3235 = vmatprep.mubr.f32.mxu0 %v6084_v2  ;;  %v3997_v54 = vrot.slane %v5709_v1, %v6233_v14 }
 0x381   :  { %v3345_v62 = vsel %vm3341_vm12, %v3340_v58, %v3334_v40  ;;  %v3342_v63 = vsel %vm3341_vm12, %v3338_v49, %v3340_v58  ;;  %v3554_v16 = vsel %vm1250_vm7, %v3545_v57, %v3547_v48  ;;  %v3985_v49 = vrot.slane %v5709_v1, %v6229_v11 }
 0x382   :  { %v3375_v3 = vmul.f32 %v3367_v55, %v3345_v62  ;;  %5678 = vmatmul.mubr.msk.f32.gmra.mrb[4].mxu1 %vm1973_vm10, %v5673_v47  ;;  %5682 = vmatmul.mubr.msk.f32.vlgmr.msra.gmra.mrb[2].mxu0 %vm1973_vm10, %v5679_v56  ;;  %v3374_v12 = vmul.f32 %v3363_v61, %v3342_v63  ;;  %v3582_v22 = vmul.f32 %v3565_v8, %v3554_v16  ;;  %v5700_v55 = vld [vmem:[%s7251_s4 + $0x90] sm:$0xff] }
 0x383   :  { %3383 = vmatpush1.msra.mxu0 %v3372_v59  ;;  %3241 = vmatprep.mubr.f32.mxu0 %v6084_v2  ;;  %v5716_v59 = vld [vmem:[%s7249_s5 + $0x23] ss:$8 sm:$0xf] }
 0x384   :  { %v3757_v6 = vpop.permute.xlu0 %3756  ;;  %3459 = vmatprep.subr.mxu1 %v3375_v3  ;;  %v3549_v7 = vpop.permute.xlu1 %3548  ;;  %3312 = vmatprep.mubr.f32.mxu1 %v6084_v2  ;;  %v4200_v3 = vrot.slane %v5716_v59, %v6227_v10  ;;  %v4204_v23 = vrot.slane %v5716_v59, %v6231_v13 }
 0x385   :  { %v3553_v15 = vsel %vm1250_vm7, %v3547_v48, %v3549_v7 }
 0x386   :  { %v3583_v17 = vmul.f32 %v3569_v4, %v3553_v15  ;;  %5683 = vmatmul.mubr.msk.f32.gmra.mrb[4].mxu0 %vm1973_vm10, %v5680_v5  ;;  %5684 = vmatmul.mubr.msk.f32.vlgmr.msra.gmra.mrb[2].mxu1 %vm1973_vm10, %v5679_v56  ;;  %v5701_v4 = vld [vmem:[%s7251_s4 + $0x98] sm:$0xff] }
 0x387   :  { %3460 = vmatpush1.msra.mxu1 %v3374_v12  ;;  %3318 = vmatprep.mubr.f32.mxu1 %v6084_v2 }
 0x388   :  { %v3755_v20 = vpop.permute.xlu0 %3754  ;;  %v3551_v21 = vpop.permute.xlu1 %3550  ;;  %3592 = vmatprep.subr.mxu0 %v3583_v17  ;;  %3446 = vmatprep.mubr.f32.mxu0 %v6084_v2  ;;  %v4208_v17 = vrot.slane %v5716_v59, %v6233_v14 }
 0x389   :  { %v3555_v25 = vsel %vm1250_vm7, %v3551_v21, %v3545_v57  ;;  %v3552_v26 = vsel %vm1250_vm7, %v3549_v7, %v3551_v21  ;;  %v3764_v36 = vsel %vm1453_vm8, %v3755_v20, %v3757_v6  ;;  %v4196_v7 = vrot.slane %v5716_v59, %v6229_v11 }
 0x38a   :  { %v3585_v27 = vmul.f32 %v3577_v18, %v3555_v25  ;;  %5685 = vmatmul.mubr.msk.f32.gmra.mrb[4].mxu1 %vm1973_vm10, %v5680_v5  ;;  %5689 = vmatmul.mubr.msk.f32.vlgmr.msra.gmra.mrb[2].mxu0 %vm1973_vm10, %v5686_v19  ;;  %v3584_v34 = vmul.f32 %v3573_v24, %v3552_v26  ;;  %v3792_v33 = vmul.f32 %v3775_v29, %v3764_v36  ;;  %v5707_v18 = vld [vmem:[%s7251_s4 + $0xa0] sm:$0xff] }
 0x38b   :  { %3593 = vmatpush1.msra.mxu0 %v3582_v22  ;;  %3452 = vmatprep.mubr.f32.mxu0 %v6084_v2  ;;  %v5723_v22 = vld [vmem:[%s7249_s5 + $0x24] ss:$8 sm:$0xf] }
 0x38c   :  { %v3967_v31 = vpop.permute.xlu0 %3966  ;;  %3669 = vmatprep.subr.mxu1 %v3585_v27  ;;  %v3759_v30 = vpop.permute.xlu1 %3758  ;;  %3523 = vmatprep.mubr.f32.mxu1 %v6084_v2  ;;  %v4411_v27 = vrot.slane %v5723_v22, %v6227_v10  ;;  %v4415_v1 = vrot.slane %v5723_v22, %v6231_v13 }
 0x38d   :  { %v3763_v35 = vsel %vm1453_vm8, %v3757_v6, %v3759_v30 }
 0x38e   :  { %v3793_v37 = vmul.f32 %v3779_v0, %v3763_v35  ;;  %5690 = vmatmul.mubr.msk.f32.gmra.mrb[4].mxu0 %vm1973_vm10, %v5687_v28  ;;  %5691 = vmatmul.mubr.msk.f32.vlgmr.msra.gmra.mrb[2].mxu1 %vm1973_vm10, %v5686_v19  ;;  %v5708_v0 = vld [vmem:[%s7251_s4 + $0xa8] sm:$0xff] }
 0x38f   :  { %3670 = vmatpush1.msra.mxu1 %v3584_v34  ;;  %3529 = vmatprep.mubr.f32.mxu1 %v6084_v2 }
 0x390   :  { %v3965_v39 = vpop.permute.xlu0 %3964  ;;  %v3761_v40 = vpop.permute.xlu1 %3760  ;;  %3802 = vmatprep.subr.mxu0 %v3793_v37  ;;  %3656 = vmatprep.mubr.f32.mxu0 %v6084_v2  ;;  %v4419_v37 = vrot.slane %v5723_v22, %v6233_v14 }
 0x391   :  { %v3765_v42 = vsel %vm1453_vm8, %v3761_v40, %v3755_v20  ;;  %v3762_v43 = vsel %vm1453_vm8, %v3759_v30, %v3761_v40  ;;  %v3974_v52 = vsel %vm1656_vm9, %v3965_v39, %v3967_v31  ;;  %v4407_v30 = vrot.slane %v5723_v22, %v6229_v11 }
 0x392   :  { %v3795_v44 = vmul.f32 %v3787_v38, %v3765_v42  ;;  %5692 = vmatmul.mubr.msk.f32.gmra.mrb[4].mxu1 %vm1973_vm10, %v5687_v28  ;;  %5696 = vmatmul.mubr.msk.f32.vlgmr.msra.gmra.mrb[2].mxu0 %vm1973_vm10, %v5693_v32  ;;  %v3794_v50 = vmul.f32 %v3783_v41, %v3762_v43  ;;  %v4002_v58 = vmul.f32 %v3985_v49, %v3974_v52  ;;  %v5714_v38 = vld [vmem:[%s7251_s4 + $0xb0] sm:$0xff] }
 0x393   :  { %3803 = vmatpush1.msra.mxu0 %v3792_v33  ;;  %3662 = vmatprep.mubr.f32.mxu0 %v6084_v2  ;;  %v5730_v33 = vld [vmem:[%s7249_s5 + $0x25] ss:$8 sm:$0xf] }
 0x394   :  { %v4177_v47 = vpop.permute.xlu0 %4176  ;;  %3879 = vmatprep.subr.mxu1 %v3795_v44  ;;  %v3969_v48 = vpop.permute.xlu1 %3968  ;;  %3733 = vmatprep.mubr.f32.mxu1 %v6084_v2  ;;  %v4622_v44 = vrot.slane %v5730_v33, %v6227_v10  ;;  %v4626_v59 = vrot.slane %v5730_v33, %v6231_v13 }
 0x395   :  { %v3973_v51 = vsel %vm1656_vm9, %v3967_v31, %v3969_v48 }
 0x396   :  { %v4003_v53 = vmul.f32 %v3989_v45, %v3973_v51  ;;  %5697 = vmatmul.mubr.msk.f32.gmra.mrb[4].mxu0 %vm1973_vm10, %v5694_v46  ;;  %5698 = vmatmul.mubr.msk.f32.vlgmr.msra.gmra.mrb[2].mxu1 %vm1973_vm10, %v5693_v32  ;;  %v5715_v45 = vld [vmem:[%s7251_s4 + $0xb8] sm:$0xff] }
 0x397   :  { %3880 = vmatpush1.msra.mxu1 %v3794_v50  ;;  %3739 = vmatprep.mubr.f32.mxu1 %v6084_v2 }
 0x398   :  { %v4175_v56 = vpop.permute.xlu0 %4174  ;;  %v3971_v57 = vpop.permute.xlu1 %3970  ;;  %4012 = vmatprep.subr.mxu0 %v4003_v53  ;;  %3866 = vmatprep.mubr.f32.mxu0 %v6084_v2  ;;  %v4630_v53 = vrot.slane %v5730_v33, %v6233_v14 }
 0x399   :  { %v3975_v61 = vsel %vm1656_vm9, %v3971_v57, %v3965_v39  ;;  %v3972_v62 = vsel %vm1656_vm9, %v3969_v48, %v3971_v57  ;;  %v4185_v15 = vsel %vm4182_vm13, %v4175_v56, %v4177_v47  ;;  %v4618_v48 = vrot.slane %v5730_v33, %v6229_v11  ;;  %v5277_v33 = vld [vmem:[%s7252_s6 + $0x180] sm:$0xff] }
 0x39a   :  { %v4005_v63 = vmul.f32 %v3997_v54, %v3975_v61  ;;  %5699 = vmatmul.mubr.msk.f32.gmra.mrb[4].mxu1 %vm1973_vm10, %v5694_v46  ;;  %5703 = vmatmul.mubr.msk.f32.vlgmr.msra.gmra.mrb[2].mxu0 %vm1973_vm10, %v5700_v55  ;;  %v4004_v8 = vmul.f32 %v3993_v60, %v3972_v62  ;;  %v4213_v21 = vmul.f32 %v4196_v7, %v4185_v15  ;;  %v5721_v54 = vld [vmem:[%s7251_s4 + $0xc0] sm:$0xff] }
 0x39b   :  { %4013 = vmatpush1.msra.mxu0 %v4002_v58  ;;  %3872 = vmatprep.mubr.f32.mxu0 %v6084_v2  ;;  %v5737_v58 = vld [vmem:[%s7249_s5 + $0x26] ss:$8 sm:$0xf] }
 0x39c   :  { %v4388_v5 = vpop.permute.xlu0 %4387  ;;  %4089 = vmatprep.subr.mxu1 %v4005_v63  ;;  %v4179_v6 = vpop.permute.xlu1 %4178  ;;  %3943 = vmatprep.mubr.f32.mxu1 %v6084_v2  ;;  %v4833_v63 = vrot.slane %v5737_v58, %v6227_v10 }
 0x39d   :  { %v4184_v12 = vsel %vm4182_vm13, %v4177_v47, %v4179_v6 }
 0x39e   :  { %v4214_v16 = vmul.f32 %v4200_v3, %v4184_v12  ;;  %5704 = vmatmul.mubr.msk.f32.gmra.mrb[4].mxu0 %vm1973_vm10, %v5701_v4  ;;  %5705 = vmatmul.mubr.msk.f32.vlgmr.msra.gmra.mrb[2].mxu1 %vm1973_vm10, %v5700_v55  ;;  %v5722_v3 = vld [vmem:[%s7251_s4 + $0xc8] sm:$0xff] }
 0x39f   :  { %4090 = vmatpush1.msra.mxu1 %v4004_v8  ;;  %3949 = vmatprep.mubr.f32.mxu1 %v6084_v2 }
 0x3a0   :  { %v4386_v19 = vpop.permute.xlu0 %4385  ;;  %v4181_v20 = vpop.permute.xlu1 %4180  ;;  %4223 = vmatprep.subr.mxu0 %v4214_v16  ;;  %4076 = vmatprep.mubr.f32.mxu0 %v6084_v2  ;;  %v4841_v16 = vrot.slane %v5737_v58, %v6233_v14 }
 0x3a1   :  { %v4186_v24 = vsel %vm4182_vm13, %v4181_v20, %v4175_v56  ;;  %v4183_v25 = vsel %vm4182_vm13, %v4179_v6, %v4181_v20  ;;  %v4396_v35 = vsel %vm4393_vm14, %v4386_v19, %v4388_v5  ;;  %v5744_v20 = vld [vmem:[%s7249_s5 + $0x27] ss:$8 sm:$0xf] }
 0x3a2   :  { %v4216_v26 = vmul.f32 %v4208_v17, %v4186_v24  ;;  %5706 = vmatmul.mubr.msk.f32.gmra.mrb[4].mxu1 %vm1973_vm10, %v5701_v4  ;;  %5710 = vmatmul.mubr.msk.f32.vlgmr.msra.gmra.mrb[2].mxu0 %vm1973_vm10, %v5707_v18  ;;  %v4215_v29 = vmul.f32 %v4204_v23, %v4183_v25  ;;  %v4424_v40 = vmul.f32 %v4407_v30, %v4396_v35  ;;  %v5728_v17 = vld [vmem:[%s7251_s4 + $0xd0] sm:$0xff]  ;;  %v5245_v35 = vld [vmem:[%s7252_s6 + $0x80] sm:$0xff] }
 0x3a3   :  { %4224 = vmatpush1.msra.mxu0 %v4213_v21  ;;  %4082 = vmatprep.mubr.f32.mxu0 %v6084_v2  ;;  %v4837_v21 = vrot.slane %v5737_v58, %v6231_v13  ;;  %v5044_v25 = vrot.slane %v5744_v20, %v6227_v10 }
 0x3a4   :  { %v4599_v28 = vpop.permute.xlu0 %4598  ;;  %4300 = vmatprep.subr.mxu1 %v4216_v26  ;;  %v4390_v31 = vpop.permute.xlu1 %4389  ;;  %4153 = vmatprep.mubr.f32.mxu1 %v6084_v2 }
 0x3a5   :  { %v4395_v34 = vsel %vm4393_vm14, %v4388_v5, %v4390_v31  ;;  %v4829_v5 = vrot.slane %v5737_v58, %v6229_v11  ;;  %v5250_v58 = vld [vmem:[%s7252_s6 + $0xa8] sm:$0xff] }
 0x3a6   :  { %v4425_v36 = vmul.f32 %v4411_v27, %v4395_v34  ;;  %5711 = vmatmul.mubr.msk.f32.gmra.mrb[4].mxu0 %vm1973_vm10, %v5708_v0  ;;  %5712 = vmatmul.mubr.msk.f32.vlgmr.msra.gmra.mrb[2].mxu1 %vm1973_vm10, %v5707_v18  ;;  %v5729_v27 = vld [vmem:[%s7251_s4 + $0xd8] sm:$0xff]  ;;  %v5052_v34 = vrot.slane %v5744_v20, %v6233_v14 }
 0x3a7   :  { %4301 = vmatpush1.msra.mxu1 %v4215_v29  ;;  %4159 = vmatprep.mubr.f32.mxu1 %v6084_v2 }
 0x3a8   :  { %v4597_v32 = vpop.permute.xlu0 %4596  ;;  %v4392_v39 = vpop.permute.xlu1 %4391  ;;  %4434 = vmatprep.subr.mxu0 %v4425_v36  ;;  %4287 = vmatprep.mubr.f32.mxu0 %v6084_v2  ;;  %v5246_v36 = vld [vmem:[%s7252_s6 + $0x88] sm:$0xff] }
 0x3a9   :  { %v4397_v41 = vsel %vm4393_vm14, %v4392_v39, %v4386_v19  ;;  %v4394_v42 = vsel %vm4393_vm14, %v4390_v31, %v4392_v39  ;;  %v4607_v51 = vsel %vm4604_vm15, %v4597_v32, %v4599_v28 }
 0x3aa   :  { %v4427_v43 = vmul.f32 %v4419_v37, %v4397_v41  ;;  %5713 = vmatmul.mubr.msk.f32.gmra.mrb[4].mxu1 %vm1973_vm10, %v5708_v0  ;;  %5717 = vmatmul.mubr.msk.f32.vlgmr.msra.gmra.mrb[2].mxu0 %vm1973_vm10, %v5714_v38  ;;  %v4426_v49 = vmul.f32 %v4415_v1, %v4394_v42  ;;  %v4635_v57 = vmul.f32 %v4618_v48, %v4607_v51  ;;  %v5735_v37 = vld [vmem:[%s7251_s4 + $0xe0] sm:$0xff]  ;;  %v5278_v1 = vld [vmem:[%s7252_s6 + $0x188] sm:$0xff]  ;;  %v5742_v48 = vld [vmem:[%s7251_s4 + $0xf0] sm:$0xff] }
 0x3ab   :  { %4435 = vmatpush1.msra.mxu0 %v4424_v40  ;;  %4293 = vmatprep.mubr.f32.mxu0 %v6084_v2  ;;  %v5836_v40 = vpack.c.bf16 %v5246_v36, %v5245_v35  ;;  %v5261_v51 = vld [vmem:[%s7252_s6 + $0x100] sm:$0xff]  ;;  %v5238_v35 = vld [vmem:[%s7252_s6 + $0x48] sm:$0xff] }
 0x3ac   :  { %v4810_v46 = vpop.permute.xlu0 %4809  ;;  %4511 = vmatprep.subr.mxu1 %v4427_v43  ;;  %v4601_v47 = vpop.permute.xlu1 %4600  ;;  %4364 = vmatprep.mubr.f32.mxu1 %v6084_v2  ;;  %v5868_v43 = vpack.c.bf16 %v5278_v1, %v5277_v33  ;;  %v5285_v36 = vld [vmem:[%s7252_s6 + $0x1c0] sm:$0xff]  ;;  %v5239_v33 = vld [vmem:[%s7252_s6 + $0x50] sm:$0xff] }
 0x3ad   :  { %v4606_v50 = vsel %vm4604_vm15, %v4599_v28, %v4601_v47  ;;  %v5040_v28 = vrot.slane %v5744_v20, %v6229_v11  ;;  %v5269_v1 = vld [vmem:[%s7252_s6 + $0x140] sm:$0xff] }
 0x3ae   :  { %v4636_v52 = vmul.f32 %v4622_v44, %v4606_v50  ;;  %5718 = vmatmul.mubr.msk.f32.gmra.mrb[4].mxu0 %vm1973_vm10, %v5715_v45  ;;  %5719 = vmatmul.mubr.msk.f32.vlgmr.msra.gmra.mrb[2].mxu1 %vm1973_vm10, %v5714_v38  ;;  %v5231_v50 = vld [vmem:[%s7252_s6 + $0x10] sm:$0xff] }
 0x3af   :  { %4512 = vmatpush1.msra.mxu1 %v4426_v49  ;;  %4370 = vmatprep.mubr.f32.mxu1 %v6084_v2 }
 0x3b0   :  { %v4808_v55 = vpop.permute.xlu0 %4807  ;;  %v4603_v56 = vpop.permute.xlu1 %4602  ;;  %4645 = vmatprep.subr.mxu0 %v4636_v52  ;;  %4498 = vmatprep.mubr.f32.mxu0 %v6084_v2  ;;  %v5262_v52 = vld [vmem:[%s7252_s6 + $0x108] sm:$0xff] }
 0x3b1   :  { %v4608_v60 = vsel %vm4604_vm15, %v4603_v56, %v4597_v32  ;;  %v4605_v61 = vsel %vm4604_vm15, %v4601_v47, %v4603_v56  ;;  %v4818_v12 = vsel %vm4815_vm0, %v4808_v55, %v4810_v46  ;;  %v5048_v32 = vrot.slane %v5744_v20, %v6231_v13  ;;  %v5736_v13 = vld [vmem:[%s7251_s4 + $0xe8] sm:$0xff]  ;;  %v5248_v47 = vld [vmem:[%s7252_s6 + $0x98] sm:$0xff]  ;;  %v5265_v20 = vld [vmem:[%s7252_s6 + $0x120] sm:$0xff] }
 0x3b2   :  { %v4638_v62 = vmul.f32 %v4630_v53, %v4608_v60  ;;  %5720 = vmatmul.mubr.msk.f32.gmra.mrb[4].mxu1 %vm1973_vm10, %v5715_v45  ;;  %5724 = vmatmul.mubr.msk.f32.vlgmr.msra.gmra.mrb[2].mxu0 %vm1973_vm10, %v5721_v54  ;;  %v4637_v6 = vmul.f32 %v4626_v59, %v4605_v61  ;;  %v4846_v19 = vmul.f32 %v4829_v5, %v4818_v12  ;;  %v5230_v45 = vld [vmem:[%s7252_s6 + $0x8] sm:$0xff]  ;;  %v5280_v56 = vld [vmem:[%s7252_s6 + $0x198] sm:$0xff]  ;;  %v5251_v12 = vld [vmem:[%s7252_s6 + $0xb0] sm:$0xff] }
 0x3b3   :  { %4646 = vmatpush1.msra.mxu0 %v4635_v57  ;;  %4504 = vmatprep.mubr.f32.mxu0 %v6084_v2  ;;  %v5838_v49 = vpack.c.bf16 %v5230_v45, %v5229_v9  ;;  %v5249_v57 = vld [vmem:[%s7252_s6 + $0xa0] sm:$0xff]  ;;  %v5743_v59 = vld [vmem:[%s7251_s4 + $0xf8] sm:$0xff]  ;;  %v5870_v60 = vpack.c.bf16 %v5262_v52, %v5261_v51  ;;  %v5258_v45 = vld [vmem:[%s7252_s6 + $0xe8] sm:$0xff] }
 0x3b4   :  { %4722 = vmatprep.subr.mxu1 %v4638_v62  ;;  %v4812_v4 = vpop.permute.xlu1 %4811  ;;  %4575 = vmatprep.mubr.f32.mxu1 %v6084_v2  ;;  %v5021_v7 = vpop.permute.xlu0 %5020  ;;  %v5844_v5 = vpack.c.bf16 %v5250_v58, %v5249_v57  ;;  %v5257_v9 = vld [vmem:[%s7252_s6 + $0xe0] sm:$0xff]  ;;  %v5272_v51 = vld [vmem:[%s7252_s6 + $0x158] sm:$0xff] }
 0x3b5   :  { %v4817_v8 = vsel %vm4815_vm0, %v4810_v46, %v4812_v4  ;;  %v5247_v46 = vld [vmem:[%s7252_s6 + $0x90] sm:$0xff]  ;;  %v5860_v52 = vpack.c.bf16 %v5258_v45, %v5257_v9  ;;  %v5260_v57 = vld [vmem:[%s7252_s6 + $0xf8] sm:$0xff] }
 0x3b6   :  { %v4847_v15 = vmul.f32 %v4833_v63, %v4817_v8  ;;  %5725 = vmatmul.mubr.msk.f32.gmra.mrb[4].mxu0 %vm1973_vm10, %v5722_v3  ;;  %5726 = vmatmul.mubr.msk.f32.vlgmr.msra.gmra.mrb[2].mxu1 %vm1973_vm10, %v5721_v54  ;;  %v5840_v53 = vpack.c.bf16 %v5248_v47, %v5247_v46  ;;  %v5232_v54 = vld [vmem:[%s7252_s6 + $0x18] sm:$0xff]  ;;  %v5233_v63 = vld [vmem:[%s7252_s6 + $0x20] sm:$0xff]  ;;  %v5282_v8 = vld [vmem:[%s7252_s6 + $0x1a8] sm:$0xff] }
 0x3b7   :  { %4723 = vmatpush1.msra.mxu1 %v4637_v6  ;;  %4581 = vmatprep.mubr.f32.mxu1 %v6084_v2  ;;  %v5842_v61 = vpack.c.bf16 %v5232_v54, %v5231_v50  ;;  %v5234_v6 = vld [vmem:[%s7252_s6 + $0x28] sm:$0xff]  ;;  %v5271_v50 = vld [vmem:[%s7252_s6 + $0x150] sm:$0xff]  ;;  %v5289_v54 = vld [vmem:[%s7252_s6 + $0x1e0] sm:$0xff] }
 0x3b8   :  { %v4814_v18 = vpop.permute.xlu1 %4813  ;;  %4856 = vmatprep.subr.mxu0 %v4847_v15  ;;  %4709 = vmatprep.mubr.f32.mxu0 %v6084_v2  ;;  %v5019_v26 = vpop.permute.xlu0 %5018  ;;  %v5252_v15 = vld [vmem:[%s7252_s6 + $0xb8] sm:$0xff]  ;;  %v5890_v58 = vpack.c.bf16 %v5272_v51, %v5271_v50 }
 0x3b9   :  { %v4819_v22 = vsel %vm4815_vm0, %v4814_v18, %v4808_v55  ;;  %v4816_v23 = vsel %vm4815_vm0, %v4812_v4, %v4814_v18  ;;  %v5029_v30 = vsel %vm5026_vm1, %v5019_v26, %v5021_v7  ;;  %v5279_v55 = vld [vmem:[%s7252_s6 + $0x190] sm:$0xff]  ;;  %v5264_v4 = vld [vmem:[%s7252_s6 + $0x118] sm:$0xff] }
 0x3ba   :  { %v4849_v24 = vmul.f32 %v4841_v16, %v4819_v22  ;;  %5727 = vmatmul.mubr.msk.f32.gmra.mrb[4].mxu1 %vm1973_vm10, %v5722_v3  ;;  %5731 = vmatmul.mubr.msk.f32.vlgmr.msra.gmra.mrb[2].mxu0 %vm1973_vm10, %v5728_v17  ;;  %v4848_v31 = vmul.f32 %v4837_v21, %v4816_v23  ;;  %v5057_v14 = vmul.f32 %v5040_v28, %v5029_v30  ;;  %v5263_v3 = vld [vmem:[%s7252_s6 + $0x110] sm:$0xff]  ;;  %v5266_v21 = vld [vmem:[%s7252_s6 + $0x128] sm:$0xff]  ;;  %v5236_v23 = vld [vmem:[%s7252_s6 + $0x38] sm:$0xff] }
 0x3bb   :  { %4857 = vmatpush1.msra.mxu0 %v4846_v19  ;;  %4715 = vmatprep.mubr.f32.mxu0 %v6084_v2  ;;  %v5872_v62 = vpack.c.bf16 %v5280_v56, %v5279_v55  ;;  %v5874_v16 = vpack.c.bf16 %v5264_v4, %v5263_v3  ;;  %v5235_v19 = vld [vmem:[%s7252_s6 + $0x30] sm:$0xff]  ;;  %v5848_v22 = vpack.c.bf16 %v5252_v15, %v5251_v12  ;;  %v5290_v55 = vld [vmem:[%s7252_s6 + $0x1e8] sm:$0xff]  ;;  %v5273_v3 = vld [vmem:[%s7252_s6 + $0x160] sm:$0xff] }
 0x3bc   :  { %4933 = vmatprep.subr.mxu1 %v4849_v24  ;;  %v5023_v0 = vpop.permute.xlu1 %5022  ;;  %4786 = vmatprep.mubr.f32.mxu1 %v6084_v2  ;;  %v5283_v24 = vld [vmem:[%s7252_s6 + $0x1b0] sm:$0xff]  ;;  %v5850_v28 = vpack.c.bf16 %v5236_v23, %v5235_v19 }
 0x3bd   :  { %v5028_v10 = vsel %vm5026_vm1, %v5021_v7, %v5023_v0  ;;  %v5281_v7 = vld [vmem:[%s7252_s6 + $0x1a0] sm:$0xff]  ;;  %v5267_v30 = vld [vmem:[%s7252_s6 + $0x130] sm:$0xff] }
 0x3be   :  { %v5058_v29 = vmul.f32 %v5044_v25, %v5028_v10  ;;  %5732 = vmatmul.mubr.msk.f32.gmra.mrb[4].mxu0 %vm1973_vm10, %v5729_v27  ;;  %5733 = vmatmul.mubr.msk.f32.vlgmr.msra.gmra.mrb[2].mxu1 %vm1973_vm10, %v5728_v17  ;;  %v5846_v17 = vpack.c.bf16 %v5234_v6, %v5233_v63  ;;  %v5876_v18 = vpack.c.bf16 %v5282_v8, %v5281_v7  ;;  %v5284_v25 = vld [vmem:[%s7252_s6 + $0x1b8] sm:$0xff]  ;;  %v5237_v10 = vld [vmem:[%s7252_s6 + $0x40] sm:$0xff]  ;;  %v5259_v56 = vld [vmem:[%s7252_s6 + $0xf0] sm:$0xff] }
 0x3bf   :  { %4934 = vmatpush1.msra.mxu1 %v4848_v31  ;;  %4792 = vmatprep.mubr.f32.mxu1 %v6084_v2  ;;  %v5880_v31 = vpack.c.bf16 %v5284_v25, %v5283_v24  ;;  %v5244_v63 = vld [vmem:[%s7252_s6 + $0x78] sm:$0xff]  ;;  %v5291_v7 = vld [vmem:[%s7252_s6 + $0x1f0] sm:$0xff] }
 0x3c0   :  { %v5025_v38 = vpop.permute.xlu1 %5024  ;;  %5067 = vmatprep.subr.mxu0 %v5058_v29  ;;  %4920 = vmatprep.mubr.f32.mxu0 %v6084_v2  ;;  %v5268_v29 = vld [vmem:[%s7252_s6 + $0x138] sm:$0xff]  ;;  %v5275_v15 = vld [vmem:[%s7252_s6 + $0x170] sm:$0xff] }
 0x3c1   :  { %v5030_v39 = vsel %vm5026_vm1, %v5025_v38, %v5019_v26  ;;  %v5027_v41 = vsel %vm5026_vm1, %v5023_v0, %v5025_v38  ;;  %v5253_v26 = vld [vmem:[%s7252_s6 + $0xc0] sm:$0xff]  ;;  %v5878_v0 = vpack.c.bf16 %v5266_v21, %v5265_v20  ;;  %v5255_v38 = vld [vmem:[%s7252_s6 + $0xd0] sm:$0xff]  ;;  %v5292_v8 = vld [vmem:[%s7252_s6 + $0x1f8] sm:$0xff] }
 0x3c2   :  { %v5060_v42 = vmul.f32 %v5052_v34, %v5030_v39  ;;  %5734 = vmatmul.mubr.msk.f32.gmra.mrb[4].mxu1 %vm1973_vm10, %v5729_v27  ;;  %5738 = vmatmul.mubr.msk.f32.vlgmr.msra.gmra.mrb[2].mxu0 %vm1973_vm10, %v5735_v37  ;;  %v5059_v44 = vmul.f32 %v5048_v32, %v5027_v41  ;;  %v5254_v27 = vld [vmem:[%s7252_s6 + $0xc8] sm:$0xff]  ;;  %v5882_v32 = vpack.c.bf16 %v5268_v29, %v5267_v30 }
 0x3c3   :  { %5068 = vmatpush1.msra.mxu0 %v5057_v14  ;;  %4926 = vmatprep.mubr.f32.mxu0 %v6084_v2  ;;  %v5852_v34 = vpack.c.bf16 %v5254_v27, %v5253_v26  ;;  %v5256_v14 = vld [vmem:[%s7252_s6 + $0xd8] sm:$0xff]  ;;  %v5854_v39 = vpack.c.bf16 %v5238_v35, %v5237_v10  ;;  %v5270_v41 = vld [vmem:[%s7252_s6 + $0x148] sm:$0xff]  ;;  %v5896_v12 = vpack.c.bf16 %v5292_v8, %v5291_v7  ;;  %v15_v27 = vstv %s7253_s9 }
 0x3c4   :  { %5144 = vmatprep.subr.mxu1 %v5060_v42  ;;  %4997 = vmatprep.mubr.f32.mxu1 %v6084_v2  ;;  %v5856_v42 = vpack.c.bf16 %v5256_v14, %v5255_v38  ;;  %v5886_v46 = vpack.c.bf16 %v5270_v41, %v5269_v1  ;;  %16 = vst [vmem:[#allocation2] sm:$0x1] %v15_v27 }
 0x3c5   :  { %5837 = vmatprep.subr.bf16.mxu0 %v5836_v40 }
 0x3c6   :  { %5739 = vmatmul.mubr.msk.f32.gmra.mrb[4].mxu0 %vm1973_vm10, %v5736_v13  ;;  %5740 = vmatmul.mubr.msk.f32.vlgmr.msra.gmra.mrb[2].mxu1 %vm1973_vm10, %v5735_v37  ;;  %v5286_v37 = vld [vmem:[%s7252_s6 + $0x1c8] sm:$0xff] }
 0x3c7   :  { %5145 = vmatpush1.msra.mxu1 %v5059_v44  ;;  %5003 = vmatprep.mubr.f32.mxu1 %v6084_v2  ;;  %v5884_v40 = vpack.c.bf16 %v5286_v37, %v5285_v36  ;;  %v5288_v44 = vld [vmem:[%s7252_s6 + $0x1d8] sm:$0xff] }
 0x3c8   :  { %5131 = vmatprep.mubr.f32.mxu0 %v6084_v2  ;;  %5869 = vmatprep.subr.bf16.mxu1 %v5868_v43  ;;  %v5287_v43 = vld [vmem:[%s7252_s6 + $0x1d0] sm:$0xff] }
 0x3c9   :  { %v5298_v10 = vpop.permute.xlu0 %5297 }
 0x3ca   :  { %5741 = vmatmul.mubr.msk.f32.gmra.mrb[4].mxu1 %vm1973_vm10, %v5736_v13  ;;  %5745 = vmatmul.mubr.msk.f32.vlgmr.msra.gmra.mrb[2].mxu0 %vm1973_vm10, %v5742_v48  ;;  %v5240_v13 = vld [vmem:[%s7252_s6 + $0x58] sm:$0xff] }
 0x3cb   :  { %5137 = vmatprep.mubr.f32.mxu0 %v6084_v2  ;;  %5208 = vmatprep.mubr.f32.mxu1 %v6084_v2  ;;  %v5858_v47 = vpack.c.bf16 %v5240_v13, %v5239_v33 }
 0x3cc   :  { %5839 = vmatpush3.bf16.msra.mxu0 %v5838_v49  ;;  %v5241_v49 = vld [vmem:[%s7252_s6 + $0x60] sm:$0xff] }
 0x3cd   :  { %5841 = vmatprep.subr.bf16.mxu0 %v5840_v53  ;;  %v5242_v53 = vld [vmem:[%s7252_s6 + $0x68] sm:$0xff] }
 0x3ce   :  { %5746 = vmatmul.mubr.msk.f32.gmra.mrb[4].mxu0 %vm1973_vm10, %v5743_v59  ;;  %5747 = vmatmul.mubr.msk.f32.vlgmr.msra.gmra.mrb[2].mxu1 %vm1973_vm10, %v5742_v48  ;;  %v5888_v48 = vpack.c.bf16 %v5288_v44, %v5287_v43 }
 0x3cf   :  { %5214 = vmatprep.mubr.f32.mxu1 %v6084_v2  ;;  %5871 = vmatpush3.bf16.msra.mxu1 %v5870_v60  ;;  %v5892_v60 = vpack.c.bf16 %v5290_v55, %v5289_v54 }
 0x3d0   :  { %5843 = vmatpush3.bf16.msra.mxu0 %v5842_v61  ;;  %5873 = vmatprep.subr.bf16.mxu1 %v5872_v62  ;;  %v5864_v61 = vpack.c.bf16 %v5260_v57, %v5259_v56  ;;  %v5243_v62 = vld [vmem:[%s7252_s6 + $0x70] sm:$0xff] }
 0x3d1   :  { %5845 = vmatprep.subr.bf16.mxu0 %v5844_v5  ;;  %v5866_v4 = vpack.c.bf16 %v5244_v63, %v5243_v62  ;;  %v5274_v5 = vld [vmem:[%s7252_s6 + $0x168] sm:$0xff] }
 0x3d2   :  { %5748 = vmatmul.mubr.msk.f32.gmra.mrb[4].mxu1 %vm1973_vm10, %v5743_v59  ;;  %v5862_v59 = vpack.c.bf16 %v5242_v53, %v5241_v49  ;;  %v5894_v6 = vpack.c.bf16 %v5274_v5, %v5273_v3  ;;  %v6101_v49 = vmov 0.0|0.0  }
 0x3d3   :  { %5875 = vmatpush3.bf16.msra.mxu1 %v5874_v16  ;;  %v5276_v16 = vld [vmem:[%s7252_s6 + $0x178] sm:$0xff] }
 0x3d4   :  { %5847 = vmatpush3.bf16.msra.mxu0 %v5846_v17  ;;  %5877 = vmatprep.subr.bf16.mxu1 %v5876_v18  ;;  %v5898_v17 = vpack.c.bf16 %v5276_v16, %v5275_v15  ;;  %v5294_v18 = vld [vmem:[%s7250_s7 + $0x8] sm:$0xff] }
 0x3d5   :  { %5849 = vmatprep.subr.bf16.mxu0 %v5848_v22  ;;  %5302 = vperm.xlu1 %6075, %v5294_v18  }
 0x3d7   :  { %5879 = vmatpush3.bf16.msra.mxu1 %v5878_v0 }
 0x3d8   :  { %5851 = vmatpush3.bf16.msra.mxu0 %v5850_v28  ;;  %5881 = vmatprep.subr.bf16.mxu1 %v5880_v31 }
 0x3d9   :  { %5853 = vmatprep.subr.bf16.mxu0 %v5852_v34 }
 0x3db   :  { %5883 = vmatpush3.bf16.msra.mxu1 %v5882_v32 }
 0x3dc   :  { %5855 = vmatpush3.bf16.msra.mxu0 %v5854_v39  ;;  %5885 = vmatprep.subr.bf16.mxu1 %v5884_v40 }
 0x3dd   :  { %5857 = vmatprep.subr.bf16.mxu0 %v5856_v42  ;;  %v5480_v42 = vld [vmem:[#allocation2] sm:$0x1] }
 0x3df   :  { %5887 = vmatpush3.bf16.msra.mxu1 %v5886_v46 }
 0x3e0   :  { %5859 = vmatpush3.bf16.msra.mxu0 %v5858_v47  ;;  %5889 = vmatprep.subr.bf16.mxu1 %v5888_v48 }
 0x3e1   :  { %5861 = vmatprep.subr.bf16.mxu0 %v5860_v52 }
 0x3e3   :  { %5891 = vmatpush3.bf16.msra.mxu1 %v5890_v58 }
 0x3e4   :  { %5863 = vmatpush3.bf16.msra.mxu0 %v5862_v59  ;;  %5893 = vmatprep.subr.bf16.mxu1 %v5892_v60 }
 0x3e5   :  { %5865 = vmatprep.subr.bf16.mxu0 %v5864_v61 }
 0x3e7   :  { %5895 = vmatpush3.bf16.msra.mxu1 %v5894_v6 }
 0x3e8   :  { %5867 = vmatpush3.bf16.msra.mxu0 %v5866_v4  ;;  %5897 = vmatprep.subr.bf16.mxu1 %v5896_v12 }
 0x3e9   :  { %5900 = vmatprep.subr.bf16.mxu0 %v6101_v49 }
 0x3eb   :  { %5899 = vmatpush3.bf16.msra.mxu1 %v5898_v17 }
 0x454   :  { %v5303_v14 = vpop.permute.xlu1 %5302 }
 0x49d   :  { %v5133_v19 = vpop.f32.mrb[2].mxu0 }
 0x49e   :  { %v5135_v20 = vpop.f32.mrb[3].mxu0 }
 0x49f   :  { %5369 = vmatprep.mubr.f32.mxu0 %v5135_v20 }
 0x4a0   :  { %5370 = vmatmul.mubr.f32.vlgmr.msra.gmra.mrb[6].mxu0 %v5133_v19 }
 0x4a1   :  { %v5139_v21 = vpop.f32.mrb[4].mxu0  ;;  %v5210_v22 = vpop.f32.mrb[2].mxu1 }
 0x4a2   :  { %v5141_v23 = vpop.f32.mrb[5].mxu0  ;;  %v5212_v24 = vpop.f32.mrb[3].mxu1 }
 0x4a3   :  { %5374 = vmatprep.mubr.f32.mxu0 %v5141_v23  ;;  %5444 = vmatprep.mubr.f32.mxu1 %v5212_v24 }
 0x4a4   :  { %5375 = vmatmul.mubr.f32.gmra.mrb[8].mxu0 %v5139_v21  ;;  %5445 = vmatmul.mubr.f32.vlgmr.msra.gmra.mrb[6].mxu1 %v5210_v22 }
 0x4a5   :  { %v5216_v25 = vpop.f32.mrb[4].mxu1  ;;  %5833 = vmatprep.mubr.msk.f32.mxu0 %vm6102_vm2, %v6084_v2  ;;  %v5479_v2 = vld [vmem:[%s7254_s8] sm:$0x1] }
 0x4a6   :  { %v5218_v26 = vpop.f32.mrb[5].mxu1 }
 0x4a7   :  { %5449 = vmatprep.mubr.f32.mxu1 %v5218_v26 }
 0x4a8   :  { %5450 = vmatmul.mubr.f32.gmra.mrb[8].mxu1 %v5216_v25 }
 0x573   :  { %v5782_v0 = vpop.f32.mrb[6].mxu0 }
 0x574   :  { %v5783_v28 = vpop.f32.mrb[7].mxu0 }
 0x575   :  { %v5784_v31 = vadd.f32 %v5783_v28, %v5782_v0 }
 0x577   :  { %v5785_v30 = vpop.f32.mrb[8].mxu0  ;;  %v5820_v29 = vpop.f32.mrb[6].mxu1  ;;  %v5372_v36 = vadd.f32 %v5784_v31, %v5298_v10 }
 0x578   :  { %v5786_v34 = vpop.f32.mrb[9].mxu0  ;;  %v5821_v35 = vpop.f32.mrb[7].mxu1 }
 0x579   :  { %v5787_v37 = vadd.f32 %v5786_v34, %v5785_v30  ;;  %v5822_v38 = vadd.f32 %v5821_v35, %v5820_v29 }
 0x57b   :  { %v5823_v32 = vpop.f32.mrb[8].mxu1  ;;  %v5447_v39 = vadd.f32 %v5822_v38, %v5372_v36  ;;  %v5377_v33 = vadd.f32 %v5787_v37, %v5303_v14 }
 0x57c   :  { %v5824_v40 = vpop.f32.mrb[9].mxu1 }
 0x57d   :  { %v5825_v1 = vadd.f32 %v5824_v40, %v5823_v32  ;;  %5455 = vadd.xlane.f32.xlu0 %v5447_v39 }
 0x57f   :  { %v5452_v41 = vadd.f32 %v5825_v1, %v5377_v33 }
 0x581   :  { %5457 = vadd.xlane.f32.xlu1 %v5452_v41 }
 0x592   :  { %5483 = vperm.xlu1 %6075, %v5480_v42  }
 0x60a   :  { %v5456_v13 = vpop.xlane.xlu0 %5455 }
 0x60b   :  { %v5459_v43 = vmul.f32 0.0078125, %v5456_v13 }
 0x60d   :  { %v5461_v44 = vsub.f32 %v5447_v39, %v5459_v43 }
 0x60e   :  { %v5458_v9 = vpop.xlane.xlu1 %5457 }
 0x60f   :  { %v5460_v45 = vmul.f32 0.0078125, %v5458_v9  ;;  %v5463_v46 = vmul.f32 %v5461_v44, %v5461_v44 }
 0x611   :  { %v5462_v47 = vsub.f32 %v5452_v41, %v5460_v45  ;;  %5465 = vadd.xlane.f32.xlu0 %v5463_v46 }
 0x612   :  { %v5484_v63 = vpop.permute.xlu1 %5483 }
 0x613   :  { %v5464_v48 = vmul.f32 %v5462_v47, %v5462_v47  ;;  %v5489_v3 = vrot.slane %v5484_v63, %v6229_v11 }
 0x615   :  { %5467 = vadd.xlane.f32.xlu0 %v5464_v48 }
 0x69e   :  { %v5466_v50 = vpop.xlane.xlu0 %5465 }
 0x69f   :  { %v5469_v51 = vmul.f32 0.0078125, %v5466_v50 }
 0x6a1   :  { %v5471_v52 = vadd.f32 1e-05, %v5469_v51 }
 0x6a2   :  { %v5468_v53 = vpop.xlane.xlu0 %5467 }
 0x6a3   :  { %6080 = vrsqrt.f32 %v5471_v52  ;;  %v5470_v54 = vmul.f32 0.0078125, %v5468_v53 }
 0x6a5   :  { %v5472_v55 = vadd.f32 1e-05, %v5470_v54 }
 0x6a7   :  { %6082 = vrsqrt.f32 %v5472_v55 }
 0x6ad   :  { %v6081_v56 = vpop.eup %6080 }
 0x6ae   :  { %v5475_v57 = vmul.f32 %v6081_v56, %v5461_v44 }
 0x6b0   :  { %v5477_v60 = vmax.f32 %v5475_v57, 0.0 }
 0x6b1   :  { %v6083_v58 = vpop.eup %6082 }
 0x6b2   :  { %v5476_v59 = vmul.f32 %v6083_v58, %v5462_v47 }
 0x6b4   :  { %v5478_v61 = vmax.f32 %v5476_v59, 0.0 }
 0x6b6   :  { %v5901_v62 = vpack.c.bf16 %v5478_v61, %v5477_v60 }
 0x6b8   :  { %5902 = vmatpush3.bf16.msra.mxu0 %v5901_v62 }
 0x6bb   :  { %5834 = vmatmul.mubr.msk.f32.vlgmr.msra.gmra.mrb[10].mxu0 %vm5490_vm3, %v5479_v2 }
 0x78e   :  { %v5560_v4 = vpop.f32.mrb[10].mxu0 }
 0x78f   :  { %v5561_v5 = vadd.f32 %v5560_v4, %v5489_v3  ;;  %v5835_v6 = vpop.f32.mrb[11].mxu0 }
 0x791   :  { %v5564_v7 = vmax.f32 %v5561_v5, 0.0 }
 0x793   :  { %5565 = vst [vmem:[%s7255_s10] sm:$0x1] %v5564_v7 }

// kernel: lstm_conv_cell_forward.2
= control target key start
LH: loop header
LB: loop body
LE: loop exit
PB: predicated region body
PF: predicated region fallthrough
CT: control target
= control target key end

     0   :  { %16 = vsyncpa [#allocation5], 0  ;;  %s5724_s19 = smov 16   ;;  %s5725_s26 = smov 48   ;;  %v5726_v11 = vmov 0.0   ;;  %s6740_s0 = inlined_call_operand.vmem [shape: f32[32,64], index: 0, kind: input, shape index: {}]   ;;  %s6741_s1 = inlined_call_operand.vmem [shape: f32[2,2,16], index: 1, kind: input, shape index: {}]   ;;  %s6742_s2 = inlined_call_operand.vmem [shape: f32[2,2,16], index: 2, kind: input, shape index: {}]   ;;  %s6743_s3 = inlined_call_operand.vmem [shape: f32[2,64,256], index: 3, kind: input, shape index: {}]   ;;  %s6744_s4 = inlined_call_operand.vmem [shape: f32[2,64,256], index: 4, kind: input, shape index: {}]   ;;  %s6745_s5 = inlined_call_operand.vmem [shape: f32[2,1,256], index: 5, kind: input, shape index: {}]   ;;  %s6746_s6 = inlined_call_operand.vmem [shape: f32[32,16], index: 6, kind: input, shape index: {}]   ;;  %s6747_s7 = inlined_call_operand.vmem [shape: f32[1,16], index: 7, kind: input, shape index: {}]   ;;  %s6748_s8 = inlined_call_operand.vmem [shape: f32[16,2,64], index: 8, kind: output, shape index: {0}]   ;;  %s6749_s9 = inlined_call_operand.hbm [shape: f32[2,2,8], index: 9, kind: output, shape index: {1}]   ;;  %s6750_s10 = inlined_call_operand.hbm [shape: f32[2,2,8], index: 10, kind: output, shape index: {2}]  }
   0x1   :  { %v5796_v0 = vld [vmem:[%s6741_s1] sm:$0x3]  ;;  %v39_v1 = vld [vmem:[%s6743_s3 + $0x8] sm:$0xff]  ;;  %v41_v2 = vld [vmem:[%s6743_s3 + $0x18] sm:$0xff]  ;;  %143 = vmatprep.mubr.f32.mxu0 %v5726_v11  ;;  %292 = vmatprep.mubr.f32.mxu1 %v5726_v11  ;;  %s5727_s22 = smov 32  }
   0x2   :  { %179 = vrot.lane.b32.xlu0 %v5796_v0, %s5724_s19  ;;  %v4704_v3 = vpack.c.bf16 %v41_v2, %v39_v1  ;;  %v38_v4 = vld [vmem:[%s6743_s3] sm:$0xff]  ;;  %v40_v5 = vld [vmem:[%s6743_s3 + $0x10] sm:$0xff]  ;;  %v43_v6 = vld [vmem:[%s6743_s3 + $0x28] sm:$0xff] }
   0x3   :  { %185 = vrot.lane.b32.xlu1 %v5796_v0, %s5725_s26  ;;  %v4706_v7 = vpack.c.bf16 %v40_v5, %v38_v4  ;;  %v45_v8 = vld [vmem:[%s6743_s3 + $0x38] sm:$0xff]  ;;  %v42_v9 = vld [vmem:[%s6743_s3 + $0x20] sm:$0xff]  ;;  %v44_v10 = vld [vmem:[%s6743_s3 + $0x30] sm:$0xff] }
   0x4   :  { %4705 = vmatprep.subr.bf16.mxu0 %v4704_v3  ;;  %v4708_v12 = vpack.c.bf16 %v45_v8, %v43_v6  ;;  %v47_v13 = vld [vmem:[%s6743_s3 + $0x48] sm:$0xff]  ;;  %v49_v14 = vld [vmem:[%s6743_s3 + $0x58] sm:$0xff]  ;;  %v4710_v15 = vpack.c.bf16 %v44_v10, %v42_v9  ;;  %v46_v19 = vld [vmem:[%s6743_s3 + $0x40] sm:$0xff] }
   0x5   :  { %4707 = vmatpush1.bf16.msra.mxu0 %v4706_v7  ;;  %v208_v16 = vld [vmem:[%s6744_s4 + $0x8] sm:$0xff]  ;;  %v210_v17 = vld [vmem:[%s6744_s4 + $0x18] sm:$0xff]  ;;  %v4712_v18 = vpack.c.bf16 %v49_v14, %v47_v13  ;;  %v48_v20 = vld [vmem:[%s6743_s3 + $0x50] sm:$0xff] }
   0x6   :  { %182 = vrot.lane.b32.xlu0 %v5796_v0, %s5727_s22  ;;  %4709 = vmatprep.subr.bf16.mxu0 %v4708_v12  ;;  %v5848_v21 = vpack.c.bf16 %v210_v17, %v208_v16  ;;  %v207_v22 = vld [vmem:[%s6744_s4] sm:$0xff]  ;;  %v51_v23 = vld [vmem:[%s6743_s3 + $0x68] sm:$0xff]  ;;  %v53_v24 = vld [vmem:[%s6743_s3 + $0x78] sm:$0xff]  ;;  %v4714_v29 = vpack.c.bf16 %v48_v20, %v46_v19 }
   0x7   :  { %v209_v25 = vld [vmem:[%s6744_s4 + $0x10] sm:$0xff]  ;;  %v212_v27 = vld [vmem:[%s6744_s4 + $0x28] sm:$0xff]  ;;  %v214_v28 = vld [vmem:[%s6744_s4 + $0x38] sm:$0xff]  ;;  %v4716_v34 = vpack.c.bf16 %v53_v24, %v51_v23 }
   0x8   :  { %4721 = vmatprep.subr.bf16.mxu1 %v5848_v21  ;;  %v5863_v26 = vpack.c.bf16 %v209_v25, %v207_v22  ;;  %v5871_v30 = vpack.c.bf16 %v214_v28, %v212_v27  ;;  %v211_v31 = vld [vmem:[%s6744_s4 + $0x20] sm:$0xff]  ;;  %v213_v32 = vld [vmem:[%s6744_s4 + $0x30] sm:$0xff]  ;;  %v216_v33 = vld [vmem:[%s6744_s4 + $0x48] sm:$0xff] }
   0x9   :  { %4711 = vmatpush1.bf16.msra.mxu0 %v4710_v15  ;;  %v50_v35 = vld [vmem:[%s6743_s3 + $0x60] sm:$0xff]  ;;  %v52_v36 = vld [vmem:[%s6743_s3 + $0x70] sm:$0xff]  ;;  %v5889_v37 = vpack.c.bf16 %v213_v32, %v211_v31  ;;  %v218_v38 = vld [vmem:[%s6744_s4 + $0x58] sm:$0xff] }
   0xa   :  { %4713 = vmatprep.subr.bf16.mxu0 %v4712_v18  ;;  %4723 = vmatpush1.bf16.msra.mxu1 %v5863_v26  ;;  %v5895_v39 = vpack.c.bf16 %v218_v38, %v216_v33  ;;  %v215_v40 = vld [vmem:[%s6744_s4 + $0x40] sm:$0xff]  ;;  %v217_v41 = vld [vmem:[%s6744_s4 + $0x50] sm:$0xff]  ;;  %v220_v42 = vld [vmem:[%s6744_s4 + $0x68] sm:$0xff]  ;;  %v4718_v45 = vpack.c.bf16 %v52_v36, %v50_v35 }
   0xb   :  { %4725 = vmatprep.subr.bf16.mxu1 %v5871_v30  ;;  %v222_v43 = vld [vmem:[%s6744_s4 + $0x78] sm:$0xff]  ;;  %v177_v44 = vld [vmem:[%s6742_s2] sm:$0x3] }
   0xc   :  { %195 = vrot.lane.b32.xlu1 %v177_v44, %s5724_s19 }
   0xd   :  { %4715 = vmatpush1.bf16.msra.mxu0 %v4714_v29 }
   0xe   :  { %17 = vsyncpa [#allocation7], 0  ;;  %4717 = vmatprep.subr.bf16.mxu0 %v4716_v34  ;;  %4727 = vmatpush1.bf16.msra.mxu1 %v5889_v37  ;;  %v5914_v46 = vpack.c.bf16 %v217_v41, %v215_v40  ;;  %v5917_v47 = vpack.c.bf16 %v222_v43, %v220_v42  ;;  %v219_v48 = vld [vmem:[%s6744_s4 + $0x60] sm:$0xff]  ;;  %v221_v49 = vld [vmem:[%s6744_s4 + $0x70] sm:$0xff]  ;;  %vm66_vm0 = vcmask 523264   ;;  %vm188_vm1 = vcmask 130048  }
   0xf   :  { %4729 = vmatprep.subr.bf16.mxu1 %v5895_v39  ;;  %198 = vrot.lane.b32.xlu0 %v177_v44, %s5727_s22  ;;  %v34_v50 = vld [vmem:[%s6740_s0] sm:$0xff]  ;;  %v5931_v51 = vpack.c.bf16 %v221_v49, %v219_v48  ;;  %vm190_vm2 = vcmask 261120   ;;  %vm192_vm3 = vcmask 392192   ;;  %s5728_s14 = smov 64   ;;  %v35_v27 = vld [vmem:[%s6740_s0 + $0x8] sm:$0xff]  ;;  %v36_v28 = vld [vmem:[%s6740_s0 + $0x10] sm:$0xff] }
  0x10   :  { %201 = vrot.lane.b32.xlu1 %v177_v44, %s5725_s26  ;;  %v54_v3 = vld [vmem:[%s6745_s5] sm:$0x3]  ;;  %v37_v29 = vld [vmem:[%s6740_s0 + $0x18] sm:$0xff]  ;;  %vm335_vm4 = vcmask 517120   ;;  %vm454_vm5 = vcmask 519170   ;;  %vm574_vm6 = vcmask 521220  }
  0x11   :  { %4719 = vmatpush1.bf16.msra.mxu0 %v4718_v45  ;;  %vm694_vm7 = vcmask 523270   ;;  %s5730_s24 = smov 80   ;;  %s5731_s0 = smov 96   ;;  %vm5733_vm8 = vmmov 0   ;;  %vm4256_vm9 = vcmask 1041408   ;;  %vm4343_vm10 = vcmask 58368  }
  0x12   :  { %4731 = vmatpush1.bf16.msra.mxu1 %v5914_v46  ;;  %4737 = vmatprep.subr.bf16.mxu0 %v5848_v21  ;;  %s5734_s13 = smov 120   ;;  %vm4409_vm11 = vcmask 60418   ;;  %s5735_s20 = smov [#allocation4]  }
  0x13   :  { %4733 = vmatprep.subr.bf16.mxu1 %v5917_v47  ;;  %s4503_s21 = sshll.u32 %s5735_s20, 4  ;;  %s4504_s21 = int_to_ptr.vmem [resolvable:$true] %s4503_s21 }
  0x14   :  { %4532 = vmatmul.mubr.msk.f32.vlgmr.msra.gmra.mrb[0].mxu0 %vm66_vm0, %v34_v50  ;;  %p5681_p1 = scmp.lt.s32.totalorder %s4504_s21, %s4504_s21 }
  0x15   :  { %4739 = vmatpush1.bf16.msra.mxu0 %v5863_v26  ;;  %149 = vmatprep.mubr.f32.mxu0 %v5726_v11 }
  0x16   :  { %4735 = vmatpush1.bf16.msra.mxu1 %v5931_v51  ;;  %4741 = vmatprep.subr.bf16.mxu0 %v5871_v30 }
  0x17   :  { %4753 = vmatprep.subr.bf16.mxu1 %v5848_v21 }
  0x18   :  { %4533 = vmatmul.mubr.msk.f32.gmra.mrb[2].mxu0 %vm66_vm0, %v35_v27 }
  0x19   :  { %4743 = vmatpush1.bf16.msra.mxu0 %v5889_v37  ;;  %155 = vmatprep.mubr.f32.mxu0 %v5726_v11 }
  0x1a   :  { %4745 = vmatprep.subr.bf16.mxu0 %v5895_v39 }
  0x1c   :  { %4534 = vmatmul.mubr.msk.f32.gmra.mrb[4].mxu0 %vm66_vm0, %v36_v28 }
  0x1d   :  { %4747 = vmatpush1.bf16.msra.mxu0 %v5914_v46  ;;  %161 = vmatprep.mubr.f32.mxu0 %v5726_v11 }
  0x1e   :  { %4749 = vmatprep.subr.bf16.mxu0 %v5917_v47 }
  0x20   :  { %4535 = vmatmul.mubr.msk.f32.gmra.mrb[6].mxu0 %vm66_vm0, %v37_v29 }
  0x21   :  { %4751 = vmatpush1.bf16.msra.mxu0 %v5931_v51  ;;  %406 = vmatprep.mubr.f32.mxu0 %v5726_v11 }
  0x22   :  { %4769 = vmatprep.subr.bf16.mxu0 %v5848_v21 }
  0x74   :  { %v180_v52 = vpop.permute.xlu0 %179 }
  0x75   :  { %v186_v53 = vpop.permute.xlu1 %185  ;;  %v189_v54 = vsel %vm188_vm1, %v5796_v0, %v180_v52  ;;  %v56_v0 = vlaneseq }
  0x77   :  { %v5965_v1 = vshrl.u32 %v56_v0, 7 }
  0x78   :  { %v183_v55 = vpop.permute.xlu0 %182 }
  0x79   :  { %v191_v56 = vsel %vm190_vm2, %v189_v54, %v183_v55  ;;  %v58_v2 = vsub.s32 0, %v5965_v1  ;;  %v62_v4 = vsub.s32 1, %v5965_v1 }
  0x7a   :  { %v193_v57 = vsel %vm192_vm3, %v191_v56, %v186_v53 }
  0x7b   :  { %4536 = vmatmul.mubr.msk.f32.vlgmr.msra.gmra.mrb[0].mxu1 %vm66_vm0, %v193_v57  ;;  %v59_v5 = vrot.slane %v54_v3, %v58_v2  ;;  %v63_v6 = vrot.slane %v54_v3, %v62_v4 }
  0x7c   :  { %4755 = vmatpush1.bf16.msra.mxu1 %v5863_v26  ;;  %526 = vmatprep.mubr.f32.mxu1 %v5726_v11 }
  0x7d   :  { %4757 = vmatprep.subr.bf16.mxu1 %v5871_v30 }
  0x7e   :  { %v196_v58 = vpop.permute.xlu1 %195 }
  0x7f   :  { %v204_v59 = vsel %vm188_vm1, %v177_v44, %v196_v58 }
  0x80   :  { %4759 = vmatpush1.bf16.msra.mxu1 %v5889_v37 }
  0x81   :  { %v199_v60 = vpop.permute.xlu0 %198  ;;  %4761 = vmatprep.subr.bf16.mxu1 %v5895_v39 }
  0x82   :  { %v205_v61 = vsel %vm190_vm2, %v204_v59, %v199_v60  ;;  %v202_v62 = vpop.permute.xlu1 %201 }
  0x83   :  { %v206_v63 = vsel %vm192_vm3, %v205_v61, %v202_v62 }
  0x84   :  { %4763 = vmatpush1.bf16.msra.mxu1 %v5914_v46  ;;  %315 = vrot.lane.b32.xlu1 %v206_v63, %s5728_s14 }
  0x85   :  { %4765 = vmatprep.subr.bf16.mxu1 %v5917_v47 }
  0x88   :  { %4767 = vmatpush1.bf16.msra.mxu1 %v5931_v51 }
  0x89   :  { %4785 = vmatprep.subr.bf16.mxu1 %v5848_v21 }
  0xe7   :  { %v145_v7 = vpop.f32.mrb[0].mxu0 }
  0xe8   :  { %v146_v8 = vadd.f32 %v145_v7, %v59_v5  ;;  %v147_v9 = vpop.f32.mrb[1].mxu0 }
  0xe9   :  { %v148_v10 = vadd.f32 %v147_v9, %v63_v6 }
  0xea   :  { %168 = vst [vmem:[#allocation2] sm:$0xff] %v146_v8 }
  0xeb   :  { %169 = vst [vmem:[#allocation2 + $0x8] sm:$0xff] %v148_v10  ;;  %v151_v38 = vpop.f32.mrb[2].mxu0 }
  0xec   :  { %v152_v40 = vadd.f32 %v151_v38, %v59_v5  ;;  %v153_v41 = vpop.f32.mrb[3].mxu0 }
  0xed   :  { %v154_v42 = vadd.f32 %v153_v41, %v63_v6 }
  0xee   :  { %170 = vst [vmem:[#allocation2 + $0x10] sm:$0xff] %v152_v40 }
  0xef   :  { %171 = vst [vmem:[#allocation2 + $0x18] sm:$0xff] %v154_v42  ;;  %v157_v43 = vpop.f32.mrb[4].mxu0 }
  0xf0   :  { %v158_v44 = vadd.f32 %v157_v43, %v59_v5  ;;  %v159_v45 = vpop.f32.mrb[5].mxu0 }
  0xf1   :  { %v223_v17 = vld [vmem:[#allocation2] sm:$0x3]  ;;  %v160_v48 = vadd.f32 %v159_v45, %v63_v6 }
  0xf2   :  { %v224_v12 = vld [vmem:[#allocation2 + $0x8] sm:$0x3]  ;;  %172 = vst [vmem:[#allocation2 + $0x20] sm:$0xff] %v158_v44  ;;  %v338_v62 = vld [vmem:[#allocation2 + $0x8] sm:$0xc] }
  0xf3   :  { %173 = vst [vmem:[#allocation2 + $0x28] sm:$0xff] %v160_v48  ;;  %v163_v49 = vpop.f32.mrb[6].mxu0 }
  0xf4   :  { %v164_v50 = vadd.f32 %v163_v49, %v59_v5  ;;  %v165_v52 = vpop.f32.mrb[7].mxu0  ;;  %v337_v5 = vld [vmem:[#allocation2] sm:$0xc] }
  0xf5   :  { %v166_v53 = vadd.f32 %v165_v52, %v63_v6 }
  0xf6   :  { %v316_v31 = vpop.permute.xlu1 %315  ;;  %174 = vst [vmem:[#allocation2 + $0x30] sm:$0xff] %v164_v50 }
  0xf7   :  { %175 = vst [vmem:[#allocation2 + $0x38] sm:$0xff] %v166_v53 }
 0x14e   :  { %v294_v13 = vpop.f32.mrb[0].mxu1 }
 0x14f   :  { %v296_v14 = vpop.f32.mrb[1].mxu1  ;;  %v299_v18 = vadd.f32 %v294_v13, %v223_v17 }
 0x150   :  { %v300_v15 = vadd.f32 %v296_v14, %v224_v12 }
 0x151   :  { %v4537_v19 = vmul.f32 -1.442695, %v299_v18 }
 0x152   :  { %5284 = vtanh.f32 %v300_v15  ;;  %v4538_v36 = vmul.f32 -1.442695, %v300_v15 }
 0x153   :  { %5286 = vpow2.f32 %v4537_v19 }
 0x15c   :  { %v5285_v16 = vpop.eup %5284 }
 0x15d   :  { %320 = vrot.lane.b32.xlu0 %v5285_v16, %s5728_s14  ;;  %v5287_v20 = vpop.eup %5286 }
 0x15e   :  { %v307_v22 = vadd.f32 1.0, %v5287_v20 }
 0x160   :  { %5288 = vrcp.f32 %v307_v22 }
 0x16a   :  { %v5289_v23 = vpop.eup %5288 }
 0x16b   :  { %v318_v32 = vmul.f32 %v5289_v23, %v316_v31 }
 0x1cf   :  { %v321_v24 = vpop.permute.xlu0 %320 }
 0x1d0   :  { %v323_v25 = vmul.f32 %v5289_v23, %v321_v24 }
 0x1d2   :  { %325 = vrot.lane.b32.xlu0 %v323_v25, %s5728_s14 }
 0x244   :  { %v326_v33 = vpop.permute.xlu0 %325 }
 0x245   :  { %v5993_v34 = vadd.f32 %v326_v33, %v318_v32  ;;  %v457_v32 = vld [vmem:[#allocation2 + $0x8] sm:$0x30] }
 0x247   :  { %5290 = vtanh.f32 %v5993_v34  ;;  %v435_v14 = vrot.slane %v5993_v34, 6 }
 0x248   :  { %5292 = vpow2.f32 %v4538_v36  ;;  %v456_v36 = vld [vmem:[#allocation2] sm:$0x30] }
 0x251   :  { %v5291_v35 = vpop.eup %5290 }
 0x252   :  { %331 = vrot.lane.b32.xlu1 %v5291_v35, %s5728_s14  ;;  %v5293_v54 = vpop.eup %5292 }
 0x253   :  { %v308_v55 = vadd.f32 1.0, %v5293_v54 }
 0x255   :  { %5294 = vrcp.f32 %v308_v55 }
 0x25f   :  { %v5295_v56 = vpop.eup %5294 }
 0x2c4   :  { %v332_v57 = vpop.permute.xlu1 %331 }
 0x2c5   :  { %v334_v58 = vmul.f32 %v5295_v56, %v332_v57 }
 0x2c7   :  { %336 = vst.msk [vmem:[#allocation3] sm:$0x3] %vm335_vm4, %v334_v58  ;;  %4539 = vmatmul.mubr.msk.f32.vlgmr.msra.gmra.mrb[8].mxu0 %vm66_vm0, %v334_v58 }
 0x2c8   :  { %4771 = vmatpush1.bf16.msra.mxu0 %v5863_v26  ;;  %646 = vmatprep.mubr.f32.mxu0 %v5726_v11 }
 0x2c9   :  { %4773 = vmatprep.subr.bf16.mxu0 %v5871_v30 }
 0x2cc   :  { %4775 = vmatpush1.bf16.msra.mxu0 %v5889_v37 }
 0x2cd   :  { %4777 = vmatprep.subr.bf16.mxu0 %v5895_v39 }
 0x2d0   :  { %4779 = vmatpush1.bf16.msra.mxu0 %v5914_v46 }
 0x2d1   :  { %4781 = vmatprep.subr.bf16.mxu0 %v5917_v47 }
 0x2d4   :  { %4783 = vmatpush1.bf16.msra.mxu0 %v5931_v51 }
 0x2d5   :  { %4801 = vmatprep.subr.bf16.mxu0 %v5848_v21 }
 0x39a   :  { %v408_v59 = vpop.f32.mrb[8].mxu0 }
 0x39b   :  { %v410_v60 = vpop.f32.mrb[9].mxu0  ;;  %v415_v3 = vrot.slane %v408_v59, 6 }
 0x39c   :  { %v416_v61 = vrot.slane %v410_v60, 6 }
 0x39d   :  { %v419_v6 = vadd.f32 %v415_v3, %v337_v5 }
 0x39e   :  { %v420_v63 = vadd.f32 %v416_v61, %v338_v62 }
 0x39f   :  { %v4540_v7 = vmul.f32 -1.442695, %v419_v6 }
 0x3a0   :  { %5296 = vtanh.f32 %v420_v63  ;;  %v4541_v19 = vmul.f32 -1.442695, %v420_v63 }
 0x3a1   :  { %5298 = vpow2.f32 %v4540_v7  ;;  %v576_v7 = vld [vmem:[#allocation2] sm:$0xc0] }
 0x3aa   :  { %v5297_v0 = vpop.eup %5296 }
 0x3ab   :  { %439 = vrot.lane.b32.xlu0 %v5297_v0, %s5728_s14  ;;  %v5299_v8 = vpop.eup %5298  ;;  %v577_v0 = vld [vmem:[#allocation2 + $0x8] sm:$0xc0] }
 0x3ac   :  { %v427_v9 = vadd.f32 1.0, %v5299_v8 }
 0x3ae   :  { %5300 = vrcp.f32 %v427_v9 }
 0x3b8   :  { %v5301_v10 = vpop.eup %5300 }
 0x3b9   :  { %v437_v15 = vmul.f32 %v5301_v10, %v435_v14 }
 0x41d   :  { %v440_v12 = vpop.permute.xlu0 %439 }
 0x41e   :  { %v442_v13 = vmul.f32 %v5301_v10, %v440_v12 }
 0x420   :  { %444 = vrot.lane.b32.xlu1 %v442_v13, %s5728_s14 }
 0x492   :  { %v445_v16 = vpop.permute.xlu1 %444 }
 0x493   :  { %v447_v17 = vadd.f32 %v445_v16, %v437_v15 }
 0x495   :  { %5302 = vtanh.f32 %v447_v17  ;;  %v555_v48 = vrot.slane %v447_v17, 6 }
 0x496   :  { %5304 = vpow2.f32 %v4541_v19 }
 0x49f   :  { %v5303_v18 = vpop.eup %5302 }
 0x4a0   :  { %450 = vrot.lane.b32.xlu0 %v5303_v18, %s5728_s14  ;;  %v5305_v20 = vpop.eup %5304 }
 0x4a1   :  { %v428_v22 = vadd.f32 1.0, %v5305_v20 }
 0x4a3   :  { %5306 = vrcp.f32 %v428_v22 }
 0x4ad   :  { %v5307_v23 = vpop.eup %5306 }
 0x512   :  { %v451_v24 = vpop.permute.xlu0 %450 }
 0x513   :  { %v453_v25 = vmul.f32 %v5307_v23, %v451_v24 }
 0x515   :  { %455 = vst.msk [vmem:[#allocation3] sm:$0xc] %vm454_vm5, %v453_v25  ;;  %v459_v27 = vrot.slane %v453_v25, 2 }
 0x517   :  { %4542 = vmatmul.mubr.msk.f32.vlgmr.msra.gmra.mrb[2].mxu1 %vm66_vm0, %v459_v27 }
 0x518   :  { %4787 = vmatpush1.bf16.msra.mxu1 %v5863_v26  ;;  %766 = vmatprep.mubr.f32.mxu1 %v5726_v11 }
 0x519   :  { %4789 = vmatprep.subr.bf16.mxu1 %v5871_v30 }
 0x51c   :  { %4791 = vmatpush1.bf16.msra.mxu1 %v5889_v37 }
 0x51d   :  { %4793 = vmatprep.subr.bf16.mxu1 %v5895_v39 }
 0x520   :  { %4795 = vmatpush1.bf16.msra.mxu1 %v5914_v46 }
 0x521   :  { %4797 = vmatprep.subr.bf16.mxu1 %v5917_v47 }
 0x524   :  { %4799 = vmatpush1.bf16.msra.mxu1 %v5931_v51 }
 0x525   :  { %4817 = vmatprep.subr.bf16.mxu1 %v5848_v21 }
 0x5ea   :  { %v528_v28 = vpop.f32.mrb[2].mxu1 }
 0x5eb   :  { %v530_v29 = vpop.f32.mrb[3].mxu1  ;;  %v535_v35 = vrot.slane %v528_v28, 4 }
 0x5ec   :  { %v536_v31 = vrot.slane %v530_v29, 4 }
 0x5ed   :  { %v539_v38 = vadd.f32 %v535_v35, %v456_v36  ;;  %v696_v36 = vld [vmem:[#allocation2 + $0x10] sm:$0x3] }
 0x5ee   :  { %v540_v33 = vadd.f32 %v536_v31, %v457_v32  ;;  %v697_v32 = vld [vmem:[#allocation2 + $0x18] sm:$0x3] }
 0x5ef   :  { %v4543_v40 = vmul.f32 -1.442695, %v539_v38 }
 0x5f0   :  { %5308 = vtanh.f32 %v540_v33  ;;  %v4544_v54 = vmul.f32 -1.442695, %v540_v33 }
 0x5f1   :  { %5310 = vpow2.f32 %v4543_v40 }
 0x5fa   :  { %v5309_v34 = vpop.eup %5308 }
 0x5fb   :  { %559 = vrot.lane.b32.xlu1 %v5309_v34, %s5728_s14  ;;  %v5311_v41 = vpop.eup %5310 }
 0x5fc   :  { %v547_v42 = vadd.f32 1.0, %v5311_v41 }
 0x5fe   :  { %5312 = vrcp.f32 %v547_v42 }
 0x608   :  { %v5313_v43 = vpop.eup %5312 }
 0x609   :  { %v557_v49 = vmul.f32 %v5313_v43, %v555_v48 }
 0x66d   :  { %v560_v44 = vpop.permute.xlu1 %559 }
 0x66e   :  { %v562_v45 = vmul.f32 %v5313_v43, %v560_v44 }
 0x670   :  { %564 = vrot.lane.b32.xlu0 %v562_v45, %s5728_s14 }
 0x6e2   :  { %v565_v50 = vpop.permute.xlu0 %564 }
 0x6e3   :  { %v567_v52 = vadd.f32 %v565_v50, %v557_v49 }
 0x6e5   :  { %5314 = vtanh.f32 %v567_v52  ;;  %v675_v16 = vrot.slane %v567_v52, 6 }
 0x6e6   :  { %5316 = vpow2.f32 %v4544_v54 }
 0x6ef   :  { %v5315_v53 = vpop.eup %5314 }
 0x6f0   :  { %570 = vrot.lane.b32.xlu1 %v5315_v53, %s5728_s14  ;;  %v5317_v55 = vpop.eup %5316 }
 0x6f1   :  { %v548_v56 = vadd.f32 1.0, %v5317_v55 }
 0x6f3   :  { %5318 = vrcp.f32 %v548_v56 }
 0x6fd   :  { %v5319_v57 = vpop.eup %5318 }
 0x762   :  { %v571_v58 = vpop.permute.xlu1 %570 }
 0x763   :  { %v573_v59 = vmul.f32 %v5319_v57, %v571_v58 }
 0x765   :  { %575 = vst.msk [vmem:[#allocation3] sm:$0x30] %vm574_vm6, %v573_v59  ;;  %v579_v60 = vrot.slane %v573_v59, 4 }
 0x767   :  { %4545 = vmatmul.mubr.msk.f32.vlgmr.msra.gmra.mrb[10].mxu0 %vm66_vm0, %v579_v60 }
 0x768   :  { %4803 = vmatpush1.bf16.msra.mxu0 %v5863_v26  ;;  %878 = vmatprep.mubr.f32.mxu0 %v5726_v11 }
 0x769   :  { %4805 = vmatprep.subr.bf16.mxu0 %v5871_v30 }
 0x76c   :  { %4807 = vmatpush1.bf16.msra.mxu0 %v5889_v37 }
 0x76d   :  { %4809 = vmatprep.subr.bf16.mxu0 %v5895_v39 }
 0x770   :  { %4811 = vmatpush1.bf16.msra.mxu0 %v5914_v46 }
 0x771   :  { %4813 = vmatprep.subr.bf16.mxu0 %v5917_v47 }
 0x774   :  { %4815 = vmatpush1.bf16.msra.mxu0 %v5931_v51 }
 0x775   :  { %4833 = vmatprep.subr.bf16.mxu0 %v5848_v21 }
 0x83a   :  { %v648_v61 = vpop.f32.mrb[10].mxu0 }
 0x83b   :  { %v650_v62 = vpop.f32.mrb[11].mxu0  ;;  %v655_v6 = vrot.slane %v648_v61, 2 }
 0x83c   :  { %v656_v63 = vrot.slane %v650_v62, 2 }
 0x83d   :  { %v659_v8 = vadd.f32 %v655_v6, %v576_v7  ;;  %v809_v6 = vld [vmem:[#allocation2 + $0x10] sm:$0xc] }
 0x83e   :  { %v660_v3 = vadd.f32 %v656_v63, %v577_v0  ;;  %v810_v63 = vld [vmem:[#allocation2 + $0x18] sm:$0xc] }
 0x83f   :  { %v4546_v9 = vmul.f32 -1.442695, %v659_v8 }
 0x840   :  { %5320 = vtanh.f32 %v660_v3  ;;  %v4547_v22 = vmul.f32 -1.442695, %v660_v3 }
 0x841   :  { %5322 = vpow2.f32 %v4546_v9 }
 0x84a   :  { %v5321_v5 = vpop.eup %5320 }
 0x84b   :  { %679 = vrot.lane.b32.xlu0 %v5321_v5, %s5728_s14  ;;  %v5323_v10 = vpop.eup %5322 }
 0x84c   :  { %v667_v12 = vadd.f32 1.0, %v5323_v10 }
 0x84e   :  { %5324 = vrcp.f32 %v667_v12 }
 0x858   :  { %v5325_v13 = vpop.eup %5324 }
 0x859   :  { %v677_v17 = vmul.f32 %v5325_v13, %v675_v16 }
 0x8bd   :  { %v680_v14 = vpop.permute.xlu0 %679 }
 0x8be   :  { %v682_v15 = vmul.f32 %v5325_v13, %v680_v14 }
 0x8c0   :  { %684 = vrot.lane.b32.xlu1 %v682_v15, %s5728_s14 }
 0x932   :  { %v685_v18 = vpop.permute.xlu1 %684 }
 0x933   :  { %v687_v19 = vadd.f32 %v685_v18, %v677_v17 }
 0x935   :  { %5326 = vtanh.f32 %v687_v19  ;;  %v789_v48 = vrot.slane %v687_v19, 6 }
 0x936   :  { %5328 = vpow2.f32 %v4547_v22 }
 0x93f   :  { %v5327_v20 = vpop.eup %5326 }
 0x940   :  { %690 = vrot.lane.b32.xlu0 %v5327_v20, %s5728_s14  ;;  %v5329_v23 = vpop.eup %5328 }
 0x941   :  { %v668_v24 = vadd.f32 1.0, %v5329_v23 }
 0x943   :  { %5330 = vrcp.f32 %v668_v24 }
 0x94d   :  { %v5331_v25 = vpop.eup %5330 }
 0x9b2   :  { %v691_v27 = vpop.permute.xlu0 %690 }
 0x9b3   :  { %v693_v28 = vmul.f32 %v5331_v25, %v691_v27 }
 0x9b5   :  { %695 = vst.msk [vmem:[#allocation3] sm:$0xc0] %vm694_vm7, %v693_v28  ;;  %v699_v29 = vrot.slane %v693_v28, 6 }
 0x9b7   :  { %4548 = vmatmul.mubr.msk.f32.vlgmr.msra.gmra.mrb[4].mxu1 %vm66_vm0, %v699_v29 }
 0x9b8   :  { %4819 = vmatpush1.bf16.msra.mxu1 %v5863_v26  ;;  %997 = vmatprep.mubr.f32.mxu1 %v5726_v11 }
 0x9b9   :  { %4821 = vmatprep.subr.bf16.mxu1 %v5871_v30 }
 0x9bc   :  { %4823 = vmatpush1.bf16.msra.mxu1 %v5889_v37 }
 0x9bd   :  { %4825 = vmatprep.subr.bf16.mxu1 %v5895_v39 }
 0x9c0   :  { %4827 = vmatpush1.bf16.msra.mxu1 %v5914_v46 }
 0x9c1   :  { %4829 = vmatprep.subr.bf16.mxu1 %v5917_v47 }
 0x9c4   :  { %4831 = vmatpush1.bf16.msra.mxu1 %v5931_v51 }
 0x9c5   :  { %4849 = vmatprep.subr.bf16.mxu1 %v5848_v21 }
 0xa8a   :  { %v768_v31 = vpop.f32.mrb[4].mxu1 }
 0xa8b   :  { %v770_v33 = vpop.f32.mrb[5].mxu1  ;;  %v773_v38 = vadd.f32 %v768_v31, %v696_v36 }
 0xa8c   :  { %v774_v34 = vadd.f32 %v770_v33, %v697_v32  ;;  %v928_v33 = vld [vmem:[#allocation2 + $0x18] sm:$0x30] }
 0xa8d   :  { %v4549_v40 = vmul.f32 -1.442695, %v773_v38  ;;  %v927_v38 = vld [vmem:[#allocation2 + $0x10] sm:$0x30] }
 0xa8e   :  { %5332 = vtanh.f32 %v774_v34  ;;  %v4550_v54 = vmul.f32 -1.442695, %v774_v34 }
 0xa8f   :  { %5334 = vpow2.f32 %v4549_v40 }
 0xa98   :  { %v5333_v35 = vpop.eup %5332 }
 0xa99   :  { %793 = vrot.lane.b32.xlu1 %v5333_v35, %s5728_s14  ;;  %v5335_v41 = vpop.eup %5334 }
 0xa9a   :  { %v781_v42 = vadd.f32 1.0, %v5335_v41 }
 0xa9c   :  { %5336 = vrcp.f32 %v781_v42 }
 0xaa6   :  { %v5337_v43 = vpop.eup %5336 }
 0xaa7   :  { %v791_v49 = vmul.f32 %v5337_v43, %v789_v48 }
 0xb0b   :  { %v794_v44 = vpop.permute.xlu1 %793 }
 0xb0c   :  { %v796_v45 = vmul.f32 %v5337_v43, %v794_v44 }
 0xb0e   :  { %798 = vrot.lane.b32.xlu0 %v796_v45, %s5728_s14 }
 0xb80   :  { %v799_v50 = vpop.permute.xlu0 %798 }
 0xb81   :  { %v801_v52 = vadd.f32 %v799_v50, %v791_v49 }
 0xb83   :  { %5338 = vtanh.f32 %v801_v52  ;;  %v907_v15 = vrot.slane %v801_v52, 6 }
 0xb84   :  { %5340 = vpow2.f32 %v4550_v54 }
 0xb8d   :  { %v5339_v53 = vpop.eup %5338 }
 0xb8e   :  { %804 = vrot.lane.b32.xlu1 %v5339_v53, %s5728_s14  ;;  %v5341_v55 = vpop.eup %5340 }
 0xb8f   :  { %v782_v56 = vadd.f32 1.0, %v5341_v55 }
 0xb91   :  { %5342 = vrcp.f32 %v782_v56 }
 0xb9b   :  { %v5343_v57 = vpop.eup %5342 }
 0xc00   :  { %v805_v58 = vpop.permute.xlu1 %804 }
 0xc01   :  { %v807_v59 = vmul.f32 %v5343_v57, %v805_v58 }
 0xc03   :  { %808 = vst.msk [vmem:[#allocation3 + $0x8] sm:$0x3] %vm335_vm4, %v807_v59  ;;  %4551 = vmatmul.mubr.msk.f32.vlgmr.msra.gmra.mrb[12].mxu0 %vm66_vm0, %v807_v59 }
 0xc04   :  { %4835 = vmatpush1.bf16.msra.mxu0 %v5863_v26  ;;  %1116 = vmatprep.mubr.f32.mxu0 %v5726_v11 }
 0xc05   :  { %4837 = vmatprep.subr.bf16.mxu0 %v5871_v30 }
 0xc08   :  { %4839 = vmatpush1.bf16.msra.mxu0 %v5889_v37 }
 0xc09   :  { %4841 = vmatprep.subr.bf16.mxu0 %v5895_v39 }
 0xc0c   :  { %4843 = vmatpush1.bf16.msra.mxu0 %v5914_v46 }
 0xc0d   :  { %4845 = vmatprep.subr.bf16.mxu0 %v5917_v47 }
 0xc10   :  { %4847 = vmatpush1.bf16.msra.mxu0 %v5931_v51 }
 0xc11   :  { %4865 = vmatprep.subr.bf16.mxu0 %v5848_v21 }
 0xcd6   :  { %v880_v60 = vpop.f32.mrb[12].mxu0 }
 0xcd7   :  { %v882_v61 = vpop.f32.mrb[13].mxu0  ;;  %v887_v5 = vrot.slane %v880_v60, 6 }
 0xcd8   :  { %v888_v62 = vrot.slane %v882_v61, 6 }
 0xcd9   :  { %v891_v7 = vadd.f32 %v887_v5, %v809_v6 }
 0xcda   :  { %v892_v0 = vadd.f32 %v888_v62, %v810_v63 }
 0xcdb   :  { %v4552_v8 = vmul.f32 -1.442695, %v891_v7 }
 0xcdc   :  { %5344 = vtanh.f32 %v892_v0  ;;  %v4553_v20 = vmul.f32 -1.442695, %v892_v0 }
 0xcdd   :  { %5346 = vpow2.f32 %v4552_v8  ;;  %v1046_v8 = vld [vmem:[#allocation2 + $0x10] sm:$0xc0] }
 0xce6   :  { %v5345_v3 = vpop.eup %5344 }
 0xce7   :  { %911 = vrot.lane.b32.xlu0 %v5345_v3, %s5728_s14  ;;  %v5347_v9 = vpop.eup %5346  ;;  %v1047_v3 = vld [vmem:[#allocation2 + $0x18] sm:$0xc0] }
 0xce8   :  { %v899_v10 = vadd.f32 1.0, %v5347_v9 }
 0xcea   :  { %5348 = vrcp.f32 %v899_v10 }
 0xcf4   :  { %v5349_v12 = vpop.eup %5348 }
 0xcf5   :  { %v909_v16 = vmul.f32 %v5349_v12, %v907_v15 }
 0xd59   :  { %v912_v13 = vpop.permute.xlu0 %911 }
 0xd5a   :  { %v914_v14 = vmul.f32 %v5349_v12, %v912_v13 }
 0xd5c   :  { %916 = vrot.lane.b32.xlu1 %v914_v14, %s5728_s14 }
 0xdce   :  { %v917_v17 = vpop.permute.xlu1 %916 }
 0xdcf   :  { %v919_v18 = vadd.f32 %v917_v17, %v909_v16 }
 0xdd1   :  { %5350 = vtanh.f32 %v919_v18  ;;  %v1026_v49 = vrot.slane %v919_v18, 6 }
 0xdd2   :  { %5352 = vpow2.f32 %v4553_v20 }
 0xddb   :  { %v5351_v19 = vpop.eup %5350 }
 0xddc   :  { %922 = vrot.lane.b32.xlu0 %v5351_v19, %s5728_s14  ;;  %v5353_v22 = vpop.eup %5352 }
 0xddd   :  { %v900_v23 = vadd.f32 1.0, %v5353_v22 }
 0xddf   :  { %5354 = vrcp.f32 %v900_v23 }
 0xde9   :  { %v5355_v24 = vpop.eup %5354 }
 0xe4e   :  { %v923_v25 = vpop.permute.xlu0 %922 }
 0xe4f   :  { %v925_v27 = vmul.f32 %v5355_v24, %v923_v25 }
 0xe51   :  { %926 = vst.msk [vmem:[#allocation3 + $0x8] sm:$0xc] %vm454_vm5, %v925_v27  ;;  %v930_v28 = vrot.slane %v925_v27, 2 }
 0xe53   :  { %4554 = vmatmul.mubr.msk.f32.vlgmr.msra.gmra.mrb[6].mxu1 %vm66_vm0, %v930_v28 }
 0xe54   :  { %4851 = vmatpush1.bf16.msra.mxu1 %v5863_v26  ;;  %1235 = vmatprep.mubr.f32.mxu1 %v5726_v11 }
 0xe55   :  { %4853 = vmatprep.subr.bf16.mxu1 %v5871_v30 }
 0xe58   :  { %4855 = vmatpush1.bf16.msra.mxu1 %v5889_v37 }
 0xe59   :  { %4857 = vmatprep.subr.bf16.mxu1 %v5895_v39 }
 0xe5c   :  { %4859 = vmatpush1.bf16.msra.mxu1 %v5914_v46 }
 0xe5d   :  { %4861 = vmatprep.subr.bf16.mxu1 %v5917_v47 }
 0xe60   :  { %4863 = vmatpush1.bf16.msra.mxu1 %v5931_v51 }
 0xe61   :  { %4881 = vmatprep.subr.bf16.mxu1 %v5848_v21 }
 0xf26   :  { %v999_v29 = vpop.f32.mrb[6].mxu1 }
 0xf27   :  { %v1001_v31 = vpop.f32.mrb[7].mxu1  ;;  %v1006_v36 = vrot.slane %v999_v29, 4 }
 0xf28   :  { %v1007_v32 = vrot.slane %v1001_v31, 4 }
 0xf29   :  { %v1010_v40 = vadd.f32 %v1006_v36, %v927_v38  ;;  %v1165_v38 = vld [vmem:[#allocation2 + $0x20] sm:$0x3] }
 0xf2a   :  { %v1011_v34 = vadd.f32 %v1007_v32, %v928_v33  ;;  %v1166_v33 = vld [vmem:[#allocation2 + $0x28] sm:$0x3] }
 0xf2b   :  { %v4555_v41 = vmul.f32 -1.442695, %v1010_v40 }
 0xf2c   :  { %5356 = vtanh.f32 %v1011_v34  ;;  %v4556_v55 = vmul.f32 -1.442695, %v1011_v34 }
 0xf2d   :  { %5358 = vpow2.f32 %v4555_v41 }
 0xf36   :  { %v5357_v35 = vpop.eup %5356 }
 0xf37   :  { %1030 = vrot.lane.b32.xlu1 %v5357_v35, %s5728_s14  ;;  %v5359_v42 = vpop.eup %5358 }
 0xf38   :  { %v1018_v43 = vadd.f32 1.0, %v5359_v42 }
 0xf3a   :  { %5360 = vrcp.f32 %v1018_v43 }
 0xf44   :  { %v5361_v44 = vpop.eup %5360 }
 0xf45   :  { %v1028_v50 = vmul.f32 %v5361_v44, %v1026_v49 }
 0xfa9   :  { %v1031_v45 = vpop.permute.xlu1 %1030 }
 0xfaa   :  { %v1033_v48 = vmul.f32 %v5361_v44, %v1031_v45 }
 0xfac   :  { %1035 = vrot.lane.b32.xlu0 %v1033_v48, %s5728_s14 }
0x101e   :  { %v1036_v52 = vpop.permute.xlu0 %1035 }
0x101f   :  { %v1038_v53 = vadd.f32 %v1036_v52, %v1028_v50 }
0x1021   :  { %5362 = vtanh.f32 %v1038_v53  ;;  %v1145_v17 = vrot.slane %v1038_v53, 6 }
0x1022   :  { %5364 = vpow2.f32 %v4556_v55 }
0x102b   :  { %v5363_v54 = vpop.eup %5362 }
0x102c   :  { %1041 = vrot.lane.b32.xlu1 %v5363_v54, %s5728_s14  ;;  %v5365_v56 = vpop.eup %5364 }
0x102d   :  { %v1019_v57 = vadd.f32 1.0, %v5365_v56 }
0x102f   :  { %5366 = vrcp.f32 %v1019_v57 }
0x1039   :  { %v5367_v58 = vpop.eup %5366 }
0x109e   :  { %v1042_v59 = vpop.permute.xlu1 %1041 }
0x109f   :  { %v1044_v60 = vmul.f32 %v5367_v58, %v1042_v59 }
0x10a1   :  { %1045 = vst.msk [vmem:[#allocation3 + $0x8] sm:$0x30] %vm574_vm6, %v1044_v60  ;;  %v1049_v61 = vrot.slane %v1044_v60, 4 }
0x10a3   :  { %4557 = vmatmul.mubr.msk.f32.vlgmr.msra.gmra.mrb[14].mxu0 %vm66_vm0, %v1049_v61 }
0x10a4   :  { %4867 = vmatpush1.bf16.msra.mxu0 %v5863_v26  ;;  %1347 = vmatprep.mubr.f32.mxu0 %v5726_v11 }
0x10a5   :  { %4869 = vmatprep.subr.bf16.mxu0 %v5871_v30 }
0x10a8   :  { %4871 = vmatpush1.bf16.msra.mxu0 %v5889_v37 }
0x10a9   :  { %4873 = vmatprep.subr.bf16.mxu0 %v5895_v39 }
0x10ac   :  { %4875 = vmatpush1.bf16.msra.mxu0 %v5914_v46 }
0x10ad   :  { %4877 = vmatprep.subr.bf16.mxu0 %v5917_v47 }
0x10b0   :  { %4879 = vmatpush1.bf16.msra.mxu0 %v5931_v51 }
0x10b1   :  { %4897 = vmatprep.subr.bf16.mxu0 %v5848_v21 }
0x1176   :  { %v1118_v62 = vpop.f32.mrb[14].mxu0 }
0x1177   :  { %v1120_v63 = vpop.f32.mrb[15].mxu0  ;;  %v1125_v7 = vrot.slane %v1118_v62, 2 }
0x1178   :  { %v1126_v0 = vrot.slane %v1120_v63, 2 }
0x1179   :  { %v1129_v9 = vadd.f32 %v1125_v7, %v1046_v8  ;;  %v1278_v7 = vld [vmem:[#allocation2 + $0x20] sm:$0xc] }
0x117a   :  { %v1130_v5 = vadd.f32 %v1126_v0, %v1047_v3  ;;  %v1279_v0 = vld [vmem:[#allocation2 + $0x28] sm:$0xc] }
0x117b   :  { %v4558_v10 = vmul.f32 -1.442695, %v1129_v9 }
0x117c   :  { %5368 = vtanh.f32 %v1130_v5  ;;  %v4559_v23 = vmul.f32 -1.442695, %v1130_v5 }
0x117d   :  { %5370 = vpow2.f32 %v4558_v10 }
0x1186   :  { %v5369_v6 = vpop.eup %5368 }
0x1187   :  { %1149 = vrot.lane.b32.xlu0 %v5369_v6, %s5728_s14  ;;  %v5371_v12 = vpop.eup %5370 }
0x1188   :  { %v1137_v13 = vadd.f32 1.0, %v5371_v12 }
0x118a   :  { %5372 = vrcp.f32 %v1137_v13 }
0x1194   :  { %v5373_v14 = vpop.eup %5372 }
0x1195   :  { %v1147_v18 = vmul.f32 %v5373_v14, %v1145_v17 }
0x11f9   :  { %v1150_v15 = vpop.permute.xlu0 %1149 }
0x11fa   :  { %v1152_v16 = vmul.f32 %v5373_v14, %v1150_v15 }
0x11fc   :  { %1154 = vrot.lane.b32.xlu1 %v1152_v16, %s5728_s14 }
0x126e   :  { %v1155_v19 = vpop.permute.xlu1 %1154 }
0x126f   :  { %v1157_v20 = vadd.f32 %v1155_v19, %v1147_v18 }
0x1271   :  { %5374 = vtanh.f32 %v1157_v20  ;;  %v1258_v49 = vrot.slane %v1157_v20, 6 }
0x1272   :  { %5376 = vpow2.f32 %v4559_v23 }
0x127b   :  { %v5375_v22 = vpop.eup %5374 }
0x127c   :  { %1160 = vrot.lane.b32.xlu0 %v5375_v22, %s5728_s14  ;;  %v5377_v24 = vpop.eup %5376 }
0x127d   :  { %v1138_v25 = vadd.f32 1.0, %v5377_v24 }
0x127f   :  { %5378 = vrcp.f32 %v1138_v25 }
0x1289   :  { %v5379_v27 = vpop.eup %5378 }
0x12ee   :  { %v1161_v28 = vpop.permute.xlu0 %1160 }
0x12ef   :  { %v1163_v29 = vmul.f32 %v5379_v27, %v1161_v28 }
0x12f1   :  { %1164 = vst.msk [vmem:[#allocation3 + $0x8] sm:$0xc0] %vm694_vm7, %v1163_v29  ;;  %v1168_v31 = vrot.slane %v1163_v29, 6 }
0x12f3   :  { %4560 = vmatmul.mubr.msk.f32.vlgmr.msra.gmra.mrb[8].mxu1 %vm66_vm0, %v1168_v31 }
0x12f4   :  { %4883 = vmatpush1.bf16.msra.mxu1 %v5863_v26  ;;  %1466 = vmatprep.mubr.f32.mxu1 %v5726_v11 }
0x12f5   :  { %4885 = vmatprep.subr.bf16.mxu1 %v5871_v30 }
0x12f8   :  { %4887 = vmatpush1.bf16.msra.mxu1 %v5889_v37 }
0x12f9   :  { %4889 = vmatprep.subr.bf16.mxu1 %v5895_v39 }
0x12fc   :  { %4891 = vmatpush1.bf16.msra.mxu1 %v5914_v46 }
0x12fd   :  { %4893 = vmatprep.subr.bf16.mxu1 %v5917_v47 }
0x1300   :  { %4895 = vmatpush1.bf16.msra.mxu1 %v5931_v51 }
0x1301   :  { %4913 = vmatprep.subr.bf16.mxu1 %v5848_v21 }
0x13c6   :  { %v1237_v32 = vpop.f32.mrb[8].mxu1 }
0x13c7   :  { %v1239_v34 = vpop.f32.mrb[9].mxu1  ;;  %v1242_v40 = vadd.f32 %v1237_v32, %v1165_v38 }
0x13c8   :  { %v1243_v35 = vadd.f32 %v1239_v34, %v1166_v33  ;;  %v1397_v34 = vld [vmem:[#allocation2 + $0x28] sm:$0x30] }
0x13c9   :  { %v4561_v41 = vmul.f32 -1.442695, %v1242_v40  ;;  %v1396_v40 = vld [vmem:[#allocation2 + $0x20] sm:$0x30] }
0x13ca   :  { %5380 = vtanh.f32 %v1243_v35  ;;  %v4562_v55 = vmul.f32 -1.442695, %v1243_v35 }
0x13cb   :  { %5382 = vpow2.f32 %v4561_v41 }
0x13d4   :  { %v5381_v36 = vpop.eup %5380 }
0x13d5   :  { %1262 = vrot.lane.b32.xlu1 %v5381_v36, %s5728_s14  ;;  %v5383_v42 = vpop.eup %5382 }
0x13d6   :  { %v1250_v43 = vadd.f32 1.0, %v5383_v42 }
0x13d8   :  { %5384 = vrcp.f32 %v1250_v43 }
0x13e2   :  { %v5385_v44 = vpop.eup %5384 }
0x13e3   :  { %v1260_v50 = vmul.f32 %v5385_v44, %v1258_v49 }
0x1447   :  { %v1263_v45 = vpop.permute.xlu1 %1262 }
0x1448   :  { %v1265_v48 = vmul.f32 %v5385_v44, %v1263_v45 }
0x144a   :  { %1267 = vrot.lane.b32.xlu0 %v1265_v48, %s5728_s14 }
0x14bc   :  { %v1268_v52 = vpop.permute.xlu0 %1267 }
0x14bd   :  { %v1270_v53 = vadd.f32 %v1268_v52, %v1260_v50 }
0x14bf   :  { %5386 = vtanh.f32 %v1270_v53  ;;  %v1376_v16 = vrot.slane %v1270_v53, 6 }
0x14c0   :  { %5388 = vpow2.f32 %v4562_v55 }
0x14c9   :  { %v5387_v54 = vpop.eup %5386 }
0x14ca   :  { %1273 = vrot.lane.b32.xlu1 %v5387_v54, %s5728_s14  ;;  %v5389_v56 = vpop.eup %5388 }
0x14cb   :  { %v1251_v57 = vadd.f32 1.0, %v5389_v56 }
0x14cd   :  { %5390 = vrcp.f32 %v1251_v57 }
0x14d7   :  { %v5391_v58 = vpop.eup %5390 }
0x153c   :  { %v1274_v59 = vpop.permute.xlu1 %1273 }
0x153d   :  { %v1276_v60 = vmul.f32 %v5391_v58, %v1274_v59 }
0x153f   :  { %1277 = vst.msk [vmem:[#allocation3 + $0x10] sm:$0x3] %vm335_vm4, %v1276_v60  ;;  %4563 = vmatmul.mubr.msk.f32.vlgmr.msra.gmra.mrb[16].mxu0 %vm66_vm0, %v1276_v60 }
0x1540   :  { %4899 = vmatpush1.bf16.msra.mxu0 %v5863_v26  ;;  %1585 = vmatprep.mubr.f32.mxu0 %v5726_v11 }
0x1541   :  { %4901 = vmatprep.subr.bf16.mxu0 %v5871_v30 }
0x1544   :  { %4903 = vmatpush1.bf16.msra.mxu0 %v5889_v37 }
0x1545   :  { %4905 = vmatprep.subr.bf16.mxu0 %v5895_v39 }
0x1548   :  { %4907 = vmatpush1.bf16.msra.mxu0 %v5914_v46 }
0x1549   :  { %4909 = vmatprep.subr.bf16.mxu0 %v5917_v47 }
0x154c   :  { %4911 = vmatpush1.bf16.msra.mxu0 %v5931_v51 }
0x154d   :  { %4929 = vmatprep.subr.bf16.mxu0 %v5848_v21 }
0x1612   :  { %v1349_v61 = vpop.f32.mrb[16].mxu0 }
0x1613   :  { %v1351_v62 = vpop.f32.mrb[17].mxu0  ;;  %v1356_v6 = vrot.slane %v1349_v61, 6 }
0x1614   :  { %v1357_v63 = vrot.slane %v1351_v62, 6 }
0x1615   :  { %v1360_v8 = vadd.f32 %v1356_v6, %v1278_v7 }
0x1616   :  { %v1361_v3 = vadd.f32 %v1357_v63, %v1279_v0 }
0x1617   :  { %v4564_v9 = vmul.f32 -1.442695, %v1360_v8 }
0x1618   :  { %5392 = vtanh.f32 %v1361_v3  ;;  %v4565_v22 = vmul.f32 -1.442695, %v1361_v3 }
0x1619   :  { %5394 = vpow2.f32 %v4564_v9  ;;  %v1515_v9 = vld [vmem:[#allocation2 + $0x20] sm:$0xc0] }
0x1622   :  { %v5393_v5 = vpop.eup %5392 }
0x1623   :  { %1380 = vrot.lane.b32.xlu0 %v5393_v5, %s5728_s14  ;;  %v5395_v10 = vpop.eup %5394  ;;  %v1516_v5 = vld [vmem:[#allocation2 + $0x28] sm:$0xc0] }
0x1624   :  { %v1368_v12 = vadd.f32 1.0, %v5395_v10 }
0x1626   :  { %5396 = vrcp.f32 %v1368_v12 }
0x1630   :  { %v5397_v13 = vpop.eup %5396 }
0x1631   :  { %v1378_v17 = vmul.f32 %v5397_v13, %v1376_v16 }
0x1695   :  { %v1381_v14 = vpop.permute.xlu0 %1380 }
0x1696   :  { %v1383_v15 = vmul.f32 %v5397_v13, %v1381_v14 }
0x1698   :  { %1385 = vrot.lane.b32.xlu1 %v1383_v15, %s5728_s14 }
0x170a   :  { %v1386_v18 = vpop.permute.xlu1 %1385 }
0x170b   :  { %v1388_v19 = vadd.f32 %v1386_v18, %v1378_v17 }
0x170d   :  { %5398 = vtanh.f32 %v1388_v19  ;;  %v1495_v50 = vrot.slane %v1388_v19, 6 }
0x170e   :  { %5400 = vpow2.f32 %v4565_v22 }
0x1717   :  { %v5399_v20 = vpop.eup %5398 }
0x1718   :  { %1391 = vrot.lane.b32.xlu0 %v5399_v20, %s5728_s14  ;;  %v5401_v23 = vpop.eup %5400 }
0x1719   :  { %v1369_v24 = vadd.f32 1.0, %v5401_v23 }
0x171b   :  { %5402 = vrcp.f32 %v1369_v24 }
0x1725   :  { %v5403_v25 = vpop.eup %5402 }
0x178a   :  { %v1392_v27 = vpop.permute.xlu0 %1391 }
0x178b   :  { %v1394_v28 = vmul.f32 %v5403_v25, %v1392_v27 }
0x178d   :  { %1395 = vst.msk [vmem:[#allocation3 + $0x10] sm:$0xc] %vm454_vm5, %v1394_v28  ;;  %v1399_v29 = vrot.slane %v1394_v28, 2 }
0x178f   :  { %4566 = vmatmul.mubr.msk.f32.vlgmr.msra.gmra.mrb[10].mxu1 %vm66_vm0, %v1399_v29 }
0x1790   :  { %4915 = vmatpush1.bf16.msra.mxu1 %v5863_v26  ;;  %1704 = vmatprep.mubr.f32.mxu1 %v5726_v11 }
0x1791   :  { %4917 = vmatprep.subr.bf16.mxu1 %v5871_v30 }
0x1794   :  { %4919 = vmatpush1.bf16.msra.mxu1 %v5889_v37 }
0x1795   :  { %4921 = vmatprep.subr.bf16.mxu1 %v5895_v39 }
0x1798   :  { %4923 = vmatpush1.bf16.msra.mxu1 %v5914_v46 }
0x1799   :  { %4925 = vmatprep.subr.bf16.mxu1 %v5917_v47 }
0x179c   :  { %4927 = vmatpush1.bf16.msra.mxu1 %v5931_v51 }
0x179d   :  { %4945 = vmatprep.subr.bf16.mxu1 %v5848_v21 }
0x1862   :  { %v1468_v31 = vpop.f32.mrb[10].mxu1 }
0x1863   :  { %v1470_v32 = vpop.f32.mrb[11].mxu1  ;;  %v1475_v38 = vrot.slane %v1468_v31, 4 }
0x1864   :  { %v1476_v33 = vrot.slane %v1470_v32, 4 }
0x1865   :  { %v1479_v41 = vadd.f32 %v1475_v38, %v1396_v40  ;;  %v1634_v38 = vld [vmem:[#allocation2 + $0x30] sm:$0x3] }
0x1866   :  { %v1480_v35 = vadd.f32 %v1476_v33, %v1397_v34  ;;  %v1635_v33 = vld [vmem:[#allocation2 + $0x38] sm:$0x3] }
0x1867   :  { %v4567_v42 = vmul.f32 -1.442695, %v1479_v41 }
0x1868   :  { %5404 = vtanh.f32 %v1480_v35  ;;  %v4568_v56 = vmul.f32 -1.442695, %v1480_v35 }
0x1869   :  { %5406 = vpow2.f32 %v4567_v42 }
0x1872   :  { %v5405_v36 = vpop.eup %5404 }
0x1873   :  { %1499 = vrot.lane.b32.xlu1 %v5405_v36, %s5728_s14  ;;  %v5407_v43 = vpop.eup %5406 }
0x1874   :  { %v1487_v44 = vadd.f32 1.0, %v5407_v43 }
0x1876   :  { %5408 = vrcp.f32 %v1487_v44 }
0x1880   :  { %v5409_v45 = vpop.eup %5408 }
0x1881   :  { %v1497_v52 = vmul.f32 %v5409_v45, %v1495_v50 }
0x18e5   :  { %v1500_v48 = vpop.permute.xlu1 %1499 }
0x18e6   :  { %v1502_v49 = vmul.f32 %v5409_v45, %v1500_v48 }
0x18e8   :  { %1504 = vrot.lane.b32.xlu0 %v1502_v49, %s5728_s14 }
0x195a   :  { %v1505_v53 = vpop.permute.xlu0 %1504 }
0x195b   :  { %v1507_v54 = vadd.f32 %v1505_v53, %v1497_v52 }
0x195d   :  { %5410 = vtanh.f32 %v1507_v54  ;;  %v1614_v17 = vrot.slane %v1507_v54, 6 }
0x195e   :  { %5412 = vpow2.f32 %v4568_v56 }
0x1967   :  { %v5411_v55 = vpop.eup %5410 }
0x1968   :  { %1510 = vrot.lane.b32.xlu1 %v5411_v55, %s5728_s14  ;;  %v5413_v57 = vpop.eup %5412 }
0x1969   :  { %v1488_v58 = vadd.f32 1.0, %v5413_v57 }
0x196b   :  { %5414 = vrcp.f32 %v1488_v58 }
0x1975   :  { %v5415_v59 = vpop.eup %5414 }
0x19da   :  { %v1511_v60 = vpop.permute.xlu1 %1510 }
0x19db   :  { %v1513_v61 = vmul.f32 %v5415_v59, %v1511_v60 }
0x19dd   :  { %1514 = vst.msk [vmem:[#allocation3 + $0x10] sm:$0x30] %vm574_vm6, %v1513_v61  ;;  %v1518_v62 = vrot.slane %v1513_v61, 4 }
0x19df   :  { %4569 = vmatmul.mubr.msk.f32.vlgmr.msra.gmra.mrb[18].mxu0 %vm66_vm0, %v1518_v62 }
0x19e0   :  { %4931 = vmatpush1.bf16.msra.mxu0 %v5863_v26  ;;  %1816 = vmatprep.mubr.f32.mxu0 %v5726_v11 }
0x19e1   :  { %4933 = vmatprep.subr.bf16.mxu0 %v5871_v30 }
0x19e4   :  { %4935 = vmatpush1.bf16.msra.mxu0 %v5889_v37 }
0x19e5   :  { %4937 = vmatprep.subr.bf16.mxu0 %v5895_v39 }
0x19e8   :  { %4939 = vmatpush1.bf16.msra.mxu0 %v5914_v46 }
0x19e9   :  { %4941 = vmatprep.subr.bf16.mxu0 %v5917_v47 }
0x19ec   :  { %4943 = vmatpush1.bf16.msra.mxu0 %v5931_v51 }
0x19ed   :  { %4961 = vmatprep.subr.bf16.mxu0 %v5848_v21 }
0x1ab2   :  { %v1587_v63 = vpop.f32.mrb[18].mxu0 }
0x1ab3   :  { %v1589_v0 = vpop.f32.mrb[19].mxu0  ;;  %v1594_v8 = vrot.slane %v1587_v63, 2 }
0x1ab4   :  { %v1595_v3 = vrot.slane %v1589_v0, 2  ;;  %v1748_v0 = vld [vmem:[#allocation2 + $0x38] sm:$0xc] }
0x1ab5   :  { %v1598_v10 = vadd.f32 %v1594_v8, %v1515_v9 }
0x1ab6   :  { %v1599_v6 = vadd.f32 %v1595_v3, %v1516_v5  ;;  %v1747_v5 = vld [vmem:[#allocation2 + $0x30] sm:$0xc] }
0x1ab7   :  { %v4570_v12 = vmul.f32 -1.442695, %v1598_v10 }
0x1ab8   :  { %5416 = vtanh.f32 %v1599_v6  ;;  %v4571_v23 = vmul.f32 -1.442695, %v1599_v6 }
0x1ab9   :  { %5418 = vpow2.f32 %v4570_v12 }
0x1ac2   :  { %v5417_v7 = vpop.eup %5416 }
0x1ac3   :  { %1618 = vrot.lane.b32.xlu0 %v5417_v7, %s5728_s14  ;;  %v5419_v13 = vpop.eup %5418 }
0x1ac4   :  { %v1606_v14 = vadd.f32 1.0, %v5419_v13  ;;  %v4585_v13 = vld [vmem:[%s6743_s3 + $0x88] sm:$0xff] }
0x1ac6   :  { %5420 = vrcp.f32 %v1606_v14  ;;  %v4587_v14 = vld [vmem:[%s6743_s3 + $0x98] sm:$0xff] }
0x1ad0   :  { %v5421_v15 = vpop.eup %5420 }
0x1ad1   :  { %v1616_v18 = vmul.f32 %v5421_v15, %v1614_v17 }
0x1b35   :  { %v1619_v16 = vpop.permute.xlu0 %1618 }
0x1b36   :  { %v1621_v21 = vmul.f32 %v5421_v15, %v1619_v16  ;;  %v4976_v15 = vpack.c.bf16 %v4587_v14, %v4585_v13 }
0x1b38   :  { %1623 = vrot.lane.b32.xlu1 %v1621_v21, %s5728_s14 }
0x1baa   :  { %v1624_v19 = vpop.permute.xlu1 %1623 }
0x1bab   :  { %v1626_v20 = vadd.f32 %v1624_v19, %v1616_v18  ;;  %v4584_v19 = vld [vmem:[%s6743_s3 + $0x80] sm:$0xff] }
0x1bad   :  { %5422 = vtanh.f32 %v1626_v20  ;;  %v1727_v49 = vrot.slane %v1626_v20, 6  ;;  %v4586_v20 = vld [vmem:[%s6743_s3 + $0x90] sm:$0xff] }
0x1bae   :  { %5424 = vpow2.f32 %v4571_v23 }
0x1bb7   :  { %v5423_v22 = vpop.eup %5422 }
0x1bb8   :  { %1629 = vrot.lane.b32.xlu0 %v5423_v22, %s5728_s14  ;;  %v5425_v24 = vpop.eup %5424 }
0x1bb9   :  { %v1607_v25 = vadd.f32 1.0, %v5425_v24  ;;  %v4589_v24 = vld [vmem:[%s6743_s3 + $0xa8] sm:$0xff] }
0x1bbb   :  { %5426 = vrcp.f32 %v1607_v25  ;;  %v4591_v25 = vld [vmem:[%s6743_s3 + $0xb8] sm:$0xff] }
0x1bc5   :  { %v5427_v27 = vpop.eup %5426 }
0x1c2a   :  { %v1630_v28 = vpop.permute.xlu0 %1629 }
0x1c2b   :  { %v1632_v29 = vmul.f32 %v5427_v27, %v1630_v28  ;;  %v4978_v28 = vpack.c.bf16 %v4586_v20, %v4584_v19  ;;  %v4608_v20 = vld [vmem:[%s6744_s4 + $0x88] sm:$0xff] }
0x1c2d   :  { %1633 = vst.msk [vmem:[#allocation3 + $0x10] sm:$0xc0] %vm694_vm7, %v1632_v29  ;;  %v1637_v31 = vrot.slane %v1632_v29, 6 }
0x1c2f   :  { %4572 = vmatmul.mubr.msk.f32.vlgmr.msra.gmra.mrb[12].mxu1 %vm66_vm0, %v1637_v31  ;;  %v4980_v31 = vpack.c.bf16 %v4591_v25, %v4589_v24  ;;  %v4609_v24 = vld [vmem:[%s6744_s4 + $0x90] sm:$0xff] }
0x1c30   :  { %4947 = vmatpush1.bf16.msra.mxu1 %v5863_v26  ;;  %1935 = vmatprep.mubr.f32.mxu1 %v5726_v11 }
0x1c31   :  { %4949 = vmatprep.subr.bf16.mxu1 %v5871_v30 }
0x1c34   :  { %4951 = vmatpush1.bf16.msra.mxu1 %v5889_v37 }
0x1c35   :  { %4953 = vmatprep.subr.bf16.mxu1 %v5895_v39 }
0x1c38   :  { %4955 = vmatpush1.bf16.msra.mxu1 %v5914_v46 }
0x1c39   :  { %4957 = vmatprep.subr.bf16.mxu1 %v5917_v47 }
0x1c3c   :  { %4959 = vmatpush1.bf16.msra.mxu1 %v5931_v51 }
0x1c3d   :  { %4977 = vmatprep.subr.bf16.mxu1 %v4976_v15 }
0x1d02   :  { %v1706_v32 = vpop.f32.mrb[12].mxu1 }
0x1d03   :  { %v1708_v34 = vpop.f32.mrb[13].mxu1  ;;  %v1711_v40 = vadd.f32 %v1706_v32, %v1634_v38  ;;  %v4588_v32 = vld [vmem:[%s6743_s3 + $0xa0] sm:$0xff] }
0x1d04   :  { %v1712_v35 = vadd.f32 %v1708_v34, %v1635_v33  ;;  %v4590_v33 = vld [vmem:[%s6743_s3 + $0xb0] sm:$0xff]  ;;  %v4593_v34 = vld [vmem:[%s6743_s3 + $0xc8] sm:$0xff] }
0x1d05   :  { %v4573_v41 = vmul.f32 -1.442695, %v1711_v40  ;;  %v4592_v40 = vld [vmem:[%s6743_s3 + $0xc0] sm:$0xff] }
0x1d06   :  { %5428 = vtanh.f32 %v1712_v35  ;;  %v4574_v55 = vmul.f32 -1.442695, %v1712_v35  ;;  %v4595_v35 = vld [vmem:[%s6743_s3 + $0xd8] sm:$0xff] }
0x1d07   :  { %5430 = vpow2.f32 %v4573_v41  ;;  %v4984_v38 = vpack.c.bf16 %v4595_v35, %v4593_v34  ;;  %v4594_v41 = vld [vmem:[%s6743_s3 + $0xd0] sm:$0xff]  ;;  %v4616_v34 = vld [vmem:[%s6744_s4 + $0xc8] sm:$0xff]  ;;  %v4618_v35 = vld [vmem:[%s6744_s4 + $0xd8] sm:$0xff] }
0x1d10   :  { %v5429_v36 = vpop.eup %5428 }
0x1d11   :  { %1731 = vrot.lane.b32.xlu1 %v5429_v36, %s5728_s14  ;;  %v5431_v42 = vpop.eup %5430  ;;  %v4982_v36 = vpack.c.bf16 %v4590_v33, %v4588_v32  ;;  %v4613_v32 = vld [vmem:[%s6744_s4 + $0xb0] sm:$0xff] }
0x1d12   :  { %v1719_v43 = vadd.f32 1.0, %v5431_v42  ;;  %v4597_v42 = vld [vmem:[%s6743_s3 + $0xe8] sm:$0xff] }
0x1d14   :  { %5432 = vrcp.f32 %v1719_v43  ;;  %v4599_v43 = vld [vmem:[%s6743_s3 + $0xf8] sm:$0xff] }
0x1d1e   :  { %v5433_v44 = vpop.eup %5432 }
0x1d1f   :  { %v1729_v50 = vmul.f32 %v5433_v44, %v1727_v49  ;;  %v4598_v49 = vld [vmem:[%s6743_s3 + $0xf0] sm:$0xff] }
0x1d83   :  { %v1732_v45 = vpop.permute.xlu1 %1731 }
0x1d84   :  { %v1734_v48 = vmul.f32 %v5433_v44, %v1732_v45  ;;  %v4986_v44 = vpack.c.bf16 %v4594_v41, %v4592_v40  ;;  %v4988_v45 = vpack.c.bf16 %v4599_v43, %v4597_v42  ;;  %v4617_v40 = vld [vmem:[%s6744_s4 + $0xd0] sm:$0xff]  ;;  %v4620_v43 = vld [vmem:[%s6744_s4 + $0xe8] sm:$0xff] }
0x1d86   :  { %1736 = vrot.lane.b32.xlu0 %v1734_v48, %s5728_s14  ;;  %v4596_v48 = vld [vmem:[%s6743_s3 + $0xe0] sm:$0xff]  ;;  %s5676_s3 = scalar_lea.vmem %s4504_s21, 64 }
0x1d87   :  { %p5677_p0 = scmp.ne.s32.totalorder %s4504_s21, %s5676_s3  ;;  %p5682_p2 = scmp.lt.s32.totalorder %s5676_s3, %s5676_s3 }
0x1d89   :  { %p5683_p3 = por %p5682_p2, %p5681_p1 }
0x1d8b   :  { %p5684_p4 = pnand %p5683_p3, %p5677_p0 }
0x1df8   :  { %v1737_v52 = vpop.permute.xlu0 %1736 }
0x1df9   :  { %v1739_v53 = vadd.f32 %v1737_v52, %v1729_v50  ;;  %v4990_v50 = vpack.c.bf16 %v4598_v49, %v4596_v48  ;;  %v2129_v52 = vld [vmem:[#allocation3] sm:$0xff]  ;;  %v4621_v49 = vld [vmem:[%s6744_s4 + $0xf0] sm:$0xff] }
0x1dfa   :  { %v4619_v48 = vld [vmem:[%s6744_s4 + $0xe0] sm:$0xff] }
0x1dfb   :  { %5434 = vtanh.f32 %v1739_v53  ;;  %v1845_v8 = vrot.slane %v1739_v53, 6  ;;  %v2130_v53 = vld [vmem:[#allocation3 + $0x8] sm:$0xff] }
0x1dfc   :  { %5436 = vpow2.f32 %v4574_v55 }
0x1e05   :  { %v5435_v54 = vpop.eup %5434 }
0x1e06   :  { %1742 = vrot.lane.b32.xlu1 %v5435_v54, %s5728_s14  ;;  %v5437_v56 = vpop.eup %5436  ;;  %v2131_v54 = vld [vmem:[#allocation3 + $0x10] sm:$0xff] }
0x1e07   :  { %v1720_v57 = vadd.f32 1.0, %v5437_v56 }
0x1e09   :  { %5438 = vrcp.f32 %v1720_v57 }
0x1e13   :  { %v5439_v58 = vpop.eup %5438 }
0x1e78   :  { %v1743_v59 = vpop.permute.xlu1 %1742 }
0x1e79   :  { %v1745_v60 = vmul.f32 %v5439_v58, %v1743_v59  ;;  %v1866_v58 = vld [vmem:[#allocation2 + $0x38] sm:$0x30] }
0x1e7b   :  { %1746 = vst.msk [vmem:[#allocation3 + $0x18] sm:$0x3] %vm335_vm4, %v1745_v60  ;;  %4575 = vmatmul.mubr.msk.f32.vlgmr.msra.gmra.mrb[20].mxu0 %vm66_vm0, %v1745_v60  ;;  %v4600_v60 = vld [vmem:[%s6745_s5 + $0x2] sm:$0x3]  ;;  %s5729_s5 = smov 112  }
0x1e7c   :  { %4963 = vmatpush1.bf16.msra.mxu0 %v5863_v26  ;;  %2054 = vmatprep.mubr.f32.mxu0 %v5726_v11 }
0x1e7d   :  { %4965 = vmatprep.subr.bf16.mxu0 %v5871_v30 }
0x1e80   :  { %4967 = vmatpush1.bf16.msra.mxu0 %v5889_v37 }
0x1e81   :  { %4969 = vmatprep.subr.bf16.mxu0 %v5895_v39 }
0x1e84   :  { %4971 = vmatpush1.bf16.msra.mxu0 %v5914_v46 }
0x1e85   :  { %4973 = vmatprep.subr.bf16.mxu0 %v5917_v47 }
0x1e88   :  { %4975 = vmatpush1.bf16.msra.mxu0 %v5931_v51 }
0x1f4e   :  { %v1818_v61 = vpop.f32.mrb[20].mxu0 }
0x1f4f   :  { %v1820_v62 = vpop.f32.mrb[21].mxu0  ;;  %v1825_v30 = vrot.slane %v1818_v61, 6  ;;  %v6246_v61 = vrot.slane %v4600_v60, %v58_v2 }
0x1f50   :  { %v1826_v63 = vrot.slane %v1820_v62, 6  ;;  %v6250_v62 = vrot.slane %v4600_v60, %v62_v4 }
0x1f51   :  { %v1829_v37 = vadd.f32 %v1825_v30, %v1747_v5 }
0x1f52   :  { %v1830_v3 = vadd.f32 %v1826_v63, %v1748_v0 }
0x1f53   :  { %v4576_v6 = vmul.f32 -1.442695, %v1829_v37 }
0x1f54   :  { %5440 = vtanh.f32 %v1830_v3  ;;  %v4577_v21 = vmul.f32 -1.442695, %v1830_v3 }
0x1f55   :  { %5442 = vpow2.f32 %v4576_v6 }
0x1f5e   :  { %v5441_v26 = vpop.eup %5440 }
0x1f5f   :  { %1849 = vrot.lane.b32.xlu0 %v5441_v26, %s5728_s14  ;;  %v5443_v39 = vpop.eup %5442 }
0x1f60   :  { %v1837_v46 = vadd.f32 1.0, %v5443_v39 }
0x1f62   :  { %5444 = vrcp.f32 %v1837_v46 }
0x1f6c   :  { %v5445_v47 = vpop.eup %5444 }
0x1f6d   :  { %v1847_v9 = vmul.f32 %v5445_v47, %v1845_v8 }
0x1fd1   :  { %v1850_v7 = vpop.permute.xlu0 %1849 }
0x1fd2   :  { %v1852_v51 = vmul.f32 %v5445_v47, %v1850_v7  ;;  %v1865_v7 = vld [vmem:[#allocation2 + $0x30] sm:$0x30] }
0x1fd4   :  { %1854 = vrot.lane.b32.xlu1 %v1852_v51, %s5728_s14 }
0x2046   :  { %v1855_v10 = vpop.permute.xlu1 %1854 }
0x2047   :  { %v6177_v12 = vadd.f32 %v1855_v10, %v1847_v9 }
0x2049   :  { %5446 = vtanh.f32 %v6177_v12 }
0x204a   :  { %5448 = vpow2.f32 %v4577_v21  ;;  %v1964_v21 = vrot.slane %v6177_v12, 6  ;;  %v4607_v12 = vld [vmem:[%s6744_s4 + $0x80] sm:$0xff] }
0x204b   :  { %v6287_v25 = vpack.c.bf16 %v4609_v24, %v4607_v12 }
0x2053   :  { %v5447_v16 = vpop.eup %5446 }
0x2054   :  { %1860 = vrot.lane.b32.xlu0 %v5447_v16, %s5728_s14  ;;  %v5449_v17 = vpop.eup %5448  ;;  %v6263_v16 = vld [vmem:[%s6741_s1 + $0x2] sm:$0x3] }
0x2055   :  { %v1838_v18 = vadd.f32 1.0, %v5449_v17 }
0x2057   :  { %5450 = vrcp.f32 %v1838_v18 }
0x2061   :  { %v5451_v22 = vpop.eup %5450 }
0x20c6   :  { %v1861_v23 = vpop.permute.xlu0 %1860 }
0x20c7   :  { %v1863_v27 = vmul.f32 %v5451_v22, %v1861_v23  ;;  %v4610_v22 = vld [vmem:[%s6744_s4 + $0x98] sm:$0xff] }
0x20c8   :  { %v6279_v23 = vpack.c.bf16 %v4610_v22, %v4608_v20 }
0x20c9   :  { %1864 = vst.msk [vmem:[#allocation3 + $0x18] sm:$0xc] %vm454_vm5, %v1863_v27  ;;  %v1868_v29 = vrot.slane %v1863_v27, 2  ;;  %v4612_v27 = vld [vmem:[%s6744_s4 + $0xa8] sm:$0xff] }
0x20ca   :  { %4993 = vmatprep.subr.bf16.mxu0 %v6279_v23 }
0x20cb   :  { %4578 = vmatmul.mubr.msk.f32.vlgmr.msra.gmra.mrb[14].mxu1 %vm66_vm0, %v1868_v29 }
0x20cc   :  { %4979 = vmatpush1.bf16.msra.mxu1 %v4978_v28  ;;  %2239 = vmatprep.mubr.f32.mxu1 %v5726_v11  ;;  %v4614_v28 = vld [vmem:[%s6744_s4 + $0xb8] sm:$0xff] }
0x20cd   :  { %4981 = vmatprep.subr.bf16.mxu1 %v4980_v31  ;;  %v6298_v29 = vpack.c.bf16 %v4614_v28, %v4612_v27  ;;  %v4611_v31 = vld [vmem:[%s6744_s4 + $0xa0] sm:$0xff] }
0x20ce   :  { %v6306_v33 = vpack.c.bf16 %v4613_v32, %v4611_v31 }
0x20d0   :  { %4983 = vmatpush1.bf16.msra.mxu1 %v4982_v36  ;;  %v6316_v36 = vpack.c.bf16 %v4618_v35, %v4616_v34 }
0x20d1   :  { %4985 = vmatprep.subr.bf16.mxu1 %v4984_v38  ;;  %v4615_v38 = vld [vmem:[%s6744_s4 + $0xc0] sm:$0xff] }
0x20d2   :  { %v6324_v41 = vpack.c.bf16 %v4617_v40, %v4615_v38 }
0x20d4   :  { %4987 = vmatpush1.bf16.msra.mxu1 %v4986_v44  ;;  %v4622_v44 = vld [vmem:[%s6744_s4 + $0xf8] sm:$0xff] }
0x20d5   :  { %4989 = vmatprep.subr.bf16.mxu1 %v4988_v45  ;;  %v6335_v45 = vpack.c.bf16 %v4622_v44, %v4620_v43 }
0x20d8   :  { %4991 = vmatpush1.bf16.msra.mxu1 %v4990_v50  ;;  %v6343_v50 = vpack.c.bf16 %v4621_v49, %v4619_v48 }
0x20d9   :  { %5009 = vmatprep.subr.bf16.mxu1 %v6279_v23 }
0x20db   :  { %4601 = vmatmul.mubr.msk.f32.vlgmr.msra.gmra.mrb[16].mxu1 %vm66_vm0, %v2129_v52 }
0x20dc   :  { %2245 = vmatprep.mubr.f32.mxu1 %v5726_v11  ;;  %5011 = vmatpush1.bf16.msra.mxu1 %v6287_v25 }
0x20dd   :  { %5013 = vmatprep.subr.bf16.mxu1 %v6298_v29 }
0x20df   :  { %4602 = vmatmul.mubr.msk.f32.gmra.mrb[18].mxu1 %vm66_vm0, %v2130_v53 }
0x20e0   :  { %2251 = vmatprep.mubr.f32.mxu1 %v5726_v11  ;;  %5015 = vmatpush1.bf16.msra.mxu1 %v6306_v33 }
0x20e1   :  { %5017 = vmatprep.subr.bf16.mxu1 %v6316_v36 }
0x20e3   :  { %4603 = vmatmul.mubr.msk.f32.gmra.mrb[20].mxu1 %vm66_vm0, %v2131_v54 }
0x20e4   :  { %2257 = vmatprep.mubr.f32.mxu1 %v5726_v11  ;;  %5019 = vmatpush1.bf16.msra.mxu1 %v6324_v41 }
0x20e5   :  { %5021 = vmatprep.subr.bf16.mxu1 %v6335_v45 }
0x20e8   :  { %5023 = vmatpush1.bf16.msra.mxu1 %v6343_v50 }
0x20e9   :  { %5041 = vmatprep.subr.bf16.mxu1 %v6279_v23 }
0x219e   :  { %v1937_v55 = vpop.f32.mrb[14].mxu1 }
0x219f   :  { %v1939_v56 = vpop.f32.mrb[15].mxu1  ;;  %v1944_v47 = vrot.slane %v1937_v55, 4 }
0x21a0   :  { %v1945_v57 = vrot.slane %v1939_v56, 4 }
0x21a1   :  { %v1948_v51 = vadd.f32 %v1944_v47, %v1865_v7 }
0x21a2   :  { %v6238_v59 = vadd.f32 %v1945_v57, %v1866_v58 }
0x21a3   :  { %v4579_v8 = vmul.f32 -1.442695, %v1948_v51 }
0x21a4   :  { %5452 = vtanh.f32 %v6238_v59  ;;  %v4580_v52 = vmul.f32 -1.442695, %v6238_v59 }
0x21a5   :  { %5454 = vpow2.f32 %v4579_v8 }
0x21ae   :  { %v5453_v63 = vpop.eup %5452  ;;  %v2241_v0 = vpop.f32.mrb[16].mxu1 }
0x21af   :  { %v2242_v3 = vadd.f32 %v2241_v0, %v6246_v61  ;;  %v2243_v26 = vpop.f32.mrb[17].mxu1  ;;  %1968 = vrot.lane.b32.xlu1 %v5453_v63, %s5728_s14  ;;  %v5455_v9 = vpop.eup %5454 }
0x21b0   :  { %v2244_v30 = vadd.f32 %v2243_v26, %v6250_v62  ;;  %v1956_v10 = vadd.f32 1.0, %v5455_v9  ;;  %v1984_v9 = vld [vmem:[#allocation2 + $0x30] sm:$0xc0] }
0x21b1   :  { %2264 = vst [vmem:[#allocation2] sm:$0xff] %v2242_v3 }
0x21b2   :  { %2265 = vst [vmem:[#allocation2 + $0x8] sm:$0xff] %v2244_v30  ;;  %v2247_v5 = vpop.f32.mrb[18].mxu1  ;;  %5456 = vrcp.f32 %v1956_v10  ;;  %v4606_v30 = vld [vmem:[%s6742_s2 + $0x2] sm:$0x3] }
0x21b3   :  { %v2248_v37 = vadd.f32 %v2247_v5, %v6246_v61  ;;  %v2249_v2 = vpop.f32.mrb[19].mxu1 }
0x21b4   :  { %v2250_v6 = vadd.f32 %v2249_v2, %v6250_v62 }
0x21b5   :  { %2266 = vst [vmem:[#allocation2 + $0x10] sm:$0xff] %v2248_v37 }
0x21b6   :  { %2267 = vst [vmem:[#allocation2 + $0x18] sm:$0xff] %v2250_v6  ;;  %v2253_v1 = vpop.f32.mrb[20].mxu1  ;;  %v1985_v6 = vld [vmem:[#allocation2 + $0x38] sm:$0xc0] }
0x21b7   :  { %v2254_v4 = vadd.f32 %v2253_v1, %v6246_v61  ;;  %v2255_v39 = vpop.f32.mrb[21].mxu1 }
0x21b8   :  { %v2256_v46 = vadd.f32 %v2255_v39, %v6250_v62 }
0x21b9   :  { %2268 = vst [vmem:[#allocation2 + $0x20] sm:$0xff] %v2254_v4  ;;  %v2320_v47 = vld [vmem:[#allocation2 + $0x8] sm:$0x3] }
0x21ba   :  { %2269 = vst [vmem:[#allocation2 + $0x28] sm:$0xff] %v2256_v46 }
0x21bc   :  { %v5457_v13 = vpop.eup %5456 }
0x21bd   :  { %v1966_v17 = vmul.f32 %v5457_v13, %v1964_v21 }
0x2221   :  { %v1969_v14 = vpop.permute.xlu1 %1968 }
0x2222   :  { %v1971_v15 = vmul.f32 %v5457_v13, %v1969_v14  ;;  %v2319_v14 = vld [vmem:[#allocation2] sm:$0x3] }
0x2224   :  { %1973 = vrot.lane.b32.xlu0 %v1971_v15, %s5728_s14 }
0x2228   :  { %2277 = vrot.lane.b32.xlu0 %v6263_v16, %s5724_s19 }
0x222c   :  { %2283 = vrot.lane.b32.xlu0 %v6263_v16, %s5725_s26 }
0x2230   :  { %2290 = vrot.lane.b32.xlu0 %v4606_v30, %s5724_s19 }
0x2234   :  { %2296 = vrot.lane.b32.xlu0 %v4606_v30, %s5725_s26 }
0x2296   :  { %v1974_v18 = vpop.permute.xlu0 %1973 }
0x2297   :  { %v6270_v19 = vadd.f32 %v1974_v18, %v1966_v17 }
0x2299   :  { %5458 = vtanh.f32 %v6270_v19  ;;  %v2083_v43 = vrot.slane %v6270_v19, 6 }
0x229a   :  { %5460 = vpow2.f32 %v4580_v52  ;;  %v2278_v59 = vpop.permute.xlu0 %2277 }
0x229b   :  { %v2286_v60 = vsel %vm188_vm1, %v6263_v16, %v2278_v59 }
0x229e   :  { %v2284_v3 = vpop.permute.xlu0 %2283 }
0x22a2   :  { %v2291_v18 = vpop.permute.xlu0 %2290 }
0x22a3   :  { %v5459_v42 = vpop.eup %5458  ;;  %v2299_v27 = vsel %vm188_vm1, %v4606_v30, %v2291_v18 }
0x22a4   :  { %1979 = vrot.lane.b32.xlu1 %v5459_v42, %s5728_s14  ;;  %v5461_v53 = vpop.eup %5460 }
0x22a5   :  { %v1957_v54 = vadd.f32 1.0, %v5461_v53 }
0x22a6   :  { %v2297_v28 = vpop.permute.xlu0 %2296 }
0x22a7   :  { %5462 = vrcp.f32 %v1957_v54 }
0x22a8   :  { %2280 = vrot.lane.b32.xlu1 %v6263_v16, %s5727_s22 }
0x22b1   :  { %v5463_v55 = vpop.eup %5462 }
0x2316   :  { %v1980_v56 = vpop.permute.xlu1 %1979 }
0x2317   :  { %v1982_v57 = vmul.f32 %v5463_v55, %v1980_v56 }
0x2319   :  { %1983 = vst.msk [vmem:[#allocation3 + $0x18] sm:$0x30] %vm574_vm6, %v1982_v57  ;;  %v1987_v58 = vrot.slane %v1982_v57, 4 }
0x231a   :  { %v2281_v63 = vpop.permute.xlu1 %2280 }
0x231b   :  { %4581 = vmatmul.mubr.msk.f32.vlgmr.msra.gmra.mrb[22].mxu0 %vm66_vm0, %v1987_v58  ;;  %v2287_v0 = vsel %vm190_vm2, %v2286_v60, %v2281_v63 }
0x231c   :  { %4995 = vmatpush1.bf16.msra.mxu0 %v6287_v25  ;;  %2388 = vmatprep.mubr.f32.mxu0 %v5726_v11  ;;  %v2288_v26 = vsel %vm192_vm3, %v2287_v0, %v2284_v3 }
0x231d   :  { %4997 = vmatprep.subr.bf16.mxu0 %v6298_v29 }
0x2320   :  { %4999 = vmatpush1.bf16.msra.mxu0 %v6306_v33 }
0x2321   :  { %5001 = vmatprep.subr.bf16.mxu0 %v6316_v36 }
0x2324   :  { %5003 = vmatpush1.bf16.msra.mxu0 %v6324_v41 }
0x2325   :  { %5005 = vmatprep.subr.bf16.mxu0 %v6335_v45 }
0x2328   :  { %5007 = vmatpush1.bf16.msra.mxu0 %v6343_v50 }
0x2329   :  { %5025 = vmatprep.subr.bf16.mxu0 %v6279_v23 }
0x232b   :  { %4623 = vmatmul.mubr.msk.f32.vlgmr.msra.gmra.mrb[24].mxu0 %vm66_vm0, %v2288_v26 }
0x232c   :  { %5027 = vmatpush1.bf16.msra.mxu0 %v6287_v25  ;;  %2621 = vmatprep.mubr.f32.mxu0 %v5726_v11 }
0x232d   :  { %5029 = vmatprep.subr.bf16.mxu0 %v6298_v29 }
0x2330   :  { %5031 = vmatpush1.bf16.msra.mxu0 %v6306_v33 }
0x2331   :  { %5033 = vmatprep.subr.bf16.mxu0 %v6316_v36 }
0x2334   :  { %5035 = vmatpush1.bf16.msra.mxu0 %v6324_v41 }
0x2335   :  { %5037 = vmatprep.subr.bf16.mxu0 %v6335_v45 }
0x2338   :  { %5039 = vmatpush1.bf16.msra.mxu0 %v6343_v50 }
0x2339   :  { %5057 = vmatprep.subr.bf16.mxu0 %v6279_v23 }
0x23ee   :  { %v2056_v5 = vpop.f32.mrb[22].mxu0 }
0x23ef   :  { %v2058_v37 = vpop.f32.mrb[23].mxu0  ;;  %v2063_v8 = vrot.slane %v2056_v5, 2 }
0x23f0   :  { %v2064_v2 = vrot.slane %v2058_v37, 2 }
0x23f1   :  { %v2067_v10 = vadd.f32 %v2063_v8, %v1984_v9  ;;  %v2433_v8 = vld [vmem:[#allocation2 + $0x8] sm:$0xc] }
0x23f2   :  { %v2068_v1 = vadd.f32 %v2064_v2, %v1985_v6 }
0x23f3   :  { %v4582_v13 = vmul.f32 -1.442695, %v2067_v10 }
0x23f4   :  { %5464 = vtanh.f32 %v2068_v1  ;;  %v4583_v19 = vmul.f32 -1.442695, %v2068_v1 }
0x23fe   :  { %v5465_v4 = vpop.eup %5464  ;;  %v2390_v39 = vpop.f32.mrb[24].mxu0 }
0x23ff   :  { %v2392_v46 = vpop.f32.mrb[25].mxu0  ;;  %2087 = vrot.lane.b32.xlu1 %v5465_v4, %s5728_s14  ;;  %v2395_v16 = vadd.f32 %v2390_v39, %v2319_v14  ;;  %v2432_v14 = vld [vmem:[#allocation2] sm:$0xc] }
0x2400   :  { %v2396_v7 = vadd.f32 %v2392_v46, %v2320_v47 }
0x2401   :  { %v4624_v17 = vmul.f32 -1.442695, %v2395_v16 }
0x2402   :  { %5466 = vtanh.f32 %v2396_v7  ;;  %v4625_v60 = vmul.f32 -1.442695, %v2396_v7 }
0x2403   :  { %2293 = vrot.lane.b32.xlu1 %v4606_v30, %s5727_s22  ;;  %5468 = vpow2.f32 %v4582_v13 }
0x240c   :  { %v5467_v51 = vpop.eup %5466 }
0x240d   :  { %2416 = vrot.lane.b32.xlu1 %v5467_v51, %s5728_s14  ;;  %v5469_v15 = vpop.eup %5468 }
0x240e   :  { %v2075_v21 = vadd.f32 1.0, %v5469_v15 }
0x2410   :  { %5470 = vrcp.f32 %v2075_v21 }
0x2411   :  { %5472 = vpow2.f32 %v4624_v17 }
0x241a   :  { %v5471_v20 = vpop.eup %5470 }
0x241b   :  { %v5473_v12 = vpop.eup %5472  ;;  %v2085_v44 = vmul.f32 %v5471_v20, %v2083_v43 }
0x241c   :  { %v2403_v31 = vadd.f32 1.0, %v5473_v12 }
0x241e   :  { %5474 = vrcp.f32 %v2403_v31 }
0x2428   :  { %v5475_v38 = vpop.eup %5474 }
0x2471   :  { %v2088_v22 = vpop.permute.xlu1 %2087 }
0x2472   :  { %v2090_v24 = vmul.f32 %v5471_v20, %v2088_v22 }
0x2474   :  { %2092 = vrot.lane.b32.xlu0 %v2090_v24, %s5728_s14 }
0x2475   :  { %v2294_v32 = vpop.permute.xlu1 %2293 }
0x2476   :  { %v2300_v34 = vsel %vm190_vm2, %v2299_v27, %v2294_v32 }
0x2477   :  { %v2301_v35 = vsel %vm192_vm3, %v2300_v34, %v2297_v28 }
0x2478   :  { %2411 = vrot.lane.b32.xlu1 %v2301_v35, %s5728_s14 }
0x247f   :  { %v2417_v40 = vpop.permute.xlu1 %2416 }
0x2480   :  { %v2419_v42 = vmul.f32 %v5475_v38, %v2417_v40 }
0x2482   :  { %2421 = vrot.lane.b32.xlu0 %v2419_v42, %s5728_s14 }
0x24e6   :  { %v2093_v48 = vpop.permute.xlu0 %2092 }
0x24e7   :  { %v6391_v49 = vadd.f32 %v2093_v48, %v2085_v44  ;;  %v2552_v48 = vld [vmem:[#allocation2 + $0x8] sm:$0x30] }
0x24e9   :  { %5476 = vtanh.f32 %v6391_v49 }
0x24ea   :  { %v2412_v53 = vpop.permute.xlu1 %2411 }
0x24eb   :  { %v2414_v54 = vmul.f32 %v5475_v38, %v2412_v53 }
0x24f3   :  { %v5477_v52 = vpop.eup %5476 }
0x24f4   :  { %2098 = vrot.lane.b32.xlu1 %v5477_v52, %s5728_s14  ;;  %v2422_v55 = vpop.permute.xlu0 %2421 }
0x24f5   :  { %v6395_v56 = vadd.f32 %v2422_v55, %v2414_v54  ;;  %v2551_v55 = vld [vmem:[#allocation2] sm:$0x30] }
0x24f7   :  { %5478 = vtanh.f32 %v6395_v56  ;;  %v2530_v20 = vrot.slane %v6395_v56, 6 }
0x24f8   :  { %5480 = vpow2.f32 %v4583_v19 }
0x2501   :  { %v5479_v57 = vpop.eup %5478 }
0x2502   :  { %2427 = vrot.lane.b32.xlu0 %v5479_v57, %s5728_s14  ;;  %v5481_v58 = vpop.eup %5480 }
0x2503   :  { %v2076_v59 = vadd.f32 1.0, %v5481_v58 }
0x2505   :  { %5482 = vrcp.f32 %v2076_v59 }
0x2506   :  { %5484 = vpow2.f32 %v4625_v60 }
0x250f   :  { %v5483_v63 = vpop.eup %5482 }
0x2510   :  { %v5485_v3 = vpop.eup %5484 }
0x2511   :  { %v2404_v30 = vadd.f32 1.0, %v5485_v3 }
0x2513   :  { %5486 = vrcp.f32 %v2404_v30 }
0x251d   :  { %v5487_v37 = vpop.eup %5486 }
0x2566   :  { %v2099_v0 = vpop.permute.xlu1 %2098 }
0x2567   :  { %v6399_v26 = vmul.f32 %v5483_v63, %v2099_v0 }
0x2569   :  { %2102 = vst.msk [vmem:[#allocation3 + $0x18] sm:$0xc0] %vm694_vm7, %v6399_v26 }
0x2570   :  { %v2132_v5 = vld [vmem:[#allocation3 + $0x18] sm:$0xff] }
0x2571   :  { %4604 = vmatmul.mubr.msk.f32.gmra.mrb[22].mxu1 %vm66_vm0, %v2132_v5 }
0x2572   :  { %2501 = vmatprep.mubr.f32.mxu1 %v5726_v11 }
0x2574   :  { %v2428_v2 = vpop.permute.xlu0 %2427 }
0x2575   :  { %v2430_v6 = vmul.f32 %v5487_v37, %v2428_v2 }
0x2577   :  { %2431 = vst.msk [vmem:[%s6748_s8] sm:$0x3] %vm335_vm4, %v2430_v6  ;;  %4626 = vmatmul.mubr.msk.f32.vlgmr.msra.gmra.mrb[24].mxu1 %vm66_vm0, %v2430_v6 }
0x2578   :  { %5043 = vmatpush1.bf16.msra.mxu1 %v6287_v25  ;;  %2741 = vmatprep.mubr.f32.mxu1 %v5726_v11 }
0x2579   :  { %5045 = vmatprep.subr.bf16.mxu1 %v6298_v29 }
0x257c   :  { %5047 = vmatpush1.bf16.msra.mxu1 %v6306_v33 }
0x257d   :  { %5049 = vmatprep.subr.bf16.mxu1 %v6316_v36 }
0x2580   :  { %5051 = vmatpush1.bf16.msra.mxu1 %v6324_v41 }
0x2581   :  { %5053 = vmatprep.subr.bf16.mxu1 %v6335_v45 }
0x2584   :  { %5055 = vmatpush1.bf16.msra.mxu1 %v6343_v50 }
0x2585   :  { %5073 = vmatprep.subr.bf16.mxu1 %v6279_v23 }
0x2644   :  { %v2259_v1 = vpop.f32.mrb[22].mxu1 }
0x2645   :  { %v2260_v4 = vadd.f32 %v2259_v1, %v6246_v61  ;;  %v2261_v39 = vpop.f32.mrb[23].mxu1 }
0x2646   :  { %v2262_v46 = vadd.f32 %v2261_v39, %v6250_v62 }
0x2647   :  { %2270 = vst [vmem:[#allocation2 + $0x30] sm:$0xff] %v2260_v4 }
0x2648   :  { %2271 = vst [vmem:[#allocation2 + $0x38] sm:$0xff] %v2262_v46 }
0x264a   :  { %v2503_v47 = vpop.f32.mrb[24].mxu1 }
0x264b   :  { %v2505_v7 = vpop.f32.mrb[25].mxu1  ;;  %v2510_v13 = vrot.slane %v2503_v47, 6 }
0x264c   :  { %v2511_v51 = vrot.slane %v2505_v7, 6 }
0x264d   :  { %v2514_v15 = vadd.f32 %v2510_v13, %v2432_v14 }
0x264e   :  { %v2515_v9 = vadd.f32 %v2511_v51, %v2433_v8 }
0x264f   :  { %v4627_v16 = vmul.f32 -1.442695, %v2514_v15  ;;  %v2671_v15 = vld [vmem:[#allocation2] sm:$0xc0] }
0x2650   :  { %5488 = vtanh.f32 %v2515_v9  ;;  %v4628_v28 = vmul.f32 -1.442695, %v2515_v9  ;;  %v2672_v9 = vld [vmem:[#allocation2 + $0x8] sm:$0xc0] }
0x2651   :  { %5490 = vpow2.f32 %v4627_v16 }
0x265a   :  { %v5489_v10 = vpop.eup %5488 }
0x265b   :  { %2534 = vrot.lane.b32.xlu1 %v5489_v10, %s5728_s14  ;;  %v5491_v61 = vpop.eup %5490 }
0x265c   :  { %v2522_v21 = vadd.f32 1.0, %v5491_v61 }
0x265e   :  { %5492 = vrcp.f32 %v2522_v21 }
0x2668   :  { %v5493_v62 = vpop.eup %5492 }
0x2669   :  { %v2532_v22 = vmul.f32 %v5493_v62, %v2530_v20 }
0x26cd   :  { %v2535_v17 = vpop.permute.xlu1 %2534 }
0x26ce   :  { %v2537_v18 = vmul.f32 %v5493_v62, %v2535_v17 }
0x26d0   :  { %2539 = vrot.lane.b32.xlu0 %v2537_v18, %s5728_s14 }
0x2742   :  { %v2540_v12 = vpop.permute.xlu0 %2539 }
0x2743   :  { %v2542_v24 = vadd.f32 %v2540_v12, %v2532_v22 }
0x2745   :  { %5494 = vtanh.f32 %v2542_v24  ;;  %v2650_v0 = vrot.slane %v2542_v24, 6 }
0x2746   :  { %5496 = vpow2.f32 %v4628_v28 }
0x274f   :  { %v5495_v27 = vpop.eup %5494 }
0x2750   :  { %2545 = vrot.lane.b32.xlu1 %v5495_v27, %s5728_s14  ;;  %v5497_v31 = vpop.eup %5496 }
0x2751   :  { %v2523_v32 = vadd.f32 1.0, %v5497_v31 }
0x2753   :  { %5498 = vrcp.f32 %v2523_v32 }
0x275d   :  { %v5499_v34 = vpop.eup %5498 }
0x27c2   :  { %v2546_v35 = vpop.permute.xlu1 %2545 }
0x27c3   :  { %v2548_v38 = vmul.f32 %v5499_v34, %v2546_v35 }
0x27c5   :  { %4629 = vst.msk [vmem:[%s6748_s8] sm:$0xc] %vm454_vm5, %v2548_v38  ;;  %v2554_v40 = vrot.slane %v2548_v38, 2 }
0x27c7   :  { %4630 = vmatmul.mubr.msk.f32.vlgmr.msra.gmra.mrb[26].mxu0 %vm66_vm0, %v2554_v40 }
0x27c8   :  { %5059 = vmatpush1.bf16.msra.mxu0 %v6287_v25  ;;  %2861 = vmatprep.mubr.f32.mxu0 %v5726_v11 }
0x27c9   :  { %5061 = vmatprep.subr.bf16.mxu0 %v6298_v29 }
0x27cc   :  { %5063 = vmatpush1.bf16.msra.mxu0 %v6306_v33 }
0x27cd   :  { %5065 = vmatprep.subr.bf16.mxu0 %v6316_v36 }
0x27d0   :  { %5067 = vmatpush1.bf16.msra.mxu0 %v6324_v41 }
0x27d1   :  { %5069 = vmatprep.subr.bf16.mxu0 %v6335_v45 }
0x27d4   :  { %5071 = vmatpush1.bf16.msra.mxu0 %v6343_v50 }
0x27d5   :  { %5089 = vmatprep.subr.bf16.mxu0 %v6279_v23 }
0x289a   :  { %v2623_v42 = vpop.f32.mrb[26].mxu0 }
0x289b   :  { %v2625_v43 = vpop.f32.mrb[27].mxu0  ;;  %v2630_v54 = vrot.slane %v2623_v42, 4 }
0x289c   :  { %v2631_v44 = vrot.slane %v2625_v43, 4 }
0x289d   :  { %v2634_v56 = vadd.f32 %v2630_v54, %v2551_v55  ;;  %v2791_v54 = vld [vmem:[#allocation2 + $0x10] sm:$0x3] }
0x289e   :  { %v2635_v52 = vadd.f32 %v2631_v44, %v2552_v48  ;;  %v2792_v44 = vld [vmem:[#allocation2 + $0x18] sm:$0x3] }
0x289f   :  { %v4631_v57 = vmul.f32 -1.442695, %v2634_v56 }
0x28a0   :  { %5500 = vtanh.f32 %v2635_v52  ;;  %v4632_v2 = vmul.f32 -1.442695, %v2635_v52 }
0x28a1   :  { %5502 = vpow2.f32 %v4631_v57 }
0x28aa   :  { %v5501_v53 = vpop.eup %5500 }
0x28ab   :  { %2654 = vrot.lane.b32.xlu0 %v5501_v53, %s5728_s14  ;;  %v5503_v19 = vpop.eup %5502 }
0x28ac   :  { %v2642_v58 = vadd.f32 1.0, %v5503_v19 }
0x28ae   :  { %5504 = vrcp.f32 %v2642_v58 }
0x28b8   :  { %v5505_v59 = vpop.eup %5504 }
0x28b9   :  { %v2652_v3 = vmul.f32 %v5505_v59, %v2650_v0 }
0x291d   :  { %v2655_v60 = vpop.permute.xlu0 %2654 }
0x291e   :  { %v2657_v63 = vmul.f32 %v5505_v59, %v2655_v60 }
0x2920   :  { %2659 = vrot.lane.b32.xlu1 %v2657_v63, %s5728_s14 }
0x2992   :  { %v2660_v30 = vpop.permute.xlu1 %2659 }
0x2993   :  { %v2662_v5 = vadd.f32 %v2660_v30, %v2652_v3 }
0x2995   :  { %5506 = vtanh.f32 %v2662_v5  ;;  %v2770_v22 = vrot.slane %v2662_v5, 6 }
0x2996   :  { %5508 = vpow2.f32 %v4632_v2 }
0x299f   :  { %v5507_v37 = vpop.eup %5506 }
0x29a0   :  { %2665 = vrot.lane.b32.xlu0 %v5507_v37, %s5728_s14  ;;  %v5509_v6 = vpop.eup %5508 }
0x29a1   :  { %v2643_v1 = vadd.f32 1.0, %v5509_v6 }
0x29a3   :  { %5510 = vrcp.f32 %v2643_v1 }
0x29ad   :  { %v5511_v4 = vpop.eup %5510 }
0x2a12   :  { %v2666_v39 = vpop.permute.xlu0 %2665 }
0x2a13   :  { %v2668_v46 = vmul.f32 %v5511_v4, %v2666_v39 }
0x2a15   :  { %4633 = vst.msk [vmem:[%s6748_s8] sm:$0x30] %vm574_vm6, %v2668_v46  ;;  %v2674_v47 = vrot.slane %v2668_v46, 4 }
0x2a17   :  { %4634 = vmatmul.mubr.msk.f32.vlgmr.msra.gmra.mrb[26].mxu1 %vm66_vm0, %v2674_v47 }
0x2a18   :  { %5075 = vmatpush1.bf16.msra.mxu1 %v6287_v25  ;;  %2974 = vmatprep.mubr.f32.mxu1 %v5726_v11 }
0x2a19   :  { %5077 = vmatprep.subr.bf16.mxu1 %v6298_v29 }
0x2a1c   :  { %5079 = vmatpush1.bf16.msra.mxu1 %v6306_v33 }
0x2a1d   :  { %5081 = vmatprep.subr.bf16.mxu1 %v6316_v36 }
0x2a20   :  { %5083 = vmatpush1.bf16.msra.mxu1 %v6324_v41 }
0x2a21   :  { %5085 = vmatprep.subr.bf16.mxu1 %v6335_v45 }
0x2a24   :  { %5087 = vmatpush1.bf16.msra.mxu1 %v6343_v50 }
0x2a25   :  { %5105 = vmatprep.subr.bf16.mxu1 %v6279_v23 }
0x2aea   :  { %v2743_v7 = vpop.f32.mrb[26].mxu1 }
0x2aeb   :  { %v2745_v51 = vpop.f32.mrb[27].mxu1  ;;  %v2750_v14 = vrot.slane %v2743_v7, 2 }
0x2aec   :  { %v2751_v8 = vrot.slane %v2745_v51, 2  ;;  %v2906_v51 = vld [vmem:[#allocation2 + $0x18] sm:$0xc] }
0x2aed   :  { %v2754_v16 = vadd.f32 %v2750_v14, %v2671_v15 }
0x2aee   :  { %v2755_v10 = vadd.f32 %v2751_v8, %v2672_v9 }
0x2aef   :  { %v4635_v61 = vmul.f32 -1.442695, %v2754_v16 }
0x2af0   :  { %5512 = vtanh.f32 %v2755_v10  ;;  %v4636_v31 = vmul.f32 -1.442695, %v2755_v10 }
0x2af1   :  { %5514 = vpow2.f32 %v4635_v61 }
0x2afa   :  { %v5513_v13 = vpop.eup %5512 }
0x2afb   :  { %2774 = vrot.lane.b32.xlu1 %v5513_v13, %s5728_s14  ;;  %v5515_v21 = vpop.eup %5514  ;;  %v2905_v13 = vld [vmem:[#allocation2 + $0x10] sm:$0xc] }
0x2afc   :  { %v2762_v62 = vadd.f32 1.0, %v5515_v21 }
0x2afe   :  { %5516 = vrcp.f32 %v2762_v62 }
0x2b08   :  { %v5517_v17 = vpop.eup %5516 }
0x2b09   :  { %v2772_v12 = vmul.f32 %v5517_v17, %v2770_v22 }
0x2b6d   :  { %v2775_v18 = vpop.permute.xlu1 %2774 }
0x2b6e   :  { %v2777_v20 = vmul.f32 %v5517_v17, %v2775_v18 }
0x2b70   :  { %2779 = vrot.lane.b32.xlu0 %v2777_v20, %s5728_s14 }
0x2be2   :  { %v2780_v24 = vpop.permute.xlu0 %2779 }
0x2be3   :  { %v2782_v27 = vadd.f32 %v2780_v24, %v2772_v12 }
0x2be5   :  { %5518 = vtanh.f32 %v2782_v27  ;;  %v2884_v63 = vrot.slane %v2782_v27, 6 }
0x2be6   :  { %5520 = vpow2.f32 %v4636_v31 }
0x2bef   :  { %v5519_v28 = vpop.eup %5518 }
0x2bf0   :  { %2785 = vrot.lane.b32.xlu1 %v5519_v28, %s5728_s14  ;;  %v5521_v32 = vpop.eup %5520 }
0x2bf1   :  { %v2763_v34 = vadd.f32 1.0, %v5521_v32 }
0x2bf3   :  { %5522 = vrcp.f32 %v2763_v34 }
0x2bfd   :  { %v5523_v35 = vpop.eup %5522 }
0x2c62   :  { %v2786_v38 = vpop.permute.xlu1 %2785 }
0x2c63   :  { %v2788_v40 = vmul.f32 %v5523_v35, %v2786_v38 }
0x2c65   :  { %4637 = vst.msk [vmem:[%s6748_s8] sm:$0xc0] %vm694_vm7, %v2788_v40  ;;  %v2794_v42 = vrot.slane %v2788_v40, 6 }
0x2c67   :  { %4638 = vmatmul.mubr.msk.f32.vlgmr.msra.gmra.mrb[28].mxu0 %vm66_vm0, %v2794_v42 }
0x2c68   :  { %5091 = vmatpush1.bf16.msra.mxu0 %v6287_v25  ;;  %3094 = vmatprep.mubr.f32.mxu0 %v5726_v11 }
0x2c69   :  { %5093 = vmatprep.subr.bf16.mxu0 %v6298_v29 }
0x2c6c   :  { %5095 = vmatpush1.bf16.msra.mxu0 %v6306_v33 }
0x2c6d   :  { %5097 = vmatprep.subr.bf16.mxu0 %v6316_v36 }
0x2c70   :  { %5099 = vmatpush1.bf16.msra.mxu0 %v6324_v41 }
0x2c71   :  { %5101 = vmatprep.subr.bf16.mxu0 %v6335_v45 }
0x2c74   :  { %5103 = vmatpush1.bf16.msra.mxu0 %v6343_v50 }
0x2c75   :  { %5121 = vmatprep.subr.bf16.mxu0 %v6279_v23 }
0x2d3a   :  { %v2863_v43 = vpop.f32.mrb[28].mxu0 }
0x2d3b   :  { %v2865_v48 = vpop.f32.mrb[29].mxu0  ;;  %v2868_v55 = vadd.f32 %v2863_v43, %v2791_v54  ;;  %v3024_v54 = vld [vmem:[#allocation2 + $0x10] sm:$0x30] }
0x2d3c   :  { %v2869_v52 = vadd.f32 %v2865_v48, %v2792_v44  ;;  %v3025_v44 = vld [vmem:[#allocation2 + $0x18] sm:$0x30] }
0x2d3d   :  { %v4639_v56 = vmul.f32 -1.442695, %v2868_v55 }
0x2d3e   :  { %5524 = vtanh.f32 %v2869_v52  ;;  %v4640_v37 = vmul.f32 -1.442695, %v2869_v52 }
0x2d3f   :  { %5526 = vpow2.f32 %v4639_v56 }
0x2d48   :  { %v5525_v53 = vpop.eup %5524 }
0x2d49   :  { %2888 = vrot.lane.b32.xlu0 %v5525_v53, %s5728_s14  ;;  %v5527_v57 = vpop.eup %5526 }
0x2d4a   :  { %v2876_v19 = vadd.f32 1.0, %v5527_v57 }
0x2d4c   :  { %5528 = vrcp.f32 %v2876_v19 }
0x2d56   :  { %v5529_v58 = vpop.eup %5528 }
0x2d57   :  { %v2886_v0 = vmul.f32 %v5529_v58, %v2884_v63 }
0x2dbb   :  { %v2889_v59 = vpop.permute.xlu0 %2888 }
0x2dbc   :  { %v2891_v60 = vmul.f32 %v5529_v58, %v2889_v59 }
0x2dbe   :  { %2893 = vrot.lane.b32.xlu1 %v2891_v60, %s5728_s14 }
0x2e30   :  { %v2894_v3 = vpop.permute.xlu1 %2893 }
0x2e31   :  { %v2896_v30 = vadd.f32 %v2894_v3, %v2886_v0 }
0x2e33   :  { %5530 = vtanh.f32 %v2896_v30  ;;  %v3003_v18 = vrot.slane %v2896_v30, 6 }
0x2e34   :  { %5532 = vpow2.f32 %v4640_v37 }
0x2e3d   :  { %v5531_v5 = vpop.eup %5530 }
0x2e3e   :  { %2899 = vrot.lane.b32.xlu0 %v5531_v5, %s5728_s14  ;;  %v5533_v2 = vpop.eup %5532 }
0x2e3f   :  { %v2877_v6 = vadd.f32 1.0, %v5533_v2 }
0x2e41   :  { %5534 = vrcp.f32 %v2877_v6 }
0x2e4b   :  { %v5535_v1 = vpop.eup %5534 }
0x2eb0   :  { %v2900_v4 = vpop.permute.xlu0 %2899 }
0x2eb1   :  { %v2902_v39 = vmul.f32 %v5535_v1, %v2900_v4 }
0x2eb3   :  { %4641 = vst.msk [vmem:[%s6748_s8 + $0x8] sm:$0x3] %vm335_vm4, %v2902_v39  ;;  %4642 = vmatmul.mubr.msk.f32.vlgmr.msra.gmra.mrb[28].mxu1 %vm66_vm0, %v2902_v39 }
0x2eb4   :  { %5107 = vmatpush1.bf16.msra.mxu1 %v6287_v25  ;;  %3214 = vmatprep.mubr.f32.mxu1 %v5726_v11 }
0x2eb5   :  { %5109 = vmatprep.subr.bf16.mxu1 %v6298_v29 }
0x2eb8   :  { %5111 = vmatpush1.bf16.msra.mxu1 %v6306_v33 }
0x2eb9   :  { %5113 = vmatprep.subr.bf16.mxu1 %v6316_v36 }
0x2ebc   :  { %5115 = vmatpush1.bf16.msra.mxu1 %v6324_v41 }
0x2ebd   :  { %5117 = vmatprep.subr.bf16.mxu1 %v6335_v45 }
0x2ec0   :  { %5119 = vmatpush1.bf16.msra.mxu1 %v6343_v50 }
0x2ec1   :  { %5137 = vmatprep.subr.bf16.mxu1 %v6279_v23 }
0x2f86   :  { %v2976_v46 = vpop.f32.mrb[28].mxu1 }
0x2f87   :  { %v2978_v47 = vpop.f32.mrb[29].mxu1  ;;  %v2983_v10 = vrot.slane %v2976_v46, 6 }
0x2f88   :  { %v2984_v7 = vrot.slane %v2978_v47, 6 }
0x2f89   :  { %v2987_v14 = vadd.f32 %v2983_v10, %v2905_v13 }
0x2f8a   :  { %v2988_v8 = vadd.f32 %v2984_v7, %v2906_v51 }
0x2f8b   :  { %v4643_v15 = vmul.f32 -1.442695, %v2987_v14  ;;  %v3144_v14 = vld [vmem:[#allocation2 + $0x10] sm:$0xc0] }
0x2f8c   :  { %5536 = vtanh.f32 %v2988_v8  ;;  %v4644_v27 = vmul.f32 -1.442695, %v2988_v8  ;;  %v3145_v8 = vld [vmem:[#allocation2 + $0x18] sm:$0xc0] }
0x2f8d   :  { %5538 = vpow2.f32 %v4643_v15 }
0x2f96   :  { %v5537_v9 = vpop.eup %5536 }
0x2f97   :  { %3007 = vrot.lane.b32.xlu1 %v5537_v9, %s5728_s14  ;;  %v5539_v16 = vpop.eup %5538 }
0x2f98   :  { %v2995_v61 = vadd.f32 1.0, %v5539_v16 }
0x2f9a   :  { %5540 = vrcp.f32 %v2995_v61 }
0x2fa4   :  { %v5541_v21 = vpop.eup %5540 }
0x2fa5   :  { %v3005_v20 = vmul.f32 %v5541_v21, %v3003_v18 }
0x3009   :  { %v3008_v62 = vpop.permute.xlu1 %3007 }
0x300a   :  { %v3010_v17 = vmul.f32 %v5541_v21, %v3008_v62 }
0x300c   :  { %3012 = vrot.lane.b32.xlu0 %v3010_v17, %s5728_s14 }
0x307e   :  { %v3013_v22 = vpop.permute.xlu0 %3012 }
0x307f   :  { %v3015_v12 = vadd.f32 %v3013_v22, %v3005_v20 }
0x3081   :  { %5542 = vtanh.f32 %v3015_v12  ;;  %v3123_v63 = vrot.slane %v3015_v12, 6 }
0x3082   :  { %5544 = vpow2.f32 %v4644_v27 }
0x308b   :  { %v5543_v24 = vpop.eup %5542 }
0x308c   :  { %3018 = vrot.lane.b32.xlu1 %v5543_v24, %s5728_s14  ;;  %v5545_v28 = vpop.eup %5544 }
0x308d   :  { %v2996_v31 = vadd.f32 1.0, %v5545_v28 }
0x308f   :  { %5546 = vrcp.f32 %v2996_v31 }
0x3099   :  { %v5547_v32 = vpop.eup %5546 }
0x30fe   :  { %v3019_v34 = vpop.permute.xlu1 %3018 }
0x30ff   :  { %v3021_v35 = vmul.f32 %v5547_v32, %v3019_v34 }
0x3101   :  { %4645 = vst.msk [vmem:[%s6748_s8 + $0x8] sm:$0xc] %vm454_vm5, %v3021_v35  ;;  %v3027_v38 = vrot.slane %v3021_v35, 2 }
0x3103   :  { %4646 = vmatmul.mubr.msk.f32.vlgmr.msra.gmra.mrb[30].mxu0 %vm66_vm0, %v3027_v38 }
0x3104   :  { %5123 = vmatpush1.bf16.msra.mxu0 %v6287_v25  ;;  %3334 = vmatprep.mubr.f32.mxu0 %v5726_v11 }
0x3105   :  { %5125 = vmatprep.subr.bf16.mxu0 %v6298_v29 }
0x3108   :  { %5127 = vmatpush1.bf16.msra.mxu0 %v6306_v33 }
0x3109   :  { %5129 = vmatprep.subr.bf16.mxu0 %v6316_v36 }
0x310c   :  { %5131 = vmatpush1.bf16.msra.mxu0 %v6324_v41 }
0x310d   :  { %5133 = vmatprep.subr.bf16.mxu0 %v6335_v45 }
0x3110   :  { %5135 = vmatpush1.bf16.msra.mxu0 %v6343_v50 }
0x3111   :  { %5153 = vmatprep.subr.bf16.mxu0 %v6279_v23 }
0x31d6   :  { %v3096_v40 = vpop.f32.mrb[30].mxu0 }
0x31d7   :  { %v3098_v42 = vpop.f32.mrb[31].mxu0  ;;  %v3103_v53 = vrot.slane %v3096_v40, 4 }
0x31d8   :  { %v3104_v43 = vrot.slane %v3098_v42, 4 }
0x31d9   :  { %v3107_v55 = vadd.f32 %v3103_v53, %v3024_v54  ;;  %v3264_v53 = vld [vmem:[#allocation2 + $0x20] sm:$0x3] }
0x31da   :  { %v3108_v48 = vadd.f32 %v3104_v43, %v3025_v44  ;;  %v3265_v43 = vld [vmem:[#allocation2 + $0x28] sm:$0x3] }
0x31db   :  { %v4647_v56 = vmul.f32 -1.442695, %v3107_v55 }
0x31dc   :  { %5548 = vtanh.f32 %v3108_v48  ;;  %v4648_v37 = vmul.f32 -1.442695, %v3108_v48 }
0x31dd   :  { %5550 = vpow2.f32 %v4647_v56 }
0x31e6   :  { %v5549_v52 = vpop.eup %5548 }
0x31e7   :  { %3127 = vrot.lane.b32.xlu0 %v5549_v52, %s5728_s14  ;;  %v5551_v57 = vpop.eup %5550 }
0x31e8   :  { %v3115_v19 = vadd.f32 1.0, %v5551_v57 }
0x31ea   :  { %5552 = vrcp.f32 %v3115_v19 }
0x31f4   :  { %v5553_v58 = vpop.eup %5552 }
0x31f5   :  { %v3125_v0 = vmul.f32 %v5553_v58, %v3123_v63 }
0x3259   :  { %v3128_v59 = vpop.permute.xlu0 %3127 }
0x325a   :  { %v3130_v60 = vmul.f32 %v5553_v58, %v3128_v59 }
0x325c   :  { %3132 = vrot.lane.b32.xlu1 %v3130_v60, %s5728_s14 }
0x32ce   :  { %v3133_v3 = vpop.permute.xlu1 %3132 }
0x32cf   :  { %v3135_v30 = vadd.f32 %v3133_v3, %v3125_v0 }
0x32d1   :  { %5554 = vtanh.f32 %v3135_v30  ;;  %v3243_v20 = vrot.slane %v3135_v30, 6 }
0x32d2   :  { %5556 = vpow2.f32 %v4648_v37 }
0x32db   :  { %v5555_v5 = vpop.eup %5554 }
0x32dc   :  { %3138 = vrot.lane.b32.xlu0 %v5555_v5, %s5728_s14  ;;  %v5557_v2 = vpop.eup %5556 }
0x32dd   :  { %v3116_v6 = vadd.f32 1.0, %v5557_v2 }
0x32df   :  { %5558 = vrcp.f32 %v3116_v6 }
0x32e9   :  { %v5559_v1 = vpop.eup %5558 }
0x334e   :  { %v3139_v4 = vpop.permute.xlu0 %3138 }
0x334f   :  { %v3141_v39 = vmul.f32 %v5559_v1, %v3139_v4 }
0x3351   :  { %4649 = vst.msk [vmem:[%s6748_s8 + $0x8] sm:$0x30] %vm574_vm6, %v3141_v39  ;;  %v3147_v46 = vrot.slane %v3141_v39, 4 }
0x3353   :  { %4650 = vmatmul.mubr.msk.f32.vlgmr.msra.gmra.mrb[30].mxu1 %vm66_vm0, %v3147_v46 }
0x3354   :  { %5139 = vmatpush1.bf16.msra.mxu1 %v6287_v25  ;;  %3447 = vmatprep.mubr.f32.mxu1 %v5726_v11 }
0x3355   :  { %5141 = vmatprep.subr.bf16.mxu1 %v6298_v29 }
0x3358   :  { %5143 = vmatpush1.bf16.msra.mxu1 %v6306_v33 }
0x3359   :  { %5145 = vmatprep.subr.bf16.mxu1 %v6316_v36 }
0x335c   :  { %5147 = vmatpush1.bf16.msra.mxu1 %v6324_v41 }
0x335d   :  { %5149 = vmatprep.subr.bf16.mxu1 %v6335_v45 }
0x3360   :  { %5151 = vmatpush1.bf16.msra.mxu1 %v6343_v50 }
0x3361   :  { %5169 = vmatprep.subr.bf16.mxu1 %v6279_v23 }
0x3426   :  { %v3216_v47 = vpop.f32.mrb[30].mxu1 }
0x3427   :  { %v3218_v7 = vpop.f32.mrb[31].mxu1  ;;  %v3223_v13 = vrot.slane %v3216_v47, 2 }
0x3428   :  { %v3224_v51 = vrot.slane %v3218_v7, 2  ;;  %v3379_v7 = vld [vmem:[#allocation2 + $0x28] sm:$0xc] }
0x3429   :  { %v3227_v15 = vadd.f32 %v3223_v13, %v3144_v14 }
0x342a   :  { %v3228_v9 = vadd.f32 %v3224_v51, %v3145_v8 }
0x342b   :  { %v4651_v16 = vmul.f32 -1.442695, %v3227_v15 }
0x342c   :  { %5560 = vtanh.f32 %v3228_v9  ;;  %v4652_v28 = vmul.f32 -1.442695, %v3228_v9 }
0x342d   :  { %5562 = vpow2.f32 %v4651_v16 }
0x3436   :  { %v5561_v10 = vpop.eup %5560 }
0x3437   :  { %3247 = vrot.lane.b32.xlu1 %v5561_v10, %s5728_s14  ;;  %v5563_v61 = vpop.eup %5562  ;;  %v3378_v10 = vld [vmem:[#allocation2 + $0x20] sm:$0xc] }
0x3438   :  { %v3235_v21 = vadd.f32 1.0, %v5563_v61 }
0x343a   :  { %5564 = vrcp.f32 %v3235_v21 }
0x3444   :  { %v5565_v62 = vpop.eup %5564 }
0x3445   :  { %v3245_v22 = vmul.f32 %v5565_v62, %v3243_v20 }
0x34a9   :  { %v3248_v17 = vpop.permute.xlu1 %3247 }
0x34aa   :  { %v3250_v18 = vmul.f32 %v5565_v62, %v3248_v17 }
0x34ac   :  { %3252 = vrot.lane.b32.xlu0 %v3250_v18, %s5728_s14 }
0x351e   :  { %v3253_v12 = vpop.permute.xlu0 %3252 }
0x351f   :  { %v3255_v24 = vadd.f32 %v3253_v12, %v3245_v22 }
0x3521   :  { %5566 = vtanh.f32 %v3255_v24  ;;  %v3357_v60 = vrot.slane %v3255_v24, 6 }
0x3522   :  { %5568 = vpow2.f32 %v4652_v28 }
0x352b   :  { %v5567_v27 = vpop.eup %5566 }
0x352c   :  { %3258 = vrot.lane.b32.xlu1 %v5567_v27, %s5728_s14  ;;  %v5569_v31 = vpop.eup %5568 }
0x352d   :  { %v3236_v32 = vadd.f32 1.0, %v5569_v31 }
0x352f   :  { %5570 = vrcp.f32 %v3236_v32 }
0x3539   :  { %v5571_v34 = vpop.eup %5570 }
0x359e   :  { %v3259_v35 = vpop.permute.xlu1 %3258 }
0x359f   :  { %v3261_v38 = vmul.f32 %v5571_v34, %v3259_v35 }
0x35a1   :  { %4653 = vst.msk [vmem:[%s6748_s8 + $0x8] sm:$0xc0] %vm694_vm7, %v3261_v38  ;;  %v3267_v40 = vrot.slane %v3261_v38, 6 }
0x35a3   :  { %4654 = vmatmul.mubr.msk.f32.vlgmr.msra.gmra.mrb[32].mxu0 %vm66_vm0, %v3267_v40 }
0x35a4   :  { %5155 = vmatpush1.bf16.msra.mxu0 %v6287_v25  ;;  %3567 = vmatprep.mubr.f32.mxu0 %v5726_v11 }
0x35a5   :  { %5157 = vmatprep.subr.bf16.mxu0 %v6298_v29 }
0x35a8   :  { %5159 = vmatpush1.bf16.msra.mxu0 %v6306_v33 }
0x35a9   :  { %5161 = vmatprep.subr.bf16.mxu0 %v6316_v36 }
0x35ac   :  { %5163 = vmatpush1.bf16.msra.mxu0 %v6324_v41 }
0x35ad   :  { %5165 = vmatprep.subr.bf16.mxu0 %v6335_v45 }
0x35b0   :  { %5167 = vmatpush1.bf16.msra.mxu0 %v6343_v50 }
0x35b1   :  { %5185 = vmatprep.subr.bf16.mxu0 %v6279_v23 }
0x3676   :  { %v3336_v42 = vpop.f32.mrb[32].mxu0 }
0x3677   :  { %v3338_v44 = vpop.f32.mrb[33].mxu0  ;;  %v3341_v54 = vadd.f32 %v3336_v42, %v3264_v53  ;;  %v3497_v53 = vld [vmem:[#allocation2 + $0x20] sm:$0x30] }
0x3678   :  { %v3342_v48 = vadd.f32 %v3338_v44, %v3265_v43  ;;  %v3498_v43 = vld [vmem:[#allocation2 + $0x28] sm:$0x30] }
0x3679   :  { %v4655_v55 = vmul.f32 -1.442695, %v3341_v54 }
0x367a   :  { %5572 = vtanh.f32 %v3342_v48  ;;  %v4656_v5 = vmul.f32 -1.442695, %v3342_v48 }
0x367b   :  { %5574 = vpow2.f32 %v4655_v55 }
0x3684   :  { %v5573_v52 = vpop.eup %5572 }
0x3685   :  { %3361 = vrot.lane.b32.xlu0 %v5573_v52, %s5728_s14  ;;  %v5575_v56 = vpop.eup %5574 }
0x3686   :  { %v3349_v57 = vadd.f32 1.0, %v5575_v56 }
0x3688   :  { %5576 = vrcp.f32 %v3349_v57 }
0x3692   :  { %v5577_v19 = vpop.eup %5576 }
0x3693   :  { %v3359_v63 = vmul.f32 %v5577_v19, %v3357_v60 }
0x36f7   :  { %v3362_v58 = vpop.permute.xlu0 %3361 }
0x36f8   :  { %v3364_v59 = vmul.f32 %v5577_v19, %v3362_v58 }
0x36fa   :  { %3366 = vrot.lane.b32.xlu1 %v3364_v59, %s5728_s14 }
0x376c   :  { %v3367_v0 = vpop.permute.xlu1 %3366 }
0x376d   :  { %v3369_v3 = vadd.f32 %v3367_v0, %v3359_v63 }
0x376f   :  { %5578 = vtanh.f32 %v3369_v3  ;;  %v3476_v17 = vrot.slane %v3369_v3, 6 }
0x3770   :  { %5580 = vpow2.f32 %v4656_v5 }
0x3779   :  { %v5579_v30 = vpop.eup %5578 }
0x377a   :  { %3372 = vrot.lane.b32.xlu0 %v5579_v30, %s5728_s14  ;;  %v5581_v37 = vpop.eup %5580 }
0x377b   :  { %v3350_v2 = vadd.f32 1.0, %v5581_v37 }
0x377d   :  { %5582 = vrcp.f32 %v3350_v2 }
0x3787   :  { %v5583_v6 = vpop.eup %5582 }
0x37ec   :  { %v3373_v1 = vpop.permute.xlu0 %3372 }
0x37ed   :  { %v3375_v4 = vmul.f32 %v5583_v6, %v3373_v1 }
0x37ef   :  { %4657 = vst.msk [vmem:[%s6748_s8 + $0x10] sm:$0x3] %vm335_vm4, %v3375_v4  ;;  %4658 = vmatmul.mubr.msk.f32.vlgmr.msra.gmra.mrb[32].mxu1 %vm66_vm0, %v3375_v4 }
0x37f0   :  { %5171 = vmatpush1.bf16.msra.mxu1 %v6287_v25  ;;  %3687 = vmatprep.mubr.f32.mxu1 %v5726_v11 }
0x37f1   :  { %5173 = vmatprep.subr.bf16.mxu1 %v6298_v29 }
0x37f4   :  { %5175 = vmatpush1.bf16.msra.mxu1 %v6306_v33 }
0x37f5   :  { %5177 = vmatprep.subr.bf16.mxu1 %v6316_v36 }
0x37f8   :  { %5179 = vmatpush1.bf16.msra.mxu1 %v6324_v41 }
0x37f9   :  { %5181 = vmatprep.subr.bf16.mxu1 %v6335_v45 }
0x37fc   :  { %5183 = vmatpush1.bf16.msra.mxu1 %v6343_v50 }
0x37fd   :  { %5201 = vmatprep.subr.bf16.mxu1 %v6279_v23 }
0x38c2   :  { %v3449_v39 = vpop.f32.mrb[32].mxu1 }
0x38c3   :  { %v3451_v46 = vpop.f32.mrb[33].mxu1  ;;  %v3456_v9 = vrot.slane %v3449_v39, 6 }
0x38c4   :  { %v3457_v47 = vrot.slane %v3451_v46, 6 }
0x38c5   :  { %v3460_v13 = vadd.f32 %v3456_v9, %v3378_v10 }
0x38c6   :  { %v3461_v51 = vadd.f32 %v3457_v47, %v3379_v7 }
0x38c7   :  { %v4659_v14 = vmul.f32 -1.442695, %v3460_v13  ;;  %v3617_v13 = vld [vmem:[#allocation2 + $0x20] sm:$0xc0] }
0x38c8   :  { %5584 = vtanh.f32 %v3461_v51  ;;  %v4660_v24 = vmul.f32 -1.442695, %v3461_v51  ;;  %v3618_v51 = vld [vmem:[#allocation2 + $0x28] sm:$0xc0] }
0x38c9   :  { %5586 = vpow2.f32 %v4659_v14 }
0x38d2   :  { %v5585_v8 = vpop.eup %5584 }
0x38d3   :  { %3480 = vrot.lane.b32.xlu1 %v5585_v8, %s5728_s14  ;;  %v5587_v15 = vpop.eup %5586 }
0x38d4   :  { %v3468_v16 = vadd.f32 1.0, %v5587_v15 }
0x38d6   :  { %5588 = vrcp.f32 %v3468_v16 }
0x38e0   :  { %v5589_v61 = vpop.eup %5588 }
0x38e1   :  { %v3478_v18 = vmul.f32 %v5589_v61, %v3476_v17 }
0x3945   :  { %v3481_v21 = vpop.permute.xlu1 %3480 }
0x3946   :  { %v3483_v62 = vmul.f32 %v5589_v61, %v3481_v21 }
0x3948   :  { %3485 = vrot.lane.b32.xlu0 %v3483_v62, %s5728_s14 }
0x39ba   :  { %v3486_v20 = vpop.permute.xlu0 %3485 }
0x39bb   :  { %v3488_v22 = vadd.f32 %v3486_v20, %v3478_v18 }
0x39bd   :  { %5590 = vtanh.f32 %v3488_v22  ;;  %v3596_v60 = vrot.slane %v3488_v22, 6 }
0x39be   :  { %5592 = vpow2.f32 %v4660_v24 }
0x39c7   :  { %v5591_v12 = vpop.eup %5590 }
0x39c8   :  { %3491 = vrot.lane.b32.xlu1 %v5591_v12, %s5728_s14  ;;  %v5593_v27 = vpop.eup %5592 }
0x39c9   :  { %v3469_v28 = vadd.f32 1.0, %v5593_v27 }
0x39cb   :  { %5594 = vrcp.f32 %v3469_v28 }
0x39d5   :  { %v5595_v31 = vpop.eup %5594 }
0x3a3a   :  { %v3492_v32 = vpop.permute.xlu1 %3491 }
0x3a3b   :  { %v3494_v34 = vmul.f32 %v5595_v31, %v3492_v32 }
0x3a3d   :  { %4661 = vst.msk [vmem:[%s6748_s8 + $0x10] sm:$0xc] %vm454_vm5, %v3494_v34  ;;  %v3500_v35 = vrot.slane %v3494_v34, 2 }
0x3a3f   :  { %4662 = vmatmul.mubr.msk.f32.vlgmr.msra.gmra.mrb[34].mxu0 %vm66_vm0, %v3500_v35 }
0x3a40   :  { %5187 = vmatpush1.bf16.msra.mxu0 %v6287_v25  ;;  %3807 = vmatprep.mubr.f32.mxu0 %v5726_v11 }
0x3a41   :  { %5189 = vmatprep.subr.bf16.mxu0 %v6298_v29 }
0x3a44   :  { %5191 = vmatpush1.bf16.msra.mxu0 %v6306_v33 }
0x3a45   :  { %5193 = vmatprep.subr.bf16.mxu0 %v6316_v36 }
0x3a48   :  { %5195 = vmatpush1.bf16.msra.mxu0 %v6324_v41 }
0x3a49   :  { %5197 = vmatprep.subr.bf16.mxu0 %v6335_v45 }
0x3a4c   :  { %5199 = vmatpush1.bf16.msra.mxu0 %v6343_v50 }
0x3a4d   :  { %5217 = vmatprep.subr.bf16.mxu0 %v6279_v23 }
0x3b12   :  { %v3569_v38 = vpop.f32.mrb[34].mxu0 }
0x3b13   :  { %v3571_v40 = vpop.f32.mrb[35].mxu0  ;;  %v3576_v52 = vrot.slane %v3569_v38, 4 }
0x3b14   :  { %v3577_v42 = vrot.slane %v3571_v40, 4  ;;  %v3738_v40 = vld [vmem:[#allocation2 + $0x38] sm:$0x3] }
0x3b15   :  { %v3580_v54 = vadd.f32 %v3576_v52, %v3497_v53 }
0x3b16   :  { %v3581_v44 = vadd.f32 %v3577_v42, %v3498_v43 }
0x3b17   :  { %v4663_v55 = vmul.f32 -1.442695, %v3580_v54 }
0x3b18   :  { %5596 = vtanh.f32 %v3581_v44  ;;  %v4664_v5 = vmul.f32 -1.442695, %v3581_v44 }
0x3b19   :  { %5598 = vpow2.f32 %v4663_v55 }
0x3b22   :  { %v5597_v48 = vpop.eup %5596 }
0x3b23   :  { %3600 = vrot.lane.b32.xlu0 %v5597_v48, %s5728_s14  ;;  %v5599_v56 = vpop.eup %5598  ;;  %v3737_v48 = vld [vmem:[#allocation2 + $0x30] sm:$0x3] }
0x3b24   :  { %v3588_v57 = vadd.f32 1.0, %v5599_v56 }
0x3b26   :  { %5600 = vrcp.f32 %v3588_v57 }
0x3b30   :  { %v5601_v19 = vpop.eup %5600 }
0x3b31   :  { %v3598_v63 = vmul.f32 %v5601_v19, %v3596_v60 }
0x3b95   :  { %v3601_v58 = vpop.permute.xlu0 %3600 }
0x3b96   :  { %v3603_v59 = vmul.f32 %v5601_v19, %v3601_v58 }
0x3b98   :  { %3605 = vrot.lane.b32.xlu1 %v3603_v59, %s5728_s14 }
0x3c0a   :  { %v3606_v0 = vpop.permute.xlu1 %3605 }
0x3c0b   :  { %v3608_v3 = vadd.f32 %v3606_v0, %v3598_v63 }
0x3c0d   :  { %5602 = vtanh.f32 %v3608_v3  ;;  %v3716_v17 = vrot.slane %v3608_v3, 6 }
0x3c0e   :  { %5604 = vpow2.f32 %v4664_v5 }
0x3c17   :  { %v5603_v30 = vpop.eup %5602 }
0x3c18   :  { %3611 = vrot.lane.b32.xlu0 %v5603_v30, %s5728_s14  ;;  %v5605_v37 = vpop.eup %5604 }
0x3c19   :  { %v3589_v2 = vadd.f32 1.0, %v5605_v37 }
0x3c1b   :  { %5606 = vrcp.f32 %v3589_v2 }
0x3c25   :  { %v5607_v6 = vpop.eup %5606 }
0x3c8a   :  { %v3612_v1 = vpop.permute.xlu0 %3611 }
0x3c8b   :  { %v3614_v4 = vmul.f32 %v5607_v6, %v3612_v1 }
0x3c8d   :  { %4665 = vst.msk [vmem:[%s6748_s8 + $0x10] sm:$0x30] %vm574_vm6, %v3614_v4  ;;  %v3620_v39 = vrot.slane %v3614_v4, 4 }
0x3c8f   :  { %4666 = vmatmul.mubr.msk.f32.vlgmr.msra.gmra.mrb[34].mxu1 %vm66_vm0, %v3620_v39 }
0x3c90   :  { %5203 = vmatpush1.bf16.msra.mxu1 %v6287_v25  ;;  %3920 = vmatprep.mubr.f32.mxu1 %v5726_v11 }
0x3c91   :  { %5205 = vmatprep.subr.bf16.mxu1 %v6298_v29 }
0x3c94   :  { %5207 = vmatpush1.bf16.msra.mxu1 %v6306_v33 }
0x3c95   :  { %5209 = vmatprep.subr.bf16.mxu1 %v6316_v36 }
0x3c98   :  { %5211 = vmatpush1.bf16.msra.mxu1 %v6324_v41 }
0x3c99   :  { %5213 = vmatprep.subr.bf16.mxu1 %v6335_v45 }
0x3c9c   :  { %5215 = vmatpush1.bf16.msra.mxu1 %v6343_v50 }
0x3c9d   :  { %5233 = vmatprep.subr.bf16.mxu1 %v6279_v23 }
0x3d62   :  { %v3689_v46 = vpop.f32.mrb[34].mxu1 }
0x3d63   :  { %v3691_v47 = vpop.f32.mrb[35].mxu1  ;;  %v3696_v10 = vrot.slane %v3689_v46, 2  ;;  %v3852_v46 = vld [vmem:[#allocation2 + $0x38] sm:$0xc] }
0x3d64   :  { %v3697_v7 = vrot.slane %v3691_v47, 2 }
0x3d65   :  { %v3700_v14 = vadd.f32 %v3696_v10, %v3617_v13 }
0x3d66   :  { %v3701_v8 = vadd.f32 %v3697_v7, %v3618_v51  ;;  %v3851_v7 = vld [vmem:[#allocation2 + $0x30] sm:$0xc] }
0x3d67   :  { %v4667_v15 = vmul.f32 -1.442695, %v3700_v14 }
0x3d68   :  { %5608 = vtanh.f32 %v3701_v8  ;;  %v4668_v24 = vmul.f32 -1.442695, %v3701_v8 }
0x3d69   :  { %5610 = vpow2.f32 %v4667_v15 }
0x3d72   :  { %v5609_v9 = vpop.eup %5608 }
0x3d73   :  { %3720 = vrot.lane.b32.xlu1 %v5609_v9, %s5728_s14  ;;  %v5611_v16 = vpop.eup %5610 }
0x3d74   :  { %v3708_v61 = vadd.f32 1.0, %v5611_v16 }
0x3d76   :  { %5612 = vrcp.f32 %v3708_v61 }
0x3d80   :  { %v5613_v21 = vpop.eup %5612 }
0x3d81   :  { %v3718_v18 = vmul.f32 %v5613_v21, %v3716_v17 }
0x3de5   :  { %v3721_v62 = vpop.permute.xlu1 %3720 }
0x3de6   :  { %v3723_v23 = vmul.f32 %v5613_v21, %v3721_v62 }
0x3de8   :  { %3725 = vrot.lane.b32.xlu0 %v3723_v23, %s5728_s14 }
0x3e5a   :  { %v3726_v20 = vpop.permute.xlu0 %3725 }
0x3e5b   :  { %v3728_v22 = vadd.f32 %v3726_v20, %v3718_v18 }
0x3e5d   :  { %5614 = vtanh.f32 %v3728_v22  ;;  %v3830_v58 = vrot.slane %v3728_v22, 6 }
0x3e5e   :  { %5616 = vpow2.f32 %v4668_v24  ;;  %v3971_v24 = vld [vmem:[#allocation2 + $0x38] sm:$0x30] }
0x3e67   :  { %v5615_v12 = vpop.eup %5614 }
0x3e68   :  { %3731 = vrot.lane.b32.xlu1 %v5615_v12, %s5728_s14  ;;  %v5617_v27 = vpop.eup %5616 }
0x3e69   :  { %v3709_v28 = vadd.f32 1.0, %v5617_v27 }
0x3e6b   :  { %5618 = vrcp.f32 %v3709_v28 }
0x3e75   :  { %v5619_v31 = vpop.eup %5618 }
0x3eda   :  { %v3732_v32 = vpop.permute.xlu1 %3731 }
0x3edb   :  { %v3734_v34 = vmul.f32 %v5619_v31, %v3732_v32  ;;  %v3970_v32 = vld [vmem:[#allocation2 + $0x30] sm:$0x30] }
0x3edd   :  { %4669 = vst.msk [vmem:[%s6748_s8 + $0x10] sm:$0xc0] %vm694_vm7, %v3734_v34  ;;  %v3740_v35 = vrot.slane %v3734_v34, 6 }
0x3edf   :  { %4670 = vmatmul.mubr.msk.f32.vlgmr.msra.gmra.mrb[36].mxu0 %vm66_vm0, %v3740_v35 }
0x3ee0   :  { %5219 = vmatpush1.bf16.msra.mxu0 %v6287_v25  ;;  %4040 = vmatprep.mubr.f32.mxu0 %v5726_v11 }
0x3ee1   :  { %5221 = vmatprep.subr.bf16.mxu0 %v6298_v29 }
0x3ee4   :  { %5223 = vmatpush1.bf16.msra.mxu0 %v6306_v33 }
0x3ee5   :  { %5225 = vmatprep.subr.bf16.mxu0 %v6316_v36 }
0x3ee8   :  { %5227 = vmatpush1.bf16.msra.mxu0 %v6324_v41 }
0x3ee9   :  { %5229 = vmatprep.subr.bf16.mxu0 %v6335_v45 }
0x3eec   :  { %5231 = vmatpush1.bf16.msra.mxu0 %v6343_v50 }
0x3fb2   :  { %v3809_v38 = vpop.f32.mrb[36].mxu0 }
0x3fb3   :  { %v3811_v42 = vpop.f32.mrb[37].mxu0  ;;  %v3814_v52 = vadd.f32 %v3809_v38, %v3737_v48 }
0x3fb4   :  { %v3815_v43 = vadd.f32 %v3811_v42, %v3738_v40 }
0x3fb5   :  { %v4671_v53 = vmul.f32 -1.442695, %v3814_v52 }
0x3fb6   :  { %5620 = vtanh.f32 %v3815_v43  ;;  %v4672_v3 = vmul.f32 -1.442695, %v3815_v43 }
0x3fb7   :  { %5622 = vpow2.f32 %v4671_v53 }
0x3fc0   :  { %v5621_v44 = vpop.eup %5620 }
0x3fc1   :  { %3834 = vrot.lane.b32.xlu0 %v5621_v44, %s5728_s14  ;;  %v5623_v54 = vpop.eup %5622 }
0x3fc2   :  { %v3822_v55 = vadd.f32 1.0, %v5623_v54 }
0x3fc4   :  { %5624 = vrcp.f32 %v3822_v55 }
0x3fce   :  { %v5625_v56 = vpop.eup %5624 }
0x3fcf   :  { %v3832_v59 = vmul.f32 %v5625_v56, %v3830_v58 }
0x4033   :  { %v3835_v57 = vpop.permute.xlu0 %3834 }
0x4034   :  { %v3837_v19 = vmul.f32 %v5625_v56, %v3835_v57 }
0x4036   :  { %3839 = vrot.lane.b32.xlu1 %v3837_v19, %s5728_s14 }
0x40a8   :  { %v3840_v60 = vpop.permute.xlu1 %3839 }
0x40a9   :  { %v3842_v63 = vadd.f32 %v3840_v60, %v3832_v59 }
0x40ab   :  { %5626 = vtanh.f32 %v3842_v63  ;;  %v3949_v9 = vrot.slane %v3842_v63, 6 }
0x40ac   :  { %5628 = vpow2.f32 %v4672_v3 }
0x40b5   :  { %v5627_v0 = vpop.eup %5626 }
0x40b6   :  { %3845 = vrot.lane.b32.xlu0 %v5627_v0, %s5728_s14  ;;  %v5629_v30 = vpop.eup %5628 }
0x40b7   :  { %v3823_v5 = vadd.f32 1.0, %v5629_v30 }
0x40b9   :  { %5630 = vrcp.f32 %v3823_v5  ;;  %v4091_v5 = vld [vmem:[#allocation2 + $0x38] sm:$0xc0] }
0x40c3   :  { %v5631_v37 = vpop.eup %5630 }
0x4128   :  { %v3846_v2 = vpop.permute.xlu0 %3845 }
0x4129   :  { %v3848_v6 = vmul.f32 %v5631_v37, %v3846_v2 }
0x412b   :  { %4673 = vst.msk [vmem:[%s6748_s8 + $0x18] sm:$0x3] %vm335_vm4, %v3848_v6  ;;  %4674 = vmatmul.mubr.msk.f32.vlgmr.msra.gmra.mrb[36].mxu1 %vm66_vm0, %v3848_v6 }
0x412c   :  { %5235 = vmatpush1.bf16.msra.mxu1 %v6287_v25  ;;  %4160 = vmatprep.mubr.f32.mxu1 %v5726_v11 }
0x412d   :  { %5237 = vmatprep.subr.bf16.mxu1 %v6298_v29 }
0x4130   :  { %5239 = vmatpush1.bf16.msra.mxu1 %v6306_v33 }
0x4131   :  { %5241 = vmatprep.subr.bf16.mxu1 %v6316_v36 }
0x4134   :  { %5243 = vmatpush1.bf16.msra.mxu1 %v6324_v41 }
0x4135   :  { %5245 = vmatprep.subr.bf16.mxu1 %v6335_v45 }
0x4138   :  { %5247 = vmatpush1.bf16.msra.mxu1 %v6343_v50 }
0x41fe   :  { %v3922_v1 = vpop.f32.mrb[36].mxu1 }
0x41ff   :  { %v3924_v4 = vpop.f32.mrb[37].mxu1  ;;  %v3929_v29 = vrot.slane %v3922_v1, 6  ;;  %v4090_v1 = vld [vmem:[#allocation2 + $0x30] sm:$0xc0] }
0x4200   :  { %v3930_v39 = vrot.slane %v3924_v4, 6 }
0x4201   :  { %v3933_v33 = vadd.f32 %v3929_v29, %v3851_v7 }
0x4202   :  { %v3934_v47 = vadd.f32 %v3930_v39, %v3852_v46 }
0x4203   :  { %v4675_v51 = vmul.f32 -1.442695, %v3933_v33 }
0x4204   :  { %5632 = vtanh.f32 %v3934_v47  ;;  %v4676_v16 = vmul.f32 -1.442695, %v3934_v47 }
0x4205   :  { %5634 = vpow2.f32 %v4675_v51 }
0x420e   :  { %v5633_v25 = vpop.eup %5632 }
0x420f   :  { %3953 = vrot.lane.b32.xlu1 %v5633_v25, %s5728_s14  ;;  %v5635_v36 = vpop.eup %5634 }
0x4210   :  { %v3941_v41 = vadd.f32 1.0, %v5635_v36 }
0x4212   :  { %5636 = vrcp.f32 %v3941_v41 }
0x421c   :  { %v5637_v45 = vpop.eup %5636 }
0x421d   :  { %v3951_v10 = vmul.f32 %v5637_v45, %v3949_v9 }
0x4281   :  { %v3954_v8 = vpop.permute.xlu1 %3953 }
0x4282   :  { %v3956_v50 = vmul.f32 %v5637_v45, %v3954_v8 }
0x4284   :  { %3958 = vrot.lane.b32.xlu0 %v3956_v50, %s5728_s14 }
0x42f6   :  { %v3959_v13 = vpop.permute.xlu0 %3958 }
0x42f7   :  { %v3961_v14 = vadd.f32 %v3959_v13, %v3951_v10 }
0x42f9   :  { %5638 = vtanh.f32 %v3961_v14  ;;  %v4069_v48 = vrot.slane %v3961_v14, 6 }
0x42fa   :  { %5640 = vpow2.f32 %v4676_v16 }
0x4303   :  { %v5639_v15 = vpop.eup %5638 }
0x4304   :  { %3964 = vrot.lane.b32.xlu1 %v5639_v15, %s5728_s14  ;;  %v5641_v61 = vpop.eup %5640 }
0x4305   :  { %v3942_v21 = vadd.f32 1.0, %v5641_v61 }
0x4307   :  { %5642 = vrcp.f32 %v3942_v21 }
0x4311   :  { %v5643_v62 = vpop.eup %5642 }
0x4376   :  { %v3965_v23 = vpop.permute.xlu1 %3964 }
0x4377   :  { %v3967_v17 = vmul.f32 %v5643_v62, %v3965_v23 }
0x4379   :  { %4677 = vst.msk [vmem:[%s6748_s8 + $0x18] sm:$0xc] %vm454_vm5, %v3967_v17  ;;  %v3973_v18 = vrot.slane %v3967_v17, 2 }
0x437b   :  { %4678 = vmatmul.mubr.msk.f32.vlgmr.msra.gmra.mrb[38].mxu0 %vm66_vm0, %v3973_v18  ;;  %v4258_v18 = vld [vmem:[%s6746_s6] sm:$0xff] }
0x437c   :  { %4701 = vmatprep.mubr.msk.f32.mxu0 %vm5733_vm8, %v5726_v11 }
0x444e   :  { %v4042_v20 = vpop.f32.mrb[38].mxu0 }
0x444f   :  { %v4044_v22 = vpop.f32.mrb[39].mxu0  ;;  %v4049_v31 = vrot.slane %v4042_v20, 4 }
0x4450   :  { %v4050_v12 = vrot.slane %v4044_v22, 4  ;;  %v5732_v22 = vmov 0.0|0.0  }
0x4451   :  { %v4053_v34 = vadd.f32 %v4049_v31, %v3970_v32  ;;  %5248 = vmatprep.subr.bf16.mxu0 %v5732_v22 }
0x4452   :  { %v4054_v27 = vadd.f32 %v4050_v12, %v3971_v24  ;;  %v4260_v24 = vld [vmem:[%s6746_s6 + $0x10] sm:$0xff] }
0x4453   :  { %v4679_v35 = vmul.f32 -1.442695, %v4053_v34 }
0x4454   :  { %5644 = vtanh.f32 %v4054_v27  ;;  %v4680_v56 = vmul.f32 -1.442695, %v4054_v27  ;;  %v4261_v27 = vld [vmem:[%s6746_s6 + $0x18] sm:$0xff] }
0x4455   :  { %5646 = vpow2.f32 %v4679_v35 }
0x445e   :  { %v5645_v28 = vpop.eup %5644 }
0x445f   :  { %4073 = vrot.lane.b32.xlu0 %v5645_v28, %s5728_s14  ;;  %v5647_v38 = vpop.eup %5646  ;;  %v5252_v28 = vpack.c.bf16 %v4261_v27, %v4260_v24 }
0x4460   :  { %v4061_v40 = vadd.f32 1.0, %v5647_v38 }
0x4462   :  { %5648 = vrcp.f32 %v4061_v40 }
0x446c   :  { %v5649_v42 = vpop.eup %5648 }
0x446d   :  { %v4071_v52 = vmul.f32 %v5649_v42, %v4069_v48 }
0x44d1   :  { %v4074_v43 = vpop.permute.xlu0 %4073 }
0x44d2   :  { %v4076_v44 = vmul.f32 %v5649_v42, %v4074_v43 }
0x44d4   :  { %4078 = vrot.lane.b32.xlu1 %v4076_v44, %s5728_s14 }
0x4546   :  { %v4079_v53 = vpop.permute.xlu1 %4078 }
0x4547   :  { %v4081_v54 = vadd.f32 %v4079_v53, %v4071_v52 }
0x4549   :  { %5650 = vtanh.f32 %v4081_v54  ;;  %v4189_v33 = vrot.slane %v4081_v54, 6 }
0x454a   :  { %5652 = vpow2.f32 %v4680_v56 }
0x4553   :  { %v5651_v55 = vpop.eup %5650 }
0x4554   :  { %4084 = vrot.lane.b32.xlu0 %v5651_v55, %s5728_s14  ;;  %v5653_v57 = vpop.eup %5652 }
0x4555   :  { %v4062_v19 = vadd.f32 1.0, %v5653_v57 }
0x4557   :  { %5654 = vrcp.f32 %v4062_v19 }
0x4561   :  { %v5655_v58 = vpop.eup %5654 }
0x45c6   :  { %v4085_v59 = vpop.permute.xlu0 %4084 }
0x45c7   :  { %v4087_v60 = vmul.f32 %v5655_v58, %v4085_v59 }
0x45c9   :  { %4681 = vst.msk [vmem:[%s6748_s8 + $0x18] sm:$0x30] %vm574_vm6, %v4087_v60  ;;  %v4093_v63 = vrot.slane %v4087_v60, 4 }
0x45cb   :  { %4682 = vmatmul.mubr.msk.f32.vlgmr.msra.gmra.mrb[38].mxu1 %vm66_vm0, %v4093_v63 }
0x469e   :  { %v4162_v0 = vpop.f32.mrb[38].mxu1 }
0x469f   :  { %v4164_v3 = vpop.f32.mrb[39].mxu1  ;;  %v4169_v6 = vrot.slane %v4162_v0, 2 }
0x46a0   :  { %v4170_v30 = vrot.slane %v4164_v3, 2 }
0x46a1   :  { %v4173_v4 = vadd.f32 %v4169_v6, %v4090_v1 }
0x46a2   :  { %v4174_v37 = vadd.f32 %v4170_v30, %v4091_v5 }
0x46a3   :  { %v4683_v39 = vmul.f32 -1.442695, %v4173_v4 }
0x46a4   :  { %5656 = vtanh.f32 %v4174_v37  ;;  %v4684_v8 = vmul.f32 -1.442695, %v4174_v37 }
0x46a5   :  { %5658 = vpow2.f32 %v4683_v39 }
0x46ae   :  { %v5657_v2 = vpop.eup %5656 }
0x46af   :  { %4193 = vrot.lane.b32.xlu1 %v5657_v2, %s5728_s14  ;;  %v5659_v46 = vpop.eup %5658 }
0x46b0   :  { %v4181_v47 = vadd.f32 1.0, %v5659_v46 }
0x46b2   :  { %5660 = vrcp.f32 %v4181_v47 }
0x46bc   :  { %v5661_v25 = vpop.eup %5660 }
0x46bd   :  { %v4191_v51 = vmul.f32 %v5661_v25, %v4189_v33 }
0x4721   :  { %v4194_v29 = vpop.permute.xlu1 %4193 }
0x4722   :  { %v4196_v7 = vmul.f32 %v5661_v25, %v4194_v29 }
0x4724   :  { %4198 = vrot.lane.b32.xlu0 %v4196_v7, %s5728_s14 }
0x4728   :  { %2117 = vrot.lane.b32.xlu0 %v6391_v49, %s5729_s5 }
0x4796   :  { %v4199_v36 = vpop.permute.xlu0 %4198 }
0x4797   :  { %v4201_v41 = vadd.f32 %v4199_v36, %v4191_v51 }
0x4799   :  { %5662 = vtanh.f32 %v4201_v41  ;;  %4224 = vrot.lane.b32.xlu0 %v4201_v41, %s5729_s5 }
0x479a   :  { %5664 = vpow2.f32 %v4684_v8  ;;  %v2118_v15 = vpop.permute.xlu0 %2117 }
0x479b   :  { %v2120_v21 = vadd.f32 %v2118_v15, %v6391_v49 }
0x479d   :  { %2125 = vrot.lane.b32.xlu0 %v6391_v49, %s5730_s24 }
0x47a3   :  { %v5663_v45 = vpop.eup %5662 }
0x47a4   :  { %4204 = vrot.lane.b32.xlu1 %v5663_v45, %s5728_s14  ;;  %v5665_v50 = vpop.eup %5664 }
0x47a5   :  { %v4182_v9 = vadd.f32 1.0, %v5665_v50 }
0x47a7   :  { %5666 = vrcp.f32 %v4182_v9 }
0x47a8   :  { %2121 = vrot.lane.b32.xlu1 %v6391_v49, %s5731_s0  ;;  %v4259_v49 = vld [vmem:[%s6746_s6 + $0x8] sm:$0xff] }
0x47a9   :  { %v5249_v20 = vpack.c.bf16 %v4259_v49, %v4258_v18 }
0x47ab   :  { %5250 = vmatpush3.bf16.msra.mxu0 %v5249_v20 }
0x47ac   :  { %4228 = vrot.lane.b32.xlu1 %v4201_v41, %s5731_s0  ;;  %5251 = vmatprep.subr.bf16.mxu0 %v5732_v22 }
0x47af   :  { %5253 = vmatpush3.bf16.msra.mxu0 %v5252_v28 }
0x47b1   :  { %v5667_v10 = vpop.eup %5666 }
0x480b   :  { %v4225_v16 = vpop.permute.xlu0 %4224 }
0x480c   :  { %v4227_v40 = vadd.f32 %v4225_v16, %v4201_v41 }
0x480f   :  { %v2126_v23 = vpop.permute.xlu0 %2125 }
0x4816   :  { %v4205_v13 = vpop.permute.xlu1 %4204 }
0x4817   :  { %v4207_v14 = vmul.f32 %v5667_v10, %v4205_v13 }
0x4819   :  { %4685 = vst.msk [vmem:[%s6748_s8 + $0x18] sm:$0xc0] %vm694_vm7, %v4207_v14  ;;  %4215 = vrot.lane.b32.xlu0 %v4207_v14, %s5731_s0  ;;  %4211 = vrot.lane.b32.xlu1 %v4207_v14, %s5729_s5 }
0x481a   :  { %v2122_v61 = vpop.permute.xlu1 %2121 }
0x481b   :  { %v2124_v62 = vadd.f32 %v2122_v61, %v2120_v21 }
0x481d   :  { %4232 = vrot.lane.b32.xlu0 %v4201_v41, %s5730_s24  ;;  %4219 = vrot.lane.b32.xlu1 %v4207_v14, %s5730_s24  ;;  %v2128_v17 = vadd.f32 %v2126_v23, %v2124_v62 }
0x481e   :  { %v4229_v12 = vpop.permute.xlu1 %4228 }
0x481f   :  { %v4231_v44 = vadd.f32 %v4229_v12, %v4227_v40 }
0x4821   :  { %2108 = vrot.lane.b32.xlu0 %v6399_v26, %s5731_s0  ;;  %2104 = vrot.lane.b32.xlu1 %v6399_v26, %s5729_s5 }
0x4825   :  { %2112 = vrot.lane.b32.xlu1 %v6399_v26, %s5730_s24 }
0x4829   :  { %4242 = vrot.lane.b32.xlu1 %v2128_v17, %s5728_s14 }
0x488b   :  { %v4216_v31 = vpop.permute.xlu0 %4215  ;;  %v4212_v32 = vpop.permute.xlu1 %4211 }
0x488c   :  { %v4214_v34 = vadd.f32 %v4212_v32, %v4207_v14 }
0x488e   :  { %v4218_v35 = vadd.f32 %v4216_v31, %v4214_v34 }
0x488f   :  { %v4220_v38 = vpop.permute.xlu1 %4219  ;;  %v4233_v43 = vpop.permute.xlu0 %4232 }
0x4890   :  { %v4222_v42 = vadd.f32 %v4220_v38, %v4218_v35  ;;  %v4235_v48 = vadd.f32 %v4233_v43, %v4231_v44 }
0x4892   :  { %4237 = vrot.lane.b32.xlu0 %v4222_v42, %s5724_s19 }
0x4893   :  { %v2105_v52 = vpop.permute.xlu1 %2104  ;;  %v2109_v54 = vpop.permute.xlu0 %2108 }
0x4894   :  { %v2107_v53 = vadd.f32 %v2105_v52, %v6399_v26  ;;  %v4686_v26 = vld [vmem:[%s6747_s7] ss:$0 sm:$0xff] }
0x4896   :  { %4246 = vrot.lane.b32.xlu0 %v4235_v48, %s5730_s24  ;;  %v2111_v55 = vadd.f32 %v2109_v54, %v2107_v53 }
0x4897   :  { %v2113_v56 = vpop.permute.xlu1 %2112 }
0x4898   :  { %v2115_v11 = vadd.f32 %v2113_v56, %v2111_v55 }
0x489b   :  { %v4243_v58 = vpop.permute.xlu1 %4242 }
0x4904   :  { %v4238_v57 = vpop.permute.xlu0 %4237 }
0x4905   :  { %v4240_v19 = vsel %vm188_vm1, %v2115_v11, %v4238_v57 }
0x4906   :  { %v4251_v63 = vrot.slane %v4240_v19, 6 }
0x4908   :  { %v4247_v59 = vpop.permute.xlu0 %4246 }
0x4909   :  { %v4249_v60 = vsel %vm188_vm1, %v4243_v58, %v4247_v59 }
0x490a   :  { %v4254_v0 = vrot.slane %v4249_v60, 4 }
0x490c   :  { %v4257_v3 = vsel %vm4256_vm9, %v4251_v63, %v4254_v0 }
0x490d   :  { %4702 = vmatmul.mubr.msk.f32.vlgmr.msra.gmra.mrb[40].mxu0 %vm190_vm2, %v4257_v3 }
0x49e0   :  { %v4338_v30 = vpop.f32.mrb[40].mxu0 }
0x49e1   :  { %v4339_v5 = vadd.f32 %v4686_v26, %v4338_v30  ;;  %v4703_v37 = vpop.f32.mrb[41].mxu0 }
0x49e3   :  { %v6685_v2 = vmax.f32 %v4339_v5, 0.0 }
0x49e5   :  { %v4344_v6 = vsel %vm4343_vm10, %v6685_v2, 0.0  ;;  %v4375_v1 = vrot.slane %v6685_v2, 2 }
0x49e6   :  { %4345 = vadd.xlane.f32.xlu1 %v4344_v6 }
0x49e7   :  { %v4377_v8 = vsel %vm4343_vm10, %v4375_v1, 0.0 }
0x49f7   :  { %4411 = vrot.lane.b32.xlu1 %v6685_v2, %s5734_s13 }
0x49fb   :  { %4453 = vrot.lane.b32.xlu1 %v4375_v1, %s5734_s13 }
0x4a73   :  { %v4346_v4 = vpop.xlane.xlu1 %4345 }
0x4a74   :  { %v4347_v39 = vrot.slane %v4346_v4, 4 }
0x4a76   :  { %v4348_v46 = vadd.f32 %v4347_v39, %v4346_v4 }
0x4a77   :  { %v4412_v35 = vpop.permute.xlu1 %4411 }
0x4a78   :  { %v4349_v47 = vrot.slane %v4348_v46, 2  ;;  %v4414_v42 = vsel %vm4343_vm10, %v4412_v35, 0.0 }
0x4a7a   :  { %v4350_v25 = vadd.f32 %v4349_v47, %v4348_v46 }
0x4a7b   :  { %v4454_v4 = vpop.permute.xlu1 %4453 }
0x4a7c   :  { %v4351_v29 = vrot.slane %v4350_v25, 1  ;;  %v4456_v39 = vsel %vm4343_vm10, %v4454_v4, 0.0 }
0x4a7e   :  { %v4352_v7 = vadd.f32 %v4351_v29, %v4350_v25 }
0x4a80   :  { %5254 = vpush %v4352_v7 }
0x4ab1   :  { %s5255_s7 = spop %5254 }
0x4ab2   :  { %v4354_v33 = vstv %s5255_s7 }
0x4ab3   :  { %v4355_v51 = vmul.f32 0.0625, %v4354_v33 }
0x4ab5   :  { %v4356_v36 = vsub.f32 %v6685_v2, %v4355_v51 }
0x4ab7   :  { %v4357_v41 = vmul.f32 %v4356_v36, %v4356_v36 }
0x4ab9   :  { %v4358_v45 = vsel %vm4343_vm10, %v4357_v41, 0.0 }
0x4aba   :  { %4359 = vadd.xlane.f32.xlu0 %v4358_v45 }
0x4abe   :  { %4378 = vadd.xlane.f32.xlu0 %v4377_v8 }
0x4b47   :  { %v4360_v50 = vpop.xlane.xlu0 %4359 }
0x4b48   :  { %v4361_v9 = vrot.slane %v4360_v50, 4 }
0x4b4a   :  { %v4362_v10 = vadd.f32 %v4361_v9, %v4360_v50 }
0x4b4b   :  { %v4379_v13 = vpop.xlane.xlu0 %4378 }
0x4b4c   :  { %v4363_v14 = vrot.slane %v4362_v10, 2  ;;  %v4380_v15 = vrot.slane %v4379_v13, 4 }
0x4b4e   :  { %v4381_v16 = vadd.f32 %v4380_v15, %v4379_v13  ;;  %v4364_v61 = vadd.f32 %v4363_v14, %v4362_v10 }
0x4b50   :  { %v4382_v21 = vrot.slane %v4381_v16, 2  ;;  %v4365_v62 = vrot.slane %v4364_v61, 1 }
0x4b52   :  { %v4366_v23 = vadd.f32 %v4365_v62, %v4364_v61  ;;  %v4383_v17 = vadd.f32 %v4382_v21, %v4381_v16 }
0x4b54   :  { %5256 = vpush %v4366_v23  ;;  %v4384_v18 = vrot.slane %v4383_v17, 1 }
0x4b56   :  { %v4385_v49 = vadd.f32 %v4384_v18, %v4383_v17 }
0x4b58   :  { %5258 = vpush %v4385_v49 }
0x4b85   :  { %s5257_s15 = spop %5256 }
0x4b86   :  { %v4368_v20 = vstv %s5257_s15 }
0x4b87   :  { %v4369_v22 = vmul.f32 0.0625, %v4368_v20 }
0x4b89   :  { %v4370_v12 = vadd.f32 1e-05, %v4369_v22  ;;  %s5259_s16 = spop %5258 }
0x4b8a   :  { %v4387_v24 = vstv %s5259_s16 }
0x4b8b   :  { %5668 = vrsqrt.f32 %v4370_v12  ;;  %v4388_v27 = vmul.f32 0.0625, %v4387_v24 }
0x4b8d   :  { %v4389_v28 = vsub.f32 %v6685_v2, %v4388_v27 }
0x4b8f   :  { %v4390_v31 = vmul.f32 %v4389_v28, %v4389_v28 }
0x4b91   :  { %v4392_v32 = vrot.slane %v4390_v31, 2 }
0x4b93   :  { %v4394_v34 = vsel %vm4343_vm10, %v4392_v32, 0.0 }
0x4b94   :  { %4395 = vadd.xlane.f32.xlu0 %v4394_v34 }
0x4b95   :  { %v5669_v38 = vpop.eup %5668 }
0x4b96   :  { %v4372_v40 = vmul.f32 %v5669_v38, %v4356_v36 }
0x4b98   :  { %4415 = vadd.xlane.f32.xlu0 %v4414_v42  ;;  %4373 = vst.msk [vmem:[#allocation4] sm:$0x3] %vm4343_vm10, %v4372_v40 }
0x4c21   :  { %v4396_v43 = vpop.xlane.xlu0 %4395 }
0x4c22   :  { %v4397_v44 = vrot.slane %v4396_v43, 4 }
0x4c24   :  { %v4398_v48 = vadd.f32 %v4397_v44, %v4396_v43 }
0x4c25   :  { %v4416_v52 = vpop.xlane.xlu0 %4415 }
0x4c26   :  { %v4399_v53 = vrot.slane %v4398_v48, 2  ;;  %v4417_v54 = vrot.slane %v4416_v52, 4 }
0x4c28   :  { %v4418_v55 = vadd.f32 %v4417_v54, %v4416_v52  ;;  %v4400_v56 = vadd.f32 %v4399_v53, %v4398_v48 }
0x4c2a   :  { %v4419_v57 = vrot.slane %v4418_v55, 2  ;;  %v4401_v11 = vrot.slane %v4400_v56, 1 }
0x4c2c   :  { %v4402_v19 = vadd.f32 %v4401_v11, %v4400_v56  ;;  %v4420_v58 = vadd.f32 %v4419_v57, %v4418_v55 }
0x4c2e   :  { %5260 = vpush %v4402_v19  ;;  %v4421_v59 = vrot.slane %v4420_v58, 1 }
0x4c30   :  { %v4422_v60 = vadd.f32 %v4421_v59, %v4420_v58 }
0x4c32   :  { %5262 = vpush %v4422_v60 }
0x4c5f   :  { %s5261_s4 = spop %5260 }
0x4c60   :  { %v4404_v63 = vstv %s5261_s4 }
0x4c61   :  { %v4405_v0 = vmul.f32 0.0625, %v4404_v63 }
0x4c63   :  { %v4406_v3 = vadd.f32 1e-05, %v4405_v0  ;;  %s5263_s17 = spop %5262 }
0x4c64   :  { %v4424_v26 = vstv %s5263_s17 }
0x4c65   :  { %5670 = vrsqrt.f32 %v4406_v3  ;;  %v4425_v30 = vmul.f32 0.0625, %v4424_v26 }
0x4c67   :  { %v4426_v5 = vsub.f32 %v6685_v2, %v4425_v30 }
0x4c69   :  { %v4427_v37 = vmul.f32 %v4426_v5, %v4426_v5 }
0x4c6b   :  { %4429 = vrot.lane.b32.xlu0 %v4427_v37, %s5734_s13 }
0x4c6f   :  { %v5671_v6 = vpop.eup %5670 }
0x4c70   :  { %v4408_v1 = vmul.f32 %v5671_v6, %v4389_v28 }
0x4c72   :  { %4410 = vst.msk [vmem:[#allocation6 - $0x2] sm:$0xc] %vm4409_vm11, %v4408_v1 }
0x4c8a   :  { %4457 = vadd.xlane.f32.xlu0 %v4456_v39 }
0x4cdd   :  { %v4430_v46 = vpop.permute.xlu0 %4429 }
0x4cde   :  { %v4432_v47 = vsel %vm4343_vm10, %v4430_v46, 0.0 }
0x4cdf   :  { %4433 = vadd.xlane.f32.xlu1 %v4432_v47 }
0x4d17   :  { %v4458_v25 = vpop.xlane.xlu0 %4457 }
0x4d18   :  { %v4459_v29 = vrot.slane %v4458_v25, 4 }
0x4d1a   :  { %v4460_v7 = vadd.f32 %v4459_v29, %v4458_v25 }
0x4d1c   :  { %v4461_v33 = vrot.slane %v4460_v7, 2 }
0x4d1e   :  { %v4462_v45 = vadd.f32 %v4461_v33, %v4460_v7 }
0x4d20   :  { %v4463_v9 = vrot.slane %v4462_v45, 1 }
0x4d22   :  { %v4464_v14 = vadd.f32 %v4463_v9, %v4462_v45 }
0x4d6c   :  { %v4434_v51 = vpop.xlane.xlu1 %4433 }
0x4d6d   :  { %v4435_v36 = vrot.slane %v4434_v51, 4 }
0x4d6f   :  { %v4436_v41 = vadd.f32 %v4435_v36, %v4434_v51 }
0x4d71   :  { %v4437_v8 = vrot.slane %v4436_v41, 2 }
0x4d73   :  { %v4438_v50 = vadd.f32 %v4437_v8, %v4436_v41 }
0x4d75   :  { %v4439_v10 = vrot.slane %v4438_v50, 1 }
0x4d77   :  { %v4440_v13 = vadd.f32 %v4439_v10, %v4438_v50 }
0x4d79   :  { %5264 = vpush %v4440_v13 }
0x4d7a   :  { %5266 = vpush %v4464_v14 }
0x4daa   :  { %s5265_s2 = spop %5264 }
0x4dab   :  { %s5267_s26 = spop %5266  ;;  %v4442_v23 = vstv %s5265_s2 }
0x4dac   :  { %v4466_v15 = vstv %s5267_s26  ;;  %v4443_v18 = vmul.f32 0.0625, %v4442_v23 }
0x4dad   :  { %v4467_v16 = vmul.f32 0.0625, %v4466_v15 }
0x4dae   :  { %v4444_v20 = vadd.f32 1e-05, %v4443_v18 }
0x4daf   :  { %v4468_v61 = vsub.f32 %v6685_v2, %v4467_v16 }
0x4db0   :  { %5672 = vrsqrt.f32 %v4444_v20 }
0x4db1   :  { %v4469_v21 = vmul.f32 %v4468_v61, %v4468_v61 }
0x4db3   :  { %v4471_v62 = vrot.slane %v4469_v21, 2 }
0x4db5   :  { %4472 = vrot.lane.b32.xlu1 %v4471_v62, %s5734_s13 }
0x4dba   :  { %v5673_v22 = vpop.eup %5672 }
0x4dbb   :  { %v4446_v12 = vmul.f32 %v5673_v22, %v4426_v5 }
0x4e27   :  { %v4473_v17 = vpop.permute.xlu1 %4472 }
0x4e28   :  { %v4475_v49 = vsel %vm4343_vm10, %v4473_v17, 0.0 }
0x4e29   :  { %4476 = vadd.xlane.f32.xlu0 %v4475_v49 }
0x4e3f   :  { %4448 = vrot.lane.b32.xlu0 %v4446_v12, %s5734_s13 }
0x4eb6   :  { %v4477_v24 = vpop.xlane.xlu0 %4476 }
0x4eb7   :  { %v4478_v27 = vrot.slane %v4477_v24, 4 }
0x4eb9   :  { %v4479_v28 = vadd.f32 %v4478_v27, %v4477_v24 }
0x4eba   :  { %v4449_v2 = vpop.permute.xlu0 %4448 }
0x4ebb   :  { %v4480_v31 = vrot.slane %v4479_v28, 2  ;;  %4452 = vst.msk [vmem:[#allocation4 + $0x2] sm:$0x3] %vm4343_vm10, %v4449_v2 }
0x4ebd   :  { %v4481_v32 = vadd.f32 %v4480_v31, %v4479_v28 }
0x4ebf   :  { %v4482_v34 = vrot.slane %v4481_v32, 1 }
0x4ec1   :  { %v4483_v35 = vadd.f32 %v4482_v34, %v4481_v32 }
0x4ec3   :  { %5268 = vpush %v4483_v35 }
0x4ef4   :  { %s5269_s18 = spop %5268 }
0x4ef5   :  { %v4485_v38 = vstv %s5269_s18 }
0x4ef6   :  { %v4486_v40 = vmul.f32 0.0625, %v4485_v38 }
0x4ef8   :  { %v4487_v42 = vadd.f32 1e-05, %v4486_v40 }
0x4efa   :  { %5674 = vrsqrt.f32 %v4487_v42 }
0x4efb   :  { %5687 = shalt.err (!%p5684_p4)
}
0x4efc   :  { %s5688_s24 = scalar_lea.hbm %s6749_s9, 64 }
0x4efd   :  { %p5689_p5 = scmp.ne.s32.totalorder %s6749_s9, %s5688_s24  ;;  %p5692_p6 = scmp.lt.u32.totalorder %s5688_s24, %s6749_s9 }
0x4eff   :  { %p5694_p7 = pnand %p5692_p6, %p5689_p5 }
0x4f01   :  { %5697 = shalt.err (!%p5694_p7)
}
0x4f02   :  { %s5736_s28 = smov 2   ;;  %s5737_s30 = smov [#allocation6]  }
0x4f03   :  { %4509 = dma.vmem_to_hbm [thread:$0]  %s4504_s21, 64, %s6749_s9, [#allocation5], %s5727_s22, %s5727_s22, %s5736_s28  }
0x4f04   :  { %v5675_v43 = vpop.eup %5674  ;;  %s4515_s11 = sshll.u32 %s5737_s30, 4  ;;  %s4516_s11 = int_to_ptr.vmem [resolvable:$true] %s4515_s11 }
0x4f05   :  { %v4489_v44 = vmul.f32 %v5675_v43, %v4468_v61  ;;  %s5698_s12 = scalar_lea.vmem %s4516_s11, 64  ;;  %p5703_p9 = scmp.lt.s32.totalorder %s4516_s11, %s4516_s11 }
0x4f06   :  { %p5699_p8 = scmp.ne.s32.totalorder %s4516_s11, %s5698_s12  ;;  %p5704_p10 = scmp.lt.s32.totalorder %s5698_s12, %s5698_s12 }
0x4f07   :  { %4491 = vrot.lane.b32.xlu1 %v4489_v44, %s5734_s13 }
0x4f08   :  { %p5705_p11 = por %p5704_p10, %p5703_p9 }
0x4f0a   :  { %p5706_p12 = pnand %p5705_p11, %p5699_p8 }
0x4f79   :  { %v4492_v48 = vpop.permute.xlu1 %4491 }
0x4f7a   :  { %4495 = vst.msk [vmem:[#allocation6] sm:$0xc] %vm4409_vm11, %v4492_v48 }
0x4f7b   :  { %5709 = shalt.err (!%p5706_p12)
}
0x4f7c   :  { %s5710_s9 = scalar_lea.hbm %s6750_s10, 64 }
0x4f7d   :  { %p5711_p13 = scmp.ne.s32.totalorder %s6750_s10, %s5710_s9  ;;  %p5714_p0 = scmp.lt.u32.totalorder %s5710_s9, %s6750_s10 }
0x4f7f   :  { %p5716_p1 = pnand %p5714_p0, %p5711_p13 }
0x4f81   :  { %5719 = shalt.err (!%p5716_p1)
}
0x4f82   :  { %4521 = dma.vmem_to_hbm [thread:$0]  %s4516_s11, 64, %s6750_s10, [#allocation7], %s5727_s22, %s5727_s22, %s5736_s28  }
0x4f83   :  { %5720 = dma.done.wait [#allocation5], 64  }
0x4f84   :  { %5721 = vsyncadd [#allocation5], 4294967232 }
0x4f85   :  { %5722 = dma.done.wait [#allocation7], 64  }
0x4f86   :  { %5723 = vsyncadd [#allocation7], 4294967232 }
0x4f87   :  { %4530 = vsyncpa [#allocation5], 1 }
0x4f88   :  { %4531 = vsyncpa [#allocation7], 1 }

</bundles_post_ra>
